<compile_context>
chip_gen: v5e
topology: v5e:2x2
jax: 0.10.0
libtpu: 0.0.40
codegen_flags: <defaults>
</compile_context>

<pallas_src>
import functools
import numpy as np
import jax
import jax.numpy as jnp
from jax.experimental import pallas as pl
from jax.experimental.pallas import tpu as pltpu


def _round_up(x, m):
    return (x + m - 1) // m * m


def _pad2d(a, rows, cols):
    return jnp.pad(a, ((0, rows - a.shape[0]), (0, cols - a.shape[1])))


# --------------------- pass A: Linear + ReLU + per-tile stats --------------------- #

def _layer_fwd_kernel(*refs, n_in, m_real, tile_m):
    """One M-tile of y = relu(affine(x) @ W + b); emits y (bf16) and column stats.

    refs = (x_0..x_{n-1}, aff_0..aff_{n-1}, w_0..w_{n-1}, b, y_out, stats_out)
      x_i    : (tile_m, Kp_i)  bf16   activation tile (previous layer's pre-BN y)
      aff_i  : (8, Kp_i)       f32    row0 = BN scale of previous layer, row1 = shift
      w_i    : (Kp_i, Np)      bf16   weight slice for input i
      b      : (8, Np)         f32    row0 = bias
      y_out  : (tile_m, Np)    bf16   pre-BN activation of this layer
      stats  : (1, 8, Np)      f32    row0 = sum(y), row1 = sum(y^2) over real rows
    """
    xs = refs[0:n_in]
    affs = refs[n_in:2 * n_in]
    ws = refs[2 * n_in:3 * n_in]
    b_ref = refs[3 * n_in]
    y_ref = refs[3 * n_in + 1]
    stats_ref = refs[3 * n_in + 2]

    acc = None
    for i in range(n_in):
        scale = affs[i][0:1, :]                                   # (1, Kp) f32
        shift = affs[i][1:2, :]
        xin = (xs[i][...].astype(jnp.float32) * scale + shift).astype(jnp.bfloat16)
        part = jnp.dot(xin, ws[i][...], preferred_element_type=jnp.float32)
        acc = part if acc is None else acc + part

    y = jnp.maximum(acc + b_ref[0:1, :], 0.0)                     # (tile_m, Np) f32

    # Row mask (pad rows of the last tile contribute nothing to the batch stats).
    row0 = pl.program_id(0) * tile_m
    rows = row0 + jax.lax.broadcasted_iota(jnp.int32, (tile_m, 1), 0)
    mask = (rows < m_real).astype(jnp.float32)
    ym = y * mask
    s = jnp.sum(ym, axis=0, keepdims=True)                        # (1, Np)
    ss = jnp.sum(ym * ym, axis=0, keepdims=True)                  # (1, Np)

    y_ref[...] = y.astype(y_ref.dtype)
    np_dim = y.shape[1]
    stats_ref[0] = jnp.concatenate(
        [s, ss, jnp.zeros((6, np_dim), jnp.float32)], axis=0)


def _linear_relu_stats(xs, affs, ws, b_pack, *, tile, nt, m_real, n_p):
    n_in = len(xs)
    mp = xs[0].shape[0]

    args, in_specs = [], []
    for x in xs:
        args.append(x)
        in_specs.append(pl.BlockSpec((tile, x.shape[1]), lambda i: (i, 0)))
    for a in affs:
        args.append(a)
        in_specs.append(pl.BlockSpec(a.shape, lambda i: (0, 0)))
    for w in ws:
        args.append(w)
        in_specs.append(pl.BlockSpec(w.shape, lambda i: (0, 0)))
    args.append(b_pack)
    in_specs.append(pl.BlockSpec(b_pack.shape, lambda i: (0, 0)))

    out_shape = (jax.ShapeDtypeStruct((mp, n_p), jnp.bfloat16),
                 jax.ShapeDtypeStruct((nt, 8, n_p), jnp.float32))
    out_specs = (pl.BlockSpec((tile, n_p), lambda i: (i, 0)),
                 pl.BlockSpec((1, 8, n_p), lambda i: (i, 0, 0)))

    # Advisory cost + per-tile VMEM budget (x2 for double buffering + margin).
    flops = int(2 * mp * n_p * sum(int(w.shape[0]) for w in ws))
    hbm_bytes = int(sum(int(a.size) * a.dtype.itemsize for a in args)
                    + mp * n_p * 2 + nt * 8 * n_p * 4)
    block_bytes = int(sum(tile * int(x.shape[1]) * 2 for x in xs)
                      + sum(int(a.size) * 4 for a in affs)
                      + sum(int(w.size) * 2 for w in ws)
                      + int(b_pack.size) * 4
                      + tile * n_p * 2 + 8 * n_p * 4)
    vmem_limit = int(min(48 * 1024 * 1024,
                         max(16 * 1024 * 1024, 2 * block_bytes + (4 << 20))))

    kernel = functools.partial(_layer_fwd_kernel, n_in=n_in,
                               m_real=int(m_real), tile_m=int(tile))
    return pl.pallas_call(
        kernel,
        out_shape=out_shape,
        grid=(nt,),
        in_specs=in_specs,
        out_specs=out_specs,
        compiler_params=pltpu.CompilerParams(
            dimension_semantics=("parallel",),
            vmem_limit_bytes=vmem_limit),
        cost_estimate=pl.CostEstimate(flops=flops, transcendentals=0,
                                      bytes_accessed=hbm_bytes),
    )(*args)


# ----------------- epilogue: final BN affine (+ optional residual) ----------------- #

def _affine_out_kernel(*refs, has_residual):
    if has_residual:
        y_ref, aff_ref, r_ref, o_ref = refs
    else:
        y_ref, aff_ref, o_ref = refs
    y = y_ref[...].astype(jnp.float32)
    out = y * aff_ref[0:1, :] + aff_ref[1:2, :]
    if has_residual:
        out = out + r_ref[...].astype(jnp.float32)
    o_ref[...] = out.astype(o_ref.dtype)


def _affine_epilogue(y, aff, residual, *, tile, nt, out_dtype):
    mp, n_p = y.shape
    args = [y, aff]
    in_specs = [pl.BlockSpec((tile, n_p), lambda i: (i, 0)),
                pl.BlockSpec(aff.shape, lambda i: (0, 0))]
    has_res = residual is not None
    if has_res:
        args.append(residual)
        in_specs.append(pl.BlockSpec((tile, n_p), lambda i: (i, 0)))

    out_itemsize = jnp.dtype(out_dtype).itemsize
    block_bytes = int(tile * n_p * 2 + int(aff.size) * 4
                      + (tile * n_p * 4 if has_res else 0) + tile * n_p * out_itemsize)
    vmem_limit = int(min(48 * 1024 * 1024,
                         max(16 * 1024 * 1024, 2 * block_bytes + (2 << 20))))

    return pl.pallas_call(
        functools.partial(_affine_out_kernel, has_residual=has_res),
        out_shape=jax.ShapeDtypeStruct((mp, n_p), out_dtype),
        grid=(nt,),
        in_specs=in_specs,
        out_specs=pl.BlockSpec((tile, n_p), lambda i: (i, 0)),
        compiler_params=pltpu.CompilerParams(
            dimension_semantics=("parallel",),
            vmem_limit_bytes=vmem_limit),
    )(*args)


# ------------------------- multi_layer_neural_network_fn ------------------------- #

def mlnn_stack(inputs, layers, *, residual=None, out_dtype=jnp.float32,
               eps=1e-5, max_tile_m=256):
    """(Linear -> ReLU -> BatchNorm1d(training stats)) x L, row-tiled.

    inputs  : list of [M, K_i] arrays (first layer consumes their concat logically;
              the concat is never materialized — the layer-0 weight is split).
    layers  : list of (w[K, N], b[N], gamma[N], beta[N]).
    residual: optional [M, N_last] array added after the final BatchNorm.
    """
    m_real = int(inputs[0].shape[0])
    raw_widths = [int(x.shape[1]) for x in inputs]
    out_width = int(layers[-1][0].shape[1])

    tile = min(max_tile_m, _round_up(max(m_real, 16), 16))
    mp = _round_up(m_real, tile)
    nt = mp // tile

    # Row+lane padded bf16 inputs; identity input-affine for the first layer.
    cur_x = [_pad2d(x.astype(jnp.bfloat16), mp, _round_up(w, 128))
             for x, w in zip(inputs, raw_widths)]
    cur_widths = list(raw_widths)
    cur_aff = [jnp.zeros((8, x.shape[1]), jnp.float32).at[0, :].set(1.0) for x in cur_x]

    for (w, b, gamma, beta) in layers:
        n_raw = int(w.shape[1])
        n_p = _round_up(n_raw, 128)

        # Split the weight along the contraction dim per current input and pad.
        w_splits, off = [], 0
        for x, ki in zip(cur_x, cur_widths):
            w_splits.append(_pad2d(w[off:off + ki].astype(jnp.bfloat16),
                                   int(x.shape[1]), n_p))
            off += ki
        b_pack = jnp.zeros((8, n_p), jnp.float32).at[0, :n_raw].set(
            b.astype(jnp.float32))

        y, stats = _linear_relu_stats(cur_x, cur_aff, w_splits, b_pack,
                                      tile=tile, nt=nt, m_real=m_real, n_p=n_p)

        # Global (cross-tile) BatchNorm statistics: tiny [n_p] reduction in JAX.
        sums = jnp.sum(stats[:, 0, :], axis=0)
        sumsq = jnp.sum(stats[:, 1, :], axis=0)
        mean = sums / m_real
        var = jnp.maximum(sumsq / m_real - mean * mean, 0.0)   # biased variance
        inv = jax.lax.rsqrt(var + eps)
        gamma_p = jnp.zeros((n_p,), jnp.float32).at[:n_raw].set(gamma.astype(jnp.float32))
        beta_p = jnp.zeros((n_p,), jnp.float32).at[:n_raw].set(beta.astype(jnp.float32))
        scale = gamma_p * inv
        shift = beta_p - mean * scale
        aff = (jnp.zeros((8, n_p), jnp.float32)
               .at[0, :].set(scale).at[1, :].set(shift))

        cur_x, cur_widths, cur_aff = [y], [n_raw], [aff]

    res_p = None
    if residual is not None:
        res_p = _pad2d(residual.astype(jnp.float32), mp, int(cur_x[0].shape[1]))
    out = _affine_epilogue(cur_x[0], cur_aff[0], res_p,
                           tile=tile, nt=nt, out_dtype=out_dtype)
    return out[:m_real, :out_width]


# ------------------------------ module building blocks ----------------------------- #

def max_aggregation(features, index, l):
    # TODO(synk): data-dependent scatter-max kept in plain JAX (jax.ops.segment_max);
    # matches torch_scatter.scatter_max into a zero-initialized `out` buffer
    # (empty segments -> 0, negative maxima clamped to 0).
    seg = jax.ops.segment_max(features, index, num_segments=l)
    return jnp.maximum(seg, 0.0)


def graph_net_auto_center(params, v_feat, v_coord, keypoint_indices, edges):
    """GraphNetAutoCenter.forward."""
    # TODO(synk): edge src/dst gathers kept in plain JAX; could be folded into the
    # edge kernel via scalar-prefetch row gather at realistic edge counts.
    s_feat = v_feat[edges[:, 0]]
    s_coord = v_coord[edges[:, 0]]                                # original coords
    offset = mlnn_stack([v_feat], params["auto_offset"])          # [N, 3] f32
    new_coord = v_coord + offset
    d_coord = new_coord[edges[:, 1]]
    coord_diff = s_coord - d_coord                                # [E, 3]
    # First edge layer consumes (s_feat, coord_diff) directly; the [E, 303] concat
    # is never written to HBM.  Edge features stay bf16 for the segment max.
    edge_feat = mlnn_stack([s_feat, coord_diff], params["edge"],
                           out_dtype=jnp.bfloat16)                # [E, 300] bf16
    agg = max_aggregation(edge_feat, edges[:, 1], keypoint_indices.shape[0])
    # Residual add is fused into the update stack's epilogue kernel.
    upd = mlnn_stack([agg], params["update"], residual=v_feat)    # [N, 300] f32
    return upd


# ---------------------------------- parameter init --------------------------------- #

def init_linear(key, fan_in, fan_out):
    kw, kb = jax.random.split(key)
    w = jax.random.normal(kw, (fan_in, fan_out), jnp.float32) * (1.0 / np.sqrt(fan_in))
    b = jax.random.normal(kb, (fan_out,), jnp.float32) * 0.001
    return w, b


def init_mlnn(key, Ks):
    layers = []
    keys = jax.random.split(key, len(Ks) - 1)
    for i in range(1, len(Ks)):
        w, b = init_linear(keys[i - 1], Ks[i - 1], Ks[i])
        layers.append((w, b,
                       jnp.ones((Ks[i],), jnp.float32),
                       jnp.zeros((Ks[i],), jnp.float32)))
    return layers


def init_graph_net_params(key):
    ka, ke, ku = jax.random.split(key, 3)
    return {
        "auto_offset": init_mlnn(ka, [300, 64, 3]),
        "edge": init_mlnn(ke, [303, 300, 300]),
        "update": init_mlnn(ku, [300, 300, 300]),
    }


# ------------------------------- pure-JAX f32 reference ------------------------------ #

def _mlnn_ref(x, layers, eps=1e-5):
    for (w, b, g, be) in layers:
        y = jnp.maximum(x @ w + b, 0.0)
        mean = jnp.mean(y, axis=0)
        var = jnp.mean((y - mean) ** 2, axis=0)
        x = (y - mean) * jax.lax.rsqrt(var + eps) * g + be
    return x


def _reference_forward(params, v_feat, v_coord, keypoint_indices, edges):
    s_feat = v_feat[edges[:, 0]]
    s_coord = v_coord[edges[:, 0]]
    offset = _mlnn_ref(v_feat, params["auto_offset"])
    vc = v_coord + offset
    d_coord = vc[edges[:, 1]]
    ef = jnp.concatenate([s_feat, s_coord - d_coord], axis=-1)
    ef = _mlnn_ref(ef, params["edge"])
    seg = jnp.maximum(
        jax.ops.segment_max(ef, edges[:, 1], num_segments=keypoint_indices.shape[0]),
        0.0)
    upd = _mlnn_ref(seg, params["update"])
    return upd + v_feat


# --------------------------------------- main ---------------------------------------- #

if __name__ == "__main__":
    key = jax.random.PRNGKey(0)
    k_param, k_feat, k_coord, k_edge = jax.random.split(key, 4)

    # Small but tiling-exercising sizes: 16 vertices, 600 edges (3 row tiles of 256,
    # the last one partially masked).
    N, M_FEAT, E = 16, 300, 600

    v_feat = jax.random.normal(k_feat, (N, M_FEAT), jnp.float32)
    v_coord = jax.random.normal(k_coord, (N, 3), jnp.float32)
    keypoint_indices = jnp.arange(N, dtype=jnp.int32).reshape(N, 1)
    edges = jnp.stack([
        jax.random.randint(k_edge, (E,), 0, N, jnp.int32),
        jax.random.randint(jax.random.fold_in(k_edge, 1), (E,), 0, N, jnp.int32),
    ], axis=1)

    params = init_graph_net_params(k_param)

    fwd = jax.jit(graph_net_auto_center)
    out = jax.block_until_ready(fwd(params, v_feat, v_coord, keypoint_indices, edges))

    assert out.shape == (N, M_FEAT), out.shape
    assert bool(jnp.all(jnp.isfinite(out)))

    # Loose correctness check vs the f32 reference (bf16 MXU + small-batch BN tolerance).
    ref = jax.jit(_reference_forward)(params, v_feat, v_coord, keypoint_indices, edges)
    err_max = float(jnp.max(jnp.abs(out - ref)))
    err_mean = float(jnp.mean(jnp.abs(out - ref)))
    assert err_max < 1.0 and err_mean < 0.1, (err_max, err_mean)

    print("KERNEL_OK")
</pallas_src>

<mosaic_0001>
module attributes {stable_mosaic.version = 11 : i64} {
  func.func @_layer_fwd_kernel(%arg0: i32, %arg1: memref<16x384xbf16, #tpu.memory_space<vmem>>, %arg2: memref<8x384xf32, #tpu.memory_space<vmem>>, %arg3: memref<384x128xbf16, #tpu.memory_space<vmem>>, %arg4: memref<8x128xf32, #tpu.memory_space<vmem>>, %arg5: memref<16x128xbf16, #tpu.memory_space<vmem>>, %arg6: memref<1x8x128xf32, #tpu.memory_space<vmem>>) attributes {dimension_semantics = [#tpu.dimension_semantics<parallel>], iteration_bounds = array<i64: 1>, scalar_prefetch = 0 : i64, scratch_operands = 0 : i64, tpu.core_type = #tpu.core_type<tc>, window_params = [{transform_indices = @transform_0, window_bounds = array<i64: 16, 384>}, {pipeline_mode = #tpu.pipeline_mode<synchronous>, transform_indices = @transform_1, window_bounds = array<i64: 8, 384>}, {pipeline_mode = #tpu.pipeline_mode<synchronous>, transform_indices = @transform_2, window_bounds = array<i64: 384, 128>}, {pipeline_mode = #tpu.pipeline_mode<synchronous>, transform_indices = @transform_3, window_bounds = array<i64: 8, 128>}, {transform_indices = @transform_4, window_bounds = array<i64: 16, 128>}, {transform_indices = @transform_5, window_bounds = array<i64: 1, 8, 128>}]} {
    %c0 = arith.constant 0 : index
    %c0_0 = arith.constant 0 : index
    %0 = vector.load %arg2[%c0, %c0_0] : memref<8x384xf32, #tpu.memory_space<vmem>>, vector<1x384xf32>
    %c1 = arith.constant 1 : index
    %c0_1 = arith.constant 0 : index
    %1 = vector.load %arg2[%c1, %c0_1] : memref<8x384xf32, #tpu.memory_space<vmem>>, vector<1x384xf32>
    %c0_2 = arith.constant 0 : index
    %c0_3 = arith.constant 0 : index
    %2 = vector.load %arg1[%c0_2, %c0_3] : memref<16x384xbf16, #tpu.memory_space<vmem>>, vector<16x384xbf16>
    %3 = arith.extf %2 : vector<16x384xbf16> to vector<16x384xf32>
    %4 = vector.broadcast %0 : vector<1x384xf32> to vector<16x384xf32>
    %5 = arith.mulf %3, %4 : vector<16x384xf32>
    %6 = vector.broadcast %1 : vector<1x384xf32> to vector<16x384xf32>
    %7 = arith.addf %5, %6 : vector<16x384xf32>
    %8 = arith.truncf %7 : vector<16x384xf32> to vector<16x384xbf16>
    %c0_4 = arith.constant 0 : index
    %c0_5 = arith.constant 0 : index
    %9 = vector.load %arg3[%c0_4, %c0_5] : memref<384x128xbf16, #tpu.memory_space<vmem>>, vector<384x128xbf16>
    %cst = arith.constant dense<0.000000e+00> : vector<16x128xf32>
    %10 = tpu.matmul %8, %9, %cst {dimension_numbers = #tpu.dot_dimension_numbers<[1], [0], [0], [1], [0, 0, 1, 1], [], []>} : vector<16x384xbf16>, vector<384x128xbf16>, vector<16x128xf32> -> vector<16x128xf32>
    %c0_6 = arith.constant 0 : index
    %c0_7 = arith.constant 0 : index
    %11 = vector.load %arg4[%c0_6, %c0_7] : memref<8x128xf32, #tpu.memory_space<vmem>>, vector<1x128xf32>
    %12 = vector.broadcast %11 : vector<1x128xf32> to vector<16x128xf32>
    %13 = arith.addf %10, %12 : vector<16x128xf32>
    %cst_8 = arith.constant 0.000000e+00 : f32
    %14 = vector.broadcast %cst_8 : f32 to vector<16x128xf32>
    %15 = arith.maximumf %13, %14 : vector<16x128xf32>
    %c16_i32 = arith.constant 16 : i32
    %16 = arith.muli %arg0, %c16_i32 : i32
    %17 = tpu.iota {dimensions = array<i32: 0>} : vector<16x1xi32>
    %18 = vector.broadcast %16 : i32 to vector<16x1xi32>
    %19 = arith.addi %18, %17 : vector<16x1xi32>
    %c16_i32_9 = arith.constant 16 : i32
    %20 = vector.broadcast %c16_i32_9 : i32 to vector<16x1xi32>
    %21 = arith.cmpi slt, %19, %20 : vector<16x1xi32>
    %22 = arith.extui %21 : vector<16x1xi1> to vector<16x1xi32>
    %23 = arith.sitofp %22 : vector<16x1xi32> to vector<16x1xf32>
    %24 = vector.broadcast %23 : vector<16x1xf32> to vector<16x128xf32>
    %25 = arith.mulf %15, %24 : vector<16x128xf32>
    %cst_10 = arith.constant dense<0.000000e+00> : vector<128xf32>
    %26 = vector.multi_reduction <add>, %25, %cst_10 [0] : vector<16x128xf32> to vector<128xf32>
    %27 = vector.shape_cast %26 : vector<128xf32> to vector<1x128xf32>
    %28 = arith.mulf %25, %25 : vector<16x128xf32>
    %cst_11 = arith.constant dense<0.000000e+00> : vector<128xf32>
    %29 = vector.multi_reduction <add>, %28, %cst_11 [0] : vector<16x128xf32> to vector<128xf32>
    %30 = vector.shape_cast %29 : vector<128xf32> to vector<1x128xf32>
    %31 = arith.truncf %15 : vector<16x128xf32> to vector<16x128xbf16>
    %c0_12 = arith.constant 0 : index
    %c0_13 = arith.constant 0 : index
    %32 = vector.load %arg5[%c0_12, %c0_13] : memref<16x128xbf16, #tpu.memory_space<vmem>>, vector<16x128xbf16>
    tpu.vector_store %arg5[%c0_12, %c0_13], %31 {strides = array<i32>} : memref<16x128xbf16, #tpu.memory_space<vmem>>, vector<16x128xbf16>,
    %cst_14 = arith.constant 0.000000e+00 : f32
    %33 = vector.broadcast %cst_14 : f32 to vector<6x128xf32>
    %34 = tpu.concatenate %27, %30, %33 in 0 : vector<1x128xf32>, vector<1x128xf32>, vector<6x128xf32> -> vector<8x128xf32>
    %c0_15 = arith.constant 0 : index
    %c0_16 = arith.constant 0 : index
    %c0_17 = arith.constant 0 : index
    %35 = vector.load %arg6[%c0_15, %c0_16, %c0_17] : memref<1x8x128xf32, #tpu.memory_space<vmem>>, vector<1x8x128xf32>
    %36 = vector.shape_cast %35 : vector<1x8x128xf32> to vector<8x128xf32>
    %37 = vector.shape_cast %34 : vector<8x128xf32> to vector<1x8x128xf32>
    tpu.vector_store %arg6[%c0_15, %c0_16, %c0_17], %37 {strides = array<i32>} : memref<1x8x128xf32, #tpu.memory_space<vmem>>, vector<1x8x128xf32>,
    return
  }
  func.func @transform_0(%arg0: i32) -> (i32, i32) {
    %c0_i32 = arith.constant 0 : i32
    %c0_i32_0 = arith.constant 0 : i32
    return %arg0, %c0_i32 : i32, i32
  }
  func.func @transform_1(%arg0: i32) -> (i32, i32) {
    %c0_i32 = arith.constant 0 : i32
    %c0_i32_0 = arith.constant 0 : i32
    %c0_i32_1 = arith.constant 0 : i32
    return %c0_i32, %c0_i32_0 : i32, i32
  }
  func.func @transform_2(%arg0: i32) -> (i32, i32) {
    %c0_i32 = arith.constant 0 : i32
    %c0_i32_0 = arith.constant 0 : i32
    %c0_i32_1 = arith.constant 0 : i32
    return %c0_i32, %c0_i32_0 : i32, i32
  }
  func.func @transform_3(%arg0: i32) -> (i32, i32) {
    %c0_i32 = arith.constant 0 : i32
    %c0_i32_0 = arith.constant 0 : i32
    %c0_i32_1 = arith.constant 0 : i32
    return %c0_i32, %c0_i32_0 : i32, i32
  }
  func.func @transform_4(%arg0: i32) -> (i32, i32) {
    %c0_i32 = arith.constant 0 : i32
    %c0_i32_0 = arith.constant 0 : i32
    return %arg0, %c0_i32 : i32, i32
  }
  func.func @transform_5(%arg0: i32) -> (i32, i32, i32) {
    %c0_i32 = arith.constant 0 : i32
    %c0_i32_0 = arith.constant 0 : i32
    %c0_i32_1 = arith.constant 0 : i32
    return %arg0, %c0_i32, %c0_i32_0 : i32, i32, i32
  }
}

module attributes {stable_mosaic.version = 11 : i64} {
  func.func @_layer_fwd_kernel(%arg0: i32, %arg1: memref<16x128xbf16, #tpu.memory_space<vmem>>, %arg2: memref<8x128xf32, #tpu.memory_space<vmem>>, %arg3: memref<128x128xbf16, #tpu.memory_space<vmem>>, %arg4: memref<8x128xf32, #tpu.memory_space<vmem>>, %arg5: memref<16x128xbf16, #tpu.memory_space<vmem>>, %arg6: memref<1x8x128xf32, #tpu.memory_space<vmem>>) attributes {dimension_semantics = [#tpu.dimension_semantics<parallel>], iteration_bounds = array<i64: 1>, scalar_prefetch = 0 : i64, scratch_operands = 0 : i64, tpu.core_type = #tpu.core_type<tc>, window_params = [{transform_indices = @transform_0, window_bounds = array<i64: 16, 128>}, {pipeline_mode = #tpu.pipeline_mode<synchronous>, transform_indices = @transform_1, window_bounds = array<i64: 8, 128>}, {pipeline_mode = #tpu.pipeline_mode<synchronous>, transform_indices = @transform_2, window_bounds = array<i64: 128, 128>}, {pipeline_mode = #tpu.pipeline_mode<synchronous>, transform_indices = @transform_3, window_bounds = array<i64: 8, 128>}, {transform_indices = @transform_4, window_bounds = array<i64: 16, 128>}, {transform_indices = @transform_5, window_bounds = array<i64: 1, 8, 128>}]} {
    %c0 = arith.constant 0 : index
    %c0_0 = arith.constant 0 : index
    %0 = vector.load %arg2[%c0, %c0_0] : memref<8x128xf32, #tpu.memory_space<vmem>>, vector<1x128xf32>
    %c1 = arith.constant 1 : index
    %c0_1 = arith.constant 0 : index
    %1 = vector.load %arg2[%c1, %c0_1] : memref<8x128xf32, #tpu.memory_space<vmem>>, vector<1x128xf32>
    %c0_2 = arith.constant 0 : index
    %c0_3 = arith.constant 0 : index
    %2 = vector.load %arg1[%c0_2, %c0_3] : memref<16x128xbf16, #tpu.memory_space<vmem>>, vector<16x128xbf16>
    %3 = arith.extf %2 : vector<16x128xbf16> to vector<16x128xf32>
    %4 = vector.broadcast %0 : vector<1x128xf32> to vector<16x128xf32>
    %5 = arith.mulf %3, %4 : vector<16x128xf32>
    %6 = vector.broadcast %1 : vector<1x128xf32> to vector<16x128xf32>
    %7 = arith.addf %5, %6 : vector<16x128xf32>
    %8 = arith.truncf %7 : vector<16x128xf32> to vector<16x128xbf16>
    %c0_4 = arith.constant 0 : index
    %c0_5 = arith.constant 0 : index
    %9 = vector.load %arg3[%c0_4, %c0_5] : memref<128x128xbf16, #tpu.memory_space<vmem>>, vector<128x128xbf16>
    %cst = arith.constant dense<0.000000e+00> : vector<16x128xf32>
    %10 = tpu.matmul %8, %9, %cst {dimension_numbers = #tpu.dot_dimension_numbers<[1], [0], [0], [1], [0, 0, 1, 1], [], []>} : vector<16x128xbf16>, vector<128x128xbf16>, vector<16x128xf32> -> vector<16x128xf32>
    %c0_6 = arith.constant 0 : index
    %c0_7 = arith.constant 0 : index
    %11 = vector.load %arg4[%c0_6, %c0_7] : memref<8x128xf32, #tpu.memory_space<vmem>>, vector<1x128xf32>
    %12 = vector.broadcast %11 : vector<1x128xf32> to vector<16x128xf32>
    %13 = arith.addf %10, %12 : vector<16x128xf32>
    %cst_8 = arith.constant 0.000000e+00 : f32
    %14 = vector.broadcast %cst_8 : f32 to vector<16x128xf32>
    %15 = arith.maximumf %13, %14 : vector<16x128xf32>
    %c16_i32 = arith.constant 16 : i32
    %16 = arith.muli %arg0, %c16_i32 : i32
    %17 = tpu.iota {dimensions = array<i32: 0>} : vector<16x1xi32>
    %18 = vector.broadcast %16 : i32 to vector<16x1xi32>
    %19 = arith.addi %18, %17 : vector<16x1xi32>
    %c16_i32_9 = arith.constant 16 : i32
    %20 = vector.broadcast %c16_i32_9 : i32 to vector<16x1xi32>
    %21 = arith.cmpi slt, %19, %20 : vector<16x1xi32>
    %22 = arith.extui %21 : vector<16x1xi1> to vector<16x1xi32>
    %23 = arith.sitofp %22 : vector<16x1xi32> to vector<16x1xf32>
    %24 = vector.broadcast %23 : vector<16x1xf32> to vector<16x128xf32>
    %25 = arith.mulf %15, %24 : vector<16x128xf32>
    %cst_10 = arith.constant dense<0.000000e+00> : vector<128xf32>
    %26 = vector.multi_reduction <add>, %25, %cst_10 [0] : vector<16x128xf32> to vector<128xf32>
    %27 = vector.shape_cast %26 : vector<128xf32> to vector<1x128xf32>
    %28 = arith.mulf %25, %25 : vector<16x128xf32>
    %cst_11 = arith.constant dense<0.000000e+00> : vector<128xf32>
    %29 = vector.multi_reduction <add>, %28, %cst_11 [0] : vector<16x128xf32> to vector<128xf32>
    %30 = vector.shape_cast %29 : vector<128xf32> to vector<1x128xf32>
    %31 = arith.truncf %15 : vector<16x128xf32> to vector<16x128xbf16>
    %c0_12 = arith.constant 0 : index
    %c0_13 = arith.constant 0 : index
    %32 = vector.load %arg5[%c0_12, %c0_13] : memref<16x128xbf16, #tpu.memory_space<vmem>>, vector<16x128xbf16>
    tpu.vector_store %arg5[%c0_12, %c0_13], %31 {strides = array<i32>} : memref<16x128xbf16, #tpu.memory_space<vmem>>, vector<16x128xbf16>,
    %cst_14 = arith.constant 0.000000e+00 : f32
    %33 = vector.broadcast %cst_14 : f32 to vector<6x128xf32>
    %34 = tpu.concatenate %27, %30, %33 in 0 : vector<1x128xf32>, vector<1x128xf32>, vector<6x128xf32> -> vector<8x128xf32>
    %c0_15 = arith.constant 0 : index
    %c0_16 = arith.constant 0 : index
    %c0_17 = arith.constant 0 : index
    %35 = vector.load %arg6[%c0_15, %c0_16, %c0_17] : memref<1x8x128xf32, #tpu.memory_space<vmem>>, vector<1x8x128xf32>
    %36 = vector.shape_cast %35 : vector<1x8x128xf32> to vector<8x128xf32>
    %37 = vector.shape_cast %34 : vector<8x128xf32> to vector<1x8x128xf32>
    tpu.vector_store %arg6[%c0_15, %c0_16, %c0_17], %37 {strides = array<i32>} : memref<1x8x128xf32, #tpu.memory_space<vmem>>, vector<1x8x128xf32>,
    return
  }
  func.func @transform_0(%arg0: i32) -> (i32, i32) {
    %c0_i32 = arith.constant 0 : i32
    %c0_i32_0 = arith.constant 0 : i32
    return %arg0, %c0_i32 : i32, i32
  }
  func.func @transform_1(%arg0: i32) -> (i32, i32) {
    %c0_i32 = arith.constant 0 : i32
    %c0_i32_0 = arith.constant 0 : i32
    %c0_i32_1 = arith.constant 0 : i32
    return %c0_i32, %c0_i32_0 : i32, i32
  }
  func.func @transform_2(%arg0: i32) -> (i32, i32) {
    %c0_i32 = arith.constant 0 : i32
    %c0_i32_0 = arith.constant 0 : i32
    %c0_i32_1 = arith.constant 0 : i32
    return %c0_i32, %c0_i32_0 : i32, i32
  }
  func.func @transform_3(%arg0: i32) -> (i32, i32) {
    %c0_i32 = arith.constant 0 : i32
    %c0_i32_0 = arith.constant 0 : i32
    %c0_i32_1 = arith.constant 0 : i32
    return %c0_i32, %c0_i32_0 : i32, i32
  }
  func.func @transform_4(%arg0: i32) -> (i32, i32) {
    %c0_i32 = arith.constant 0 : i32
    %c0_i32_0 = arith.constant 0 : i32
    return %arg0, %c0_i32 : i32, i32
  }
  func.func @transform_5(%arg0: i32) -> (i32, i32, i32) {
    %c0_i32 = arith.constant 0 : i32
    %c0_i32_0 = arith.constant 0 : i32
    %c0_i32_1 = arith.constant 0 : i32
    return %arg0, %c0_i32, %c0_i32_0 : i32, i32, i32
  }
}

module attributes {stable_mosaic.version = 11 : i64} {
  func.func @_affine_out_kernel(%arg0: i32, %arg1: memref<16x128xbf16, #tpu.memory_space<vmem>>, %arg2: memref<8x128xf32, #tpu.memory_space<vmem>>, %arg3: memref<16x128xf32, #tpu.memory_space<vmem>>) attributes {dimension_semantics = [#tpu.dimension_semantics<parallel>], iteration_bounds = array<i64: 1>, scalar_prefetch = 0 : i64, scratch_operands = 0 : i64, tpu.core_type = #tpu.core_type<tc>, window_params = [{transform_indices = @transform_0, window_bounds = array<i64: 16, 128>}, {pipeline_mode = #tpu.pipeline_mode<synchronous>, transform_indices = @transform_1, window_bounds = array<i64: 8, 128>}, {transform_indices = @transform_2, window_bounds = array<i64: 16, 128>}]} {
    %c0 = arith.constant 0 : index
    %c0_0 = arith.constant 0 : index
    %0 = vector.load %arg1[%c0, %c0_0] : memref<16x128xbf16, #tpu.memory_space<vmem>>, vector<16x128xbf16>
    %1 = arith.extf %0 : vector<16x128xbf16> to vector<16x128xf32>
    %c0_1 = arith.constant 0 : index
    %c0_2 = arith.constant 0 : index
    %2 = vector.load %arg2[%c0_1, %c0_2] : memref<8x128xf32, #tpu.memory_space<vmem>>, vector<1x128xf32>
    %3 = vector.broadcast %2 : vector<1x128xf32> to vector<16x128xf32>
    %4 = arith.mulf %1, %3 : vector<16x128xf32>
    %c1 = arith.constant 1 : index
    %c0_3 = arith.constant 0 : index
    %5 = vector.load %arg2[%c1, %c0_3] : memref<8x128xf32, #tpu.memory_space<vmem>>, vector<1x128xf32>
    %6 = vector.broadcast %5 : vector<1x128xf32> to vector<16x128xf32>
    %7 = arith.addf %4, %6 : vector<16x128xf32>
    %c0_4 = arith.constant 0 : index
    %c0_5 = arith.constant 0 : index
    %8 = vector.load %arg3[%c0_4, %c0_5] : memref<16x128xf32, #tpu.memory_space<vmem>>, vector<16x128xf32>
    tpu.vector_store %arg3[%c0_4, %c0_5], %7 {strides = array<i32>} : memref<16x128xf32, #tpu.memory_space<vmem>>, vector<16x128xf32>,
    return
  }
  func.func @transform_0(%arg0: i32) -> (i32, i32) {
    %c0_i32 = arith.constant 0 : i32
    %c0_i32_0 = arith.constant 0 : i32
    return %arg0, %c0_i32 : i32, i32
  }
  func.func @transform_1(%arg0: i32) -> (i32, i32) {
    %c0_i32 = arith.constant 0 : i32
    %c0_i32_0 = arith.constant 0 : i32
    %c0_i32_1 = arith.constant 0 : i32
    return %c0_i32, %c0_i32_0 : i32, i32
  }
  func.func @transform_2(%arg0: i32) -> (i32, i32) {
    %c0_i32 = arith.constant 0 : i32
    %c0_i32_0 = arith.constant 0 : i32
    return %arg0, %c0_i32 : i32, i32
  }
}

module attributes {stable_mosaic.version = 11 : i64} {
  func.func @_layer_fwd_kernel(%arg0: i32, %arg1: memref<256x384xbf16, #tpu.memory_space<vmem>>, %arg2: memref<256x128xbf16, #tpu.memory_space<vmem>>, %arg3: memref<8x384xf32, #tpu.memory_space<vmem>>, %arg4: memref<8x128xf32, #tpu.memory_space<vmem>>, %arg5: memref<384x384xbf16, #tpu.memory_space<vmem>>, %arg6: memref<128x384xbf16, #tpu.memory_space<vmem>>, %arg7: memref<8x384xf32, #tpu.memory_space<vmem>>, %arg8: memref<256x384xbf16, #tpu.memory_space<vmem>>, %arg9: memref<1x8x384xf32, #tpu.memory_space<vmem>>) attributes {dimension_semantics = [#tpu.dimension_semantics<parallel>], iteration_bounds = array<i64: 3>, scalar_prefetch = 0 : i64, scratch_operands = 0 : i64, tpu.core_type = #tpu.core_type<tc>, window_params = [{transform_indices = @transform_0, window_bounds = array<i64: 256, 384>}, {transform_indices = @transform_1, window_bounds = array<i64: 256, 128>}, {pipeline_mode = #tpu.pipeline_mode<synchronous>, transform_indices = @transform_2, window_bounds = array<i64: 8, 384>}, {pipeline_mode = #tpu.pipeline_mode<synchronous>, transform_indices = @transform_3, window_bounds = array<i64: 8, 128>}, {pipeline_mode = #tpu.pipeline_mode<synchronous>, transform_indices = @transform_4, window_bounds = array<i64: 384, 384>}, {pipeline_mode = #tpu.pipeline_mode<synchronous>, transform_indices = @transform_5, window_bounds = array<i64: 128, 384>}, {pipeline_mode = #tpu.pipeline_mode<synchronous>, transform_indices = @transform_6, window_bounds = array<i64: 8, 384>}, {transform_indices = @transform_7, window_bounds = array<i64: 256, 384>}, {transform_indices = @transform_8, window_bounds = array<i64: 1, 8, 384>}]} {
    %c0 = arith.constant 0 : index
    %c0_0 = arith.constant 0 : index
    %0 = vector.load %arg3[%c0, %c0_0] : memref<8x384xf32, #tpu.memory_space<vmem>>, vector<1x384xf32>
    %c1 = arith.constant 1 : index
    %c0_1 = arith.constant 0 : index
    %1 = vector.load %arg3[%c1, %c0_1] : memref<8x384xf32, #tpu.memory_space<vmem>>, vector<1x384xf32>
    %c0_2 = arith.constant 0 : index
    %c0_3 = arith.constant 0 : index
    %2 = vector.load %arg1[%c0_2, %c0_3] : memref<256x384xbf16, #tpu.memory_space<vmem>>, vector<256x384xbf16>
    %3 = arith.extf %2 : vector<256x384xbf16> to vector<256x384xf32>
    %4 = vector.broadcast %0 : vector<1x384xf32> to vector<256x384xf32>
    %5 = arith.mulf %3, %4 : vector<256x384xf32>
    %6 = vector.broadcast %1 : vector<1x384xf32> to vector<256x384xf32>
    %7 = arith.addf %5, %6 : vector<256x384xf32>
    %8 = arith.truncf %7 : vector<256x384xf32> to vector<256x384xbf16>
    %c0_4 = arith.constant 0 : index
    %c0_5 = arith.constant 0 : index
    %9 = vector.load %arg5[%c0_4, %c0_5] : memref<384x384xbf16, #tpu.memory_space<vmem>>, vector<384x384xbf16>
    %cst = arith.constant dense<0.000000e+00> : vector<256x384xf32>
    %10 = tpu.matmul %8, %9, %cst {dimension_numbers = #tpu.dot_dimension_numbers<[1], [0], [0], [1], [0, 0, 1, 1], [], []>} : vector<256x384xbf16>, vector<384x384xbf16>, vector<256x384xf32> -> vector<256x384xf32>
    %c0_6 = arith.constant 0 : index
    %c0_7 = arith.constant 0 : index
    %11 = vector.load %arg4[%c0_6, %c0_7] : memref<8x128xf32, #tpu.memory_space<vmem>>, vector<1x128xf32>
    %c1_8 = arith.constant 1 : index
    %c0_9 = arith.constant 0 : index
    %12 = vector.load %arg4[%c1_8, %c0_9] : memref<8x128xf32, #tpu.memory_space<vmem>>, vector<1x128xf32>
    %c0_10 = arith.constant 0 : index
    %c0_11 = arith.constant 0 : index
    %13 = vector.load %arg2[%c0_10, %c0_11] : memref<256x128xbf16, #tpu.memory_space<vmem>>, vector<256x128xbf16>
    %14 = arith.extf %13 : vector<256x128xbf16> to vector<256x128xf32>
    %15 = vector.broadcast %11 : vector<1x128xf32> to vector<256x128xf32>
    %16 = arith.mulf %14, %15 : vector<256x128xf32>
    %17 = vector.broadcast %12 : vector<1x128xf32> to vector<256x128xf32>
    %18 = arith.addf %16, %17 : vector<256x128xf32>
    %19 = arith.truncf %18 : vector<256x128xf32> to vector<256x128xbf16>
    %c0_12 = arith.constant 0 : index
    %c0_13 = arith.constant 0 : index
    %20 = vector.load %arg6[%c0_12, %c0_13] : memref<128x384xbf16, #tpu.memory_space<vmem>>, vector<128x384xbf16>
    %cst_14 = arith.constant dense<0.000000e+00> : vector<256x384xf32>
    %21 = tpu.matmul %19, %20, %cst_14 {dimension_numbers = #tpu.dot_dimension_numbers<[1], [0], [0], [1], [0, 0, 1, 1], [], []>} : vector<256x128xbf16>, vector<128x384xbf16>, vector<256x384xf32> -> vector<256x384xf32>
    %22 = arith.addf %10, %21 : vector<256x384xf32>
    %c0_15 = arith.constant 0 : index
    %c0_16 = arith.constant 0 : index
    %23 = vector.load %arg7[%c0_15, %c0_16] : memref<8x384xf32, #tpu.memory_space<vmem>>, vector<1x384xf32>
    %24 = vector.broadcast %23 : vector<1x384xf32> to vector<256x384xf32>
    %25 = arith.addf %22, %24 : vector<256x384xf32>
    %cst_17 = arith.constant 0.000000e+00 : f32
    %26 = vector.broadcast %cst_17 : f32 to vector<256x384xf32>
    %27 = arith.maximumf %25, %26 : vector<256x384xf32>
    %c256_i32 = arith.constant 256 : i32
    %28 = arith.muli %arg0, %c256_i32 : i32
    %29 = tpu.iota {dimensions = array<i32: 0>} : vector<256x1xi32>
    %30 = vector.broadcast %28 : i32 to vector<256x1xi32>
    %31 = arith.addi %30, %29 : vector<256x1xi32>
    %c600_i32 = arith.constant 600 : i32
    %32 = vector.broadcast %c600_i32 : i32 to vector<256x1xi32>
    %33 = arith.cmpi slt, %31, %32 : vector<256x1xi32>
    %34 = arith.extui %33 : vector<256x1xi1> to vector<256x1xi32>
    %35 = arith.sitofp %34 : vector<256x1xi32> to vector<256x1xf32>
    %36 = vector.broadcast %35 : vector<256x1xf32> to vector<256x384xf32>
    %37 = arith.mulf %27, %36 : vector<256x384xf32>
    %cst_18 = arith.constant dense<0.000000e+00> : vector<384xf32>
    %38 = vector.multi_reduction <add>, %37, %cst_18 [0] : vector<256x384xf32> to vector<384xf32>
    %39 = vector.shape_cast %38 : vector<384xf32> to vector<1x384xf32>
    %40 = arith.mulf %37, %37 : vector<256x384xf32>
    %cst_19 = arith.constant dense<0.000000e+00> : vector<384xf32>
    %41 = vector.multi_reduction <add>, %40, %cst_19 [0] : vector<256x384xf32> to vector<384xf32>
    %42 = vector.shape_cast %41 : vector<384xf32> to vector<1x384xf32>
    %43 = arith.truncf %27 : vector<256x384xf32> to vector<256x384xbf16>
    %c0_20 = arith.constant 0 : index
    %c0_21 = arith.constant 0 : index
    %44 = vector.load %arg8[%c0_20, %c0_21] : memref<256x384xbf16, #tpu.memory_space<vmem>>, vector<256x384xbf16>
    tpu.vector_store %arg8[%c0_20, %c0_21], %43 {strides = array<i32>} : memref<256x384xbf16, #tpu.memory_space<vmem>>, vector<256x384xbf16>,
    %cst_22 = arith.constant 0.000000e+00 : f32
    %45 = vector.broadcast %cst_22 : f32 to vector<6x384xf32>
    %46 = tpu.concatenate %39, %42, %45 in 0 : vector<1x384xf32>, vector<1x384xf32>, vector<6x384xf32> -> vector<8x384xf32>
    %c0_23 = arith.constant 0 : index
    %c0_24 = arith.constant 0 : index
    %c0_25 = arith.constant 0 : index
    %47 = vector.load %arg9[%c0_23, %c0_24, %c0_25] : memref<1x8x384xf32, #tpu.memory_space<vmem>>, vector<1x8x384xf32>
    %48 = vector.shape_cast %47 : vector<1x8x384xf32> to vector<8x384xf32>
    %49 = vector.shape_cast %46 : vector<8x384xf32> to vector<1x8x384xf32>
    tpu.vector_store %arg9[%c0_23, %c0_24, %c0_25], %49 {strides = array<i32>} : memref<1x8x384xf32, #tpu.memory_space<vmem>>, vector<1x8x384xf32>,
    return
  }
  func.func @transform_0(%arg0: i32) -> (i32, i32) {
    %c0_i32 = arith.constant 0 : i32
    %c0_i32_0 = arith.constant 0 : i32
    return %arg0, %c0_i32 : i32, i32
  }
  func.func @transform_1(%arg0: i32) -> (i32, i32) {
    %c0_i32 = arith.constant 0 : i32
    %c0_i32_0 = arith.constant 0 : i32
    return %arg0, %c0_i32 : i32, i32
  }
  func.func @transform_2(%arg0: i32) -> (i32, i32) {
    %c0_i32 = arith.constant 0 : i32
    %c0_i32_0 = arith.constant 0 : i32
    %c0_i32_1 = arith.constant 0 : i32
    return %c0_i32, %c0_i32_0 : i32, i32
  }
  func.func @transform_3(%arg0: i32) -> (i32, i32) {
    %c0_i32 = arith.constant 0 : i32
    %c0_i32_0 = arith.constant 0 : i32
    %c0_i32_1 = arith.constant 0 : i32
    return %c0_i32, %c0_i32_0 : i32, i32
  }
  func.func @transform_4(%arg0: i32) -> (i32, i32) {
    %c0_i32 = arith.constant 0 : i32
    %c0_i32_0 = arith.constant 0 : i32
    %c0_i32_1 = arith.constant 0 : i32
    return %c0_i32, %c0_i32_0 : i32, i32
  }
  func.func @transform_5(%arg0: i32) -> (i32, i32) {
    %c0_i32 = arith.constant 0 : i32
    %c0_i32_0 = arith.constant 0 : i32
    %c0_i32_1 = arith.constant 0 : i32
    return %c0_i32, %c0_i32_0 : i32, i32
  }
  func.func @transform_6(%arg0: i32) -> (i32, i32) {
    %c0_i32 = arith.constant 0 : i32
    %c0_i32_0 = arith.constant 0 : i32
    %c0_i32_1 = arith.constant 0 : i32
    return %c0_i32, %c0_i32_0 : i32, i32
  }
  func.func @transform_7(%arg0: i32) -> (i32, i32) {
    %c0_i32 = arith.constant 0 : i32
    %c0_i32_0 = arith.constant 0 : i32
    return %arg0, %c0_i32 : i32, i32
  }
  func.func @transform_8(%arg0: i32) -> (i32, i32, i32) {
    %c0_i32 = arith.constant 0 : i32
    %c0_i32_0 = arith.constant 0 : i32
    %c0_i32_1 = arith.constant 0 : i32
    return %arg0, %c0_i32, %c0_i32_0 : i32, i32, i32
  }
}

module attributes {stable_mosaic.version = 11 : i64} {
  func.func @_layer_fwd_kernel(%arg0: i32, %arg1: memref<256x384xbf16, #tpu.memory_space<vmem>>, %arg2: memref<8x384xf32, #tpu.memory_space<vmem>>, %arg3: memref<384x384xbf16, #tpu.memory_space<vmem>>, %arg4: memref<8x384xf32, #tpu.memory_space<vmem>>, %arg5: memref<256x384xbf16, #tpu.memory_space<vmem>>, %arg6: memref<1x8x384xf32, #tpu.memory_space<vmem>>) attributes {dimension_semantics = [#tpu.dimension_semantics<parallel>], iteration_bounds = array<i64: 3>, scalar_prefetch = 0 : i64, scratch_operands = 0 : i64, tpu.core_type = #tpu.core_type<tc>, window_params = [{transform_indices = @transform_0, window_bounds = array<i64: 256, 384>}, {pipeline_mode = #tpu.pipeline_mode<synchronous>, transform_indices = @transform_1, window_bounds = array<i64: 8, 384>}, {pipeline_mode = #tpu.pipeline_mode<synchronous>, transform_indices = @transform_2, window_bounds = array<i64: 384, 384>}, {pipeline_mode = #tpu.pipeline_mode<synchronous>, transform_indices = @transform_3, window_bounds = array<i64: 8, 384>}, {transform_indices = @transform_4, window_bounds = array<i64: 256, 384>}, {transform_indices = @transform_5, window_bounds = array<i64: 1, 8, 384>}]} {
    %c0 = arith.constant 0 : index
    %c0_0 = arith.constant 0 : index
    %0 = vector.load %arg2[%c0, %c0_0] : memref<8x384xf32, #tpu.memory_space<vmem>>, vector<1x384xf32>
    %c1 = arith.constant 1 : index
    %c0_1 = arith.constant 0 : index
    %1 = vector.load %arg2[%c1, %c0_1] : memref<8x384xf32, #tpu.memory_space<vmem>>, vector<1x384xf32>
    %c0_2 = arith.constant 0 : index
    %c0_3 = arith.constant 0 : index
    %2 = vector.load %arg1[%c0_2, %c0_3] : memref<256x384xbf16, #tpu.memory_space<vmem>>, vector<256x384xbf16>
    %3 = arith.extf %2 : vector<256x384xbf16> to vector<256x384xf32>
    %4 = vector.broadcast %0 : vector<1x384xf32> to vector<256x384xf32>
    %5 = arith.mulf %3, %4 : vector<256x384xf32>
    %6 = vector.broadcast %1 : vector<1x384xf32> to vector<256x384xf32>
    %7 = arith.addf %5, %6 : vector<256x384xf32>
    %8 = arith.truncf %7 : vector<256x384xf32> to vector<256x384xbf16>
    %c0_4 = arith.constant 0 : index
    %c0_5 = arith.constant 0 : index
    %9 = vector.load %arg3[%c0_4, %c0_5] : memref<384x384xbf16, #tpu.memory_space<vmem>>, vector<384x384xbf16>
    %cst = arith.constant dense<0.000000e+00> : vector<256x384xf32>
    %10 = tpu.matmul %8, %9, %cst {dimension_numbers = #tpu.dot_dimension_numbers<[1], [0], [0], [1], [0, 0, 1, 1], [], []>} : vector<256x384xbf16>, vector<384x384xbf16>, vector<256x384xf32> -> vector<256x384xf32>
    %c0_6 = arith.constant 0 : index
    %c0_7 = arith.constant 0 : index
    %11 = vector.load %arg4[%c0_6, %c0_7] : memref<8x384xf32, #tpu.memory_space<vmem>>, vector<1x384xf32>
    %12 = vector.broadcast %11 : vector<1x384xf32> to vector<256x384xf32>
    %13 = arith.addf %10, %12 : vector<256x384xf32>
    %cst_8 = arith.constant 0.000000e+00 : f32
    %14 = vector.broadcast %cst_8 : f32 to vector<256x384xf32>
    %15 = arith.maximumf %13, %14 : vector<256x384xf32>
    %c256_i32 = arith.constant 256 : i32
    %16 = arith.muli %arg0, %c256_i32 : i32
    %17 = tpu.iota {dimensions = array<i32: 0>} : vector<256x1xi32>
    %18 = vector.broadcast %16 : i32 to vector<256x1xi32>
    %19 = arith.addi %18, %17 : vector<256x1xi32>
    %c600_i32 = arith.constant 600 : i32
    %20 = vector.broadcast %c600_i32 : i32 to vector<256x1xi32>
    %21 = arith.cmpi slt, %19, %20 : vector<256x1xi32>
    %22 = arith.extui %21 : vector<256x1xi1> to vector<256x1xi32>
    %23 = arith.sitofp %22 : vector<256x1xi32> to vector<256x1xf32>
    %24 = vector.broadcast %23 : vector<256x1xf32> to vector<256x384xf32>
    %25 = arith.mulf %15, %24 : vector<256x384xf32>
    %cst_9 = arith.constant dense<0.000000e+00> : vector<384xf32>
    %26 = vector.multi_reduction <add>, %25, %cst_9 [0] : vector<256x384xf32> to vector<384xf32>
    %27 = vector.shape_cast %26 : vector<384xf32> to vector<1x384xf32>
    %28 = arith.mulf %25, %25 : vector<256x384xf32>
    %cst_10 = arith.constant dense<0.000000e+00> : vector<384xf32>
    %29 = vector.multi_reduction <add>, %28, %cst_10 [0] : vector<256x384xf32> to vector<384xf32>
    %30 = vector.shape_cast %29 : vector<384xf32> to vector<1x384xf32>
    %31 = arith.truncf %15 : vector<256x384xf32> to vector<256x384xbf16>
    %c0_11 = arith.constant 0 : index
    %c0_12 = arith.constant 0 : index
    %32 = vector.load %arg5[%c0_11, %c0_12] : memref<256x384xbf16, #tpu.memory_space<vmem>>, vector<256x384xbf16>
    tpu.vector_store %arg5[%c0_11, %c0_12], %31 {strides = array<i32>} : memref<256x384xbf16, #tpu.memory_space<vmem>>, vector<256x384xbf16>,
    %cst_13 = arith.constant 0.000000e+00 : f32
    %33 = vector.broadcast %cst_13 : f32 to vector<6x384xf32>
    %34 = tpu.concatenate %27, %30, %33 in 0 : vector<1x384xf32>, vector<1x384xf32>, vector<6x384xf32> -> vector<8x384xf32>
    %c0_14 = arith.constant 0 : index
    %c0_15 = arith.constant 0 : index
    %c0_16 = arith.constant 0 : index
    %35 = vector.load %arg6[%c0_14, %c0_15, %c0_16] : memref<1x8x384xf32, #tpu.memory_space<vmem>>, vector<1x8x384xf32>
    %36 = vector.shape_cast %35 : vector<1x8x384xf32> to vector<8x384xf32>
    %37 = vector.shape_cast %34 : vector<8x384xf32> to vector<1x8x384xf32>
    tpu.vector_store %arg6[%c0_14, %c0_15, %c0_16], %37 {strides = array<i32>} : memref<1x8x384xf32, #tpu.memory_space<vmem>>, vector<1x8x384xf32>,
    return
  }
  func.func @transform_0(%arg0: i32) -> (i32, i32) {
    %c0_i32 = arith.constant 0 : i32
    %c0_i32_0 = arith.constant 0 : i32
    return %arg0, %c0_i32 : i32, i32
  }
  func.func @transform_1(%arg0: i32) -> (i32, i32) {
    %c0_i32 = arith.constant 0 : i32
    %c0_i32_0 = arith.constant 0 : i32
    %c0_i32_1 = arith.constant 0 : i32
    return %c0_i32, %c0_i32_0 : i32, i32
  }
  func.func @transform_2(%arg0: i32) -> (i32, i32) {
    %c0_i32 = arith.constant 0 : i32
    %c0_i32_0 = arith.constant 0 : i32
    %c0_i32_1 = arith.constant 0 : i32
    return %c0_i32, %c0_i32_0 : i32, i32
  }
  func.func @transform_3(%arg0: i32) -> (i32, i32) {
    %c0_i32 = arith.constant 0 : i32
    %c0_i32_0 = arith.constant 0 : i32
    %c0_i32_1 = arith.constant 0 : i32
    return %c0_i32, %c0_i32_0 : i32, i32
  }
  func.func @transform_4(%arg0: i32) -> (i32, i32) {
    %c0_i32 = arith.constant 0 : i32
    %c0_i32_0 = arith.constant 0 : i32
    return %arg0, %c0_i32 : i32, i32
  }
  func.func @transform_5(%arg0: i32) -> (i32, i32, i32) {
    %c0_i32 = arith.constant 0 : i32
    %c0_i32_0 = arith.constant 0 : i32
    %c0_i32_1 = arith.constant 0 : i32
    return %arg0, %c0_i32, %c0_i32_0 : i32, i32, i32
  }
}

module attributes {stable_mosaic.version = 11 : i64} {
  func.func @_affine_out_kernel(%arg0: i32, %arg1: memref<256x384xbf16, #tpu.memory_space<vmem>>, %arg2: memref<8x384xf32, #tpu.memory_space<vmem>>, %arg3: memref<256x384xbf16, #tpu.memory_space<vmem>>) attributes {dimension_semantics = [#tpu.dimension_semantics<parallel>], iteration_bounds = array<i64: 3>, scalar_prefetch = 0 : i64, scratch_operands = 0 : i64, tpu.core_type = #tpu.core_type<tc>, window_params = [{transform_indices = @transform_0, window_bounds = array<i64: 256, 384>}, {pipeline_mode = #tpu.pipeline_mode<synchronous>, transform_indices = @transform_1, window_bounds = array<i64: 8, 384>}, {transform_indices = @transform_2, window_bounds = array<i64: 256, 384>}]} {
    %c0 = arith.constant 0 : index
    %c0_0 = arith.constant 0 : index
    %0 = vector.load %arg1[%c0, %c0_0] : memref<256x384xbf16, #tpu.memory_space<vmem>>, vector<256x384xbf16>
    %1 = arith.extf %0 : vector<256x384xbf16> to vector<256x384xf32>
    %c0_1 = arith.constant 0 : index
    %c0_2 = arith.constant 0 : index
    %2 = vector.load %arg2[%c0_1, %c0_2] : memref<8x384xf32, #tpu.memory_space<vmem>>, vector<1x384xf32>
    %3 = vector.broadcast %2 : vector<1x384xf32> to vector<256x384xf32>
    %4 = arith.mulf %1, %3 : vector<256x384xf32>
    %c1 = arith.constant 1 : index
    %c0_3 = arith.constant 0 : index
    %5 = vector.load %arg2[%c1, %c0_3] : memref<8x384xf32, #tpu.memory_space<vmem>>, vector<1x384xf32>
    %6 = vector.broadcast %5 : vector<1x384xf32> to vector<256x384xf32>
    %7 = arith.addf %4, %6 : vector<256x384xf32>
    %8 = arith.truncf %7 : vector<256x384xf32> to vector<256x384xbf16>
    %c0_4 = arith.constant 0 : index
    %c0_5 = arith.constant 0 : index
    %9 = vector.load %arg3[%c0_4, %c0_5] : memref<256x384xbf16, #tpu.memory_space<vmem>>, vector<256x384xbf16>
    tpu.vector_store %arg3[%c0_4, %c0_5], %8 {strides = array<i32>} : memref<256x384xbf16, #tpu.memory_space<vmem>>, vector<256x384xbf16>,
    return
  }
  func.func @transform_0(%arg0: i32) -> (i32, i32) {
    %c0_i32 = arith.constant 0 : i32
    %c0_i32_0 = arith.constant 0 : i32
    return %arg0, %c0_i32 : i32, i32
  }
  func.func @transform_1(%arg0: i32) -> (i32, i32) {
    %c0_i32 = arith.constant 0 : i32
    %c0_i32_0 = arith.constant 0 : i32
    %c0_i32_1 = arith.constant 0 : i32
    return %c0_i32, %c0_i32_0 : i32, i32
  }
  func.func @transform_2(%arg0: i32) -> (i32, i32) {
    %c0_i32 = arith.constant 0 : i32
    %c0_i32_0 = arith.constant 0 : i32
    return %arg0, %c0_i32 : i32, i32
  }
}

module attributes {stable_mosaic.version = 11 : i64} {
  func.func @_layer_fwd_kernel(%arg0: i32, %arg1: memref<16x384xbf16, #tpu.memory_space<vmem>>, %arg2: memref<8x384xf32, #tpu.memory_space<vmem>>, %arg3: memref<384x384xbf16, #tpu.memory_space<vmem>>, %arg4: memref<8x384xf32, #tpu.memory_space<vmem>>, %arg5: memref<16x384xbf16, #tpu.memory_space<vmem>>, %arg6: memref<1x8x384xf32, #tpu.memory_space<vmem>>) attributes {dimension_semantics = [#tpu.dimension_semantics<parallel>], iteration_bounds = array<i64: 1>, scalar_prefetch = 0 : i64, scratch_operands = 0 : i64, tpu.core_type = #tpu.core_type<tc>, window_params = [{transform_indices = @transform_0, window_bounds = array<i64: 16, 384>}, {pipeline_mode = #tpu.pipeline_mode<synchronous>, transform_indices = @transform_1, window_bounds = array<i64: 8, 384>}, {pipeline_mode = #tpu.pipeline_mode<synchronous>, transform_indices = @transform_2, window_bounds = array<i64: 384, 384>}, {pipeline_mode = #tpu.pipeline_mode<synchronous>, transform_indices = @transform_3, window_bounds = array<i64: 8, 384>}, {transform_indices = @transform_4, window_bounds = array<i64: 16, 384>}, {transform_indices = @transform_5, window_bounds = array<i64: 1, 8, 384>}]} {
    %c0 = arith.constant 0 : index
    %c0_0 = arith.constant 0 : index
    %0 = vector.load %arg2[%c0, %c0_0] : memref<8x384xf32, #tpu.memory_space<vmem>>, vector<1x384xf32>
    %c1 = arith.constant 1 : index
    %c0_1 = arith.constant 0 : index
    %1 = vector.load %arg2[%c1, %c0_1] : memref<8x384xf32, #tpu.memory_space<vmem>>, vector<1x384xf32>
    %c0_2 = arith.constant 0 : index
    %c0_3 = arith.constant 0 : index
    %2 = vector.load %arg1[%c0_2, %c0_3] : memref<16x384xbf16, #tpu.memory_space<vmem>>, vector<16x384xbf16>
    %3 = arith.extf %2 : vector<16x384xbf16> to vector<16x384xf32>
    %4 = vector.broadcast %0 : vector<1x384xf32> to vector<16x384xf32>
    %5 = arith.mulf %3, %4 : vector<16x384xf32>
    %6 = vector.broadcast %1 : vector<1x384xf32> to vector<16x384xf32>
    %7 = arith.addf %5, %6 : vector<16x384xf32>
    %8 = arith.truncf %7 : vector<16x384xf32> to vector<16x384xbf16>
    %c0_4 = arith.constant 0 : index
    %c0_5 = arith.constant 0 : index
    %9 = vector.load %arg3[%c0_4, %c0_5] : memref<384x384xbf16, #tpu.memory_space<vmem>>, vector<384x384xbf16>
    %cst = arith.constant dense<0.000000e+00> : vector<16x384xf32>
    %10 = tpu.matmul %8, %9, %cst {dimension_numbers = #tpu.dot_dimension_numbers<[1], [0], [0], [1], [0, 0, 1, 1], [], []>} : vector<16x384xbf16>, vector<384x384xbf16>, vector<16x384xf32> -> vector<16x384xf32>
    %c0_6 = arith.constant 0 : index
    %c0_7 = arith.constant 0 : index
    %11 = vector.load %arg4[%c0_6, %c0_7] : memref<8x384xf32, #tpu.memory_space<vmem>>, vector<1x384xf32>
    %12 = vector.broadcast %11 : vector<1x384xf32> to vector<16x384xf32>
    %13 = arith.addf %10, %12 : vector<16x384xf32>
    %cst_8 = arith.constant 0.000000e+00 : f32
    %14 = vector.broadcast %cst_8 : f32 to vector<16x384xf32>
    %15 = arith.maximumf %13, %14 : vector<16x384xf32>
    %c16_i32 = arith.constant 16 : i32
    %16 = arith.muli %arg0, %c16_i32 : i32
    %17 = tpu.iota {dimensions = array<i32: 0>} : vector<16x1xi32>
    %18 = vector.broadcast %16 : i32 to vector<16x1xi32>
    %19 = arith.addi %18, %17 : vector<16x1xi32>
    %c16_i32_9 = arith.constant 16 : i32
    %20 = vector.broadcast %c16_i32_9 : i32 to vector<16x1xi32>
    %21 = arith.cmpi slt, %19, %20 : vector<16x1xi32>
    %22 = arith.extui %21 : vector<16x1xi1> to vector<16x1xi32>
    %23 = arith.sitofp %22 : vector<16x1xi32> to vector<16x1xf32>
    %24 = vector.broadcast %23 : vector<16x1xf32> to vector<16x384xf32>
    %25 = arith.mulf %15, %24 : vector<16x384xf32>
    %cst_10 = arith.constant dense<0.000000e+00> : vector<384xf32>
    %26 = vector.multi_reduction <add>, %25, %cst_10 [0] : vector<16x384xf32> to vector<384xf32>
    %27 = vector.shape_cast %26 : vector<384xf32> to vector<1x384xf32>
    %28 = arith.mulf %25, %25 : vector<16x384xf32>
    %cst_11 = arith.constant dense<0.000000e+00> : vector<384xf32>
    %29 = vector.multi_reduction <add>, %28, %cst_11 [0] : vector<16x384xf32> to vector<384xf32>
    %30 = vector.shape_cast %29 : vector<384xf32> to vector<1x384xf32>
    %31 = arith.truncf %15 : vector<16x384xf32> to vector<16x384xbf16>
    %c0_12 = arith.constant 0 : index
    %c0_13 = arith.constant 0 : index
    %32 = vector.load %arg5[%c0_12, %c0_13] : memref<16x384xbf16, #tpu.memory_space<vmem>>, vector<16x384xbf16>
    tpu.vector_store %arg5[%c0_12, %c0_13], %31 {strides = array<i32>} : memref<16x384xbf16, #tpu.memory_space<vmem>>, vector<16x384xbf16>,
    %cst_14 = arith.constant 0.000000e+00 : f32
    %33 = vector.broadcast %cst_14 : f32 to vector<6x384xf32>
    %34 = tpu.concatenate %27, %30, %33 in 0 : vector<1x384xf32>, vector<1x384xf32>, vector<6x384xf32> -> vector<8x384xf32>
    %c0_15 = arith.constant 0 : index
    %c0_16 = arith.constant 0 : index
    %c0_17 = arith.constant 0 : index
    %35 = vector.load %arg6[%c0_15, %c0_16, %c0_17] : memref<1x8x384xf32, #tpu.memory_space<vmem>>, vector<1x8x384xf32>
    %36 = vector.shape_cast %35 : vector<1x8x384xf32> to vector<8x384xf32>
    %37 = vector.shape_cast %34 : vector<8x384xf32> to vector<1x8x384xf32>
    tpu.vector_store %arg6[%c0_15, %c0_16, %c0_17], %37 {strides = array<i32>} : memref<1x8x384xf32, #tpu.memory_space<vmem>>, vector<1x8x384xf32>,
    return
  }
  func.func @transform_0(%arg0: i32) -> (i32, i32) {
    %c0_i32 = arith.constant 0 : i32
    %c0_i32_0 = arith.constant 0 : i32
    return %arg0, %c0_i32 : i32, i32
  }
  func.func @transform_1(%arg0: i32) -> (i32, i32) {
    %c0_i32 = arith.constant 0 : i32
    %c0_i32_0 = arith.constant 0 : i32
    %c0_i32_1 = arith.constant 0 : i32
    return %c0_i32, %c0_i32_0 : i32, i32
  }
  func.func @transform_2(%arg0: i32) -> (i32, i32) {
    %c0_i32 = arith.constant 0 : i32
    %c0_i32_0 = arith.constant 0 : i32
    %c0_i32_1 = arith.constant 0 : i32
    return %c0_i32, %c0_i32_0 : i32, i32
  }
  func.func @transform_3(%arg0: i32) -> (i32, i32) {
    %c0_i32 = arith.constant 0 : i32
    %c0_i32_0 = arith.constant 0 : i32
    %c0_i32_1 = arith.constant 0 : i32
    return %c0_i32, %c0_i32_0 : i32, i32
  }
  func.func @transform_4(%arg0: i32) -> (i32, i32) {
    %c0_i32 = arith.constant 0 : i32
    %c0_i32_0 = arith.constant 0 : i32
    return %arg0, %c0_i32 : i32, i32
  }
  func.func @transform_5(%arg0: i32) -> (i32, i32, i32) {
    %c0_i32 = arith.constant 0 : i32
    %c0_i32_0 = arith.constant 0 : i32
    %c0_i32_1 = arith.constant 0 : i32
    return %arg0, %c0_i32, %c0_i32_0 : i32, i32, i32
  }
}

module attributes {stable_mosaic.version = 11 : i64} {
  func.func @_affine_out_kernel(%arg0: i32, %arg1: memref<16x384xbf16, #tpu.memory_space<vmem>>, %arg2: memref<8x384xf32, #tpu.memory_space<vmem>>, %arg3: memref<16x384xf32, #tpu.memory_space<vmem>>, %arg4: memref<16x384xf32, #tpu.memory_space<vmem>>) attributes {dimension_semantics = [#tpu.dimension_semantics<parallel>], iteration_bounds = array<i64: 1>, scalar_prefetch = 0 : i64, scratch_operands = 0 : i64, tpu.core_type = #tpu.core_type<tc>, window_params = [{transform_indices = @transform_0, window_bounds = array<i64: 16, 384>}, {pipeline_mode = #tpu.pipeline_mode<synchronous>, transform_indices = @transform_1, window_bounds = array<i64: 8, 384>}, {transform_indices = @transform_2, window_bounds = array<i64: 16, 384>}, {transform_indices = @transform_3, window_bounds = array<i64: 16, 384>}]} {
    %c0 = arith.constant 0 : index
    %c0_0 = arith.constant 0 : index
    %0 = vector.load %arg1[%c0, %c0_0] : memref<16x384xbf16, #tpu.memory_space<vmem>>, vector<16x384xbf16>
    %1 = arith.extf %0 : vector<16x384xbf16> to vector<16x384xf32>
    %c0_1 = arith.constant 0 : index
    %c0_2 = arith.constant 0 : index
    %2 = vector.load %arg2[%c0_1, %c0_2] : memref<8x384xf32, #tpu.memory_space<vmem>>, vector<1x384xf32>
    %3 = vector.broadcast %2 : vector<1x384xf32> to vector<16x384xf32>
    %4 = arith.mulf %1, %3 : vector<16x384xf32>
    %c1 = arith.constant 1 : index
    %c0_3 = arith.constant 0 : index
    %5 = vector.load %arg2[%c1, %c0_3] : memref<8x384xf32, #tpu.memory_space<vmem>>, vector<1x384xf32>
    %6 = vector.broadcast %5 : vector<1x384xf32> to vector<16x384xf32>
    %7 = arith.addf %4, %6 : vector<16x384xf32>
    %c0_4 = arith.constant 0 : index
    %c0_5 = arith.constant 0 : index
    %8 = vector.load %arg3[%c0_4, %c0_5] : memref<16x384xf32, #tpu.memory_space<vmem>>, vector<16x384xf32>
    %9 = arith.addf %7, %8 : vector<16x384xf32>
    %c0_6 = arith.constant 0 : index
    %c0_7 = arith.constant 0 : index
    %10 = vector.load %arg4[%c0_6, %c0_7] : memref<16x384xf32, #tpu.memory_space<vmem>>, vector<16x384xf32>
    tpu.vector_store %arg4[%c0_6, %c0_7], %9 {strides = array<i32>} : memref<16x384xf32, #tpu.memory_space<vmem>>, vector<16x384xf32>,
    return
  }
  func.func @transform_0(%arg0: i32) -> (i32, i32) {
    %c0_i32 = arith.constant 0 : i32
    %c0_i32_0 = arith.constant 0 : i32
    return %arg0, %c0_i32 : i32, i32
  }
  func.func @transform_1(%arg0: i32) -> (i32, i32) {
    %c0_i32 = arith.constant 0 : i32
    %c0_i32_0 = arith.constant 0 : i32
    %c0_i32_1 = arith.constant 0 : i32
    return %c0_i32, %c0_i32_0 : i32, i32
  }
  func.func @transform_2(%arg0: i32) -> (i32, i32) {
    %c0_i32 = arith.constant 0 : i32
    %c0_i32_0 = arith.constant 0 : i32
    return %arg0, %c0_i32 : i32, i32
  }
  func.func @transform_3(%arg0: i32) -> (i32, i32) {
    %c0_i32 = arith.constant 0 : i32
    %c0_i32_0 = arith.constant 0 : i32
    return %arg0, %c0_i32 : i32, i32
  }
}

</mosaic_0001>

<bundles_post_ra>
// kernel: graph_net_auto_center.9
= control target key start
LH: loop header
LB: loop body
LE: loop exit
PB: predicated region body
PF: predicated region fallthrough
CT: control target
= control target key end

     0   :  { %vm334_vm0 = vcmask 1040384   ;;  %vm336_vm1 = vcmask 1041408   ;;  %s603_s2 = inlined_call_operand.vmem [shape: bf16[384,128], index: 2, kind: input, shape index: {}]   ;;  %s604_s3 = inlined_call_operand.vmem [shape: f32[8,128], index: 3, kind: input, shape index: {}]   ;;  %s605_s1 = inlined_call_operand.vmem [shape: f32[8,384], index: 1, kind: input, shape index: {}]   ;;  %s606_s0 = inlined_call_operand.vmem [shape: bf16[16,384], index: 0, kind: input, shape index: {}]   ;;  %s607_s4 = inlined_call_operand.vmem [shape: bf16[16,128], index: 4, kind: output, shape index: {0}]   ;;  %s608_s5 = inlined_call_operand.vmem [shape: f32[1,8,128], index: 5, kind: output, shape index: {1}]  }
   0x1   :  { %v451_v0 = vld [vmem:[%s603_s2 + $0x38] sm:$0xff]  ;;  %v450_v3 = vld [vmem:[%s603_s2 + $0x30] sm:$0xff]  ;;  %v449_v6 = vld [vmem:[%s603_s2 + $0x28] sm:$0xff] }
   0x2   :  { %v459_v1 = vld [vmem:[%s603_s2 + $0x78] sm:$0xff]  ;;  %255 = vmatpush.bf16.msra.mxu0 %v451_v0  ;;  %v458_v4 = vld [vmem:[%s603_s2 + $0x70] sm:$0xff]  ;;  %v457_v7 = vld [vmem:[%s603_s2 + $0x68] sm:$0xff] }
   0x3   :  { %v467_v2 = vld [vmem:[%s603_s2 + $0xb8] sm:$0xff]  ;;  %269 = vmatpush.bf16.msra.mxu1 %v459_v1  ;;  %v466_v5 = vld [vmem:[%s603_s2 + $0xb0] sm:$0xff]  ;;  %v465_v8 = vld [vmem:[%s603_s2 + $0xa8] sm:$0xff] }
   0x4   :  { %283 = vmatpush.bf16.msra.mxu2 %v467_v2  ;;  %v448_v9 = vld [vmem:[%s603_s2 + $0x20] sm:$0xff]  ;;  %v447_v12 = vld [vmem:[%s603_s2 + $0x18] sm:$0xff]  ;;  %v24_v16 = vld [vmem:[%s606_s0 + $0xc] sm:$0xff] }
   0x5   :  { %v456_v10 = vld [vmem:[%s603_s2 + $0x60] sm:$0xff]  ;;  %v455_v14 = vld [vmem:[%s603_s2 + $0x58] sm:$0xff]  ;;  %v23_v18 = vld [vmem:[%s606_s0 + $0x8] sm:$0xf]  ;;  %v29_v24 = vunpack.c.l.bf16 %v24_v16  ;;  %v30_v26 = vunpack.c.h.bf16 %v24_v16 }
   0x6   :  { %256 = vmatpush.bf16.msra.mxu0 %v450_v3  ;;  %v464_v11 = vld [vmem:[%s603_s2 + $0xa0] sm:$0xff]  ;;  %v463_v17 = vld [vmem:[%s603_s2 + $0x98] sm:$0xff]  ;;  %v25_v19 = vld [vmem:[%s606_s0 + $0x14] sm:$0xf]  ;;  %v28_v29 = vunpack.c.l.bf16 %v23_v18 }
   0x7   :  { %270 = vmatpush.bf16.msra.mxu1 %v458_v4  ;;  %v19_v13 = vld [vmem:[%s605_s1] ss:$8 sm:$0x7]  ;;  %v347_v22 = vld [vmem:[%s605_s1 + $0x1] ss:$8 sm:$0x7]  ;;  %v31_v30 = vunpack.c.l.bf16 %v25_v19 }
   0x8   :  { %284 = vmatpush.bf16.msra.mxu2 %v466_v5  ;;  %v22_v15 = vld [vmem:[%s606_s0] sm:$0xff]  ;;  %v33_v20 = vperm.slane %v19_v13, 0  ;;  %v34_v21 = vperm.slane %v19_v13, 1  ;;  %v446_v27 = vld [vmem:[%s603_s2 + $0x10] sm:$0xff]  ;;  %v35_v31 = vperm.slane %v19_v13, 2  ;;  %v46_v33 = vperm.slane %v347_v22, 0 }
   0x9   :  { %v26_v23 = vunpack.c.l.bf16 %v22_v15  ;;  %v27_v25 = vunpack.c.h.bf16 %v22_v15  ;;  %v454_v28 = vld [vmem:[%s603_s2 + $0x50] sm:$0xff]  ;;  %v47_v34 = vperm.slane %v347_v22, 1  ;;  %v445_v39 = vld [vmem:[%s603_s2 + $0x8] sm:$0xff]  ;;  %v48_v43 = vperm.slane %v347_v22, 2  ;;  %v444_v49 = vld [vmem:[%s603_s2] sm:$0xff] }
   0xa   :  { %257 = vmatpush.bf16.msra.mxu0 %v449_v6  ;;  %v462_v32 = vld [vmem:[%s603_s2 + $0x90] sm:$0xff]  ;;  %v42_v36 = vmul.f32 %v33_v20, %v29_v24  ;;  %v43_v38 = vmul.f32 %v34_v21, %v30_v26  ;;  %v453_v40 = vld [vmem:[%s603_s2 + $0x48] sm:$0xff]  ;;  %v41_v41 = vmul.f32 %v35_v31, %v28_v29  ;;  %v44_v42 = vmul.f32 %v35_v31, %v31_v30  ;;  %v452_v50 = vld [vmem:[%s603_s2 + $0x40] sm:$0xff] }
   0xb   :  { %271 = vmatpush.bf16.msra.mxu1 %v457_v7  ;;  %v39_v35 = vmul.f32 %v33_v20, %v26_v23  ;;  %v40_v37 = vmul.f32 %v34_v21, %v27_v25  ;;  %v461_v44 = vld [vmem:[%s603_s2 + $0x88] sm:$0xff]  ;;  %v460_v53 = vld [vmem:[%s603_s2 + $0x80] sm:$0xff] }
   0xc   :  { %285 = vmatpush.bf16.msra.mxu2 %v465_v8  ;;  %v55_v46 = vadd.f32 %v46_v33, %v42_v36  ;;  %v56_v48 = vadd.f32 %v47_v34, %v43_v38  ;;  %v54_v51 = vadd.f32 %v48_v43, %v41_v41  ;;  %v57_v52 = vadd.f32 %v48_v43, %v44_v42  ;;  %v473_v57 = vld [vmem:[%s604_s3] ss:$0 sm:$0xff] }
   0xd   :  { %v52_v45 = vadd.f32 %v46_v33, %v39_v35  ;;  %v53_v47 = vadd.f32 %v47_v34, %v40_v37 }
   0xe   :  { %258 = vmatpush.bf16.msra.mxu0 %v448_v9  ;;  %v60_v56 = vpack.c.bf16 %v57_v52, %v54_v51 }
   0xf   :  { %272 = vmatpush.bf16.msra.mxu1 %v456_v10  ;;  %v58_v54 = vpack.c.bf16 %v55_v46, %v52_v45  ;;  %v59_v55 = vpack.c.bf16 %v56_v48, %v53_v47 }
  0x10   :  { %286 = vmatpush.bf16.msra.mxu2 %v464_v11 }
  0x12   :  { %259 = vmatpush.bf16.msra.mxu0 %v447_v12 }
  0x13   :  { %273 = vmatpush.bf16.msra.mxu1 %v455_v14 }
  0x14   :  { %287 = vmatpush.bf16.msra.mxu2 %v463_v17 }
  0x16   :  { %260 = vmatpush.bf16.msra.mxu0 %v446_v27 }
  0x17   :  { %274 = vmatpush.bf16.msra.mxu1 %v454_v28 }
  0x18   :  { %288 = vmatpush.bf16.msra.mxu2 %v462_v32 }
  0x1a   :  { %261 = vmatpush.bf16.msra.mxu0 %v445_v39 }
  0x1b   :  { %275 = vmatpush.bf16.msra.mxu1 %v453_v40 }
  0x1c   :  { %289 = vmatpush.bf16.msra.mxu2 %v461_v44 }
  0x1e   :  { %262 = vmatpush.bf16.msra.mxu0 %v444_v49 }
  0x1f   :  { %276 = vmatpush.bf16.msra.mxu1 %v452_v50 }
  0x20   :  { %290 = vmatpush.bf16.msra.mxu2 %v460_v53 }
  0x21   :  { %263 = vmatmul.bf16.vlgmr.msra.gmra.mxu0 %v58_v54 }
  0x22   :  { %277 = vmatmul.bf16.vlgmr.msra.gmra.mxu1 %v59_v55 }
  0x23   :  { %291 = vmatmul.bf16.vlgmr.msra.gmra.mxu2 %v60_v56 }
  0x9e   :  { %v264_v58 = vpop.f32.mrf.mxu0 }
  0x9f   :  { %v278_v59 = vpop.f32.mrf.mxu1  ;;  %v265_v60 = vadd.f32 %v473_v57, %v264_v58 }
  0xa1   :  { %v279_v62 = vadd.f32 %v278_v59, %v265_v60 }
  0xa6   :  { %v292_v61 = vpop.f32.mrf.mxu2  ;;  %v266_v63 = vpop.f32.mrf.mxu0 }
  0xa7   :  { %v267_v0 = vadd.f32 %v473_v57, %v266_v63  ;;  %v293_v1 = vadd.f32 %v292_v61, %v279_v62  ;;  %v280_v2 = vpop.f32.mrf.mxu1 }
  0xa9   :  { %v281_v3 = vadd.f32 %v280_v2, %v267_v0  ;;  %v297_v5 = vmax.f32 %v293_v1, 0.0 }
  0xab   :  { %v321_v8 = vmul.f32 %v297_v5, %v297_v5 }
  0xae   :  { %v294_v4 = vpop.f32.mrf.mxu2 }
  0xaf   :  { %v295_v6 = vadd.f32 %v294_v4, %v281_v3 }
  0xb1   :  { %v298_v7 = vmax.f32 %v295_v6, 0.0 }
  0xb3   :  { %v314_v9 = vadd.f32 %v298_v7, %v297_v5  ;;  %v322_v10 = vmul.f32 %v298_v7, %v298_v7  ;;  %v471_v11 = vpack.c.bf16 %v298_v7, %v297_v5 }
  0xb5   :  { %v315_v12 = vrot.slane %v314_v9, 4  ;;  %v323_v13 = vadd.f32 %v322_v10, %v321_v8  ;;  %472 = vst [vmem:[%s607_s4] sm:$0xff] %v471_v11  }
  0xb7   :  { %v316_v14 = vadd.f32 %v315_v12, %v314_v9  ;;  %v324_v15 = vrot.slane %v323_v13, 4 }
  0xb9   :  { %v317_v16 = vrot.slane %v316_v14, 2  ;;  %v325_v17 = vadd.f32 %v324_v15, %v323_v13 }
  0xbb   :  { %v318_v18 = vadd.f32 %v317_v16, %v316_v14  ;;  %v326_v19 = vrot.slane %v325_v17, 2 }
  0xbd   :  { %v319_v20 = vrot.slane %v318_v18, 1  ;;  %v327_v21 = vadd.f32 %v326_v19, %v325_v17 }
  0xbf   :  { %v328_v22 = vrot.slane %v327_v21, 1  ;;  %v320_v23 = vadd.f32 %v319_v20, %v318_v18 }
  0xc1   :  { %v329_v24 = vadd.f32 %v328_v22, %v327_v21 }
  0xc3   :  { %v335_v25 = vsel %vm334_vm0, %v320_v23, %v329_v24 }
  0xc4   :  { %v337_v26 = vsel %vm336_vm1, %v335_v25, 0.0 }
  0xc5   :  { %338 = vst [vmem:[%s608_s5] sm:$0xff] %v337_v26 }

// kernel: graph_net_auto_center.11
= control target key start
LH: loop header
LB: loop body
LE: loop exit
PB: predicated region body
PF: predicated region fallthrough
CT: control target
= control target key end

     0   :  { %s65_s0 = inlined_call_operand.vmem [shape: bf16[16,128], index: 0, kind: input, shape index: {}]   ;;  %s66_s1 = inlined_call_operand.vmem [shape: f32[8,128], index: 1, kind: input, shape index: {}]   ;;  %s67_s2 = inlined_call_operand.vmem [shape: f32[16,128], index: 2, kind: output, shape index: {}]  }
   0x1   :  { %v30_v0 = vld [vmem:[%s65_s0] sm:$0xff]  }
   0x2   :  { %v33_v1 = vld [vmem:[%s66_s1] ss:$0 sm:$0xff]  ;;  %v31_v2 = vunpack.c.l.bf16 %v30_v0  ;;  %v34_v3 = vld [vmem:[%s66_s1 + $0x1] ss:$0 sm:$0xff]  ;;  %v32_v4 = vunpack.c.h.bf16 %v30_v0 }
   0x4   :  { %v17_v5 = vmul.f32 %v33_v1, %v31_v2  ;;  %v18_v6 = vmul.f32 %v33_v1, %v32_v4 }
   0x6   :  { %v21_v7 = vadd.f32 %v34_v3, %v17_v5  ;;  %v22_v8 = vadd.f32 %v34_v3, %v18_v6 }
   0x8   :  { %23 = vst [vmem:[%s67_s2] sm:$0xff] %v21_v7 }
   0x9   :  { %24 = vst [vmem:[%s67_s2 + $0x8] sm:$0xff] %v22_v8 }

// kernel: graph_net_auto_center.10
= control target key start
LH: loop header
LB: loop body
LE: loop exit
PB: predicated region body
PF: predicated region fallthrough
CT: control target
= control target key end

     0   :  { %vm149_vm0 = vcmask 1040384   ;;  %vm151_vm1 = vcmask 1041408   ;;  %s286_s2 = inlined_call_operand.vmem [shape: bf16[128,128], index: 2, kind: input, shape index: {}]   ;;  %s287_s1 = inlined_call_operand.vmem [shape: f32[8,128], index: 1, kind: input, shape index: {}]   ;;  %s288_s3 = inlined_call_operand.vmem [shape: f32[8,128], index: 3, kind: input, shape index: {}]   ;;  %s289_s0 = inlined_call_operand.vmem [shape: bf16[16,128], index: 0, kind: input, shape index: {}]   ;;  %s290_s4 = inlined_call_operand.vmem [shape: bf16[16,128], index: 4, kind: output, shape index: {0}]   ;;  %s291_s5 = inlined_call_operand.vmem [shape: f32[1,8,128], index: 5, kind: output, shape index: {1}]  }
   0x1   :  { %v201_v0 = vld [vmem:[%s286_s2 + $0x38] sm:$0xff]  ;;  %v200_v1 = vld [vmem:[%s286_s2 + $0x30] sm:$0xff]  ;;  %v199_v2 = vld [vmem:[%s286_s2 + $0x28] sm:$0xff] }
   0x2   :  { %98 = vmatpush.bf16.msra.mxu0 %v201_v0  ;;  %v198_v3 = vld [vmem:[%s286_s2 + $0x20] sm:$0xff]  ;;  %v197_v4 = vld [vmem:[%s286_s2 + $0x18] sm:$0xff]  ;;  %v196_v9 = vld [vmem:[%s286_s2 + $0x10] sm:$0xff] }
   0x3   :  { %v203_v5 = vld [vmem:[%s289_s0] sm:$0xff]   ;;  %v195_v13 = vld [vmem:[%s286_s2 + $0x8] sm:$0xff] }
   0x4   :  { %v204_v6 = vunpack.c.l.bf16 %v203_v5  ;;  %v205_v7 = vunpack.c.h.bf16 %v203_v5  ;;  %v211_v8 = vld [vmem:[%s287_s1] ss:$0 sm:$0xff]  ;;  %v212_v12 = vld [vmem:[%s287_s1 + $0x1] ss:$0 sm:$0xff] }
   0x5   :  { %v194_v16 = vld [vmem:[%s286_s2] sm:$0xff] }
   0x6   :  { %99 = vmatpush.bf16.msra.mxu0 %v200_v1  ;;  %v26_v10 = vmul.f32 %v211_v8, %v204_v6  ;;  %v27_v11 = vmul.f32 %v211_v8, %v205_v7  ;;  %v213_v19 = vld [vmem:[%s288_s3] ss:$0 sm:$0xff] }
   0x8   :  { %v29_v14 = vadd.f32 %v212_v12, %v26_v10  ;;  %v30_v15 = vadd.f32 %v212_v12, %v27_v11 }
   0xa   :  { %100 = vmatpush.bf16.msra.mxu0 %v199_v2  ;;  %v31_v17 = vpack.c.bf16 %v30_v15, %v29_v14 }
   0xe   :  { %101 = vmatpush.bf16.msra.mxu0 %v198_v3 }
  0x12   :  { %102 = vmatpush.bf16.msra.mxu0 %v197_v4 }
  0x16   :  { %103 = vmatpush.bf16.msra.mxu0 %v196_v9 }
  0x1a   :  { %104 = vmatpush.bf16.msra.mxu0 %v195_v13 }
  0x1e   :  { %105 = vmatpush.bf16.msra.mxu0 %v194_v16 }
  0x21   :  { %106 = vmatmul.bf16.vlgmr.msra.gmra.mxu0 %v31_v17 }
  0x9e   :  { %v107_v18 = vpop.f32.mrf.mxu0 }
  0x9f   :  { %v108_v20 = vadd.f32 %v213_v19, %v107_v18 }
  0xa1   :  { %v112_v22 = vmax.f32 %v108_v20, 0.0 }
  0xa3   :  { %v136_v25 = vmul.f32 %v112_v22, %v112_v22 }
  0xa6   :  { %v109_v21 = vpop.f32.mrf.mxu0 }
  0xa7   :  { %v110_v23 = vadd.f32 %v213_v19, %v109_v21 }
  0xa9   :  { %v113_v24 = vmax.f32 %v110_v23, 0.0 }
  0xab   :  { %v129_v26 = vadd.f32 %v113_v24, %v112_v22  ;;  %v137_v27 = vmul.f32 %v113_v24, %v113_v24  ;;  %v209_v28 = vpack.c.bf16 %v113_v24, %v112_v22 }
  0xad   :  { %v130_v29 = vrot.slane %v129_v26, 4  ;;  %v138_v30 = vadd.f32 %v137_v27, %v136_v25  ;;  %210 = vst [vmem:[%s290_s4] sm:$0xff] %v209_v28  }
  0xaf   :  { %v131_v31 = vadd.f32 %v130_v29, %v129_v26  ;;  %v139_v32 = vrot.slane %v138_v30, 4 }
  0xb1   :  { %v132_v33 = vrot.slane %v131_v31, 2  ;;  %v140_v34 = vadd.f32 %v139_v32, %v138_v30 }
  0xb3   :  { %v133_v35 = vadd.f32 %v132_v33, %v131_v31  ;;  %v141_v36 = vrot.slane %v140_v34, 2 }
  0xb5   :  { %v134_v37 = vrot.slane %v133_v35, 1  ;;  %v142_v38 = vadd.f32 %v141_v36, %v140_v34 }
  0xb7   :  { %v143_v39 = vrot.slane %v142_v38, 1  ;;  %v135_v40 = vadd.f32 %v134_v37, %v133_v35 }
  0xb9   :  { %v144_v41 = vadd.f32 %v143_v39, %v142_v38 }
  0xbb   :  { %v150_v42 = vsel %vm149_vm0, %v135_v40, %v144_v41 }
  0xbc   :  { %v152_v43 = vsel %vm151_vm1, %v150_v42, 0.0 }
  0xbd   :  { %153 = vst [vmem:[%s291_s5] sm:$0xff] %v152_v43 }

// kernel: graph_net_auto_center.14
= control target key start
LH: loop header
LB: loop body
LE: loop exit
PB: predicated region body
PF: predicated region fallthrough
CT: control target
= control target key end

     0   :  { %s751_s9 = smov 0   ;;  %s1117_s0 = inlined_call_operand.vmem [shape: bf16[768,384], index: 0, kind: input, shape index: {}]   ;;  %s1118_s1 = inlined_call_operand.vmem [shape: f32[8,384], index: 1, kind: input, shape index: {}]   ;;  %s1119_s2 = inlined_call_operand.vmem [shape: bf16[768,384], index: 2, kind: output, shape index: {}]  }
   0x1 LB: > { %s707_s10 = sadd.s32 4294967295, %s734_s9   ;;  %p711_p0 = scmp.ge.s32.totalorder %s734_s9, 1  ;;  %s734_s9 = sphi %s751_s9, %s12_s9  }
   0x2   : > { %p114_p1 = scmp.lt.s32.totalorder %s734_s9, 4 }
   0x4   : > { %p115_p2 = pnand %p711_p0, %p114_p1 }
   0x5   : > { %s712_s11 = sshll.u32 (!%p115_p2), %s707_s10, 5 }
   0x6   : > { %118 = sbr.rel (%p115_p2) target bundleno = 109 (0x6d), region = 28  ;;  %p139_p3 = scmp.lt.s32.totalorder (!%p115_p2), %s712_s11, 95 }
   0xb   : > { %s1121_s11 = smov (!%p139_p3, %s712_s11), 95  ;;  %v312_v0 = vld [vmem:[%s1118_s1] ss:$8 sm:$0x7] }
   0xc   : > { %v716_v1 = vld [vmem:[%s1118_s1 + $0x1] ss:$8 sm:$0x7]  ;;  %s719_s16 = smul.u32 12, %s1121_s11  ;;  %v775_v2 = vperm.slane %v312_v0, 0  ;;  %v777_v3 = vperm.slane %v312_v0, 1 }
   0xd   : > { %v779_v4 = vperm.slane %v716_v1, 0  ;;  %v781_v5 = vperm.slane %v312_v0, 2  ;;  %v784_v7 = vperm.slane %v716_v1, 1  ;;  %v787_v9 = vperm.slane %v716_v1, 2 }
   0xe   : > { %s773_s19 = scalar_lea.vmem %s1117_s0, %s719_s16  ;;  %s811_s22 = scalar_lea.vmem %s1119_s2, %s719_s16 }
   0xf   : > { %v152_v6 = vld [vmem:[%s773_s19] sm:$0xff]  ;;  %v153_v8 = vld [vmem:[%s773_s19 + $0x8] sm:$0xf]  ;;  %v154_v10 = vld [vmem:[%s773_s19 + $0xc] sm:$0xff] }
  0x10   : > { %v216_v11 = vunpack.c.l.bf16 %v152_v6  ;;  %v217_v12 = vunpack.c.h.bf16 %v152_v6  ;;  %v218_v13 = vunpack.c.l.bf16 %v153_v8  ;;  %v219_v14 = vunpack.c.l.bf16 %v154_v10  ;;  %v155_v15 = vld [vmem:[%s773_s19 + $0x14] sm:$0xf]  ;;  %v156_v16 = vld [vmem:[%s773_s19 + $0x18] sm:$0xff]  ;;  %v157_v29 = vld [vmem:[%s773_s19 + $0x20] sm:$0xf] }
  0x11   : > { %v220_v17 = vunpack.c.h.bf16 %v154_v10  ;;  %v221_v18 = vunpack.c.l.bf16 %v155_v15  ;;  %v222_v19 = vunpack.c.l.bf16 %v156_v16  ;;  %v223_v20 = vunpack.c.h.bf16 %v156_v16  ;;  %v158_v30 = vld [vmem:[%s773_s19 + $0x24] sm:$0xff]  ;;  %v159_v39 = vld [vmem:[%s773_s19 + $0x2c] sm:$0xf]  ;;  %v160_v40 = vld [vmem:[%s773_s19 + $0x30] sm:$0xff] }
  0x12   : > { %v320_v21 = vmul.f32 %v775_v2, %v216_v11  ;;  %v321_v22 = vmul.f32 %v777_v3, %v217_v12  ;;  %v322_v23 = vmul.f32 %v781_v5, %v218_v13  ;;  %v323_v24 = vmul.f32 %v775_v2, %v219_v14  ;;  %v161_v45 = vld [vmem:[%s773_s19 + $0x38] sm:$0xf]  ;;  %v162_v46 = vld [vmem:[%s773_s19 + $0x3c] sm:$0xff]  ;;  %v163_v8 = vld [vmem:[%s773_s19 + $0x44] sm:$0xf] }
  0x13   : > { %v324_v25 = vmul.f32 %v777_v3, %v220_v17  ;;  %v325_v26 = vmul.f32 %v781_v5, %v221_v18  ;;  %v326_v27 = vmul.f32 %v775_v2, %v222_v19  ;;  %v327_v28 = vmul.f32 %v777_v3, %v223_v20  ;;  %v164_v10 = vld [vmem:[%s773_s19 + $0x48] sm:$0xff]  ;;  %v165_v19 = vld [vmem:[%s773_s19 + $0x50] sm:$0xf]  ;;  %v166_v20 = vld [vmem:[%s773_s19 + $0x54] sm:$0xff] }
  0x14   : > { %v425_v31 = vadd.f32 %v779_v4, %v320_v21  ;;  %v426_v32 = vadd.f32 %v784_v7, %v321_v22  ;;  %v427_v33 = vadd.f32 %v787_v9, %v322_v23  ;;  %v428_v34 = vadd.f32 %v779_v4, %v323_v24 }
  0x15   : > { %v429_v35 = vadd.f32 %v784_v7, %v324_v25  ;;  %v430_v36 = vadd.f32 %v787_v9, %v325_v26  ;;  %v431_v37 = vadd.f32 %v779_v4, %v326_v27  ;;  %v432_v38 = vadd.f32 %v784_v7, %v327_v28  ;;  %v167_v25 = vld [vmem:[%s773_s19 + $0x5c] sm:$0xf] }
  0x16   : > { %v521_v41 = vpack.c.bf16 %v426_v32, %v425_v31  ;;  %v522_v42 = vpack.c.bf16 %v427_v33, %v427_v33  ;;  %v224_v43 = vunpack.c.l.bf16 %v157_v29  ;;  %v225_v44 = vunpack.c.l.bf16 %v158_v30 }
  0x17   : > { %v523_v47 = vpack.c.bf16 %v429_v35, %v428_v34  ;;  %v524_v48 = vpack.c.bf16 %v430_v36, %v430_v36  ;;  %v525_v49 = vpack.c.bf16 %v432_v38, %v431_v37  ;;  %v226_v50 = vunpack.c.h.bf16 %v158_v30  ;;  %v168_v34 = vld [vmem:[%s773_s19 + $0x60] sm:$0xff] }
  0x18   : > { %585 = vst [vmem:[%s811_s22] sm:$0xff] %v521_v41  ;;  %v328_v51 = vmul.f32 %v781_v5, %v224_v43  ;;  %v329_v52 = vmul.f32 %v775_v2, %v225_v44  ;;  %v227_v53 = vunpack.c.l.bf16 %v159_v39  ;;  %v228_v54 = vunpack.c.l.bf16 %v160_v40 }
  0x19   : > { %586 = vst [vmem:[%s811_s22 + $0x8] sm:$0xf] %v522_v42  ;;  %v330_v55 = vmul.f32 %v777_v3, %v226_v50  ;;  %v229_v56 = vunpack.c.h.bf16 %v160_v40  ;;  %v230_v57 = vunpack.c.l.bf16 %v161_v45  ;;  %v231_v58 = vunpack.c.l.bf16 %v162_v46 }
  0x1a   : > { %587 = vst [vmem:[%s811_s22 + $0xc] sm:$0xff] %v523_v47  ;;  %v433_v59 = vadd.f32 %v787_v9, %v328_v51  ;;  %v434_v60 = vadd.f32 %v779_v4, %v329_v52  ;;  %v331_v61 = vmul.f32 %v781_v5, %v227_v53  ;;  %v332_v62 = vmul.f32 %v775_v2, %v228_v54  ;;  %v169_v47 = vld [vmem:[%s773_s19 + $0x68] sm:$0xf] }
  0x1b   : > { %588 = vst [vmem:[%s811_s22 + $0x14] sm:$0xf] %v524_v48  ;;  %v435_v63 = vadd.f32 %v784_v7, %v330_v55  ;;  %v333_v0 = vmul.f32 %v777_v3, %v229_v56  ;;  %v334_v1 = vmul.f32 %v781_v5, %v230_v57  ;;  %v232_v6 = vunpack.c.h.bf16 %v162_v46  ;;  %v170_v48 = vld [vmem:[%s773_s19 + $0x6c] sm:$0xff]  ;;  %v171_v57 = vld [vmem:[%s773_s19 + $0x74] sm:$0xf] }
  0x1c   : > { %589 = vst [vmem:[%s811_s22 + $0x18] sm:$0xff] %v525_v49  ;;  %v526_v11 = vpack.c.bf16 %v433_v59, %v433_v59  ;;  %v436_v12 = vadd.f32 %v787_v9, %v331_v61  ;;  %v437_v13 = vadd.f32 %v779_v4, %v332_v62  ;;  %v335_v14 = vmul.f32 %v775_v2, %v231_v58  ;;  %v172_v62 = vld [vmem:[%s773_s19 + $0x78] sm:$0xff] }
  0x1d   : > { %v527_v15 = vpack.c.bf16 %v435_v63, %v434_v60  ;;  %v438_v16 = vadd.f32 %v784_v7, %v333_v0  ;;  %v439_v17 = vadd.f32 %v787_v9, %v334_v1  ;;  %v336_v18 = vmul.f32 %v777_v3, %v232_v6  ;;  %v173_v63 = vld [vmem:[%s773_s19 + $0x80] sm:$0xf] }
  0x1e   : > { %590 = vst [vmem:[%s811_s22 + $0x20] sm:$0xf] %v526_v11  ;;  %v528_v21 = vpack.c.bf16 %v436_v12, %v436_v12  ;;  %v440_v22 = vadd.f32 %v779_v4, %v335_v14  ;;  %v233_v23 = vunpack.c.l.bf16 %v163_v8  ;;  %v234_v24 = vunpack.c.l.bf16 %v164_v10 }
  0x1f   : > { %591 = vst [vmem:[%s811_s22 + $0x24] sm:$0xff] %v527_v15  ;;  %v529_v26 = vpack.c.bf16 %v438_v16, %v437_v13  ;;  %v530_v27 = vpack.c.bf16 %v439_v17, %v439_v17  ;;  %v441_v28 = vadd.f32 %v784_v7, %v336_v18  ;;  %v235_v29 = vunpack.c.h.bf16 %v164_v10  ;;  %v174_v18 = vld [vmem:[%s773_s19 + $0x84] sm:$0xff] }
  0x20   : > { %592 = vst [vmem:[%s811_s22 + $0x2c] sm:$0xf] %v528_v21  ;;  %v337_v30 = vmul.f32 %v781_v5, %v233_v23  ;;  %v338_v31 = vmul.f32 %v775_v2, %v234_v24  ;;  %v236_v32 = vunpack.c.l.bf16 %v165_v19  ;;  %v237_v33 = vunpack.c.l.bf16 %v166_v20 }
  0x21   : > { %593 = vst [vmem:[%s811_s22 + $0x30] sm:$0xff] %v529_v26  ;;  %v531_v35 = vpack.c.bf16 %v441_v28, %v440_v22  ;;  %v339_v36 = vmul.f32 %v777_v3, %v235_v29  ;;  %v238_v37 = vunpack.c.h.bf16 %v166_v20  ;;  %v239_v38 = vunpack.c.l.bf16 %v167_v25 }
  0x22   : > { %594 = vst [vmem:[%s811_s22 + $0x38] sm:$0xf] %v530_v27  ;;  %v442_v39 = vadd.f32 %v787_v9, %v337_v30  ;;  %v443_v40 = vadd.f32 %v779_v4, %v338_v31  ;;  %v340_v41 = vmul.f32 %v781_v5, %v236_v32  ;;  %v341_v42 = vmul.f32 %v775_v2, %v237_v33  ;;  %v175_v27 = vld [vmem:[%s773_s19 + $0x8c] sm:$0xf]  ;;  %v176_v32 = vld [vmem:[%s773_s19 + $0x90] sm:$0xff] }
  0x23   : > { %595 = vst [vmem:[%s811_s22 + $0x3c] sm:$0xff] %v531_v35  ;;  %v444_v43 = vadd.f32 %v784_v7, %v339_v36  ;;  %v342_v44 = vmul.f32 %v777_v3, %v238_v37  ;;  %v343_v45 = vmul.f32 %v781_v5, %v239_v38  ;;  %v240_v46 = vunpack.c.l.bf16 %v168_v34  ;;  %v177_v37 = vld [vmem:[%s773_s19 + $0x98] sm:$0xf] }
  0x24   : > { %v532_v49 = vpack.c.bf16 %v442_v39, %v442_v39  ;;  %v445_v50 = vadd.f32 %v787_v9, %v340_v41  ;;  %v446_v51 = vadd.f32 %v779_v4, %v341_v42  ;;  %v241_v52 = vunpack.c.h.bf16 %v168_v34  ;;  %v178_v42 = vld [vmem:[%s773_s19 + $0x9c] sm:$0xff] }
  0x25   : > { %v533_v53 = vpack.c.bf16 %v444_v43, %v443_v40  ;;  %v447_v54 = vadd.f32 %v784_v7, %v342_v44  ;;  %v448_v55 = vadd.f32 %v787_v9, %v343_v45  ;;  %v344_v56 = vmul.f32 %v775_v2, %v240_v46 }
  0x26   : > { %596 = vst [vmem:[%s811_s22 + $0x44] sm:$0xf] %v532_v49  ;;  %v534_v58 = vpack.c.bf16 %v445_v50, %v445_v50  ;;  %v345_v59 = vmul.f32 %v777_v3, %v241_v52  ;;  %v242_v60 = vunpack.c.l.bf16 %v169_v47  ;;  %v243_v61 = vunpack.c.l.bf16 %v170_v48  ;;  %v179_v47 = vld [vmem:[%s773_s19 + $0xa4] sm:$0xf] }
  0x27   : > { %597 = vst [vmem:[%s811_s22 + $0x48] sm:$0xff] %v533_v53  ;;  %v535_v0 = vpack.c.bf16 %v447_v54, %v446_v51  ;;  %v536_v1 = vpack.c.bf16 %v448_v55, %v448_v55  ;;  %v449_v6 = vadd.f32 %v779_v4, %v344_v56  ;;  %v244_v8 = vunpack.c.h.bf16 %v170_v48  ;;  %v180_v56 = vld [vmem:[%s773_s19 + $0xa8] sm:$0xff] }
  0x28   : > { %598 = vst [vmem:[%s811_s22 + $0x50] sm:$0xf] %v534_v58  ;;  %v450_v10 = vadd.f32 %v784_v7, %v345_v59  ;;  %v346_v11 = vmul.f32 %v781_v5, %v242_v60  ;;  %v347_v12 = vmul.f32 %v775_v2, %v243_v61  ;;  %v245_v13 = vunpack.c.l.bf16 %v171_v57 }
  0x29   : > { %599 = vst [vmem:[%s811_s22 + $0x54] sm:$0xff] %v535_v0  ;;  %v348_v14 = vmul.f32 %v777_v3, %v244_v8  ;;  %v246_v15 = vunpack.c.l.bf16 %v172_v62  ;;  %v247_v16 = vunpack.c.h.bf16 %v172_v62  ;;  %v248_v17 = vunpack.c.l.bf16 %v173_v63 }
  0x2a   : > { %600 = vst [vmem:[%s811_s22 + $0x5c] sm:$0xf] %v536_v1  ;;  %v537_v19 = vpack.c.bf16 %v450_v10, %v449_v6  ;;  %v451_v20 = vadd.f32 %v787_v9, %v346_v11  ;;  %v452_v21 = vadd.f32 %v779_v4, %v347_v12  ;;  %v349_v22 = vmul.f32 %v781_v5, %v245_v13  ;;  %v181_v1 = vld [vmem:[%s773_s19 + $0xb0] sm:$0xf]  ;;  %v182_v12 = vld [vmem:[%s773_s19 + $0xb4] sm:$0xff] }
  0x2b   : > { %v453_v23 = vadd.f32 %v784_v7, %v348_v14  ;;  %v350_v24 = vmul.f32 %v775_v2, %v246_v15  ;;  %v351_v25 = vmul.f32 %v777_v3, %v247_v16  ;;  %v352_v26 = vmul.f32 %v781_v5, %v248_v17  ;;  %v183_v17 = vld [vmem:[%s773_s19 + $0xbc] sm:$0xf] }
  0x2c   : > { %601 = vst [vmem:[%s811_s22 + $0x60] sm:$0xff] %v537_v19  ;;  %v538_v28 = vpack.c.bf16 %v451_v20, %v451_v20  ;;  %v454_v29 = vadd.f32 %v787_v9, %v349_v22  ;;  %v249_v30 = vunpack.c.l.bf16 %v174_v18  ;;  %v250_v31 = vunpack.c.h.bf16 %v174_v18  ;;  %v184_v22 = vld [vmem:[%s773_s19 + $0xc0] sm:$0xff] }
  0x2d   : > { %v539_v33 = vpack.c.bf16 %v453_v23, %v452_v21  ;;  %v455_v34 = vadd.f32 %v779_v4, %v350_v24  ;;  %v456_v35 = vadd.f32 %v784_v7, %v351_v25  ;;  %v457_v36 = vadd.f32 %v787_v9, %v352_v26 }
  0x2e   : > { %602 = vst [vmem:[%s811_s22 + $0x68] sm:$0xf] %v538_v28  ;;  %v540_v38 = vpack.c.bf16 %v454_v29, %v454_v29  ;;  %v353_v39 = vmul.f32 %v775_v2, %v249_v30  ;;  %v354_v40 = vmul.f32 %v777_v3, %v250_v31  ;;  %v251_v41 = vunpack.c.l.bf16 %v175_v27  ;;  %v185_v27 = vld [vmem:[%s773_s19 + $0xc8] sm:$0xf] }
  0x2f   : > { %603 = vst [vmem:[%s811_s22 + $0x6c] sm:$0xff] %v539_v33  ;;  %v541_v43 = vpack.c.bf16 %v456_v35, %v455_v34  ;;  %v542_v44 = vpack.c.bf16 %v457_v36, %v457_v36  ;;  %v252_v45 = vunpack.c.l.bf16 %v176_v32  ;;  %v253_v46 = vunpack.c.h.bf16 %v176_v32 }
  0x30   : > { %604 = vst [vmem:[%s811_s22 + $0x74] sm:$0xf] %v540_v38  ;;  %v458_v48 = vadd.f32 %v779_v4, %v353_v39  ;;  %v459_v49 = vadd.f32 %v784_v7, %v354_v40  ;;  %v355_v50 = vmul.f32 %v781_v5, %v251_v41  ;;  %v254_v51 = vunpack.c.l.bf16 %v177_v37  ;;  %v186_v40 = vld [vmem:[%s773_s19 + $0xcc] sm:$0xff] }
  0x31   : > { %605 = vst [vmem:[%s811_s22 + $0x78] sm:$0xff] %v541_v43  ;;  %v356_v52 = vmul.f32 %v775_v2, %v252_v45  ;;  %v357_v53 = vmul.f32 %v777_v3, %v253_v46  ;;  %v255_v54 = vunpack.c.l.bf16 %v178_v42  ;;  %v256_v55 = vunpack.c.h.bf16 %v178_v42  ;;  %v187_v45 = vld [vmem:[%s773_s19 + $0xd4] sm:$0xf] }
  0x32   : > { %606 = vst [vmem:[%s811_s22 + $0x80] sm:$0xf] %v542_v44  ;;  %v543_v57 = vpack.c.bf16 %v459_v49, %v458_v48  ;;  %v460_v58 = vadd.f32 %v787_v9, %v355_v50  ;;  %v358_v59 = vmul.f32 %v781_v5, %v254_v51  ;;  %v257_v60 = vunpack.c.l.bf16 %v179_v47  ;;  %v188_v50 = vld [vmem:[%s773_s19 + $0xd8] sm:$0xff] }
  0x33   : > { %v461_v61 = vadd.f32 %v779_v4, %v356_v52  ;;  %v462_v62 = vadd.f32 %v784_v7, %v357_v53  ;;  %v359_v63 = vmul.f32 %v775_v2, %v255_v54  ;;  %v360_v0 = vmul.f32 %v777_v3, %v256_v55  ;;  %v189_v55 = vld [vmem:[%s773_s19 + $0xe0] sm:$0xf] }
  0x34   : > { %607 = vst [vmem:[%s811_s22 + $0x84] sm:$0xff] %v543_v57  ;;  %v544_v6 = vpack.c.bf16 %v460_v58, %v460_v58  ;;  %v463_v8 = vadd.f32 %v787_v9, %v358_v59  ;;  %v361_v10 = vmul.f32 %v781_v5, %v257_v60  ;;  %v258_v11 = vunpack.c.l.bf16 %v180_v56 }
  0x35   : > { %v545_v13 = vpack.c.bf16 %v462_v62, %v461_v61  ;;  %v464_v14 = vadd.f32 %v779_v4, %v359_v63  ;;  %v465_v15 = vadd.f32 %v784_v7, %v360_v0  ;;  %v259_v16 = vunpack.c.h.bf16 %v180_v56  ;;  %v190_v0 = vld [vmem:[%s773_s19 + $0xe4] sm:$0xff] }
  0x36   : > { %608 = vst [vmem:[%s811_s22 + $0x8c] sm:$0xf] %v544_v6  ;;  %v546_v18 = vpack.c.bf16 %v463_v8, %v463_v8  ;;  %v466_v19 = vadd.f32 %v787_v9, %v361_v10  ;;  %v362_v20 = vmul.f32 %v775_v2, %v258_v11  ;;  %v260_v21 = vunpack.c.l.bf16 %v181_v1  ;;  %v191_v11 = vld [vmem:[%s773_s19 + $0xec] sm:$0xf] }
  0x37   : > { %609 = vst [vmem:[%s811_s22 + $0x90] sm:$0xff] %v545_v13  ;;  %v547_v23 = vpack.c.bf16 %v465_v15, %v464_v14  ;;  %v363_v24 = vmul.f32 %v777_v3, %v259_v16  ;;  %v261_v25 = vunpack.c.l.bf16 %v182_v12  ;;  %v262_v26 = vunpack.c.h.bf16 %v182_v12 }
  0x38   : > { %610 = vst [vmem:[%s811_s22 + $0x98] sm:$0xf] %v546_v18  ;;  %v548_v28 = vpack.c.bf16 %v466_v19, %v466_v19  ;;  %v467_v29 = vadd.f32 %v779_v4, %v362_v20  ;;  %v364_v30 = vmul.f32 %v781_v5, %v260_v21  ;;  %v263_v31 = vunpack.c.l.bf16 %v183_v17  ;;  %v192_v20 = vld [vmem:[%s773_s19 + $0xf0] sm:$0xff] }
  0x39   : > { %611 = vst [vmem:[%s811_s22 + $0x9c] sm:$0xff] %v547_v23  ;;  %v468_v32 = vadd.f32 %v784_v7, %v363_v24  ;;  %v365_v33 = vmul.f32 %v775_v2, %v261_v25  ;;  %v366_v34 = vmul.f32 %v777_v3, %v262_v26  ;;  %v264_v35 = vunpack.c.l.bf16 %v184_v22  ;;  %v193_v25 = vld [vmem:[%s773_s19 + $0xf8] sm:$0xf] }
  0x3a   : > { %612 = vst [vmem:[%s811_s22 + $0xa4] sm:$0xf] %v548_v28  ;;  %v469_v36 = vadd.f32 %v787_v9, %v364_v30  ;;  %v367_v37 = vmul.f32 %v781_v5, %v263_v31  ;;  %v265_v38 = vunpack.c.h.bf16 %v184_v22  ;;  %v266_v39 = vunpack.c.l.bf16 %v185_v27  ;;  %v194_v30 = vld [vmem:[%s773_s19 + $0xfc] sm:$0xff] }
  0x3b   : > { %v549_v41 = vpack.c.bf16 %v468_v32, %v467_v29  ;;  %v470_v42 = vadd.f32 %v779_v4, %v365_v33  ;;  %v471_v43 = vadd.f32 %v784_v7, %v366_v34  ;;  %v368_v44 = vmul.f32 %v775_v2, %v264_v35  ;;  %v195_v35 = vld [vmem:[%s773_s19 + $0x104] sm:$0xf] }
  0x3c   : > { %v550_v46 = vpack.c.bf16 %v469_v36, %v469_v36  ;;  %v472_v47 = vadd.f32 %v787_v9, %v367_v37  ;;  %v369_v48 = vmul.f32 %v777_v3, %v265_v38  ;;  %v370_v49 = vmul.f32 %v781_v5, %v266_v39 }
  0x3d   : > { %613 = vst [vmem:[%s811_s22 + $0xa8] sm:$0xff] %v549_v41  ;;  %v551_v51 = vpack.c.bf16 %v471_v43, %v470_v42  ;;  %v473_v52 = vadd.f32 %v779_v4, %v368_v44  ;;  %v267_v53 = vunpack.c.l.bf16 %v186_v40  ;;  %v268_v54 = vunpack.c.h.bf16 %v186_v40  ;;  %v196_v44 = vld [vmem:[%s773_s19 + $0x108] sm:$0xff] }
  0x3e   : > { %614 = vst [vmem:[%s811_s22 + $0xb0] sm:$0xf] %v550_v46  ;;  %v552_v56 = vpack.c.bf16 %v472_v47, %v472_v47  ;;  %v474_v57 = vadd.f32 %v784_v7, %v369_v48  ;;  %v475_v58 = vadd.f32 %v787_v9, %v370_v49  ;;  %v269_v59 = vunpack.c.l.bf16 %v187_v45  ;;  %v197_v49 = vld [vmem:[%s773_s19 + $0x110] sm:$0xf] }
  0x3f   : > { %615 = vst [vmem:[%s811_s22 + $0xb4] sm:$0xff] %v551_v51  ;;  %v371_v60 = vmul.f32 %v775_v2, %v267_v53  ;;  %v372_v61 = vmul.f32 %v777_v3, %v268_v54  ;;  %v270_v62 = vunpack.c.l.bf16 %v188_v50  ;;  %v271_v63 = vunpack.c.h.bf16 %v188_v50 }
  0x40   : > { %616 = vst [vmem:[%s811_s22 + $0xbc] sm:$0xf] %v552_v56  ;;  %v553_v1 = vpack.c.bf16 %v474_v57, %v473_v52  ;;  %v554_v6 = vpack.c.bf16 %v475_v58, %v475_v58  ;;  %v373_v8 = vmul.f32 %v781_v5, %v269_v59  ;;  %v272_v10 = vunpack.c.l.bf16 %v189_v55  ;;  %v198_v58 = vld [vmem:[%s773_s19 + $0x114] sm:$0xff] }
  0x41   : > { %v476_v12 = vadd.f32 %v779_v4, %v371_v60  ;;  %v477_v13 = vadd.f32 %v784_v7, %v372_v61  ;;  %v374_v14 = vmul.f32 %v775_v2, %v270_v62  ;;  %v375_v15 = vmul.f32 %v777_v3, %v271_v63  ;;  %v199_v63 = vld [vmem:[%s773_s19 + $0x11c] sm:$0xf] }
  0x42   : > { %617 = vst [vmem:[%s811_s22 + $0xc0] sm:$0xff] %v553_v1  ;;  %v478_v16 = vadd.f32 %v787_v9, %v373_v8  ;;  %v376_v17 = vmul.f32 %v781_v5, %v272_v10  ;;  %v273_v18 = vunpack.c.l.bf16 %v190_v0  ;;  %v274_v19 = vunpack.c.h.bf16 %v190_v0 }
  0x43   : > { %618 = vst [vmem:[%s811_s22 + $0xc8] sm:$0xf] %v554_v6  ;;  %v555_v21 = vpack.c.bf16 %v477_v13, %v476_v12  ;;  %v479_v22 = vadd.f32 %v779_v4, %v374_v14  ;;  %v480_v23 = vadd.f32 %v784_v7, %v375_v15  ;;  %v275_v24 = vunpack.c.l.bf16 %v191_v11  ;;  %v200_v14 = vld [vmem:[%s773_s19 + $0x120] sm:$0xff]  ;;  %v201_v15 = vld [vmem:[%s773_s19 + $0x128] sm:$0xf] }
  0x44   : > { %v556_v26 = vpack.c.bf16 %v478_v16, %v478_v16  ;;  %v481_v27 = vadd.f32 %v787_v9, %v376_v17  ;;  %v377_v28 = vmul.f32 %v775_v2, %v273_v18  ;;  %v378_v29 = vmul.f32 %v777_v3, %v274_v19 }
  0x45   : > { %619 = vst [vmem:[%s811_s22 + $0xcc] sm:$0xff] %v555_v21  ;;  %v557_v31 = vpack.c.bf16 %v480_v23, %v479_v22  ;;  %v379_v32 = vmul.f32 %v781_v5, %v275_v24  ;;  %v276_v33 = vunpack.c.l.bf16 %v192_v20  ;;  %v277_v34 = vunpack.c.h.bf16 %v192_v20 }
  0x46   : > { %620 = vst [vmem:[%s811_s22 + $0xd4] sm:$0xf] %v556_v26  ;;  %v558_v36 = vpack.c.bf16 %v481_v27, %v481_v27  ;;  %v482_v37 = vadd.f32 %v779_v4, %v377_v28  ;;  %v483_v38 = vadd.f32 %v784_v7, %v378_v29  ;;  %v278_v39 = vunpack.c.l.bf16 %v193_v25  ;;  %v202_v28 = vld [vmem:[%s773_s19 + $0x12c] sm:$0xff]  ;;  %v203_v29 = vld [vmem:[%s773_s19 + $0x134] sm:$0xf] }
  0x47   : > { %621 = vst [vmem:[%s811_s22 + $0xd8] sm:$0xff] %v557_v31  ;;  %v484_v40 = vadd.f32 %v787_v9, %v379_v32  ;;  %v380_v41 = vmul.f32 %v775_v2, %v276_v33  ;;  %v381_v42 = vmul.f32 %v777_v3, %v277_v34  ;;  %v279_v43 = vunpack.c.l.bf16 %v194_v30 }
  0x48   : > { %622 = vst [vmem:[%s811_s22 + $0xe0] sm:$0xf] %v558_v36  ;;  %v559_v45 = vpack.c.bf16 %v483_v38, %v482_v37  ;;  %v382_v46 = vmul.f32 %v781_v5, %v278_v39  ;;  %v280_v47 = vunpack.c.h.bf16 %v194_v30  ;;  %v281_v48 = vunpack.c.l.bf16 %v195_v35  ;;  %v204_v38 = vld [vmem:[%s773_s19 + $0x138] sm:$0xff] }
  0x49   : > { %v560_v50 = vpack.c.bf16 %v484_v40, %v484_v40  ;;  %v485_v51 = vadd.f32 %v779_v4, %v380_v41  ;;  %v486_v52 = vadd.f32 %v784_v7, %v381_v42  ;;  %v383_v53 = vmul.f32 %v775_v2, %v279_v43  ;;  %v205_v43 = vld [vmem:[%s773_s19 + $0x140] sm:$0xf] }
  0x4a   : > { %623 = vst [vmem:[%s811_s22 + $0xe4] sm:$0xff] %v559_v45  ;;  %v487_v54 = vadd.f32 %v787_v9, %v382_v46  ;;  %v384_v55 = vmul.f32 %v777_v3, %v280_v47  ;;  %v385_v56 = vmul.f32 %v781_v5, %v281_v48  ;;  %v282_v57 = vunpack.c.l.bf16 %v196_v44 }
  0x4b   : > { %624 = vst [vmem:[%s811_s22 + $0xec] sm:$0xf] %v560_v50  ;;  %v561_v59 = vpack.c.bf16 %v486_v52, %v485_v51  ;;  %v488_v60 = vadd.f32 %v779_v4, %v383_v53  ;;  %v283_v61 = vunpack.c.h.bf16 %v196_v44  ;;  %v284_v62 = vunpack.c.l.bf16 %v197_v49  ;;  %v206_v52 = vld [vmem:[%s773_s19 + $0x144] sm:$0xff] }
  0x4c   : > { %v562_v0 = vpack.c.bf16 %v487_v54, %v487_v54  ;;  %v489_v1 = vadd.f32 %v784_v7, %v384_v55  ;;  %v490_v6 = vadd.f32 %v787_v9, %v385_v56  ;;  %v386_v8 = vmul.f32 %v775_v2, %v282_v57  ;;  %v207_v57 = vld [vmem:[%s773_s19 + $0x14c] sm:$0xf] }
  0x4d   : > { %625 = vst [vmem:[%s811_s22 + $0xf0] sm:$0xff] %v561_v59  ;;  %v387_v10 = vmul.f32 %v777_v3, %v283_v61  ;;  %v388_v11 = vmul.f32 %v781_v5, %v284_v62  ;;  %v285_v12 = vunpack.c.l.bf16 %v198_v58  ;;  %v286_v13 = vunpack.c.h.bf16 %v198_v58 }
  0x4e   : > { %626 = vst [vmem:[%s811_s22 + $0xf8] sm:$0xf] %v562_v0  ;;  %v563_v16 = vpack.c.bf16 %v489_v1, %v488_v60  ;;  %v564_v17 = vpack.c.bf16 %v490_v6, %v490_v6  ;;  %v491_v18 = vadd.f32 %v779_v4, %v386_v8  ;;  %v287_v19 = vunpack.c.l.bf16 %v199_v63  ;;  %v208_v6 = vld [vmem:[%s773_s19 + $0x150] sm:$0xff]  ;;  %v209_v8 = vld [vmem:[%s773_s19 + $0x158] sm:$0xf] }
  0x4f   : > { %v492_v20 = vadd.f32 %v784_v7, %v387_v10  ;;  %v493_v21 = vadd.f32 %v787_v9, %v388_v11  ;;  %v389_v22 = vmul.f32 %v775_v2, %v285_v12  ;;  %v390_v23 = vmul.f32 %v777_v3, %v286_v13 }
  0x50   : > { %627 = vst [vmem:[%s811_s22 + $0xfc] sm:$0xff] %v563_v16  ;;  %v391_v24 = vmul.f32 %v781_v5, %v287_v19  ;;  %v288_v25 = vunpack.c.l.bf16 %v200_v14  ;;  %v289_v26 = vunpack.c.h.bf16 %v200_v14  ;;  %v290_v27 = vunpack.c.l.bf16 %v201_v15 }
  0x51   : > { %628 = vst [vmem:[%s811_s22 + $0x104] sm:$0xf] %v564_v17  ;;  %v565_v30 = vpack.c.bf16 %v492_v20, %v491_v18  ;;  %v566_v31 = vpack.c.bf16 %v493_v21, %v493_v21  ;;  %v494_v32 = vadd.f32 %v779_v4, %v389_v22  ;;  %v495_v33 = vadd.f32 %v784_v7, %v390_v23  ;;  %v210_v22 = vld [vmem:[%s773_s19 + $0x15c] sm:$0xff]  ;;  %v211_v23 = vld [vmem:[%s773_s19 + $0x164] sm:$0xf] }
  0x52   : > { %v496_v34 = vadd.f32 %v787_v9, %v391_v24  ;;  %v392_v35 = vmul.f32 %v775_v2, %v288_v25  ;;  %v393_v36 = vmul.f32 %v777_v3, %v289_v26  ;;  %v394_v37 = vmul.f32 %v781_v5, %v290_v27 }
  0x53   : > { %629 = vst [vmem:[%s811_s22 + $0x108] sm:$0xff] %v565_v30  ;;  %v567_v39 = vpack.c.bf16 %v495_v33, %v494_v32  ;;  %v291_v40 = vunpack.c.l.bf16 %v202_v28  ;;  %v292_v41 = vunpack.c.h.bf16 %v202_v28  ;;  %v293_v42 = vunpack.c.l.bf16 %v203_v29  ;;  %v212_v32 = vld [vmem:[%s773_s19 + $0x168] sm:$0xff] }
  0x54   : > { %630 = vst [vmem:[%s811_s22 + $0x110] sm:$0xf] %v566_v31  ;;  %v568_v44 = vpack.c.bf16 %v496_v34, %v496_v34  ;;  %v497_v45 = vadd.f32 %v779_v4, %v392_v35  ;;  %v498_v46 = vadd.f32 %v784_v7, %v393_v36  ;;  %v499_v47 = vadd.f32 %v787_v9, %v394_v37  ;;  %v213_v37 = vld [vmem:[%s773_s19 + $0x170] sm:$0xf] }
  0x55   : > { %631 = vst [vmem:[%s811_s22 + $0x114] sm:$0xff] %v567_v39  ;;  %v395_v48 = vmul.f32 %v775_v2, %v291_v40  ;;  %v396_v49 = vmul.f32 %v777_v3, %v292_v41  ;;  %v397_v50 = vmul.f32 %v781_v5, %v293_v42  ;;  %v294_v51 = vunpack.c.l.bf16 %v204_v38 }
  0x56   : > { %632 = vst [vmem:[%s811_s22 + $0x11c] sm:$0xf] %v568_v44  ;;  %v569_v53 = vpack.c.bf16 %v498_v46, %v497_v45  ;;  %v570_v54 = vpack.c.bf16 %v499_v47, %v499_v47  ;;  %v295_v55 = vunpack.c.h.bf16 %v204_v38  ;;  %v296_v56 = vunpack.c.l.bf16 %v205_v43  ;;  %v214_v46 = vld [vmem:[%s773_s19 + $0x174] sm:$0xff] }
  0x57   : > { %v500_v58 = vadd.f32 %v779_v4, %v395_v48  ;;  %v501_v59 = vadd.f32 %v784_v7, %v396_v49  ;;  %v502_v60 = vadd.f32 %v787_v9, %v397_v50  ;;  %v398_v61 = vmul.f32 %v775_v2, %v294_v51  ;;  %v215_v51 = vld [vmem:[%s773_s19 + $0x17c] sm:$0xf] }
  0x58   : > { %633 = vst [vmem:[%s811_s22 + $0x120] sm:$0xff] %v569_v53  ;;  %v399_v62 = vmul.f32 %v777_v3, %v295_v55  ;;  %v400_v63 = vmul.f32 %v781_v5, %v296_v56  ;;  %v297_v0 = vunpack.c.l.bf16 %v206_v52  ;;  %v298_v1 = vunpack.c.h.bf16 %v206_v52 }
  0x59   : > { %634 = vst [vmem:[%s811_s22 + $0x128] sm:$0xf] %v570_v54  ;;  %v571_v10 = vpack.c.bf16 %v501_v59, %v500_v58  ;;  %v572_v11 = vpack.c.bf16 %v502_v60, %v502_v60  ;;  %v503_v12 = vadd.f32 %v779_v4, %v398_v61  ;;  %v299_v13 = vunpack.c.l.bf16 %v207_v57 }
  0x5a   : > { %v504_v14 = vadd.f32 %v784_v7, %v399_v62  ;;  %v505_v15 = vadd.f32 %v787_v9, %v400_v63  ;;  %v401_v16 = vmul.f32 %v775_v2, %v297_v0  ;;  %v402_v17 = vmul.f32 %v777_v3, %v298_v1 }
  0x5b   : > { %635 = vst [vmem:[%s811_s22 + $0x12c] sm:$0xff] %v571_v10  ;;  %v403_v18 = vmul.f32 %v781_v5, %v299_v13  ;;  %v300_v19 = vunpack.c.l.bf16 %v208_v6  ;;  %v301_v20 = vunpack.c.h.bf16 %v208_v6  ;;  %v302_v21 = vunpack.c.l.bf16 %v209_v8 }
  0x5c   : > { %636 = vst [vmem:[%s811_s22 + $0x134] sm:$0xf] %v572_v11  ;;  %v573_v24 = vpack.c.bf16 %v504_v14, %v503_v12  ;;  %v574_v25 = vpack.c.bf16 %v505_v15, %v505_v15  ;;  %v506_v26 = vadd.f32 %v779_v4, %v401_v16  ;;  %v507_v27 = vadd.f32 %v784_v7, %v402_v17 }
  0x5d   : > { %v508_v28 = vadd.f32 %v787_v9, %v403_v18  ;;  %v404_v29 = vmul.f32 %v775_v2, %v300_v19  ;;  %v405_v30 = vmul.f32 %v777_v3, %v301_v20  ;;  %v406_v31 = vmul.f32 %v781_v5, %v302_v21 }
  0x5e   : > { %637 = vst [vmem:[%s811_s22 + $0x138] sm:$0xff] %v573_v24  ;;  %v575_v33 = vpack.c.bf16 %v507_v27, %v506_v26  ;;  %v303_v34 = vunpack.c.l.bf16 %v210_v22  ;;  %v304_v35 = vunpack.c.h.bf16 %v210_v22  ;;  %v305_v36 = vunpack.c.l.bf16 %v211_v23 }
  0x5f   : > { %638 = vst [vmem:[%s811_s22 + $0x140] sm:$0xf] %v574_v25  ;;  %v576_v38 = vpack.c.bf16 %v508_v28, %v508_v28  ;;  %v509_v39 = vadd.f32 %v779_v4, %v404_v29  ;;  %v510_v40 = vadd.f32 %v784_v7, %v405_v30  ;;  %v511_v41 = vadd.f32 %v787_v9, %v406_v31 }
  0x60   : > { %639 = vst [vmem:[%s811_s22 + $0x144] sm:$0xff] %v575_v33  ;;  %v407_v42 = vmul.f32 %v775_v2, %v303_v34  ;;  %v408_v43 = vmul.f32 %v777_v3, %v304_v35  ;;  %v409_v44 = vmul.f32 %v781_v5, %v305_v36  ;;  %v306_v45 = vunpack.c.l.bf16 %v212_v32 }
  0x61   : > { %640 = vst [vmem:[%s811_s22 + $0x14c] sm:$0xf] %v576_v38  ;;  %v577_v47 = vpack.c.bf16 %v510_v40, %v509_v39  ;;  %v578_v48 = vpack.c.bf16 %v511_v41, %v511_v41  ;;  %v307_v49 = vunpack.c.h.bf16 %v212_v32  ;;  %v308_v50 = vunpack.c.l.bf16 %v213_v37 }
  0x62   : > { %v512_v52 = vadd.f32 %v779_v4, %v407_v42  ;;  %v513_v53 = vadd.f32 %v784_v7, %v408_v43  ;;  %v514_v54 = vadd.f32 %v787_v9, %v409_v44  ;;  %v410_v55 = vmul.f32 %v775_v2, %v306_v45 }
  0x63   : > { %641 = vst [vmem:[%s811_s22 + $0x150] sm:$0xff] %v577_v47  ;;  %v411_v56 = vmul.f32 %v777_v3, %v307_v49  ;;  %v412_v57 = vmul.f32 %v781_v5, %v308_v50  ;;  %v309_v58 = vunpack.c.l.bf16 %v214_v46  ;;  %v310_v59 = vunpack.c.h.bf16 %v214_v46 }
  0x64   : > { %642 = vst [vmem:[%s811_s22 + $0x158] sm:$0xf] %v578_v48  ;;  %v579_v60 = vpack.c.bf16 %v513_v53, %v512_v52  ;;  %v580_v61 = vpack.c.bf16 %v514_v54, %v514_v54  ;;  %v515_v62 = vadd.f32 %v779_v4, %v410_v55  ;;  %v311_v63 = vunpack.c.l.bf16 %v215_v51 }
  0x65   : > { %v516_v0 = vadd.f32 %v784_v7, %v411_v56  ;;  %v517_v1 = vadd.f32 %v787_v9, %v412_v57  ;;  %v413_v6 = vmul.f32 %v775_v2, %v309_v58  ;;  %v414_v8 = vmul.f32 %v777_v3, %v310_v59 }
  0x66   : > { %643 = vst [vmem:[%s811_s22 + $0x15c] sm:$0xff] %v579_v60  ;;  %v415_v10 = vmul.f32 %v781_v5, %v311_v63 }
  0x67   : > { %644 = vst [vmem:[%s811_s22 + $0x164] sm:$0xf] %v580_v61  ;;  %v581_v11 = vpack.c.bf16 %v516_v0, %v515_v62  ;;  %v582_v12 = vpack.c.bf16 %v517_v1, %v517_v1  ;;  %v518_v13 = vadd.f32 %v779_v4, %v413_v6  ;;  %v519_v14 = vadd.f32 %v784_v7, %v414_v8 }
  0x68   : > { %v520_v15 = vadd.f32 %v787_v9, %v415_v10 }
  0x69   : > { %645 = vst [vmem:[%s811_s22 + $0x168] sm:$0xff] %v581_v11  ;;  %v583_v16 = vpack.c.bf16 %v519_v14, %v518_v13 }
  0x6a   : > { %646 = vst [vmem:[%s811_s22 + $0x170] sm:$0xf] %v582_v12  ;;  %v584_v17 = vpack.c.bf16 %v520_v15, %v520_v15 }
  0x6b   : > { %647 = vst [vmem:[%s811_s22 + $0x174] sm:$0xff] %v583_v16 }
  0x6c   : > { %648 = vst [vmem:[%s811_s22 + $0x17c] sm:$0xf] %v584_v17 }
  0x6d PF: > { %s12_s9 = sadd.s32 1, %s734_s9  }
  0x6e   : > { %p9_p4 = scmp.ge.s32.totalorder %s12_s9, 5  }
  0x70   :  { %11 = sbr.rel (!%p9_p4) target bundleno = 1 (0x1), region = 59 }

// kernel: graph_net_auto_center.13
= control target key start
LH: loop header
LB: loop body
LE: loop exit
PB: predicated region body
PF: predicated region fallthrough
CT: control target
= control target key end

     0   :  { %s3348_s18 = smov 0   ;;  %s5410_s0 = inlined_call_operand.vmem [shape: bf16[768,384], index: 0, kind: input, shape index: {}]   ;;  %s5411_s1 = inlined_call_operand.vmem [shape: f32[8,384], index: 1, kind: input, shape index: {}]   ;;  %s5412_s2 = inlined_call_operand.vmem [shape: bf16[384,384], index: 2, kind: input, shape index: {}]   ;;  %s5413_s3 = inlined_call_operand.vmem [shape: f32[8,384], index: 3, kind: input, shape index: {}]   ;;  %s5414_s4 = inlined_call_operand.vmem [shape: bf16[768,384], index: 4, kind: output, shape index: {0}]   ;;  %s5415_s5 = inlined_call_operand.vmem [shape: f32[3,8,384], index: 5, kind: output, shape index: {1}]  }
   0x1 LB: > { %s3354_s19 = sadd.s32 4294967295, %s3315_s18   ;;  %p2859_p0 = scmp.ge.s32.totalorder %s3315_s18, 1  ;;  %s3315_s18 = sphi %s3348_s18, %s16_s18  }
   0x2   : > { %p192_p1 = scmp.lt.s32.totalorder %s3315_s18, 4 }
   0x4   : > { %p193_p2 = pnand %p2859_p0, %p192_p1 }
   0x6   : > { %196 = sbr.rel (%p193_p2) target bundleno = 774 (0x306), region = 36 }
   0xb   : > { %v2952_v0 = vld [vmem:[%s5412_s2 + $0xa8] sm:$0xf]  ;;  %v3211_v1 = vld [vmem:[%s5412_s2 + $0xb0] sm:$0xf0]  ;;  %v2940_v2 = vld [vmem:[%s5412_s2 + $0x90] sm:$0xf] }
   0xc   : > { %v2953_v3 = vor.u32 %v3211_v1, %v2952_v0  ;;  %v3208_v4 = vld [vmem:[%s5412_s2 + $0x98] sm:$0xf0]  ;;  %v2928_v6 = vld [vmem:[%s5412_s2 + $0x78] sm:$0xf]  ;;  %v3205_v7 = vld [vmem:[%s5412_s2 + $0x80] sm:$0xf0] }
   0xd   : > { %v2941_v5 = vor.u32 %v3208_v4, %v2940_v2  ;;  %s2860_s7 = sshll.u32 %s3354_s19, 5  ;;  %v2929_v8 = vor.u32 %v3205_v7, %v2928_v6  ;;  %v2916_v9 = vld [vmem:[%s5412_s2 + $0x60] sm:$0xf]  ;;  %v3202_v10 = vld [vmem:[%s5412_s2 + $0x68] sm:$0xf0]  ;;  %p241_p4 = scmp.lt.s32.totalorder %s3354_s19, 2 }
   0xe   : > { %3261 = vmatpush.bf16.msra.mxu1 %v2953_v3  ;;  %3262 = vmatpush.bf16.msra.mxu2 %v2953_v3  ;;  %p228_p3 = scmp.lt.s32.totalorder %s2860_s7, 95  ;;  %v2917_v11 = vor.u32 %v3202_v10, %v2916_v9  ;;  %v2904_v12 = vld [vmem:[%s5412_s2 + $0x48] sm:$0xf]  ;;  %v3199_v13 = vld [vmem:[%s5412_s2 + $0x50] sm:$0xf0] }
   0xf   : > { %3263 = vmatpush.bf16.msra.mxu3 %v2953_v3  ;;  %1151 = vmatpush.bf16.msra.mxu0 %v2953_v3  ;;  %v2892_v14 = vld [vmem:[%s5412_s2 + $0x30] sm:$0xf]  ;;  %v3196_v15 = vld [vmem:[%s5412_s2 + $0x38] sm:$0xf0]  ;;  %v2905_v19 = vor.u32 %v3199_v13, %v2904_v12  ;;  %v2880_v26 = vld [vmem:[%s5412_s2 + $0x18] sm:$0xf] }
  0x10   : > { %s5797_s7 = smov (!%p228_p3, %s2860_s7), 95  ;;  %v3408_v16 = vld [vmem:[%s5411_s1] ss:$8 sm:$0x7]  ;;  %v3193_v29 = vld [vmem:[%s5412_s2 + $0x20] sm:$0xf0]  ;;  %v2893_v35 = vor.u32 %v3196_v15, %v2892_v14 }
  0x11   : > { %s3285_s12 = smul.u32 12, %s5797_s7  ;;  %v3431_v28 = vperm.slane %v3408_v16, 0  ;;  %v3439_v30 = vld [vmem:[%s5411_s1 + $0x1] ss:$8 sm:$0x7]  ;;  %v2881_v39 = vor.u32 %v3193_v29, %v2880_v26 }
  0x12   : > { %3264 = vmatpush.bf16.msra.mxu1 %v2941_v5  ;;  %3265 = vmatpush.bf16.msra.mxu2 %v2941_v5  ;;  %v3446_v41 = vperm.slane %v3439_v30, 0  ;;  %v2868_v42 = vld [vmem:[%s5412_s2] sm:$0xf]  ;;  %v3190_v43 = vld [vmem:[%s5412_s2 + $0x8] sm:$0xf0] }
  0x13   : > { %3266 = vmatpush.bf16.msra.mxu3 %v2941_v5  ;;  %1152 = vmatpush.bf16.msra.mxu0 %v2941_v5  ;;  %s3397_s21 = scalar_lea.vmem %s5410_s0, %s3285_s12  ;;  %v2869_v51 = vor.u32 %v3190_v43, %v2868_v42  ;;  %v3144_v53 = vld [vmem:[%s5412_s2 + $0x228] sm:$0xf]  ;;  %v3259_v58 = vld [vmem:[%s5412_s2 + $0x230] sm:$0xf0]  ;;  %v3210_v59 = vld [vmem:[%s5412_s2 + $0xac] sm:$0xf]  ;;  %s5060_s17 = scalar_lea.vmem %s5414_s4, %s3285_s12 }
  0x14   : > { %v3411_v17 = vld [vmem:[%s3397_s21 + $0x60] sm:$0xff]  ;;  %v3414_v18 = vld [vmem:[%s3397_s21 + $0x6c] sm:$0xff]  ;;  %v2954_v60 = vld [vmem:[%s5412_s2 + $0xb4] sm:$0xf0]  ;;  %v3145_v6 = vor.u32 %v3259_v58, %v3144_v53 }
  0x15   : > { %v281_v20 = vld [vmem:[%s3397_s21 + $0xc0] sm:$0xff]  ;;  %v283_v21 = vld [vmem:[%s3397_s21 + $0xcc] sm:$0xff]  ;;  %v337_v27 = vunpack.c.l.bf16 %v3411_v17  ;;  %v340_v31 = vunpack.c.l.bf16 %v3414_v18  ;;  %v3048_v0 = vld [vmem:[%s5412_s2 + $0x168] sm:$0xf]  ;;  %v2957_v7 = vor.u32 %v3210_v59, %v2954_v60 }
  0x16   : > { %3267 = vmatpush.bf16.msra.mxu1 %v2929_v8  ;;  %3268 = vmatpush.bf16.msra.mxu2 %v2929_v8  ;;  %v297_v22 = vld [vmem:[%s3397_s21 + $0x120] sm:$0xff]  ;;  %v299_v23 = vld [vmem:[%s3397_s21 + $0x12c] sm:$0xff]  ;;  %v361_v32 = vunpack.c.l.bf16 %v281_v20  ;;  %v364_v33 = vunpack.c.l.bf16 %v283_v21  ;;  %v3256_v2 = vld [vmem:[%s5412_s2 + $0x218] sm:$0xf0] }
  0x17   : > { %3269 = vmatpush.bf16.msra.mxu3 %v2929_v8  ;;  %1153 = vmatpush.bf16.msra.mxu0 %v2929_v8  ;;  %v3421_v24 = vld [vmem:[%s3397_s21] sm:$0xff]  ;;  %v3424_v25 = vld [vmem:[%s3397_s21 + $0xc] sm:$0xff]  ;;  %v385_v34 = vunpack.c.l.bf16 %v297_v22  ;;  %v388_v36 = vunpack.c.l.bf16 %v299_v23  ;;  %v440_v40 = vmul.f32 %v3431_v28, %v337_v27  ;;  %v443_v44 = vmul.f32 %v3431_v28, %v340_v31  ;;  %v3235_v3 = vld [vmem:[%s5412_s2 + $0x170] sm:$0xf0] }
  0x18   : > { %v313_v37 = vunpack.c.l.bf16 %v3421_v24  ;;  %v316_v38 = vunpack.c.l.bf16 %v3424_v25  ;;  %v464_v45 = vmul.f32 %v3431_v28, %v361_v32  ;;  %v467_v46 = vmul.f32 %v3431_v28, %v364_v33  ;;  %v3132_v1 = vld [vmem:[%s5412_s2 + $0x210] sm:$0xf]  ;;  %v3207_v4 = vld [vmem:[%s5412_s2 + $0x94] sm:$0xf]  ;;  %v2942_v5 = vld [vmem:[%s5412_s2 + $0x9c] sm:$0xf0] }
  0x19   : > { %v488_v47 = vmul.f32 %v3431_v28, %v385_v34  ;;  %v491_v48 = vmul.f32 %v3431_v28, %v388_v36  ;;  %v543_v52 = vadd.f32 %v3446_v41, %v440_v40  ;;  %v546_v54 = vadd.f32 %v3446_v41, %v443_v44  ;;  %v3234_v8 = vld [vmem:[%s5412_s2 + $0x16c] sm:$0xf]  ;;  %v3050_v9 = vld [vmem:[%s5412_s2 + $0x174] sm:$0xf0]  ;;  %v3513_v13 = vld [vmem:[%s3397_s21 + $0x84] sm:$0xff] }
  0x1a   : > { %3270 = vmatpush.bf16.msra.mxu1 %v2917_v11  ;;  %3271 = vmatpush.bf16.msra.mxu2 %v2917_v11  ;;  %v416_v49 = vmul.f32 %v3431_v28, %v313_v37  ;;  %v419_v50 = vmul.f32 %v3431_v28, %v316_v38  ;;  %v567_v55 = vadd.f32 %v3446_v41, %v464_v45  ;;  %v3506_v10 = vld [vmem:[%s3397_s21 + $0x78] sm:$0xff]  ;;  %v287_v15 = vld [vmem:[%s3397_s21 + $0xe4] sm:$0xff]  ;;  %v3036_v32 = vld [vmem:[%s5412_s2 + $0x150] sm:$0xf] }
  0x1b   : > { %3272 = vmatpush.bf16.msra.mxu3 %v2917_v11  ;;  %1154 = vmatpush.bf16.msra.mxu0 %v2917_v11  ;;  %v570_v56 = vadd.f32 %v3446_v41, %v467_v46  ;;  %v591_v57 = vadd.f32 %v3446_v41, %v488_v47  ;;  %v594_v61 = vadd.f32 %v3446_v41, %v491_v48  ;;  %v285_v14 = vld [vmem:[%s3397_s21 + $0xd8] sm:$0xff]  ;;  %v303_v22 = vld [vmem:[%s3397_s21 + $0x144] sm:$0xff]  ;;  %v3231_v36 = vld [vmem:[%s5412_s2 + $0x154] sm:$0xf]  ;;  %v343_v38 = vunpack.c.l.bf16 %v3506_v10 }
  0x1c   : > { %v519_v62 = vadd.f32 %v3446_v41, %v416_v49  ;;  %v522_v63 = vadd.f32 %v3446_v41, %v419_v50  ;;  %v3508_v11 = vpack.c.bf16 %v546_v54, %v543_v52  ;;  %v301_v21 = vld [vmem:[%s3397_s21 + $0x138] sm:$0xff]  ;;  %v3049_v26 = vor.u32 %v3235_v3, %v3048_v0  ;;  %v3530_v31 = vld [vmem:[%s3397_s21 + $0x24] sm:$0xff]  ;;  %v3038_v37 = vld [vmem:[%s5412_s2 + $0x15c] sm:$0xf0] }
  0x1d   : > { %v3510_v12 = vpack.c.bf16 %v570_v56, %v567_v55  ;;  %v3524_v23 = vld [vmem:[%s3397_s21 + $0x18] sm:$0xff]  ;;  %v3053_v27 = vor.u32 %v3234_v8, %v3050_v9  ;;  %v3133_v33 = vor.u32 %v3256_v2, %v3132_v1  ;;  %v2945_v34 = vor.u32 %v3207_v4, %v2942_v5  ;;  %v3253_v43 = vld [vmem:[%s5412_s2 + $0x200] sm:$0xf0]  ;;  %v2930_v45 = vld [vmem:[%s5412_s2 + $0x84] sm:$0xf0] }
  0x1e   : > { %3273 = vmatpush.bf16.msra.mxu1 %v2905_v19  ;;  %3274 = vmatpush.bf16.msra.mxu2 %v2905_v19  ;;  %5525 = vst [vmem:[#allocation2_spill] sm:$0xff] %v3508_v11  ;;  %v3519_v20 = vpack.c.bf16 %v522_v63, %v519_v62  ;;  %v3120_v29 = vld [vmem:[%s5412_s2 + $0x1f8] sm:$0xf]  ;;  %v367_v40 = vunpack.c.l.bf16 %v285_v14  ;;  %v370_v42 = vunpack.c.l.bf16 %v287_v15  ;;  %v3204_v44 = vld [vmem:[%s5412_s2 + $0x7c] sm:$0xf]  ;;  %v391_v46 = vunpack.c.l.bf16 %v301_v21 }
  0x1f   : > { %3275 = vmatpush.bf16.msra.mxu3 %v2905_v19  ;;  %1155 = vmatpush.bf16.msra.mxu0 %v2905_v19  ;;  %5526 = vst [vmem:[#allocation3_spill] sm:$0xff] %v3510_v12  ;;  %v3517_v19 = vpack.c.bf16 %v594_v61, %v591_v57  ;;  %v394_v47 = vunpack.c.l.bf16 %v303_v22  ;;  %v319_v48 = vunpack.c.l.bf16 %v3524_v23  ;;  %v322_v49 = vunpack.c.l.bf16 %v3530_v31  ;;  %v3108_v52 = vld [vmem:[%s5412_s2 + $0x1e0] sm:$0xf]  ;;  %v3024_v53 = vld [vmem:[%s5412_s2 + $0x138] sm:$0xf] }
  0x20   : > { %v3121_v54 = vor.u32 %v3253_v43, %v3120_v29  ;;  %v2933_v55 = vor.u32 %v3204_v44, %v2930_v45  ;;  %v3229_v56 = vld [vmem:[%s5412_s2 + $0x140] sm:$0xf0]  ;;  %v3228_v57 = vld [vmem:[%s5412_s2 + $0x13c] sm:$0xf]  ;;  %v3026_v58 = vld [vmem:[%s5412_s2 + $0x144] sm:$0xf0]  ;;  %v446_v59 = vmul.f32 %v3431_v28, %v343_v38  ;;  %v470_v61 = vmul.f32 %v3431_v28, %v367_v40 }
  0x21   : > { %5527 = vst [vmem:[#allocation4_spill] sm:$0xff] %v3517_v19  ;;  %v473_v62 = vmul.f32 %v3431_v28, %v370_v42  ;;  %v3250_v63 = vld [vmem:[%s5412_s2 + $0x1e8] sm:$0xf0]  ;;  %v3201_v0 = vld [vmem:[%s5412_s2 + $0x64] sm:$0xf]  ;;  %v494_v2 = vmul.f32 %v3431_v28, %v391_v46  ;;  %v497_v3 = vmul.f32 %v3431_v28, %v394_v47  ;;  %v422_v4 = vmul.f32 %v3431_v28, %v319_v48  ;;  %v3626_v42 = vld [vmem:[%s3397_s21 + $0x90] sm:$0xff] }
  0x22   : > { %3276 = vmatpush.bf16.msra.mxu1 %v2893_v35  ;;  %3277 = vmatpush.bf16.msra.mxu2 %v2893_v35  ;;  %v2918_v1 = vld [vmem:[%s5412_s2 + $0x6c] sm:$0xf0]  ;;  %v425_v5 = vmul.f32 %v3431_v28, %v322_v49  ;;  %v3096_v8 = vld [vmem:[%s5412_s2 + $0x1c8] sm:$0xf]  ;;  %v3012_v9 = vld [vmem:[%s5412_s2 + $0x120] sm:$0xf]  ;;  %v3109_v14 = vor.u32 %v3250_v63, %v3108_v52  ;;  %v349_v63 = vunpack.c.l.bf16 %v3626_v42 }
  0x23   : > { %3278 = vmatpush.bf16.msra.mxu3 %v2893_v35  ;;  %1156 = vmatpush.bf16.msra.mxu0 %v2893_v35  ;;  %v3232_v35 = vld [vmem:[%s5412_s2 + $0x158] sm:$0xf0]  ;;  %v2921_v15 = vor.u32 %v3201_v0, %v2918_v1  ;;  %v3226_v21 = vld [vmem:[%s5412_s2 + $0x128] sm:$0xf0]  ;;  %v3225_v22 = vld [vmem:[%s5412_s2 + $0x124] sm:$0xf]  ;;  %v600_v38 = vadd.f32 %v3446_v41, %v497_v3 }
  0x24   : > { %v3037_v50 = vor.u32 %v3232_v35, %v3036_v32  ;;  %v573_v32 = vadd.f32 %v3446_v41, %v470_v61  ;;  %v3198_v35 = vld [vmem:[%s5412_s2 + $0x4c] sm:$0xf]  ;;  %v528_v40 = vadd.f32 %v3446_v41, %v425_v5  ;;  %v3013_v43 = vor.u32 %v3226_v21, %v3012_v9  ;;  %v3084_v45 = vld [vmem:[%s5412_s2 + $0x1b0] sm:$0xf]  ;;  %v3000_v46 = vld [vmem:[%s5412_s2 + $0x108] sm:$0xf] }
  0x25   : > { %v3635_v47 = vld [vmem:[%s3397_s21 + $0x9c] sm:$0xff]  ;;  %v3002_v52 = vld [vmem:[%s5412_s2 + $0x114] sm:$0xf0]  ;;  %v3673_v1 = vld [vmem:[%s3397_s21 + $0x30] sm:$0xff] }
  0x26   : > { %3279 = vmatpush.bf16.msra.mxu1 %v2881_v39  ;;  %3280 = vmatpush.bf16.msra.mxu2 %v2881_v39  ;;  %v3667_v61 = vld [vmem:[%s3397_s21 + $0xfc] sm:$0xff]  ;;  %v325_v21 = vunpack.c.l.bf16 %v3673_v1 }
  0x27   : > { %3281 = vmatpush.bf16.msra.mxu3 %v2881_v39  ;;  %1157 = vmatpush.bf16.msra.mxu0 %v2881_v39  ;;  %v346_v39 = vunpack.c.l.bf16 %v3513_v13  ;;  %v307_v0 = vld [vmem:[%s3397_s21 + $0x15c] sm:$0xff]  ;;  %v376_v9 = vunpack.c.l.bf16 %v3667_v61 }
  0x29   : > { %v449_v60 = vmul.f32 %v3431_v28, %v346_v39  ;;  %v525_v39 = vadd.f32 %v3446_v41, %v422_v4 }
  0x2a   : > { %3282 = vmatpush.bf16.msra.mxu1 %v2869_v51  ;;  %3283 = vmatpush.bf16.msra.mxu2 %v2869_v51 }
  0x2b   : > { %3284 = vmatpush.bf16.msra.mxu3 %v2869_v51  ;;  %1158 = vmatpush.bf16.msra.mxu0 %v2869_v51  ;;  %v3041_v51 = vor.u32 %v3231_v36, %v3038_v37  ;;  %v552_v29 = vadd.f32 %v3446_v41, %v449_v60  ;;  %v2906_v36 = vld [vmem:[%s5412_s2 + $0x54] sm:$0xf0]  ;;  %v597_v37 = vadd.f32 %v3446_v41, %v494_v2  ;;  %v3664_v60 = vld [vmem:[%s3397_s21 + $0xf0] sm:$0xff]  ;;  %v3676_v2 = vld [vmem:[%s3397_s21 + $0x3c] sm:$0xff] }
  0x2c   : > { %v2909_v49 = vor.u32 %v3198_v35, %v2906_v36  ;;  %v2882_v35 = vld [vmem:[%s5412_s2 + $0x24] sm:$0xf0] }
  0x2d   : > { %1179 = vmatmul.bf16.vlgmr.msra.gmra.mxu1 %v3508_v11  ;;  %1199 = vmatmul.bf16.vlgmr.msra.gmra.mxu2 %v3510_v12 }
  0x2e   : > { %1329 = vmatpush.bf16.msrb.mxu2 %v3145_v6  ;;  %1219 = vmatmul.bf16.vlgmr.msra.gmra.mxu3 %v3517_v19  ;;  %v3025_v6 = vor.u32 %v3229_v56, %v3024_v53  ;;  %v3195_v56 = vld [vmem:[%s5412_s2 + $0x34] sm:$0xf] }
  0x2f   : > { %1418 = vmatpush.bf16.msrb.mxu3 %v2957_v7  ;;  %1159 = vmatmul.bf16.vlgmr.msra.gmra.mxu0 %v3519_v20  ;;  %v3029_v7 = vor.u32 %v3228_v57, %v3026_v58  ;;  %v2894_v57 = vld [vmem:[%s5412_s2 + $0x3c] sm:$0xf0]  ;;  %v3659_v58 = vpack.c.bf16 %v600_v38, %v597_v37 }
  0x30   : > { %1240 = vmatpush.bf16.msrb.mxu1 %v3049_v26  ;;  %1507 = vmatpush.bf16.msrb.mxu0 %v3053_v27  ;;  %v3014_v26 = vld [vmem:[%s5412_s2 + $0x12c] sm:$0xf0]  ;;  %v549_v27 = vadd.f32 %v3446_v41, %v446_v59  ;;  %v3661_v59 = vpack.c.bf16 %v528_v40, %v525_v39  ;;  %v3219_v39 = vld [vmem:[%s5412_s2 + $0xf4] sm:$0xf]  ;;  %v2990_v40 = vld [vmem:[%s5412_s2 + $0xfc] sm:$0xf0] }
  0x31   : > { %v3017_v44 = vor.u32 %v3225_v22, %v3014_v26  ;;  %5530 = vst [vmem:[#allocation7_spill] sm:$0xff] %v3659_v58  ;;  %v328_v22 = vunpack.c.l.bf16 %v3676_v2  ;;  %v3072_v26 = vld [vmem:[%s5412_s2 + $0x198] sm:$0xf] }
  0x32   : > { %1330 = vmatpush.bf16.msrb.mxu2 %v3133_v33  ;;  %v576_v33 = vadd.f32 %v3446_v41, %v473_v62  ;;  %v3646_v53 = vpack.c.bf16 %v552_v29, %v549_v27  ;;  %v305_v62 = vld [vmem:[%s3397_s21 + $0x150] sm:$0xff]  ;;  %v3241_v27 = vld [vmem:[%s5412_s2 + $0x1a0] sm:$0xf0] }
  0x33   : > { %1419 = vmatpush.bf16.msrb.mxu3 %v2945_v34  ;;  %v3247_v34 = vld [vmem:[%s5412_s2 + $0x1d0] sm:$0xf0]  ;;  %v2988_v29 = vld [vmem:[%s5412_s2 + $0xf0] sm:$0xf]  ;;  %v3073_v36 = vor.u32 %v3241_v27, %v3072_v26 }
  0x34   : > { %1241 = vmatpush.bf16.msrb.mxu1 %v3037_v50  ;;  %1508 = vmatpush.bf16.msrb.mxu0 %v3041_v51  ;;  %v3097_v48 = vor.u32 %v3247_v34, %v3096_v8  ;;  %v3223_v50 = vld [vmem:[%s5412_s2 + $0x110] sm:$0xf0]  ;;  %v3222_v51 = vld [vmem:[%s5412_s2 + $0x10c] sm:$0xf]  ;;  %5528 = vst [vmem:[#allocation5_spill] sm:$0xff] %v3646_v53  ;;  %v373_v8 = vunpack.c.l.bf16 %v3664_v60 }
  0x35   : > { %v3001_v3 = vor.u32 %v3223_v50, %v3000_v46  ;;  %v3005_v4 = vor.u32 %v3222_v51, %v3002_v52  ;;  %v3192_v34 = vld [vmem:[%s5412_s2 + $0x1c] sm:$0xf]  ;;  %v479_v46 = vmul.f32 %v3431_v28, %v376_v9  ;;  %v2976_v50 = vld [vmem:[%s5412_s2 + $0xd8] sm:$0xf]  ;;  %v3217_v51 = vld [vmem:[%s5412_s2 + $0xe0] sm:$0xf0] }
  0x36   : > { %1331 = vmatpush.bf16.msrb.mxu2 %v3121_v54  ;;  %v3648_v54 = vpack.c.bf16 %v576_v33, %v573_v32  ;;  %v452_v32 = vmul.f32 %v3431_v28, %v349_v63  ;;  %v3220_v33 = vld [vmem:[%s5412_s2 + $0xf8] sm:$0xf0]  ;;  %v2885_v38 = vor.u32 %v3192_v34, %v2882_v35  ;;  %v2870_v63 = vld [vmem:[%s5412_s2 + $0xc] sm:$0xf0]  ;;  %v3214_v9 = vld [vmem:[%s5412_s2 + $0xc8] sm:$0xf0] }
  0x37   : > { %1420 = vmatpush.bf16.msrb.mxu3 %v2933_v55  ;;  %v3244_v55 = vld [vmem:[%s5412_s2 + $0x1b8] sm:$0xf0]  ;;  %v2989_v37 = vor.u32 %v3220_v33, %v2988_v29  ;;  %v582_v27 = vadd.f32 %v3446_v41, %v479_v46  ;;  %v3781_v46 = vld [vmem:[%s3397_s21 + $0x114] sm:$0xff] }
  0x38   : > { %1242 = vmatpush.bf16.msrb.mxu1 %v3025_v6  ;;  %1509 = vmatpush.bf16.msrb.mxu0 %v3029_v7  ;;  %5529 = vst [vmem:[#allocation6_spill] sm:$0xff] %v3648_v54  ;;  %v3085_v5 = vor.u32 %v3244_v55, %v3084_v45  ;;  %v2897_v6 = vor.u32 %v3195_v56, %v2894_v57  ;;  %v352_v7 = vunpack.c.l.bf16 %v3635_v47 }
  0x39   : > { %v476_v45 = vmul.f32 %v3431_v28, %v373_v8  ;;  %v428_v56 = vmul.f32 %v3431_v28, %v325_v21  ;;  %v431_v57 = vmul.f32 %v3431_v28, %v328_v22  ;;  %v555_v21 = vadd.f32 %v3446_v41, %v452_v32 }
  0x3a   : > { %1332 = vmatpush.bf16.msrb.mxu2 %v3109_v14  ;;  %v397_v14 = vunpack.c.l.bf16 %v305_v62  ;;  %v3189_v62 = vld [vmem:[%s5412_s2 + $0x4] sm:$0xf] }
  0x3b   : > { %1421 = vmatpush.bf16.msrb.mxu3 %v2921_v15  ;;  %v400_v15 = vunpack.c.l.bf16 %v307_v0  ;;  %v3216_v0 = vld [vmem:[%s5412_s2 + $0xdc] sm:$0xf]  ;;  %v579_v26 = vadd.f32 %v3446_v41, %v476_v45  ;;  %v531_v34 = vadd.f32 %v3446_v41, %v428_v56  ;;  %v534_v35 = vadd.f32 %v3446_v41, %v431_v57  ;;  %v3778_v45 = vld [vmem:[%s3397_s21 + $0x108] sm:$0xff] }
  0x3c   : > { %1243 = vmatpush.bf16.msrb.mxu1 %v3013_v43  ;;  %1510 = vmatpush.bf16.msrb.mxu0 %v3017_v44  ;;  %v3060_v43 = vld [vmem:[%s5412_s2 + $0x180] sm:$0xf]  ;;  %v455_v44 = vmul.f32 %v3431_v28, %v352_v7  ;;  %v500_v52 = vmul.f32 %v3431_v28, %v397_v14  ;;  %v2873_v7 = vor.u32 %v3189_v62, %v2870_v63  ;;  %v3213_v14 = vld [vmem:[%s5412_s2 + $0xc4] sm:$0xf]  ;;  %v379_v56 = vunpack.c.l.bf16 %v3778_v45 }
  0x3d   : > { %1184 = vmatmul.bf16.gmra.mxu1 %v3646_v53  ;;  %1204 = vmatmul.bf16.gmra.mxu2 %v3648_v54  ;;  %v503_v55 = vmul.f32 %v3431_v28, %v400_v15  ;;  %v2966_v15 = vld [vmem:[%s5412_s2 + $0xcc] sm:$0xf0]  ;;  %v382_v57 = vunpack.c.l.bf16 %v3781_v46 }
  0x3e   : > { %1333 = vmatpush.bf16.msrb.mxu2 %v3097_v48  ;;  %1224 = vmatmul.bf16.gmra.mxu3 %v3659_v58  ;;  %v2993_v48 = vor.u32 %v3219_v39, %v2990_v40  ;;  %v558_v22 = vadd.f32 %v3446_v41, %v455_v44  ;;  %v603_v29 = vadd.f32 %v3446_v41, %v500_v52  ;;  %v3768_v39 = vld [vmem:[%s3397_s21 + $0xa8] sm:$0xff]  ;;  %v3771_v40 = vld [vmem:[%s3397_s21 + $0xb4] sm:$0xff] }
  0x3f   : > { %1422 = vmatpush.bf16.msrb.mxu3 %v2909_v49  ;;  %1164 = vmatmul.bf16.gmra.mxu0 %v3661_v59  ;;  %v3238_v49 = vld [vmem:[%s5412_s2 + $0x188] sm:$0xf0]  ;;  %v606_v33 = vadd.f32 %v3446_v41, %v503_v55  ;;  %v3775_v44 = vpack.c.bf16 %v534_v35, %v531_v34  ;;  %v355_v52 = vunpack.c.l.bf16 %v3768_v39  ;;  %v358_v55 = vunpack.c.l.bf16 %v3771_v40 }
  0x40   : > { %1244 = vmatpush.bf16.msrb.mxu1 %v3001_v3  ;;  %1511 = vmatpush.bf16.msrb.mxu0 %v3005_v4  ;;  %v2977_v3 = vor.u32 %v3217_v51, %v2976_v50  ;;  %v2978_v4 = vld [vmem:[%s5412_s2 + $0xe4] sm:$0xf0]  ;;  %v3789_v51 = vld [vmem:[%s3397_s21 + $0x54] sm:$0xff]  ;;  %v485_v34 = vmul.f32 %v3431_v28, %v382_v57 }
  0x41   : > { %v2981_v8 = vor.u32 %v3216_v0, %v2978_v4  ;;  %5534 = vst [vmem:[#allocation11_spill] sm:$0xff] %v3775_v44  ;;  %v3786_v50 = vld [vmem:[%s3397_s21 + $0x48] sm:$0xff]  ;;  %v2960_v4 = vld [vmem:[%s5412_s2 + $0xb0] sm:$0xf] }
  0x42   : > { %1334 = vmatpush.bf16.msrb.mxu2 %v3085_v5  ;;  %v2964_v5 = vld [vmem:[%s5412_s2 + $0xc0] sm:$0xf]  ;;  %v331_v0 = vunpack.c.l.bf16 %v3786_v50  ;;  %v588_v57 = vadd.f32 %v3446_v41, %v485_v34 }
  0x43   : > { %1423 = vmatpush.bf16.msrb.mxu3 %v2897_v6  ;;  %v3061_v6 = vor.u32 %v3238_v49, %v3060_v43  ;;  %v2965_v32 = vor.u32 %v3214_v9, %v2964_v5  ;;  %v3773_v43 = vpack.c.bf16 %v606_v33, %v603_v29  ;;  %v311_v49 = vld [vmem:[%s3397_s21 + $0x174] sm:$0xff]  ;;  %v3212_v5 = vld [vmem:[%s5412_s2 + $0xb8] sm:$0xf0]  ;;  %v3258_v9 = vld [vmem:[%s5412_s2 + $0x22c] sm:$0xf]  ;;  %v482_v33 = vmul.f32 %v3431_v28, %v379_v56 }
  0x44   : > { %1245 = vmatpush.bf16.msrb.mxu1 %v2989_v37  ;;  %1512 = vmatpush.bf16.msrb.mxu0 %v2993_v48  ;;  %v3763_v37 = vpack.c.bf16 %v558_v22, %v555_v21  ;;  %v309_v48 = vld [vmem:[%s3397_s21 + $0x168] sm:$0xff]  ;;  %v406_v63 = vunpack.c.l.bf16 %v311_v49  ;;  %v461_v21 = vmul.f32 %v3431_v28, %v358_v55  ;;  %v3260_v29 = vld [vmem:[%s5412_s2 + $0x238] sm:$0xf0] }
  0x45   : > { %5533 = vst [vmem:[#allocation10_spill] sm:$0xff] %v3773_v43  ;;  %v403_v62 = vunpack.c.l.bf16 %v309_v48  ;;  %v434_v48 = vmul.f32 %v3431_v28, %v331_v0  ;;  %v585_v56 = vadd.f32 %v3446_v41, %v482_v33  ;;  %v3871_v33 = vperm.slane %v3439_v30, 2 }
  0x46   : > { %1335 = vmatpush.bf16.msrb.mxu2 %v3073_v36  ;;  %v2969_v36 = vor.u32 %v3213_v14, %v2966_v15  ;;  %5531 = vst [vmem:[#allocation8_spill] sm:$0xff] %v3763_v37  ;;  %v3146_v14 = vld [vmem:[%s5412_s2 + $0x234] sm:$0xf0]  ;;  %v458_v15 = vmul.f32 %v3431_v28, %v355_v52  ;;  %v564_v55 = vadd.f32 %v3446_v41, %v461_v21 }
  0x47   : > { %1424 = vmatpush.bf16.msrb.mxu3 %v2885_v38  ;;  %v3765_v38 = vpack.c.bf16 %v582_v27, %v579_v26  ;;  %v3149_v26 = vor.u32 %v3258_v9, %v3146_v14  ;;  %v3152_v27 = vld [vmem:[%s5412_s2 + $0x230] sm:$0xf]  ;;  %v506_v35 = vmul.f32 %v3431_v28, %v403_v62  ;;  %v537_v0 = vadd.f32 %v3446_v41, %v434_v48 }
  0x48   : > { %1246 = vmatpush.bf16.msrb.mxu1 %v2977_v3  ;;  %1513 = vmatpush.bf16.msrb.mxu0 %v2981_v8  ;;  %v334_v3 = vunpack.c.l.bf16 %v3789_v51  ;;  %v3236_v8 = vld [vmem:[%s5412_s2 + $0x178] sm:$0xf0]  ;;  %v561_v52 = vadd.f32 %v3446_v41, %v458_v15  ;;  %v314_v9 = vunpack.c.h.bf16 %v3421_v24  ;;  %v3853_v14 = vperm.slane %v3408_v16, 1 }
  0x49   : > { %5532 = vst [vmem:[#allocation9_spill] sm:$0xff] %v3765_v38  ;;  %v609_v62 = vadd.f32 %v3446_v41, %v506_v35 }
  0x4a   : > { %1336 = vmatpush.bf16.msrb.mxu2 %v3061_v6  ;;  %v3056_v6 = vld [vmem:[%s5412_s2 + $0x170] sm:$0xf]  ;;  %v437_v49 = vmul.f32 %v3431_v28, %v334_v3  ;;  %v3841_v3 = vpack.c.bf16 %v564_v55, %v561_v52  ;;  %v417_v24 = vmul.f32 %v3853_v14, %v314_v9  ;;  %v256_v52 = vld [vmem:[%s3397_s21 + $0x2c] sm:$0xf]  ;;  %v320_v55 = vunpack.c.h.bf16 %v3524_v23  ;;  %v3209_v23 = vld [vmem:[%s5412_s2 + $0xa0] sm:$0xf0] }
  0x4b   : > { %1425 = vmatpush.bf16.msrb.mxu3 %v2873_v7  ;;  %v2961_v7 = vor.u32 %v3212_v5, %v2960_v4  ;;  %v3057_v22 = vor.u32 %v3236_v8, %v3056_v6  ;;  %v3843_v4 = vpack.c.bf16 %v588_v57, %v585_v56  ;;  %v252_v8 = vld [vmem:[%s3397_s21 + $0x14] sm:$0xf]  ;;  %v324_v57 = vunpack.c.l.bf16 %v256_v52 }
  0x4c   : > { %1247 = vmatpush.bf16.msrb.mxu1 %v2965_v32  ;;  %1514 = vmatpush.bf16.msrb.mxu0 %v2969_v36  ;;  %v3153_v32 = vor.u32 %v3260_v29, %v3152_v27  ;;  %v509_v36 = vmul.f32 %v3431_v28, %v406_v63  ;;  %v540_v28 = vadd.f32 %v3446_v41, %v437_v49  ;;  %v318_v21 = vunpack.c.l.bf16 %v252_v8  ;;  %v254_v49 = vld [vmem:[%s3397_s21 + $0x20] sm:$0xf] }
  0x4d   : > { %1189 = vmatmul.bf16.gmra.mxu1 %v3763_v37  ;;  %1209 = vmatmul.bf16.gmra.mxu2 %v3765_v38  ;;  %5535 = vst [vmem:[#allocation12_spill] sm:$0xff] %v3841_v3  ;;  %v321_v56 = vunpack.c.l.bf16 %v254_v49  ;;  %v423_v8 = vmul.f32 %v3853_v14, %v320_v55  ;;  %v258_v55 = vld [vmem:[%s3397_s21 + $0x38] sm:$0xf] }
  0x4e   : > { %1229 = vmatmul.bf16.gmra.mxu3 %v3773_v43  ;;  %1685 = vmatpush.bf16.msra.mxu2 %v2961_v7  ;;  %v612_v63 = vadd.f32 %v3446_v41, %v509_v36  ;;  %5536 = vst [vmem:[#allocation13_spill] sm:$0xff] %v3843_v4  ;;  %v3847_v6 = vpack.c.bf16 %v540_v28, %v537_v0  ;;  %v250_v7 = vld [vmem:[%s3397_s21 + $0x8] sm:$0xf]  ;;  %v317_v41 = vunpack.c.h.bf16 %v3424_v25  ;;  %v3255_v28 = vld [vmem:[%s5412_s2 + $0x214] sm:$0xf] }
  0x4f   : > { %1169 = vmatmul.bf16.gmra.mxu0 %v3775_v44  ;;  %1774 = vmatpush.bf16.msra.mxu3 %v3057_v22  ;;  %v315_v15 = vunpack.c.l.bf16 %v250_v7  ;;  %v3859_v22 = vperm.slane %v3408_v16, 2  ;;  %v3134_v7 = vld [vmem:[%s5412_s2 + $0x21c] sm:$0xf0] }
  0x50   : > { %1596 = vmatpush.bf16.msra.mxu1 %v3149_v26  ;;  %1863 = vmatpush.bf16.msra.mxu0 %v3153_v32  ;;  %v3845_v5 = vpack.c.bf16 %v612_v63, %v609_v62  ;;  %5538 = vst [vmem:[#allocation15_spill] sm:$0xff] %v3847_v6  ;;  %v3865_v26 = vperm.slane %v3439_v30, 1  ;;  %v420_v27 = vmul.f32 %v3853_v14, %v317_v41  ;;  %v323_v30 = vunpack.c.h.bf16 %v3530_v31  ;;  %v2948_v62 = vld [vmem:[%s5412_s2 + $0x98] sm:$0xf]  ;;  %v3233_v31 = vld [vmem:[%s5412_s2 + $0x160] sm:$0xf0] }
  0x51   : > { %v418_v25 = vmul.f32 %v3859_v22, %v315_v15  ;;  %v421_v29 = vmul.f32 %v3859_v22, %v318_v21  ;;  %v3044_v63 = vld [vmem:[%s5412_s2 + $0x158] sm:$0xf]  ;;  %v2949_v0 = vor.u32 %v3209_v23, %v2948_v62  ;;  %v3137_v41 = vor.u32 %v3255_v28, %v3134_v7  ;;  %v3257_v21 = vld [vmem:[%s5412_s2 + $0x220] sm:$0xf0] }
  0x52   : > { %5537 = vst [vmem:[#allocation14_spill] sm:$0xff] %v3845_v5  ;;  %v520_v16 = vadd.f32 %v3865_v26, %v417_v24  ;;  %v523_v34 = vadd.f32 %v3865_v26, %v420_v27  ;;  %v3045_v9 = vor.u32 %v3233_v31, %v3044_v63  ;;  %v3140_v15 = vld [vmem:[%s5412_s2 + $0x218] sm:$0xf]  ;;  %v426_v24 = vmul.f32 %v3853_v14, %v323_v30  ;;  %v260_v30 = vld [vmem:[%s3397_s21 + $0x44] sm:$0xf] }
  0x53   : > { %v521_v35 = vadd.f32 %v3871_v33, %v418_v25  ;;  %v524_v32 = vadd.f32 %v3871_v33, %v421_v29  ;;  %v424_v27 = vmul.f32 %v3859_v22, %v321_v56  ;;  %v427_v25 = vmul.f32 %v3859_v22, %v324_v57  ;;  %1686 = vmatpush.bf16.msra.mxu2 %v2949_v0 }
  0x54   : > { %v3877_v36 = vpack.c.bf16 %v523_v34, %v520_v16  ;;  %v3141_v29 = vor.u32 %v3257_v21, %v3140_v15  ;;  %1775 = vmatpush.bf16.msra.mxu3 %v3045_v9  ;;  %1597 = vmatpush.bf16.msra.mxu1 %v3137_v41  ;;  %v526_v16 = vadd.f32 %v3865_v26, %v423_v8  ;;  %v326_v56 = vunpack.c.h.bf16 %v3673_v1  ;;  %v262_v15 = vld [vmem:[%s3397_s21 + $0x50] sm:$0xf]  ;;  %v264_v21 = vld [vmem:[%s3397_s21 + $0x5c] sm:$0xf] }
  0x55   : > { %v3879_v48 = vpack.c.bf16 %v524_v32, %v521_v35  ;;  %v529_v34 = vadd.f32 %v3865_v26, %v426_v24  ;;  %v527_v35 = vadd.f32 %v3871_v33, %v424_v27  ;;  %v530_v32 = vadd.f32 %v3871_v33, %v427_v25 }
  0x56   : > { %1864 = vmatpush.bf16.msra.mxu0 %v3141_v29  ;;  %v329_v57 = vunpack.c.h.bf16 %v3676_v2  ;;  %v327_v62 = vunpack.c.l.bf16 %v258_v55  ;;  %v330_v23 = vunpack.c.l.bf16 %v260_v30  ;;  %v429_v63 = vmul.f32 %v3853_v14, %v326_v56 }
  0x57   : > { %v3921_v49 = vpack.c.bf16 %v529_v34, %v526_v16  ;;  %v3923_v52 = vpack.c.bf16 %v530_v32, %v527_v35  ;;  %v332_v24 = vunpack.c.h.bf16 %v3786_v50  ;;  %v335_v27 = vunpack.c.h.bf16 %v3789_v51  ;;  %v2936_v16 = vld [vmem:[%s5412_s2 + $0x80] sm:$0xf]  ;;  %v3206_v50 = vld [vmem:[%s5412_s2 + $0x88] sm:$0xf0] }
  0x58   : > { %v432_v0 = vmul.f32 %v3853_v14, %v329_v57  ;;  %v430_v31 = vmul.f32 %v3859_v22, %v327_v62  ;;  %v433_v28 = vmul.f32 %v3859_v22, %v330_v23  ;;  %v532_v1 = vadd.f32 %v3865_v26, %v429_v63  ;;  %v3032_v34 = vld [vmem:[%s5412_s2 + $0x140] sm:$0xf]  ;;  %v3230_v51 = vld [vmem:[%s5412_s2 + $0x148] sm:$0xf0]  ;;  %v3252_v23 = vld [vmem:[%s5412_s2 + $0x1fc] sm:$0xf] }
  0x59   : > { %v333_v25 = vunpack.c.l.bf16 %v262_v15  ;;  %v336_v29 = vunpack.c.l.bf16 %v264_v21  ;;  %v2937_v35 = vor.u32 %v3206_v50, %v2936_v16  ;;  %v435_v32 = vmul.f32 %v3853_v14, %v332_v24  ;;  %v3122_v63 = vld [vmem:[%s5412_s2 + $0x204] sm:$0xf0] }
  0x5a   : > { %v535_v7 = vadd.f32 %v3865_v26, %v432_v0  ;;  %v533_v2 = vadd.f32 %v3871_v33, %v430_v31  ;;  %v536_v8 = vadd.f32 %v3871_v33, %v433_v28  ;;  %v3033_v55 = vor.u32 %v3230_v51, %v3032_v34  ;;  %v3128_v0 = vld [vmem:[%s5412_s2 + $0x200] sm:$0xf]  ;;  %v266_v24 = vld [vmem:[%s3397_s21 + $0x68] sm:$0xf] }
  0x5b   : > { %v438_v30 = vmul.f32 %v3853_v14, %v335_v27  ;;  %v436_v56 = vmul.f32 %v3859_v22, %v333_v25  ;;  %v439_v57 = vmul.f32 %v3859_v22, %v336_v29  ;;  %1687 = vmatpush.bf16.msra.mxu2 %v2937_v35  ;;  %v538_v62 = vadd.f32 %v3865_v26, %v435_v32  ;;  %v268_v27 = vld [vmem:[%s3397_s21 + $0x74] sm:$0xf] }
  0x5c   : > { %v3941_v9 = vpack.c.bf16 %v535_v7, %v532_v1  ;;  %v3943_v41 = vpack.c.bf16 %v536_v8, %v533_v2  ;;  %1776 = vmatpush.bf16.msra.mxu3 %v3033_v55  ;;  %v3125_v7 = vor.u32 %v3252_v23, %v3122_v63  ;;  %v3254_v2 = vld [vmem:[%s5412_s2 + $0x208] sm:$0xf0]  ;;  %v338_v25 = vunpack.c.h.bf16 %v3411_v17  ;;  %v270_v23 = vld [vmem:[%s3397_s21 + $0x80] sm:$0xf] }
  0x5d   : > { %1194 = vmatmul.bf16.gmra.mxu1 %v3841_v3  ;;  %1214 = vmatmul.bf16.gmra.mxu2 %v3843_v4  ;;  %v541_v31 = vadd.f32 %v3865_v26, %v438_v30  ;;  %v539_v28 = vadd.f32 %v3871_v33, %v436_v56  ;;  %v542_v1 = vadd.f32 %v3871_v33, %v439_v57  ;;  %v341_v29 = vunpack.c.h.bf16 %v3414_v18  ;;  %v272_v63 = vld [vmem:[%s3397_s21 + $0x8c] sm:$0xf] }
  0x5e   : > { %1234 = vmatmul.bf16.gmra.mxu3 %v3845_v5  ;;  %5539 = vst [vmem:[#allocation16_spill] sm:$0xff] %v3941_v9  ;;  %v3129_v8 = vor.u32 %v3254_v2, %v3128_v0  ;;  %1598 = vmatpush.bf16.msra.mxu1 %v3125_v7  ;;  %v339_v16 = vunpack.c.l.bf16 %v266_v24  ;;  %v342_v50 = vunpack.c.l.bf16 %v268_v27  ;;  %v441_v34 = vmul.f32 %v3853_v14, %v338_v25  ;;  %v2924_v2 = vld [vmem:[%s5412_s2 + $0x68] sm:$0xf] }
  0x5f   : > { %1174 = vmatmul.bf16.gmra.mxu0 %v3847_v6  ;;  %v3985_v15 = vpack.c.bf16 %v541_v31, %v538_v62  ;;  %v3987_v21 = vpack.c.bf16 %v542_v1, %v539_v28  ;;  %v444_v35 = vmul.f32 %v3853_v14, %v341_v29  ;;  %v344_v31 = vunpack.c.h.bf16 %v3506_v10  ;;  %v3203_v10 = vld [vmem:[%s5412_s2 + $0x70] sm:$0xf0] }
  0x60   : > { %1865 = vmatpush.bf16.msra.mxu0 %v3129_v8  ;;  %v442_v51 = vmul.f32 %v3859_v22, %v339_v16  ;;  %v445_v32 = vmul.f32 %v3859_v22, %v342_v50  ;;  %v544_v17 = vadd.f32 %v3865_v26, %v441_v34  ;;  %v347_v28 = vunpack.c.h.bf16 %v3513_v13  ;;  %v3020_v8 = vld [vmem:[%s5412_s2 + $0x128] sm:$0xf]  ;;  %v3227_v13 = vld [vmem:[%s5412_s2 + $0x130] sm:$0xf0] }
  0x61   : > { %5540 = vst [vmem:[#allocation17_spill] sm:$0xff] %v3985_v15  ;;  %v547_v18 = vadd.f32 %v3865_v26, %v444_v35  ;;  %v345_v1 = vunpack.c.l.bf16 %v270_v23  ;;  %v348_v7 = vunpack.c.l.bf16 %v272_v63  ;;  %v2925_v24 = vor.u32 %v3203_v10, %v2924_v2 }
  0x62   : > { %5541 = vst [vmem:[#allocation18_spill] sm:$0xff] %v3987_v21  ;;  %v545_v55 = vadd.f32 %v3871_v33, %v442_v51  ;;  %v548_v30 = vadd.f32 %v3871_v33, %v445_v32  ;;  %v447_v25 = vmul.f32 %v3853_v14, %v344_v31  ;;  %v3021_v29 = vor.u32 %v3227_v13, %v3020_v8 }
  0x63   : > { %v4005_v56 = vpack.c.bf16 %v547_v18, %v544_v17  ;;  %v450_v50 = vmul.f32 %v3853_v14, %v347_v28  ;;  %v448_v34 = vmul.f32 %v3859_v22, %v345_v1  ;;  %v451_v35 = vmul.f32 %v3859_v22, %v348_v7  ;;  %1688 = vmatpush.bf16.msra.mxu2 %v2925_v24  ;;  %v3249_v18 = vld [vmem:[%s5412_s2 + $0x1e4] sm:$0xf]  ;;  %v3251_v1 = vld [vmem:[%s5412_s2 + $0x1f0] sm:$0xf0] }
  0x64   : > { %v4007_v57 = vpack.c.bf16 %v548_v30, %v545_v55  ;;  %1777 = vmatpush.bf16.msra.mxu3 %v3021_v29  ;;  %v550_v17 = vadd.f32 %v3865_v26, %v447_v25  ;;  %v3110_v55 = vld [vmem:[%s5412_s2 + $0x1ec] sm:$0xf0]  ;;  %v3116_v30 = vld [vmem:[%s5412_s2 + $0x1e8] sm:$0xf]  ;;  %v274_v25 = vld [vmem:[%s3397_s21 + $0x98] sm:$0xf] }
  0x65   : > { %5542 = vst [vmem:[#allocation19_spill] sm:$0xff] %v4005_v56  ;;  %v553_v23 = vadd.f32 %v3865_v26, %v450_v50  ;;  %v551_v63 = vadd.f32 %v3871_v33, %v448_v34  ;;  %v554_v31 = vadd.f32 %v3871_v33, %v451_v35  ;;  %v3113_v28 = vor.u32 %v3249_v18, %v3110_v55  ;;  %v276_v29 = vld [vmem:[%s3397_s21 + $0xa4] sm:$0xf] }
  0x66   : > { %5543 = vst [vmem:[#allocation20_spill] sm:$0xff] %v4007_v57  ;;  %v3117_v7 = vor.u32 %v3251_v1, %v3116_v30  ;;  %v350_v34 = vunpack.c.h.bf16 %v3626_v42  ;;  %v353_v35 = vunpack.c.h.bf16 %v3635_v47  ;;  %v351_v18 = vunpack.c.l.bf16 %v274_v25 }
  0x67   : > { %1599 = vmatpush.bf16.msra.mxu1 %v3113_v28  ;;  %v4065_v8 = vpack.c.bf16 %v553_v23, %v550_v17  ;;  %v4067_v24 = vpack.c.bf16 %v554_v31, %v551_v63  ;;  %v354_v55 = vunpack.c.l.bf16 %v276_v29 }
  0x68   : > { %1866 = vmatpush.bf16.msra.mxu0 %v3117_v7  ;;  %v453_v23 = vmul.f32 %v3853_v14, %v350_v34  ;;  %v456_v63 = vmul.f32 %v3853_v14, %v353_v35  ;;  %v454_v42 = vmul.f32 %v3859_v22, %v351_v18 }
  0x69   : > { %5546 = vst [vmem:[#allocation23_spill] sm:$0xff] %v4065_v8  ;;  %v457_v47 = vmul.f32 %v3859_v22, %v354_v55 }
  0x6a   : > { %5547 = vst [vmem:[#allocation24_spill] sm:$0xff] %v4067_v24  ;;  %v556_v1 = vadd.f32 %v3865_v26, %v453_v23  ;;  %v559_v7 = vadd.f32 %v3865_v26, %v456_v63  ;;  %v557_v25 = vadd.f32 %v3871_v33, %v454_v42  ;;  %v356_v23 = vunpack.c.h.bf16 %v3768_v39  ;;  %v3008_v39 = vld [vmem:[%s5412_s2 + $0x110] sm:$0xf] }
  0x6b   : > { %v560_v29 = vadd.f32 %v3871_v33, %v457_v47  ;;  %v359_v63 = vunpack.c.h.bf16 %v3771_v40 }
  0x6c   : > { %v4101_v35 = vpack.c.bf16 %v559_v7, %v556_v1  ;;  %v2912_v1 = vld [vmem:[%s5412_s2 + $0x50] sm:$0xf]  ;;  %v3200_v7 = vld [vmem:[%s5412_s2 + $0x58] sm:$0xf0] }
  0x6d   : > { %1248 = vmatmul.bf16.vlgmr.msrb.gmra.mxu1 %v3877_v36  ;;  %1337 = vmatmul.bf16.vlgmr.msrb.gmra.mxu2 %v3879_v48  ;;  %v4103_v18 = vpack.c.bf16 %v560_v29, %v557_v25  ;;  %v2913_v25 = vor.u32 %v3200_v7, %v2912_v1 }
  0x6e   : > { %1426 = vmatmul.bf16.vlgmr.msrb.gmra.mxu3 %v3519_v20  ;;  %5550 = vst [vmem:[#allocation27_spill] sm:$0xff] %v4101_v35 }
  0x6f   : > { %1515 = vmatmul.bf16.vlgmr.msrb.gmra.mxu0 %v3877_v36  ;;  %5551 = vst [vmem:[#allocation28_spill] sm:$0xff] %v4103_v18  ;;  %1689 = vmatpush.bf16.msra.mxu2 %v2913_v25  ;;  %v3104_v25 = vld [vmem:[%s5412_s2 + $0x1d0] sm:$0xf] }
  0x7d   : > { %1253 = vmatmul.bf16.gmra.mxu1 %v3921_v49  ;;  %1342 = vmatmul.bf16.gmra.mxu2 %v3923_v52 }
  0x7e   : > { %1431 = vmatmul.bf16.gmra.mxu3 %v3661_v59 }
  0x7f   : > { %1520 = vmatmul.bf16.gmra.mxu0 %v3921_v49 }
  0x8d   : > { %1258 = vmatmul.bf16.gmra.mxu1 %v3941_v9  ;;  %1347 = vmatmul.bf16.gmra.mxu2 %v3943_v41 }
  0x8e   : > { %1436 = vmatmul.bf16.gmra.mxu3 %v3775_v44 }
  0x8f   : > { %1525 = vmatmul.bf16.gmra.mxu0 %v3941_v9 }
  0x9d   : > { %1263 = vmatmul.bf16.gmra.mxu1 %v3985_v15  ;;  %1352 = vmatmul.bf16.gmra.mxu2 %v3987_v21 }
  0x9e   : > { %1441 = vmatmul.bf16.gmra.mxu3 %v3847_v6  ;;  %v288_v6 = vld [vmem:[%s3397_s21 + $0xec] sm:$0xf] }
  0x9f   : > { %1530 = vmatmul.bf16.gmra.mxu0 %v3985_v15  ;;  %v372_v44 = vunpack.c.l.bf16 %v288_v6 }
  0xa1   : > { %v475_v6 = vmul.f32 %v3859_v22, %v372_v44  ;;  %v3221_v44 = vld [vmem:[%s5412_s2 + $0x100] sm:$0xf0] }
  0xaa   : > { %v4009_v62 = vpop.f32.mrf.mxu1 }
  0xac   : > { %v4013_v0 = vpop.f32.mrf.mxu0 }
  0xad   : > { %1268 = vmatmul.bf16.gmra.mxu1 %v4005_v56  ;;  %1357 = vmatmul.bf16.gmra.mxu2 %v4007_v57 }
  0xae   : > { %1446 = vmatmul.bf16.gmra.mxu3 %v3508_v11  ;;  %v284_v11 = vld [vmem:[%s3397_s21 + $0xd4] sm:$0xf] }
  0xaf   : > { %1535 = vmatmul.bf16.gmra.mxu0 %v4005_v56  ;;  %v282_v56 = vld [vmem:[%s3397_s21 + $0xc8] sm:$0xf] }
  0xb0   : > { %v4033_v27 = vpop.f32.mrf.mxu2 }
  0xb1   : > { %v4036_v16 = vpop.f32.mrf.mxu3 }
  0xb2   : > { %5544 = vst [vmem:[#allocation21_spill] sm:$0xff] %v4036_v16  ;;  %v4041_v51 = vpop.f32.mrf.mxu1 }
  0xb4   : > { %v4043_v32 = vpop.f32.mrf.mxu0 }
  0xb8   : > { %v4061_v2 = vpop.f32.mrf.mxu2 }
  0xb9   : > { %v4063_v10 = vpop.f32.mrf.mxu3 }
  0xba   : > { %5545 = vst [vmem:[#allocation22_spill] sm:$0xff] %v4063_v10  ;;  %v4069_v13 = vpop.f32.mrf.mxu1 }
  0xbc   : > { %v4073_v50 = vpop.f32.mrf.mxu0 }
  0xbd   : > { %1273 = vmatmul.bf16.gmra.mxu1 %v4065_v8  ;;  %1362 = vmatmul.bf16.gmra.mxu2 %v4067_v24  ;;  %v280_v24 = vld [vmem:[%s3397_s21 + $0xbc] sm:$0xf] }
  0xbe   : > { %1451 = vmatmul.bf16.gmra.mxu3 %v3646_v53  ;;  %v278_v53 = vld [vmem:[%s3397_s21 + $0xb0] sm:$0xf]  ;;  %v360_v47 = vunpack.c.l.bf16 %v280_v24 }
  0xbf   : > { %1540 = vmatmul.bf16.gmra.mxu0 %v4065_v8  ;;  %v357_v42 = vunpack.c.l.bf16 %v278_v53  ;;  %v3224_v53 = vld [vmem:[%s5412_s2 + $0x118] sm:$0xf0] }
  0xc0   : > { %v4081_v17 = vpop.f32.mrf.mxu2  ;;  %v3009_v24 = vor.u32 %v3224_v53, %v3008_v39 }
  0xc1   : > { %v4083_v30 = vpop.f32.mrf.mxu3 }
  0xc2   : > { %5548 = vst [vmem:[#allocation25_spill] sm:$0xff] %v4083_v30  ;;  %v4089_v31 = vpop.f32.mrf.mxu1  ;;  %1778 = vmatpush.bf16.msra.mxu3 %v3009_v24 }
  0xc4   : > { %v4091_v28 = vpop.f32.mrf.mxu0 }
  0xc8   : > { %v4097_v34 = vpop.f32.mrf.mxu2 }
  0xc9   : > { %v4099_v8 = vpop.f32.mrf.mxu3 }
  0xca   : > { %5549 = vst [vmem:[#allocation26_spill] sm:$0xff] %v4099_v8  ;;  %v4105_v55 = vpop.f32.mrf.mxu1  ;;  %v463_v8 = vmul.f32 %v3859_v22, %v360_v47  ;;  %v3098_v47 = vld [vmem:[%s5412_s2 + $0x1d4] sm:$0xf0] }
  0xcc   : > { %v4109_v30 = vpop.f32.mrf.mxu0 }
  0xcd   : > { %1278 = vmatmul.bf16.gmra.mxu1 %v4101_v35  ;;  %1367 = vmatmul.bf16.gmra.mxu2 %v4103_v18  ;;  %v460_v18 = vmul.f32 %v3859_v22, %v357_v42  ;;  %v3246_v42 = vld [vmem:[%s5412_s2 + $0x1cc] sm:$0xf] }
  0xce   : > { %1456 = vmatmul.bf16.gmra.mxu3 %v3763_v37  ;;  %v462_v37 = vmul.f32 %v3853_v14, %v359_v63  ;;  %v566_v63 = vadd.f32 %v3871_v33, %v463_v8  ;;  %v3248_v8 = vld [vmem:[%s5412_s2 + $0x1d8] sm:$0xf0] }
  0xcf   : > { %1545 = vmatmul.bf16.gmra.mxu0 %v4101_v35  ;;  %v459_v35 = vmul.f32 %v3853_v14, %v356_v23  ;;  %v563_v23 = vadd.f32 %v3871_v33, %v460_v18 }
  0xd0   : > { %v4129_v40 = vpop.f32.mrf.mxu2  ;;  %v565_v39 = vadd.f32 %v3865_v26, %v462_v37  ;;  %v3101_v37 = vor.u32 %v3246_v42, %v3098_v47  ;;  %v3296_v42 = vld [vmem:[%s3397_s21 + $0xc0] sm:$0xff] }
  0xd1   : > { %v4131_v29 = vpop.f32.mrf.mxu3  ;;  %v562_v7 = vadd.f32 %v3865_v26, %v459_v35  ;;  %v4163_v24 = vpack.c.bf16 %v566_v63, %v563_v23  ;;  %v362_v47 = vunpack.c.h.bf16 %v3296_v42  ;;  %v366_v23 = vunpack.c.l.bf16 %v284_v11 }
  0xd2   : > { %5552 = vst [vmem:[#allocation29_spill] sm:$0xff] %v4131_v29  ;;  %v4137_v10 = vpop.f32.mrf.mxu1  ;;  %v3105_v29 = vor.u32 %v3248_v8, %v3104_v25  ;;  %1600 = vmatpush.bf16.msra.mxu1 %v3101_v37 }
  0xd3   : > { %v4161_v53 = vpack.c.bf16 %v565_v39, %v562_v7  ;;  %5556 = vst [vmem:[#allocation33_spill] sm:$0xff] %v4163_v24  ;;  %v363_v39 = vunpack.c.l.bf16 %v282_v56  ;;  %v469_v42 = vmul.f32 %v3859_v22, %v366_v23 }
  0xd4   : > { %v4139_v1 = vpop.f32.mrf.mxu0  ;;  %1867 = vmatpush.bf16.msra.mxu0 %v3105_v29  ;;  %v465_v29 = vmul.f32 %v3853_v14, %v362_v47 }
  0xd5   : > { %5555 = vst [vmem:[#allocation32_spill] sm:$0xff] %v4161_v53  ;;  %v466_v8 = vmul.f32 %v3859_v22, %v363_v39  ;;  %v572_v39 = vadd.f32 %v3871_v33, %v469_v42  ;;  %v3298_v42 = vld [vmem:[%s3397_s21 + $0xd8] sm:$0xff] }
  0xd8   : > { %v4154_v35 = vpop.f32.mrf.mxu2 }
  0xd9   : > { %5553 = vst [vmem:[#allocation30_spill] sm:$0xff] %v4154_v35  ;;  %v4159_v18 = vpop.f32.mrf.mxu3  ;;  %v368_v35 = vunpack.c.h.bf16 %v3298_v42 }
  0xda   : > { %5554 = vst [vmem:[#allocation31_spill] sm:$0xff] %v4159_v18  ;;  %v4165_v16 = vpop.f32.mrf.mxu1  ;;  %v3297_v18 = vld [vmem:[%s3397_s21 + $0xcc] sm:$0xff] }
  0xdb   : > { %v365_v7 = vunpack.c.h.bf16 %v3297_v18  ;;  %v759_v18 = vld [vmem:[%s5413_s3] ss:$8 sm:$0x7] }
  0xdc   : > { %v4169_v57 = vpop.f32.mrf.mxu0  ;;  %v4196_v23 = vperm.slane %v759_v18, 0 }
  0xdd   : > { %1283 = vmatmul.bf16.gmra.mxu1 %v4161_v53  ;;  %1372 = vmatmul.bf16.gmra.mxu2 %v4163_v24  ;;  %v468_v37 = vmul.f32 %v3853_v14, %v365_v7  ;;  %v569_v7 = vadd.f32 %v3871_v33, %v466_v8 }
  0xde   : > { %1461 = vmatmul.bf16.gmra.mxu3 %v3841_v3  ;;  %v1161_v24 = vadd.f32 %v4013_v0, %v4196_v23 }
  0xdf   : > { %1550 = vmatmul.bf16.gmra.mxu0 %v4161_v53  ;;  %v568_v53 = vadd.f32 %v3865_v26, %v465_v29  ;;  %v571_v47 = vadd.f32 %v3865_v26, %v468_v37  ;;  %v4206_v15 = vpack.c.bf16 %v572_v39, %v569_v7  ;;  %v286_v37 = vld [vmem:[%s3397_s21 + $0xe0] sm:$0xf]  ;;  %v471_v7 = vmul.f32 %v3853_v14, %v368_v35  ;;  %v2996_v35 = vld [vmem:[%s5412_s2 + $0xf8] sm:$0xf] }
  0xe0   : > { %v4177_v63 = vpop.f32.mrf.mxu2  ;;  %v369_v0 = vunpack.c.l.bf16 %v286_v37 }
  0xe1   : > { %5557 = vst [vmem:[#allocation34_spill] sm:$0xff] %v4177_v63  ;;  %v4179_v25 = vpop.f32.mrf.mxu3  ;;  %v4204_v63 = vpack.c.bf16 %v571_v47, %v568_v53  ;;  %v4216_v53 = vperm.slane %v759_v18, 1  ;;  %v2900_v18 = vld [vmem:[%s5412_s2 + $0x38] sm:$0xf] }
  0xe2   : > { %5558 = vst [vmem:[#allocation35_spill] sm:$0xff] %v4179_v25  ;;  %v4185_v56 = vpop.f32.mrf.mxu1 }
  0xe3   : > { %5561 = vst [vmem:[#allocation38_spill] sm:$0xff] %v4204_v63 }
  0xe4   : > { %v4187_v11 = vpop.f32.mrf.mxu0  ;;  %5562 = vst [vmem:[#allocation39_spill] sm:$0xff] %v4206_v15 }
  0xe8   : > { %v4198_v3 = vpop.f32.mrf.mxu2 }
  0xe9   : > { %5559 = vst [vmem:[#allocation36_spill] sm:$0xff] %v4198_v3  ;;  %v4202_v25 = vpop.f32.mrf.mxu3  ;;  %v3299_v3 = vld [vmem:[%s3397_s21 + $0xe4] sm:$0xff] }
  0xea   : > { %5560 = vst [vmem:[#allocation37_spill] sm:$0xff] %v4202_v25  ;;  %v1249_v29 = vpop.f32.mrf.mxu1  ;;  %v371_v9 = vunpack.c.h.bf16 %v3299_v3  ;;  %v472_v3 = vmul.f32 %v3859_v22, %v369_v0 }
  0xeb   : > { %v1250_v8 = vadd.f32 %v1249_v29, %v1161_v24  ;;  %v1163_v24 = vadd.f32 %v4043_v32, %v4196_v23  ;;  %v3197_v32 = vld [vmem:[%s5412_s2 + $0x40] sm:$0xf0] }
  0xec   : > { %v1516_v21 = vpop.f32.mrf.mxu0  ;;  %v474_v42 = vmul.f32 %v3853_v14, %v371_v9  ;;  %v2901_v9 = vor.u32 %v3197_v32, %v2900_v18  ;;  %v578_v18 = vadd.f32 %v3871_v33, %v475_v6  ;;  %v290_v6 = vld [vmem:[%s3397_s21 + $0xf8] sm:$0xf] }
  0xed   : > { %1288 = vmatmul.bf16.gmra.mxu1 %v4204_v63  ;;  %1377 = vmatmul.bf16.gmra.mxu2 %v4206_v15  ;;  %v574_v15 = vadd.f32 %v3865_v26, %v471_v7  ;;  %v3243_v7 = vld [vmem:[%s5412_s2 + $0x1b4] sm:$0xf] }
  0xee   : > { %1466 = vmatmul.bf16.gmra.mxu3 %v3510_v12  ;;  %1690 = vmatpush.bf16.msra.mxu2 %v2901_v9  ;;  %v577_v25 = vadd.f32 %v3865_v26, %v474_v42  ;;  %v3086_v42 = vld [vmem:[%s5412_s2 + $0x1bc] sm:$0xf0]  ;;  %v3245_v9 = vld [vmem:[%s5412_s2 + $0x1c0] sm:$0xf0] }
  0xef   : > { %1555 = vmatmul.bf16.gmra.mxu0 %v4204_v63  ;;  %v2997_v63 = vor.u32 %v3221_v44, %v2996_v35 }
  0xf0   : > { %v1338_v47 = vpop.f32.mrf.mxu2 }
  0xf1   : > { %v4221_v39 = vadd.f32 %v1338_v47, %v1250_v8  ;;  %v1427_v29 = vpop.f32.mrf.mxu3  ;;  %1779 = vmatpush.bf16.msra.mxu3 %v2997_v63  ;;  %v3092_v63 = vld [vmem:[%s5412_s2 + $0x1b8] sm:$0xf] }
  0xf2   : > { %v1428_v37 = vadd.f32 %v1427_v29, %v4216_v53  ;;  %v1251_v8 = vpop.f32.mrf.mxu1  ;;  %v575_v29 = vadd.f32 %v3871_v33, %v472_v3 }
  0xf3   : > { %v1252_v0 = vadd.f32 %v1251_v8, %v1163_v24  ;;  %v1166_v24 = vadd.f32 %v4073_v50, %v4196_v23 }
  0xf4   : > { %v1518_v47 = vpop.f32.mrf.mxu0  ;;  %v4239_v12 = vadd.f32 %v1516_v21, %v1428_v37  ;;  %v4249_v21 = vpack.c.bf16 %v577_v25, %v574_v15  ;;  %v4251_v37 = vpack.c.bf16 %v578_v18, %v575_v29  ;;  %v292_v15 = vld [vmem:[%s3397_s21 + $0x104] sm:$0xf]  ;;  %v3089_v25 = vor.u32 %v3243_v7, %v3086_v42 }
  0xf5   : > { %v3093_v29 = vor.u32 %v3245_v9, %v3092_v63  ;;  %v374_v18 = vunpack.c.h.bf16 %v3664_v60  ;;  %v378_v7 = vunpack.c.l.bf16 %v292_v15 }
  0xf6   : > { %5563 = vst [vmem:[#allocation40_spill] sm:$0xff] %v4239_v12  ;;  %1601 = vmatpush.bf16.msra.mxu1 %v3089_v25  ;;  %v375_v12 = vunpack.c.l.bf16 %v290_v6 }
  0xf7   : > { %5564 = vst [vmem:[#allocation41_spill] sm:$0xff] %v4249_v21  ;;  %1868 = vmatpush.bf16.msra.mxu0 %v3093_v29 }
  0xf8   : > { %v1340_v32 = vpop.f32.mrf.mxu2 }
  0xf9   : > { %v4247_v8 = vadd.f32 %v1340_v32, %v1252_v0  ;;  %v1429_v35 = vpop.f32.mrf.mxu3 }
  0xfa   : > { %v1430_v50 = vadd.f32 %v1429_v35, %v4216_v53  ;;  %v1254_v3 = vpop.f32.mrf.mxu1  ;;  %v377_v35 = vunpack.c.h.bf16 %v3667_v61  ;;  %v478_v61 = vmul.f32 %v3859_v22, %v375_v12 }
  0xfb   : > { %v1255_v44 = vadd.f32 %v1254_v3, %v1166_v24  ;;  %v1168_v24 = vadd.f32 %v4091_v28, %v4196_v23  ;;  %v481_v3 = vmul.f32 %v3859_v22, %v378_v7  ;;  %v1171_v7 = vadd.f32 %v4109_v30, %v4196_v23 }
  0xfc   : > { %v1521_v0 = vpop.f32.mrf.mxu0  ;;  %v4269_v32 = vadd.f32 %v1518_v47, %v1430_v50  ;;  %v477_v47 = vmul.f32 %v3853_v14, %v374_v18  ;;  %v480_v50 = vmul.f32 %v3853_v14, %v377_v35  ;;  %v581_v18 = vadd.f32 %v3871_v33, %v478_v61 }
  0xfd   : > { %1293 = vmatmul.bf16.gmra.mxu1 %v4249_v21  ;;  %1382 = vmatmul.bf16.gmra.mxu2 %v4251_v37  ;;  %v584_v35 = vadd.f32 %v3871_v33, %v481_v3  ;;  %v380_v3 = vunpack.c.h.bf16 %v3778_v45  ;;  %v383_v30 = vunpack.c.h.bf16 %v3781_v46 }
  0xfe   : > { %1471 = vmatmul.bf16.gmra.mxu3 %v3648_v54  ;;  %v580_v29 = vadd.f32 %v3865_v26, %v477_v47 }
  0xff   : > { %1560 = vmatmul.bf16.gmra.mxu0 %v4249_v21  ;;  %v483_v45 = vmul.f32 %v3853_v14, %v380_v3 }
 0x100   : > { %v1343_v60 = vpop.f32.mrf.mxu2 }
 0x101   : > { %v4279_v42 = vadd.f32 %v1343_v60, %v1255_v44  ;;  %v1432_v63 = vpop.f32.mrf.mxu3  ;;  %v583_v44 = vadd.f32 %v3865_v26, %v480_v50  ;;  %v296_v50 = vld [vmem:[%s3397_s21 + $0x11c] sm:$0xf] }
 0x102   : > { %v1433_v6 = vadd.f32 %v1432_v63, %v4216_v53  ;;  %v1256_v15 = vpop.f32.mrf.mxu1 }
 0x103   : > { %v1257_v25 = vadd.f32 %v1256_v15, %v1168_v24  ;;  %v4295_v24 = vpack.c.bf16 %v583_v44, %v580_v29  ;;  %v4297_v15 = vpack.c.bf16 %v584_v35, %v581_v18  ;;  %v384_v29 = vunpack.c.l.bf16 %v296_v50  ;;  %v3218_v50 = vld [vmem:[%s5412_s2 + $0xe8] sm:$0xf0] }
 0x104   : > { %v1523_v9 = vpop.f32.mrf.mxu0  ;;  %v4285_v28 = vadd.f32 %v1521_v0, %v1433_v6  ;;  %v294_v6 = vld [vmem:[%s3397_s21 + $0x110] sm:$0xf]  ;;  %v1173_v44 = vadd.f32 %v4139_v1, %v4196_v23  ;;  %v3194_v1 = vld [vmem:[%s5412_s2 + $0x28] sm:$0xf0] }
 0x105   : > { %5566 = vst [vmem:[#allocation43_spill] sm:$0xff] %v4295_v24  ;;  %v487_v46 = vmul.f32 %v3859_v22, %v384_v29 }
 0x106   : > { %5567 = vst [vmem:[#allocation44_spill] sm:$0xff] %v4297_v15 }
 0x108   : > { %v1345_v12 = vpop.f32.mrf.mxu2 }
 0x109   : > { %v4293_v60 = vadd.f32 %v1345_v12, %v1257_v25  ;;  %v1434_v63 = vpop.f32.mrf.mxu3  ;;  %v381_v25 = vunpack.c.l.bf16 %v294_v6  ;;  %v486_v12 = vmul.f32 %v3853_v14, %v383_v30 }
 0x10a   : > { %v1435_v0 = vadd.f32 %v1434_v63, %v4216_v53  ;;  %v1259_v47 = vpop.f32.mrf.mxu1  ;;  %v2888_v63 = vld [vmem:[%s5412_s2 + $0x20] sm:$0xf] }
 0x10b   : > { %5565 = vst [vmem:[#allocation42_spill] sm:$0xff] %v4293_v60  ;;  %v1260_v21 = vadd.f32 %v1259_v47, %v1171_v7  ;;  %v484_v7 = vmul.f32 %v3859_v22, %v381_v25  ;;  %v2889_v6 = vor.u32 %v3194_v1, %v2888_v63  ;;  %v590_v63 = vadd.f32 %v3871_v33, %v487_v46 }
 0x10c   : > { %v1526_v61 = vpop.f32.mrf.mxu0  ;;  %v4303_v54 = vadd.f32 %v1523_v9, %v1435_v0 }
 0x10d   : > { %1298 = vmatmul.bf16.gmra.mxu1 %v4295_v24  ;;  %1387 = vmatmul.bf16.gmra.mxu2 %v4297_v15 }
 0x10e   : > { %1476 = vmatmul.bf16.gmra.mxu3 %v3765_v38  ;;  %1691 = vmatpush.bf16.msra.mxu2 %v2889_v6  ;;  %v300_v6 = vld [vmem:[%s3397_s21 + $0x134] sm:$0xf] }
 0x10f   : > { %1565 = vmatmul.bf16.gmra.mxu0 %v4295_v24  ;;  %v589_v24 = vadd.f32 %v3865_v26, %v486_v12  ;;  %v3240_v12 = vld [vmem:[%s5412_s2 + $0x19c] sm:$0xf] }
 0x110   : > { %v1348_v18 = vpop.f32.mrf.mxu2 }
 0x111   : > { %v4313_v9 = vadd.f32 %v1348_v18, %v1260_v21  ;;  %v1437_v35 = vpop.f32.mrf.mxu3  ;;  %v2984_v21 = vld [vmem:[%s5412_s2 + $0xe0] sm:$0xf]  ;;  %v586_v18 = vadd.f32 %v3865_v26, %v483_v45 }
 0x112   : > { %v1438_v0 = vadd.f32 %v1437_v35, %v4216_v53  ;;  %v1261_v47 = vpop.f32.mrf.mxu1  ;;  %v2985_v25 = vor.u32 %v3218_v50, %v2984_v21  ;;  %v587_v35 = vadd.f32 %v3871_v33, %v484_v7  ;;  %v3074_v7 = vld [vmem:[%s5412_s2 + $0x1a4] sm:$0xf0] }
 0x113   : > { %5568 = vst [vmem:[#allocation45_spill] sm:$0xff] %v4313_v9  ;;  %v1262_v3 = vadd.f32 %v1261_v47, %v1173_v44  ;;  %v1176_v44 = vadd.f32 %v4169_v57, %v4196_v23  ;;  %v4341_v21 = vpack.c.bf16 %v589_v24, %v586_v18  ;;  %v3080_v57 = vld [vmem:[%s5412_s2 + $0x1a0] sm:$0xf]  ;;  %v298_v24 = vld [vmem:[%s3397_s21 + $0x128] sm:$0xf]  ;;  %v3077_v50 = vor.u32 %v3240_v12, %v3074_v7 }
 0x114   : > { %v1528_v30 = vpop.f32.mrf.mxu0  ;;  %v4331_v29 = vadd.f32 %v1526_v61, %v1438_v0  ;;  %1780 = vmatpush.bf16.msra.mxu3 %v2985_v25  ;;  %v4343_v45 = vpack.c.bf16 %v590_v63, %v587_v35  ;;  %v3300_v63 = vld [vmem:[%s3397_s21 + $0x120] sm:$0xff]  ;;  %v390_v12 = vunpack.c.l.bf16 %v300_v6 }
 0x115   : > { %5571 = vst [vmem:[#allocation48_spill] sm:$0xff] %v4341_v21  ;;  %1602 = vmatpush.bf16.msra.mxu1 %v3077_v50 }
 0x116   : > { %5569 = vst [vmem:[#allocation46_spill] sm:$0xff] %v4331_v29  ;;  %v387_v29 = vunpack.c.l.bf16 %v298_v24  ;;  %v493_v24 = vmul.f32 %v3859_v22, %v390_v12  ;;  %v1181_v12 = vadd.f32 %v4009_v62, %v4196_v23  ;;  %v3303_v62 = vld [vmem:[%s3397_s21 + $0x144] sm:$0xff] }
 0x117   : > { %5572 = vst [vmem:[#allocation49_spill] sm:$0xff] %v4343_v45 }
 0x118   : > { %v1350_v1 = vpop.f32.mrf.mxu2  ;;  %v490_v50 = vmul.f32 %v3859_v22, %v387_v29  ;;  %v596_v29 = vadd.f32 %v3871_v33, %v493_v24  ;;  %v3302_v24 = vld [vmem:[%s3397_s21 + $0x138] sm:$0xff] }
 0x119   : > { %v4339_v47 = vadd.f32 %v1350_v1, %v1262_v3  ;;  %v1439_v61 = vpop.f32.mrf.mxu3  ;;  %v3242_v3 = vld [vmem:[%s5412_s2 + $0x1a8] sm:$0xf0]  ;;  %v386_v1 = vunpack.c.h.bf16 %v3300_v63 }
 0x11a   : > { %v1440_v46 = vadd.f32 %v1439_v61, %v4216_v53  ;;  %v1264_v0 = vpop.f32.mrf.mxu1  ;;  %v3081_v35 = vor.u32 %v3242_v3, %v3080_v57  ;;  %v3301_v61 = vld [vmem:[%s3397_s21 + $0x12c] sm:$0xff] }
 0x11b   : > { %5570 = vst [vmem:[#allocation47_spill] sm:$0xff] %v4339_v47  ;;  %v1265_v25 = vadd.f32 %v1264_v0, %v1176_v44  ;;  %v389_v15 = vunpack.c.h.bf16 %v3301_v61  ;;  %v1178_v44 = vadd.f32 %v4187_v11, %v4196_v23 }
 0x11c   : > { %v1531_v18 = vpop.f32.mrf.mxu0  ;;  %v4361_v38 = vadd.f32 %v1528_v30, %v1440_v46  ;;  %1869 = vmatpush.bf16.msra.mxu0 %v3081_v35  ;;  %v489_v30 = vmul.f32 %v3853_v14, %v386_v1 }
 0x11d   : > { %1303 = vmatmul.bf16.gmra.mxu1 %v4341_v21  ;;  %1392 = vmatmul.bf16.gmra.mxu2 %v4343_v45  ;;  %v492_v0 = vmul.f32 %v3853_v14, %v389_v15  ;;  %v593_v15 = vadd.f32 %v3871_v33, %v490_v50 }
 0x11e   : > { %5573 = vst [vmem:[#allocation50_spill] sm:$0xff] %v4361_v38  ;;  %1481 = vmatmul.bf16.gmra.mxu3 %v3843_v4  ;;  %v592_v1 = vadd.f32 %v3865_v26, %v489_v30  ;;  %v392_v4 = vunpack.c.h.bf16 %v3302_v24 }
 0x11f   : > { %1570 = vmatmul.bf16.gmra.mxu0 %v4341_v21 }
 0x120   : > { %v1353_v7 = vpop.f32.mrf.mxu2 }
 0x121   : > { %v4371_v57 = vadd.f32 %v1353_v7, %v1265_v25  ;;  %v1442_v46 = vpop.f32.mrf.mxu3  ;;  %v595_v25 = vadd.f32 %v3865_v26, %v492_v0  ;;  %v302_v0 = vld [vmem:[%s3397_s21 + $0x140] sm:$0xf] }
 0x122   : > { %v1443_v6 = vadd.f32 %v1442_v46, %v4216_v53  ;;  %v1266_v3 = vpop.f32.mrf.mxu1 }
 0x123   : > { %5574 = vst [vmem:[#allocation51_spill] sm:$0xff] %v4371_v57  ;;  %v1267_v35 = vadd.f32 %v1266_v3, %v1178_v44  ;;  %v4387_v46 = vpack.c.bf16 %v595_v25, %v592_v1  ;;  %v304_v3 = vld [vmem:[%s3397_s21 + $0x14c] sm:$0xf]  ;;  %v393_v1 = vunpack.c.l.bf16 %v302_v0  ;;  %v2876_v0 = vld [vmem:[%s5412_s2 + $0x8] sm:$0xf] }
 0x124   : > { %v1533_v63 = vpop.f32.mrf.mxu0  ;;  %v4377_v11 = vadd.f32 %v1531_v18, %v1443_v6  ;;  %v4389_v18 = vpack.c.bf16 %v596_v29, %v593_v15  ;;  %v396_v25 = vunpack.c.l.bf16 %v304_v3  ;;  %v1183_v15 = vadd.f32 %v4041_v51, %v4196_v23  ;;  %v3191_v51 = vld [vmem:[%s5412_s2 + $0x10] sm:$0xf0] }
 0x125   : > { %5577 = vst [vmem:[#allocation54_spill] sm:$0xff] %v4387_v46  ;;  %v2877_v24 = vor.u32 %v3191_v51, %v2876_v0 }
 0x126   : > { %5575 = vst [vmem:[#allocation52_spill] sm:$0xff] %v4377_v11 }
 0x127   : > { %5578 = vst [vmem:[#allocation55_spill] sm:$0xff] %v4389_v18  ;;  %1692 = vmatpush.bf16.msra.mxu2 %v2877_v24 }
 0x128   : > { %v1355_v61 = vpop.f32.mrf.mxu2 }
 0x129   : > { %v4385_v7 = vadd.f32 %v1355_v61, %v1267_v35  ;;  %v1444_v44 = vpop.f32.mrf.mxu3  ;;  %v395_v35 = vunpack.c.h.bf16 %v3303_v62  ;;  %v495_v61 = vmul.f32 %v3853_v14, %v392_v4  ;;  %v2972_v4 = vld [vmem:[%s5412_s2 + $0xc8] sm:$0xf]  ;;  %v3215_v62 = vld [vmem:[%s5412_s2 + $0xd0] sm:$0xf0] }
 0x12a   : > { %v1445_v30 = vadd.f32 %v1444_v44, %v4216_v53  ;;  %v1269_v6 = vpop.f32.mrf.mxu1 }
 0x12b   : > { %5576 = vst [vmem:[#allocation53_spill] sm:$0xff] %v4385_v7  ;;  %v1270_v50 = vadd.f32 %v1269_v6, %v1181_v12  ;;  %v498_v44 = vmul.f32 %v3853_v14, %v395_v35  ;;  %v499_v6 = vmul.f32 %v3859_v22, %v396_v25  ;;  %v2973_v25 = vor.u32 %v3215_v62, %v2972_v4  ;;  %v3239_v62 = vld [vmem:[%s5412_s2 + $0x190] sm:$0xf0] }
 0x12c   : > { %v1536_v21 = vpop.f32.mrf.mxu0  ;;  %v4395_v45 = vadd.f32 %v1533_v63, %v1445_v30  ;;  %v496_v30 = vmul.f32 %v3859_v22, %v393_v1 }
 0x12d   : > { %1308 = vmatmul.bf16.gmra.mxu1 %v4387_v46  ;;  %1397 = vmatmul.bf16.gmra.mxu2 %v4389_v18  ;;  %v602_v0 = vadd.f32 %v3871_v33, %v499_v6 }
 0x12e   : > { %5579 = vst [vmem:[#allocation56_spill] sm:$0xff] %v4395_v45  ;;  %1486 = vmatmul.bf16.gmra.mxu3 %v3517_v19  ;;  %v601_v19 = vadd.f32 %v3865_v26, %v498_v44  ;;  %v3237_v44 = vld [vmem:[%s5412_s2 + $0x184] sm:$0xf] }
 0x12f   : > { %1575 = vmatmul.bf16.gmra.mxu0 %v4387_v46  ;;  %v598_v46 = vadd.f32 %v3865_v26, %v495_v61  ;;  %1781 = vmatpush.bf16.msra.mxu3 %v2973_v25 }
 0x130   : > { %v1358_v29 = vpop.f32.mrf.mxu2 }
 0x131   : > { %v4405_v63 = vadd.f32 %v1358_v29, %v1270_v50  ;;  %v1447_v12 = vpop.f32.mrf.mxu3  ;;  %v4433_v4 = vpack.c.bf16 %v601_v19, %v598_v46  ;;  %v306_v19 = vld [vmem:[%s3397_s21 + $0x158] sm:$0xf]  ;;  %v308_v46 = vld [vmem:[%s3397_s21 + $0x164] sm:$0xf] }
 0x132   : > { %v1448_v3 = vadd.f32 %v1447_v12, %v4216_v53  ;;  %v1271_v50 = vpop.f32.mrf.mxu1  ;;  %v599_v12 = vadd.f32 %v3871_v33, %v496_v30  ;;  %v3062_v30 = vld [vmem:[%s5412_s2 + $0x18c] sm:$0xf0]  ;;  %v399_v45 = vunpack.c.l.bf16 %v306_v19 }
 0x133   : > { %5580 = vst [vmem:[#allocation57_spill] sm:$0xff] %v4405_v63  ;;  %v1272_v35 = vadd.f32 %v1271_v50, %v1183_v15  ;;  %v1186_v15 = vadd.f32 %v4069_v13, %v4196_v23  ;;  %v3068_v13 = vld [vmem:[%s5412_s2 + $0x188] sm:$0xf]  ;;  %v3065_v24 = vor.u32 %v3237_v44, %v3062_v30  ;;  %v402_v44 = vunpack.c.l.bf16 %v308_v46 }
 0x134   : > { %v1538_v1 = vpop.f32.mrf.mxu0  ;;  %v4423_v29 = vadd.f32 %v1536_v21, %v1448_v3  ;;  %5583 = vst [vmem:[#allocation60_spill] sm:$0xff] %v4433_v4  ;;  %v4435_v61 = vpack.c.bf16 %v602_v0, %v599_v12  ;;  %v3069_v12 = vor.u32 %v3239_v62, %v3068_v13  ;;  %v3304_v0 = vld [vmem:[%s3397_s21 + $0x150] sm:$0xff] }
 0x135   : > { %1603 = vmatpush.bf16.msra.mxu1 %v3065_v24  ;;  %v502_v24 = vmul.f32 %v3859_v22, %v399_v45  ;;  %v505_v19 = vmul.f32 %v3859_v22, %v402_v44  ;;  %v1191_v44 = vadd.f32 %v4105_v55, %v4196_v23  ;;  %v3307_v55 = vld [vmem:[%s3397_s21 + $0x174] sm:$0xff] }
 0x136   : > { %5581 = vst [vmem:[#allocation58_spill] sm:$0xff] %v4423_v29  ;;  %1870 = vmatpush.bf16.msra.mxu0 %v3069_v12 }
 0x137   : > { %5584 = vst [vmem:[#allocation61_spill] sm:$0xff] %v4435_v61  ;;  %v608_v45 = vadd.f32 %v3871_v33, %v505_v19  ;;  %v3306_v19 = vld [vmem:[%s3397_s21 + $0x168] sm:$0xff] }
 0x138   : > { %v1360_v51 = vpop.f32.mrf.mxu2 }
 0x139   : > { %v4431_v50 = vadd.f32 %v1360_v51, %v1272_v35  ;;  %v1449_v21 = vpop.f32.mrf.mxu3  ;;  %v398_v51 = vunpack.c.h.bf16 %v3304_v0 }
 0x13a   : > { %v1450_v6 = vadd.f32 %v1449_v21, %v4216_v53  ;;  %v1274_v3 = vpop.f32.mrf.mxu1  ;;  %v3305_v21 = vld [vmem:[%s3397_s21 + $0x15c] sm:$0xff] }
 0x13b   : > { %5582 = vst [vmem:[#allocation59_spill] sm:$0xff] %v4431_v50  ;;  %v1275_v35 = vadd.f32 %v1274_v3, %v1186_v15  ;;  %v401_v29 = vunpack.c.h.bf16 %v3305_v21  ;;  %v1188_v15 = vadd.f32 %v4089_v31, %v4196_v23 }
 0x13c   : > { %v1541_v25 = vpop.f32.mrf.mxu0  ;;  %v4453_v18 = vadd.f32 %v1538_v1, %v1450_v6  ;;  %v501_v1 = vmul.f32 %v3853_v14, %v398_v51 }
 0x13d   : > { %1313 = vmatmul.bf16.gmra.mxu1 %v4433_v4  ;;  %1402 = vmatmul.bf16.gmra.mxu2 %v4435_v61  ;;  %v504_v3 = vmul.f32 %v3853_v14, %v401_v29  ;;  %v605_v29 = vadd.f32 %v3871_v33, %v502_v24 }
 0x13e   : > { %5585 = vst [vmem:[#allocation62_spill] sm:$0xff] %v4453_v18  ;;  %1491 = vmatmul.bf16.gmra.mxu3 %v3659_v58  ;;  %v604_v51 = vadd.f32 %v3865_v26, %v501_v1  ;;  %v404_v58 = vunpack.c.h.bf16 %v3306_v19 }
 0x13f   : > { %1580 = vmatmul.bf16.gmra.mxu0 %v4433_v4 }
 0x140   : > { %v1363_v30 = vpop.f32.mrf.mxu2 }
 0x141   : > { %v4463_v13 = vadd.f32 %v1363_v30, %v1275_v35  ;;  %v1452_v6 = vpop.f32.mrf.mxu3  ;;  %v607_v35 = vadd.f32 %v3865_v26, %v504_v3  ;;  %v310_v3 = vld [vmem:[%s3397_s21 + $0x170] sm:$0xf] }
 0x142   : > { %v1453_v46 = vadd.f32 %v1452_v6, %v4216_v53  ;;  %v1276_v62 = vpop.f32.mrf.mxu1 }
 0x143   : > { %5586 = vst [vmem:[#allocation63_spill] sm:$0xff] %v4463_v13  ;;  %v1277_v12 = vadd.f32 %v1276_v62, %v1188_v15  ;;  %v4479_v6 = vpack.c.bf16 %v607_v35, %v604_v51  ;;  %v312_v62 = vld [vmem:[%s3397_s21 + $0x17c] sm:$0xf]  ;;  %v405_v51 = vunpack.c.l.bf16 %v310_v3  ;;  %s3154_s21 = sshll.u32 %s3354_s19, 8  ;;  %s5799_s19 = smov (!%p241_p4, %s3354_s19), 2 }
 0x144   : > { %v1543_v0 = vpop.f32.mrf.mxu0  ;;  %v4469_v31 = vadd.f32 %v1541_v25, %v1453_v46  ;;  %v4481_v25 = vpack.c.bf16 %v608_v45, %v605_v29  ;;  %v408_v35 = vunpack.c.l.bf16 %v312_v62  ;;  %v1193_v29 = vadd.f32 %v4137_v10, %v4196_v23  ;;  %s3286_s7 = smul.u32 24, %s5799_s19 }
 0x145   : > { %5589 = vst [vmem:[#allocation66_spill] sm:$0xff] %v4479_v6 }
 0x146   : > { %5587 = vst [vmem:[#allocation64_spill] sm:$0xff] %v4469_v31  ;;  %s5087_s20 = scalar_lea.vmem %s5415_s5, %s3286_s7 }
 0x147   : > { %5590 = vst [vmem:[#allocation67_spill] sm:$0xff] %v4481_v25 }
 0x148   : > { %v1365_v21 = vpop.f32.mrf.mxu2 }
 0x149   : > { %v4477_v30 = vadd.f32 %v1365_v21, %v1277_v12  ;;  %v1454_v15 = vpop.f32.mrf.mxu3  ;;  %v407_v12 = vunpack.c.h.bf16 %v3307_v55  ;;  %v507_v21 = vmul.f32 %v3853_v14, %v404_v58 }
 0x14a   : > { %v1455_v1 = vadd.f32 %v1454_v15, %v4216_v53  ;;  %v1279_v46 = vpop.f32.mrf.mxu1 }
 0x14b   : > { %5588 = vst [vmem:[#allocation65_spill] sm:$0xff] %v4477_v30  ;;  %v1280_v24 = vadd.f32 %v1279_v46, %v1191_v44  ;;  %v510_v15 = vmul.f32 %v3853_v14, %v407_v12  ;;  %v511_v46 = vmul.f32 %v3859_v22, %v408_v35  ;;  %v610_v10 = vadd.f32 %v3865_v26, %v507_v21 }
 0x14c   : > { %v1546_v4 = vpop.f32.mrf.mxu0  ;;  %v4487_v61 = vadd.f32 %v1543_v0, %v1455_v1  ;;  %v508_v1 = vmul.f32 %v3859_v22, %v405_v51  ;;  %v1196_v12 = vadd.f32 %v4165_v16, %v4196_v23  ;;  %v1198_v16 = vadd.f32 %v4185_v56, %v4196_v23 }
 0x14d   : > { %1318 = vmatmul.bf16.gmra.mxu1 %v4479_v6  ;;  %1407 = vmatmul.bf16.gmra.mxu2 %v4481_v25  ;;  %v613_v58 = vadd.f32 %v3865_v26, %v510_v15 }
 0x14e   : > { %5591 = vst [vmem:[#allocation68_spill] sm:$0xff] %v4487_v61  ;;  %1496 = vmatmul.bf16.gmra.mxu3 %v3773_v43 }
 0x14f   : > { %1585 = vmatmul.bf16.gmra.mxu0 %v4479_v6  ;;  %v4513_v35 = vpack.c.bf16 %v613_v58, %v610_v10 }
 0x150   : > { %v1368_v45 = vpop.f32.mrf.mxu2 }
 0x151   : > { %v4497_v0 = vadd.f32 %v1368_v45, %v1280_v24  ;;  %v1457_v44 = vpop.f32.mrf.mxu3  ;;  %v611_v24 = vadd.f32 %v3871_v33, %v508_v1  ;;  %v614_v45 = vadd.f32 %v3871_v33, %v511_v46  ;;  %5595 = vst [vmem:[#allocation72_spill] sm:$0xff] %v4513_v35 }
 0x152   : > { %v1458_v3 = vadd.f32 %v1457_v44, %v4216_v53  ;;  %v1281_v62 = vpop.f32.mrf.mxu1 }
 0x153   : > { %5592 = vst [vmem:[#allocation69_spill] sm:$0xff] %v4497_v0  ;;  %v1282_v19 = vadd.f32 %v1281_v62, %v1193_v29  ;;  %v4515_v29 = vpack.c.bf16 %v614_v45, %v611_v24  ;;  %v1201_v24 = vadd.f32 %v4033_v27, %v4196_v23  ;;  %v1203_v27 = vadd.f32 %v4061_v2, %v4196_v23 }
 0x154   : > { %v1548_v55 = vpop.f32.mrf.mxu0  ;;  %v4503_v6 = vadd.f32 %v1546_v4, %v1458_v3 }
 0x155   : > { %5596 = vst [vmem:[#allocation73_spill] sm:$0xff] %v4515_v29 }
 0x156   : > { %5593 = vst [vmem:[#allocation70_spill] sm:$0xff] %v4503_v6 }
 0x158   : > { %v1370_v14 = vpop.f32.mrf.mxu2 }
 0x159   : > { %v4511_v22 = vadd.f32 %v1370_v14, %v1282_v19  ;;  %v1459_v51 = vpop.f32.mrf.mxu3 }
 0x15a   : > { %v1460_v4 = vadd.f32 %v1459_v51, %v4216_v53  ;;  %v1284_v21 = vpop.f32.mrf.mxu1 }
 0x15b   : > { %5594 = vst [vmem:[#allocation71_spill] sm:$0xff] %v4511_v22  ;;  %v1285_v44 = vadd.f32 %v1284_v21, %v1196_v12 }
 0x15c   : > { %v1551_v26 = vpop.f32.mrf.mxu0  ;;  %v4518_v15 = vadd.f32 %v1548_v55, %v1460_v4 }
 0x15d   : > { %1323 = vmatmul.bf16.gmra.mxu1 %v4513_v35  ;;  %1412 = vmatmul.bf16.gmra.mxu2 %v4515_v29  ;;  %v5618_v29 = vmax.f32 %v4293_v60, 0.0 }
 0x15e   : > { %5597 = vst [vmem:[#allocation74_spill] sm:$0xff] %v4518_v15  ;;  %1501 = vmatmul.bf16.gmra.mxu3 %v3845_v5  ;;  %v5619_v15 = vld [vmem:[#allocation18_spill] sm:$0xff] }
 0x15f   : > { %1590 = vmatmul.bf16.gmra.mxu0 %v4513_v35 }
 0x160   : > { %v1373_v33 = vpop.f32.mrf.mxu2 }
 0x161   : > { %v4526_v1 = vadd.f32 %v1373_v33, %v1285_v44  ;;  %v1462_v46 = vpop.f32.mrf.mxu3 }
 0x162   : > { %v1463_v3 = vadd.f32 %v1462_v46, %v4216_v53  ;;  %v1286_v62 = vpop.f32.mrf.mxu1 }
 0x163   : > { %5598 = vst [vmem:[#allocation75_spill] sm:$0xff] %v4526_v1  ;;  %v1287_v19 = vadd.f32 %v1286_v62, %v1198_v16 }
 0x164   : > { %v1553_v55 = vpop.f32.mrf.mxu0  ;;  %v4529_v10 = vadd.f32 %v1551_v26, %v1463_v3 }
 0x166   : > { %5599 = vst [vmem:[#allocation76_spill] sm:$0xff] %v4529_v10 }
 0x168   : > { %v1375_v58 = vpop.f32.mrf.mxu2 }
 0x169   : > { %v4533_v45 = vadd.f32 %v1375_v58, %v1287_v19  ;;  %v1464_v14 = vpop.f32.mrf.mxu3 }
 0x16a   : > { %v1465_v12 = vadd.f32 %v1464_v14, %v4216_v53  ;;  %v1289_v56 = vpop.f32.mrf.mxu1 }
 0x16b   : > { %5600 = vst [vmem:[#allocation77_spill] sm:$0xff] %v4533_v45  ;;  %v1290_v51 = vadd.f32 %v1289_v56, %v1201_v24  ;;  %v1208_v56 = vadd.f32 %v4097_v34, %v4196_v23 }
 0x16c   : > { %v1556_v4 = vpop.f32.mrf.mxu0  ;;  %v4536_v21 = vadd.f32 %v1553_v55, %v1465_v12 }
 0x16d   : > { %1604 = vmatmul.bf16.vlgmr.msra.gmra.mxu1 %v3879_v48  ;;  %1693 = vmatmul.bf16.vlgmr.msra.gmra.mxu2 %v3519_v20  ;;  %v1206_v20 = vadd.f32 %v4081_v17, %v4196_v23 }
 0x16e   : > { %5601 = vst [vmem:[#allocation78_spill] sm:$0xff] %v4536_v21  ;;  %1782 = vmatmul.bf16.vlgmr.msra.gmra.mxu3 %v3877_v36 }
 0x16f   : > { %1871 = vmatmul.bf16.vlgmr.msra.gmra.mxu0 %v3879_v48 }
 0x170   : > { %v1378_v44 = vpop.f32.mrf.mxu2 }
 0x171   : > { %v4544_v26 = vadd.f32 %v1378_v44, %v1290_v51  ;;  %v1467_v33 = vpop.f32.mrf.mxu3 }
 0x172   : > { %v1468_v16 = vadd.f32 %v1467_v33, %v4216_v53  ;;  %v1291_v46 = vpop.f32.mrf.mxu1 }
 0x173   : > { %5602 = vst [vmem:[#allocation79_spill] sm:$0xff] %v4544_v26  ;;  %v1292_v3 = vadd.f32 %v1291_v46, %v1203_v27 }
 0x174   : > { %v1558_v62 = vpop.f32.mrf.mxu0  ;;  %v4547_v19 = vadd.f32 %v1556_v4, %v1468_v16 }
 0x176   : > { %5603 = vst [vmem:[#allocation80_spill] sm:$0xff] %v4547_v19 }
 0x178   : > { %v1380_v55 = vpop.f32.mrf.mxu2 }
 0x179   : > { %v4551_v36 = vadd.f32 %v1380_v55, %v1292_v3  ;;  %v1469_v48 = vpop.f32.mrf.mxu3 }
 0x17a   : > { %v1470_v58 = vadd.f32 %v1469_v48, %v4216_v53  ;;  %v1294_v2 = vpop.f32.mrf.mxu1 }
 0x17b   : > { %5604 = vst [vmem:[#allocation81_spill] sm:$0xff] %v4551_v36  ;;  %v1295_v24 = vadd.f32 %v1294_v2, %v1206_v20 }
 0x17c   : > { %v1561_v14 = vpop.f32.mrf.mxu0  ;;  %v4554_v12 = vadd.f32 %v1558_v62, %v1470_v58 }
 0x17d   : > { %1609 = vmatmul.bf16.gmra.mxu1 %v3923_v52  ;;  %1698 = vmatmul.bf16.gmra.mxu2 %v3661_v59  ;;  %v2049_v59 = vlaneseq }
 0x17e   : > { %5605 = vst [vmem:[#allocation82_spill] sm:$0xff] %v4554_v12  ;;  %1787 = vmatmul.bf16.gmra.mxu3 %v3921_v49  ;;  %v1211_v49 = vadd.f32 %v4129_v40, %v4196_v23  ;;  %v5610_v40 = vld [vmem:[#allocation11_spill] sm:$0xff]  ;;  %v5615_v12 = vmax.f32 %v4279_v42, 0.0 }
 0x17f   : > { %1876 = vmatmul.bf16.gmra.mxu0 %v3923_v52  ;;  %v4569_v52 = vshrl.u32 %v2049_v59, 7  ;;  %v5612_v59 = vld [vmem:[#allocation30_spill] sm:$0xff] }
 0x180   : > { %v1383_v17 = vpop.f32.mrf.mxu2 }
 0x181   : > { %v4562_v51 = vadd.f32 %v1383_v17, %v1295_v24  ;;  %v1472_v4 = vpop.f32.mrf.mxu3  ;;  %v2051_v48 = vadd.s32 8, %v4569_v52  ;;  %v2052_v17 = vadd.s32 16, %v4569_v52  ;;  %v2059_v21 = vadd.s32 72, %v4569_v52 }
 0x182   : > { %v1473_v44 = vadd.f32 %v1472_v4, %v4216_v53  ;;  %v1296_v27 = vpop.f32.mrf.mxu1 }
 0x183   : > { %5606 = vst [vmem:[#allocation83_spill] sm:$0xff] %v4562_v51  ;;  %v1297_v33 = vadd.f32 %v1296_v27, %v1208_v56  ;;  %v5611_v56 = vld [vmem:[#allocation16_spill] sm:$0xff] }
 0x184   : > { %v1563_v16 = vpop.f32.mrf.mxu0  ;;  %v4565_v46 = vadd.f32 %v1561_v14, %v1473_v44  ;;  %v4578_v14 = vstv %s3154_s21  ;;  %v2053_v44 = vadd.s32 24, %v4569_v52 }
 0x185   : > { %v2084_v4 = vadd.s32 %v4578_v14, %v2051_v48  ;;  %v2083_v27 = vadd.s32 %v4578_v14, %v4569_v52  ;;  %v2092_v18 = vadd.s32 %v4578_v14, %v2059_v21 }
 0x186   : > { %5607 = vst [vmem:[#allocation84_spill] sm:$0xff] %v4565_v46  ;;  %v2086_v48 = vadd.s32 %v4578_v14, %v2053_v44  ;;  %v2055_v46 = vadd.s32 40, %v4569_v52 }
 0x187   : > { %vm2116_vm0 = vcmp.lt.s32.totalorder %v2084_v4, 600  ;;  %vm2115_vm1 = vcmp.lt.s32.totalorder %v2083_v27, 600  ;;  %vm2124_vm9 = vcmp.lt.s32.totalorder %v2092_v18, 600 }
 0x188   : > { %v1385_v3 = vpop.f32.mrf.mxu2  ;;  %vm2118_vm3 = vcmp.lt.s32.totalorder %v2086_v48, 600 }
 0x189   : > { %v4571_v62 = vadd.f32 %v1385_v3, %v1297_v33  ;;  %v1474_v34 = vpop.f32.mrf.mxu3  ;;  %v2054_v33 = vadd.s32 32, %v4569_v52  ;;  %v1213_v3 = vadd.f32 %v5612_v59, %v4196_v23 }
 0x18a   : > { %v1475_v55 = vadd.f32 %v1474_v34, %v4216_v53  ;;  %v1299_v20 = vpop.f32.mrf.mxu1 }
 0x18b   : > { %5608 = vst [vmem:[#allocation85_spill] sm:$0xff] %v4571_v62  ;;  %v1300_v58 = vadd.f32 %v1299_v20, %v1211_v49  ;;  %v2085_v49 = vadd.s32 %v4578_v14, %v2052_v17  ;;  %v5466_v17 = vmov 0.0  }
 0x18c   : > { %v1566_v2 = vpop.f32.mrf.mxu0  ;;  %v4576_v24 = vadd.f32 %v1563_v16, %v1475_v55  ;;  %v4609_v44 = vsel %vm2115_vm1, 1.0, %v5466_v17  ;;  %v4625_v48 = vsel %vm2118_vm3, 1.0, %v5466_v17 }
 0x18d   : > { %1614 = vmatmul.bf16.gmra.mxu1 %v3943_v41  ;;  %1703 = vmatmul.bf16.gmra.mxu2 %v5610_v40  ;;  %vm2117_vm2 = vcmp.lt.s32.totalorder %v2085_v49, 600 }
 0x18e   : > { %5609 = vst [vmem:[#allocation86_spill] sm:$0xff] %v4576_v24  ;;  %1792 = vmatmul.bf16.gmra.mxu3 %v5611_v56  ;;  %v2087_v24 = vadd.s32 %v4578_v14, %v2054_v33  ;;  %v4613_v33 = vsel %vm2117_vm2, 1.0, %v5466_v17 }
 0x18f   : > { %1881 = vmatmul.bf16.gmra.mxu0 %v3943_v41 }
 0x190   : > { %v1388_v16 = vpop.f32.mrf.mxu2  ;;  %vm2119_vm4 = vcmp.lt.s32.totalorder %v2087_v24, 600 }
 0x191   : > { %v4593_v34 = vadd.f32 %v1388_v16, %v1300_v58  ;;  %v1477_v55 = vpop.f32.mrf.mxu3  ;;  %v5461_v58 = vmax.f32 %v4247_v8, 0.0  ;;  %v4605_v16 = vsel %vm2116_vm0, 1.0, %v5466_v17 }
 0x192   : > { %v1478_v41 = vadd.f32 %v1477_v55, %v4216_v53  ;;  %v1301_v20 = vpop.f32.mrf.mxu1 }
 0x193   : > { %v4597_v40 = vadd.f32 %v1301_v20, %v1213_v3  ;;  %v2056_v3 = vadd.s32 48, %v4569_v52  ;;  %v2214_v55 = vmul.f32 %v4605_v16, %v5461_v58  ;;  %v2057_v20 = vadd.s32 56, %v4569_v52 }
 0x194   : > { %v1568_v56 = vpop.f32.mrf.mxu0  ;;  %v4601_v59 = vadd.f32 %v1566_v2, %v1478_v41  ;;  %v2088_v2 = vadd.s32 %v4578_v14, %v2055_v46  ;;  %v5614_v46 = vmax.f32 %v4221_v39, 0.0  ;;  %v2217_v58 = vmul.f32 %v4613_v33, %v5615_v12 }
 0x195   : > { %v4637_v41 = vsel %vm2119_vm4, 1.0, %v5466_v17  ;;  %v2089_v35 = vadd.s32 %v4578_v14, %v2056_v3  ;;  %v2421_v5 = vmul.f32 %v2214_v55, %v2214_v55  ;;  %v2090_v10 = vadd.s32 %v4578_v14, %v2057_v20  ;;  %v5620_v17 = vld [vmem:[#allocation15_spill] sm:$0xff] }
 0x196   : > { %5613 = vst [vmem:[#allocation11_spill] sm:$0xff] %v4601_v59  ;;  %v2211_v59 = vmul.f32 %v4609_v44, %v5614_v46  ;;  %vm2120_vm5 = vcmp.lt.s32.totalorder %v2088_v2, 600  ;;  %v2220_v46 = vmul.f32 %v4625_v48, %v5618_v29  ;;  %v2058_v12 = vadd.s32 64, %v4569_v52  ;;  %v5621_v2 = vld [vmem:[#allocation17_spill] sm:$0xff] }
 0x197   : > { %5616 = vst [vmem:[#allocation16_spill] sm:$0xff] %v4637_v41  ;;  %v2424_v3 = vmul.f32 %v2217_v58, %v2217_v58  ;;  %v5624_v20 = vmax.f32 %v4313_v9, 0.0  ;;  %vm2121_vm6 = vcmp.lt.s32.totalorder %v2089_v35, 600  ;;  %vm2122_vm7 = vcmp.lt.s32.totalorder %v2090_v10, 600 }
 0x198   : > { %v4617_v49 = vpop.f32.mrf.mxu2  ;;  %v2307_v29 = vadd.f32 %v2214_v55, %v2211_v59  ;;  %v2427_v61 = vmul.f32 %v2220_v46, %v2220_v46 }
 0x199   : > { %v1479_v27 = vpop.f32.mrf.mxu3  ;;  %v2223_v43 = vmul.f32 %v4637_v41, %v5624_v20 }
 0x19a   : > { %v1480_v24 = vadd.f32 %v1479_v27, %v4216_v53  ;;  %v4628_v4 = vpop.f32.mrf.mxu1  ;;  %v2308_v25 = vadd.f32 %v2307_v29, %v2217_v58 }
 0x19b   : > { %v2430_v10 = vmul.f32 %v2223_v43, %v2223_v43 }
 0x19c   : > { %v1571_v19 = vpop.f32.mrf.mxu0  ;;  %v4641_v27 = vadd.f32 %v1568_v56, %v1480_v24  ;;  %v2418_v56 = vmul.f32 %v2211_v59, %v2211_v59  ;;  %v5622_v24 = vmov 0.0   ;;  %v2060_v59 = vadd.s32 80, %v4569_v52 }
 0x19d   : > { %1619 = vmatmul.bf16.gmra.mxu1 %v5619_v15  ;;  %1708 = vmatmul.bf16.gmra.mxu2 %v5620_v17  ;;  %v4670_v11 = vsel %vm2121_vm6, 1.0, %v5622_v24  ;;  %v4676_v31 = vsel %vm2122_vm7, 1.0, %v5622_v24  ;;  %v2309_v38 = vadd.f32 %v2308_v25, %v2220_v46  ;;  %v4697_v18 = vsel %vm2124_vm9, 1.0, %v5622_v24 }
 0x19e   : > { %5617 = vst [vmem:[#allocation30_spill] sm:$0xff] %v4641_v27  ;;  %1797 = vmatmul.bf16.gmra.mxu3 %v5621_v2  ;;  %v4654_v27 = vsel %vm2120_vm5, 1.0, %v5622_v24  ;;  %v2514_v6 = vadd.f32 %v2421_v5, %v2418_v56 }
 0x19f   : > { %1886 = vmatmul.bf16.gmra.mxu0 %v5619_v15  ;;  %5623 = vst [vmem:[#allocation18_spill] sm:$0xff] %v4654_v27  ;;  %v2091_v15 = vadd.s32 %v4578_v14, %v2058_v12  ;;  %v5626_v12 = vmax.f32 %v4339_v47, 0.0  ;;  %v2093_v47 = vadd.s32 %v4578_v14, %v2060_v59 }
 0x1a0   : > { %v4660_v17 = vpop.f32.mrf.mxu2  ;;  %v2515_v35 = vadd.f32 %v2514_v6, %v2424_v3  ;;  %5625 = vst [vmem:[#allocation15_spill] sm:$0xff] %v4670_v11  ;;  %v2061_v6 = vadd.s32 88, %v4569_v52  ;;  %v5629_v3 = vmax.f32 %v4371_v57, 0.0 }
 0x1a1   : > { %v1482_v2 = vpop.f32.mrf.mxu3  ;;  %v2226_v56 = vmul.f32 %v4654_v27, %v5626_v12  ;;  %5627 = vst [vmem:[#allocation17_spill] sm:$0xff] %v4676_v31  ;;  %vm2123_vm8 = vcmp.lt.s32.totalorder %v2091_v15, 600  ;;  %v2310_v12 = vadd.f32 %v2309_v38, %v2223_v43  ;;  %v5480_v27 = vmax.f32 %v4405_v63, 0.0  ;;  %v5634_v63 = vld [vmem:[#allocation20_spill] sm:$0xff] }
 0x1a2   : > { %v1483_v55 = vadd.f32 %v1482_v2, %v4216_v53  ;;  %v4667_v20 = vpop.f32.mrf.mxu1  ;;  %v5474_v2 = vmax.f32 %v4385_v7, 0.0  ;;  %v2516_v58 = vadd.f32 %v2515_v35, %v2427_v61  ;;  %v2229_v29 = vmul.f32 %v4670_v11, %v5629_v3  ;;  %5631 = vst [vmem:[#allocation89_spill] sm:$0xff] %v4697_v18 }
 0x1a3   : > { %v2433_v25 = vmul.f32 %v2226_v56, %v2226_v56  ;;  %v4689_v46 = vsel %vm2123_vm8, 1.0, %v5622_v24  ;;  %v2311_v61 = vadd.f32 %v2310_v12, %v2226_v56  ;;  %v2094_v38 = vadd.s32 %v4578_v14, %v2061_v6 }
 0x1a4   : > { %v1573_v5 = vpop.f32.mrf.mxu0  ;;  %v4678_v21 = vadd.f32 %v1571_v19, %v1483_v55  ;;  %v2062_v19 = vadd.s32 96, %v4569_v52  ;;  %v2517_v55 = vadd.f32 %v2516_v58, %v2430_v10  ;;  %5630 = vst [vmem:[#allocation88_spill] sm:$0xff] %v4689_v46  ;;  %v2232_v35 = vmul.f32 %v4676_v31, %v5474_v2 }
 0x1a5   : > { %v2436_v59 = vmul.f32 %v2229_v29, %v2229_v29  ;;  %vm2125_vm10 = vcmp.lt.s32.totalorder %v2093_v47, 600  ;;  %v2235_v56 = vmul.f32 %v4689_v46, %v5480_v27  ;;  %v2063_v2 = vadd.s32 104, %v4569_v52  ;;  %v5635_v27 = vld [vmem:[#allocation2_spill] sm:$0xff] }
 0x1a6   : > { %5628 = vst [vmem:[#allocation87_spill] sm:$0xff] %v4678_v21  ;;  %v2095_v12 = vadd.s32 %v4578_v14, %v2062_v19  ;;  %v2064_v21 = vadd.s32 112, %v4569_v52  ;;  %v2518_v7 = vadd.f32 %v2517_v55, %v2433_v25  ;;  %v2312_v31 = vadd.f32 %v2311_v61, %v2229_v29  ;;  %v5637_v29 = vld [vmem:[#allocation19_spill] sm:$0xff] }
 0x1a7   : > { %v5485_v10 = vmax.f32 %v4463_v13, 0.0  ;;  %v4714_v57 = vsel %vm2125_vm10, 1.0, %v5622_v24  ;;  %vm2126_vm11 = vcmp.lt.s32.totalorder %v2094_v38, 600  ;;  %v5636_v11 = vmax.f32 %v4431_v50, 0.0 }
 0x1a8   : > { %v4691_v15 = vpop.f32.mrf.mxu2  ;;  %5633 = vst [vmem:[#allocation91_spill] sm:$0xff] %v4714_v57  ;;  %v2519_v19 = vadd.f32 %v2518_v7, %v2436_v59  ;;  %v2313_v46 = vadd.f32 %v2312_v31, %v2232_v35  ;;  %vm2127_vm12 = vcmp.lt.s32.totalorder %v2095_v12, 600  ;;  %v2096_v25 = vadd.s32 %v4578_v14, %v2063_v2 }
 0x1a9   : > { %v1484_v43 = vpop.f32.mrf.mxu3  ;;  %v2238_v55 = vmul.f32 %v4697_v18, %v5636_v11  ;;  %v2097_v61 = vadd.s32 %v4578_v14, %v2064_v21  ;;  %v4730_v31 = vsel %vm2126_vm11, 1.0, %v5622_v24  ;;  %v2065_v11 = vadd.s32 120, %v4569_v52 }
 0x1aa   : > { %v1485_v58 = vadd.f32 %v1484_v43, %v4216_v53  ;;  %v4702_v3 = vpop.f32.mrf.mxu1  ;;  %v2439_v43 = vmul.f32 %v2232_v35, %v2232_v35  ;;  %5638 = vst [vmem:[#allocation20_spill] sm:$0xff] %v4730_v31  ;;  %v2314_v38 = vadd.f32 %v2313_v46, %v2235_v56  ;;  %v2066_v2 = vadd.s32 128, %v4569_v52 }
 0x1ab   : > { %v4738_v12 = vsel %vm2127_vm12, 1.0, %v5622_v24  ;;  %vm2128_vm13 = vcmp.lt.s32.totalorder %v2096_v25, 600  ;;  %vm2129_vm14 = vcmp.lt.s32.totalorder %v2097_v61, 600  ;;  %v5640_v46 = vmax.f32 %v4477_v30, 0.0  ;;  %v5643_v25 = vld [vmem:[#allocation21_spill] sm:$0xff] }
 0x1ac   : > { %v1576_v6 = vpop.f32.mrf.mxu0  ;;  %v4711_v47 = vadd.f32 %v1573_v5, %v1485_v58  ;;  %v2442_v5 = vmul.f32 %v2235_v56, %v2235_v56  ;;  %v2445_v58 = vmul.f32 %v2238_v55, %v2238_v55  ;;  %5639 = vst [vmem:[#allocation2_spill] sm:$0xff] %v4738_v12 }
 0x1ad   : > { %1624 = vmatmul.bf16.gmra.mxu1 %v5634_v63  ;;  %1713 = vmatmul.bf16.gmra.mxu2 %v5635_v27  ;;  %v2241_v27 = vmul.f32 %v4714_v57, %v5485_v10  ;;  %v2244_v56 = vmul.f32 %v4730_v31, %v5640_v46  ;;  %v5642_v57 = vmax.f32 %v4497_v0, 0.0  ;;  %v4760_v46 = vsel %vm2128_vm13, 1.0, %v5622_v24 }
 0x1ae   : > { %5632 = vst [vmem:[#allocation90_spill] sm:$0xff] %v4711_v47  ;;  %1802 = vmatmul.bf16.gmra.mxu3 %v5637_v29  ;;  %v2315_v47 = vadd.f32 %v2314_v38, %v2238_v55  ;;  %v2099_v55 = vadd.s32 %v4578_v14, %v2066_v2 }
 0x1af   : > { %1891 = vmatmul.bf16.gmra.mxu0 %v5634_v63  ;;  %v2520_v63 = vadd.f32 %v2519_v19, %v2439_v43  ;;  %v2448_v43 = vmul.f32 %v2241_v27, %v2241_v27  ;;  %v2098_v19 = vadd.s32 %v4578_v14, %v2065_v11  ;;  %5644 = vst [vmem:[#allocation21_spill] sm:$0xff] %v4760_v46  ;;  %v5645_v11 = vld [vmem:[#allocation22_spill] sm:$0xff] }
 0x1b0   : > { %v4733_v35 = vpop.f32.mrf.mxu2  ;;  %v2316_v2 = vadd.f32 %v2315_v47, %v2241_v27  ;;  %vm2131_vm0 = vcmp.lt.s32.totalorder %v2099_v55, 600 }
 0x1b1   : > { %v1487_v21 = vpop.f32.mrf.mxu3  ;;  %v2521_v7 = vadd.f32 %v2520_v63, %v2442_v5  ;;  %v2067_v5 = vadd.s32 136, %v4569_v52  ;;  %v4757_v63 = vadd.f32 %v5643_v25, %v4196_v23  ;;  %vm2130_vm15 = vcmp.lt.s32.totalorder %v2098_v19, 600 }
 0x1b2   : > { %v1488_v29 = vadd.f32 %v1487_v21, %v4216_v53  ;;  %v4741_v10 = vpop.f32.mrf.mxu1  ;;  %v2247_v21 = vmul.f32 %v4738_v12, %v5642_v57  ;;  %v5646_v57 = vld [vmem:[#allocation25_spill] sm:$0xff] }
 0x1b3   : > { %v2522_v38 = vadd.f32 %v2521_v7, %v2445_v58  ;;  %v4769_v50 = vadd.f32 %v5646_v57, %v4196_v23  ;;  %v2451_v7 = vmul.f32 %v2244_v56, %v2244_v56  ;;  %v2100_v57 = vadd.s32 %v4578_v14, %v2067_v5  ;;  %v5648_v58 = vld [vmem:[#allocation26_spill] sm:$0xff] }
 0x1b4   : > { %v1578_v13 = vpop.f32.mrf.mxu0  ;;  %v4747_v59 = vadd.f32 %v1576_v6, %v1488_v29  ;;  %v2068_v6 = vadd.s32 144, %v4569_v52  ;;  %v4765_v29 = vadd.f32 %v5645_v11, %v4196_v23  ;;  %v2454_v12 = vmul.f32 %v2247_v21, %v2247_v21 }
 0x1b5   : > { %v2523_v25 = vadd.f32 %v2522_v38, %v2448_v43  ;;  %v5647_v11 = vmax.f32 %v4511_v22, 0.0  ;;  %v2069_v43 = vadd.s32 152, %v4569_v52  ;;  %v4790_v31 = vadd.f32 %v5648_v58, %v4196_v23  ;;  %v5654_v58 = vld [vmem:[#allocation5_spill] sm:$0xff] }
 0x1b6   : > { %5641 = vst [vmem:[#allocation19_spill] sm:$0xff] %v4747_v59  ;;  %v4773_v59 = vsel %vm2129_vm14, 1.0, %v5622_v24  ;;  %v2101_v27 = vadd.s32 %v4578_v14, %v2068_v6  ;;  %v2317_v22 = vadd.f32 %v2316_v2, %v2244_v56  ;;  %v2070_v5 = vadd.s32 160, %v4569_v52  ;;  %v5653_v2 = vld [vmem:[#allocation24_spill] sm:$0xff] }
 0x1b7   : > { %v2250_v30 = vmul.f32 %v4760_v46, %v5647_v11  ;;  %v4793_v11 = vsel %vm2130_vm15, 1.0, %v5622_v24  ;;  %v2524_v61 = vadd.f32 %v2523_v25, %v2451_v7  ;;  %v5650_v6 = vmax.f32 %v4526_v1, 0.0  ;;  %v5664_v1 = vld [vmem:[#allocation36_spill] sm:$0xff] }
 0x1b8   : > { %v4776_v0 = vpop.f32.mrf.mxu2  ;;  %5649 = vst [vmem:[#allocation22_spill] sm:$0xff] %v4793_v11  ;;  %v2318_v41 = vadd.f32 %v2317_v22, %v2247_v21  ;;  %v4804_v56 = vsel %vm2131_vm0, 1.0, %v5622_v24  ;;  %vm2132_vm1 = vcmp.lt.s32.totalorder %v2100_v57, 600  ;;  %v5655_v7 = vmax.f32 %v4533_v45, 0.0 }
 0x1b9   : > { %v1489_v47 = vpop.f32.mrf.mxu3  ;;  %v2253_v18 = vmul.f32 %v4773_v59, %v5650_v6  ;;  %v2457_v60 = vmul.f32 %v2250_v30, %v2250_v30  ;;  %5652 = vst [vmem:[#allocation26_spill] sm:$0xff] %v4804_v56  ;;  %v2525_v25 = vadd.f32 %v2524_v61, %v2454_v12  ;;  %vm2133_vm2 = vcmp.lt.s32.totalorder %v2101_v27, 600  ;;  %v5657_v12 = vld [vmem:[#allocation29_spill] sm:$0xff] }
 0x1ba   : > { %v1490_v38 = vadd.f32 %v1489_v47, %v4216_v53  ;;  %v4786_v19 = vpop.f32.mrf.mxu1  ;;  %v2256_v6 = vmul.f32 %v4793_v11, %v5655_v7  ;;  %v2319_v22 = vadd.f32 %v2318_v41, %v2250_v30  ;;  %v2103_v55 = vadd.s32 %v4578_v14, %v2070_v5  ;;  %v5660_v41 = vld [vmem:[#allocation31_spill] sm:$0xff] }
 0x1bb   : > { %v2071_v47 = vadd.s32 168, %v4569_v52  ;;  %v4819_v61 = vadd.f32 %v5657_v12, %v4196_v23  ;;  %v5658_v7 = vmax.f32 %v4544_v26, 0.0  ;;  %v4832_v5 = vadd.f32 %v5660_v41, %v4196_v23 }
 0x1bc   : > { %v1581_v46 = vpop.f32.mrf.mxu0  ;;  %v4800_v9 = vadd.f32 %v1578_v13, %v1490_v38  ;;  %v2102_v13 = vadd.s32 %v4578_v14, %v2069_v43  ;;  %v5656_v38 = vld [vmem:[#allocation23_spill] sm:$0xff]  ;;  %v2320_v21 = vadd.f32 %v2319_v22, %v2253_v18  ;;  %v4836_v12 = vsel %vm2133_vm2, 1.0, %v5622_v24 }
 0x1bd   : > { %1629 = vmatmul.bf16.gmra.mxu1 %v5653_v2  ;;  %1718 = vmatmul.bf16.gmra.mxu2 %v5654_v58  ;;  %v2460_v58 = vmul.f32 %v2253_v18, %v2253_v18  ;;  %v2259_v43 = vmul.f32 %v4804_v56, %v5658_v7  ;;  %v2463_v26 = vmul.f32 %v2256_v6, %v2256_v6  ;;  %v5661_v45 = vmax.f32 %v4551_v36, 0.0 }
 0x1be   : > { %5651 = vst [vmem:[#allocation25_spill] sm:$0xff] %v4800_v9  ;;  %1807 = vmatmul.bf16.gmra.mxu3 %v5656_v38  ;;  %v4826_v38 = vsel %vm2132_vm1, 1.0, %v5622_v24  ;;  %vm2134_vm3 = vcmp.lt.s32.totalorder %v2102_v13, 600  ;;  %vm2135_vm4 = vcmp.lt.s32.totalorder %v2103_v55, 600  ;;  %v2072_v18 = vadd.s32 176, %v4569_v52 }
 0x1bf   : > { %1896 = vmatmul.bf16.gmra.mxu0 %v5653_v2  ;;  %5659 = vst [vmem:[#allocation24_spill] sm:$0xff] %v4826_v38  ;;  %v2526_v2 = vadd.f32 %v2525_v25, %v2457_v60  ;;  %v2262_v41 = vmul.f32 %v4826_v38, %v5661_v45  ;;  %v2104_v60 = vadd.s32 %v4578_v14, %v2071_v47  ;;  %v4855_v45 = vsel %vm2134_vm3, 1.0, %v5622_v24 }
 0x1c0   : > { %v4828_v30 = vpop.f32.mrf.mxu2  ;;  %v2466_v22 = vmul.f32 %v2259_v43, %v2259_v43  ;;  %v1218_v36 = vadd.f32 %v5664_v1, %v4196_v23  ;;  %5665 = vst [vmem:[#allocation23_spill] sm:$0xff] %v4855_v45  ;;  %v2073_v47 = vadd.s32 184, %v4569_v52  ;;  %v2321_v55 = vadd.f32 %v2320_v21, %v2256_v6 }
 0x1c1   : > { %v1492_v9 = vpop.f32.mrf.mxu3  ;;  %v2527_v25 = vadd.f32 %v2526_v2, %v2460_v58  ;;  %v5666_v58 = vmax.f32 %v4562_v51, 0.0  ;;  %vm2136_vm5 = vcmp.lt.s32.totalorder %v2104_v60, 600  ;;  %v2105_v1 = vadd.s32 %v4578_v14, %v2072_v18 }
 0x1c2   : > { %v1493_v57 = vadd.f32 %v1492_v9, %v4216_v53  ;;  %v4840_v56 = vpop.f32.mrf.mxu1  ;;  %v5663_v9 = vld [vmem:[#allocation34_spill] sm:$0xff]  ;;  %v2322_v11 = vadd.f32 %v2321_v55, %v2259_v43  ;;  %v5667_v6 = vmax.f32 %v4571_v62, 0.0  ;;  %v2074_v21 = vadd.s32 192, %v4569_v52  ;;  %v5672_v62 = vld [vmem:[#allocation8_spill] sm:$0xff] }
 0x1c3   : > { %v1216_v13 = vadd.f32 %v5663_v9, %v4196_v23  ;;  %v2528_v38 = vadd.f32 %v2527_v25, %v2463_v26  ;;  %v2265_v2 = vmul.f32 %v4836_v12, %v5666_v58  ;;  %v4866_v9 = vadd.f32 %v4617_v49, %v4597_v40 }
 0x1c4   : > { %v1583_v27 = vpop.f32.mrf.mxu0  ;;  %v4848_v7 = vadd.f32 %v1581_v46, %v1493_v57  ;;  %v4862_v46 = vsel %vm2135_vm4, 1.0, %v5622_v24  ;;  %v2469_v57 = vmul.f32 %v2262_v41, %v2262_v41  ;;  %v2268_v26 = vmul.f32 %v4855_v45, %v5667_v6  ;;  %v5669_v45 = vld [vmem:[#allocation35_spill] sm:$0xff] }
 0x1c5   : > { %v1305_v51 = vadd.f32 %v4628_v4, %v1216_v13  ;;  %v2106_v40 = vadd.s32 %v4578_v14, %v2073_v47  ;;  %v2075_v49 = vadd.s32 200, %v4569_v52  ;;  %v2323_v18 = vadd.f32 %v2322_v11, %v2262_v41 }
 0x1c6   : > { %5662 = vst [vmem:[#allocation5_spill] sm:$0xff] %v4848_v7  ;;  %v2529_v7 = vadd.f32 %v2528_v38, %v2466_v22  ;;  %v2472_v43 = vmul.f32 %v2265_v2, %v2265_v2  ;;  %v4880_v38 = vsel %vm2136_vm5, 1.0, %v5622_v24  ;;  %vm2137_vm6 = vcmp.lt.s32.totalorder %v2105_v1, 600 }
 0x1c7   : > { %v4887_v58 = vadd.f32 %v4660_v17, %v1305_v51  ;;  %v2475_v13 = vmul.f32 %v2268_v26, %v2268_v26  ;;  %v1307_v47 = vadd.f32 %v4667_v20, %v1218_v36  ;;  %v2107_v11 = vadd.s32 %v4578_v14, %v2074_v21  ;;  %v5671_v17 = vld [vmem:[#allocation28_spill] sm:$0xff] }
 0x1c8   : > { %v4873_v25 = vpop.f32.mrf.mxu2  ;;  %v2530_v6 = vadd.f32 %v2529_v7, %v2469_v57  ;;  %v5670_v7 = vmax.f32 %v4593_v34, 0.0  ;;  %vm2138_vm7 = vcmp.lt.s32.totalorder %v2106_v40, 600  ;;  %v2108_v51 = vadd.s32 %v4578_v14, %v2075_v49 }
 0x1c9   : > { %v1494_v60 = vpop.f32.mrf.mxu3  ;;  %v2324_v36 = vadd.f32 %v2323_v18, %v2265_v2  ;;  %v2076_v21 = vadd.s32 208, %v4569_v52  ;;  %v5519_v49 = vmax.f32 %v4887_v58, 0.0  ;;  %vm2139_vm8 = vcmp.lt.s32.totalorder %v2107_v11, 600 }
 0x1ca   : > { %v1495_v22 = vadd.f32 %v1494_v60, %v4216_v53  ;;  %v4883_v55 = vpop.f32.mrf.mxu1  ;;  %v4895_v60 = vadd.f32 %v5669_v45, %v4196_v23  ;;  %v2271_v57 = vmul.f32 %v4862_v46, %v5670_v7  ;;  %v2531_v20 = vadd.f32 %v2530_v6, %v2472_v43  ;;  %v5673_v45 = vld [vmem:[#allocation27_spill] sm:$0xff] }
 0x1cb   : > { %v2325_v2 = vadd.f32 %v2324_v36, %v2268_v26  ;;  %v4921_v43 = vsel %vm2138_vm7, 1.0, %v5622_v24  ;;  %vm2140_vm9 = vcmp.lt.s32.totalorder %v2108_v51, 600  ;;  %v2077_v1 = vadd.s32 216, %v4569_v52 }
 0x1cc   : > { %v1586_v4 = vpop.f32.mrf.mxu0  ;;  %v4891_v41 = vadd.f32 %v1583_v27, %v1495_v22  ;;  %v4904_v27 = vadd.f32 %v4691_v15, %v1307_v47  ;;  %v5674_v22 = vmax.f32 %v4866_v9, 0.0  ;;  %v1310_v15 = vadd.f32 %v4702_v3, %v4757_v63 }
 0x1cd   : > { %1634 = vmatmul.bf16.gmra.mxu1 %v5671_v17  ;;  %1723 = vmatmul.bf16.gmra.mxu2 %v5672_v62  ;;  %v4915_v62 = vsel %vm2137_vm6, 1.0, %v5622_v24  ;;  %v2532_v18 = vadd.f32 %v2531_v20, %v2475_v13  ;;  %v2478_v47 = vmul.f32 %v2271_v57, %v2271_v57  ;;  %v1312_v3 = vadd.f32 %v4741_v10, %v4765_v29 }
 0x1ce   : > { %5668 = vst [vmem:[#allocation29_spill] sm:$0xff] %v4891_v41  ;;  %1812 = vmatmul.bf16.gmra.mxu3 %v5673_v45  ;;  %v2274_v7 = vmul.f32 %v4880_v38, %v5674_v22  ;;  %v5521_v22 = vmax.f32 %v4904_v27, 0.0  ;;  %v2109_v63 = vadd.s32 %v4578_v14, %v2076_v21  ;;  %v2326_v13 = vadd.f32 %v2325_v2, %v2271_v57 }
 0x1cf   : > { %1901 = vmatmul.bf16.gmra.mxu0 %v5671_v17  ;;  %v4924_v17 = vadd.f32 %v4733_v35, %v1310_v15  ;;  %v2277_v35 = vmul.f32 %v4915_v62, %v5519_v49  ;;  %v4936_v36 = vsel %vm2139_vm8, 1.0, %v5622_v24  ;;  %v4939_v15 = vadd.f32 %v4776_v0, %v1312_v3 }
 0x1d0   : > { %v1408_v6 = vpop.f32.mrf.mxu2  ;;  %v2481_v11 = vmul.f32 %v2274_v7, %v2274_v7  ;;  %v1315_v10 = vadd.f32 %v4786_v19, %v4769_v50  ;;  %v2078_v29 = vadd.s32 224, %v4569_v52  ;;  %v2533_v57 = vadd.f32 %v2532_v18, %v2478_v47 }
 0x1d1   : > { %v1497_v45 = vpop.f32.mrf.mxu3  ;;  %v5520_v2 = vmax.f32 %v4924_v17, 0.0  ;;  %v2110_v49 = vadd.s32 %v4578_v14, %v2077_v1  ;;  %v2280_v0 = vmul.f32 %v4921_v43, %v5521_v22  ;;  %vm2141_vm10 = vcmp.lt.s32.totalorder %v2109_v63, 600 }
 0x1d2   : > { %v1498_v26 = vadd.f32 %v1497_v45, %v4216_v53  ;;  %v1321_v40 = vpop.f32.mrf.mxu1  ;;  %v4949_v45 = vsel %vm2140_vm9, 1.0, %v5622_v24  ;;  %v4956_v3 = vadd.f32 %v4828_v30, %v1315_v10  ;;  %v1317_v50 = vadd.f32 %v4840_v56, %v4790_v31 }
 0x1d3   : > { %v2327_v19 = vadd.f32 %v2326_v13, %v2274_v7  ;;  %v2484_v18 = vmul.f32 %v2277_v35, %v2277_v35  ;;  %v2079_v51 = vadd.s32 232, %v4569_v52  ;;  %v5524_v47 = vmax.f32 %v4939_v15, 0.0 }
 0x1d4   : > { %v1588_v20 = vpop.f32.mrf.mxu0  ;;  %v4944_v21 = vadd.f32 %v1586_v4, %v1498_v26  ;;  %v2534_v4 = vadd.f32 %v2533_v57, %v2481_v11  ;;  %v4963_v1 = vadd.f32 %v4873_v25, %v1317_v50  ;;  %v1320_v26 = vadd.f32 %v4883_v55, %v4819_v61 }
 0x1d5   : > { %v2111_v30 = vadd.s32 %v4578_v14, %v2078_v29  ;;  %v2283_v31 = vmul.f32 %v4936_v36, %v5520_v2  ;;  %v4972_v56 = vsel %vm2141_vm10, 1.0, %v5622_v24  ;;  %vm2142_vm11 = vcmp.lt.s32.totalorder %v2110_v49, 600 }
 0x1d6   : > { %5675 = vst [vmem:[#allocation31_spill] sm:$0xff] %v4944_v21  ;;  %v2080_v63 = vadd.s32 240, %v4569_v52  ;;  %v2487_v13 = vmul.f32 %v2280_v0, %v2280_v0  ;;  %v4976_v11 = vadd.f32 %v1408_v6, %v1320_v26  ;;  %v2328_v29 = vadd.f32 %v2327_v19, %v2277_v35 }
 0x1d7   : > { %v2535_v57 = vadd.f32 %v2534_v4, %v2484_v18  ;;  %v1322_v50 = vadd.f32 %v1321_v40, %v4832_v5  ;;  %v2112_v2 = vadd.s32 %v4578_v14, %v2079_v51  ;;  %v2286_v21 = vmul.f32 %v4949_v45, %v5524_v47  ;;  %v5677_v5 = vld [vmem:[#allocation33_spill] sm:$0xff]  ;;  %v5678_v40 = vld [vmem:[#allocation12_spill] sm:$0xff] }
 0x1d8   : > { %v1410_v10 = vpop.f32.mrf.mxu2  ;;  %v5523_v41 = vmax.f32 %v4963_v1, 0.0  ;;  %vm2143_vm12 = vcmp.lt.s32.totalorder %v2111_v30, 600  ;;  %v2490_v6 = vmul.f32 %v2283_v31, %v2283_v31  ;;  %v4989_v26 = vsel %vm2142_vm11, 1.0, %v5622_v24 }
 0x1d9   : > { %v1499_v7 = vpop.f32.mrf.mxu3  ;;  %v4991_v35 = vadd.f32 %v1410_v10, %v1322_v50  ;;  %v2113_v19 = vadd.s32 %v4578_v14, %v2080_v63  ;;  %v2329_v4 = vadd.f32 %v2328_v29, %v2280_v0  ;;  %v2536_v18 = vadd.f32 %v2535_v57, %v2487_v13 }
 0x1da   : > { %v1500_v61 = vadd.f32 %v1499_v7, %v4216_v53  ;;  %v1324_v55 = vpop.f32.mrf.mxu1  ;;  %v5679_v51 = vmax.f32 %v4956_v3, 0.0  ;;  %v5522_v30 = vmax.f32 %v4976_v11, 0.0  ;;  %v5680_v7 = vld [vmem:[#allocation32_spill] sm:$0xff]  ;;  %v5003_v49 = vsel %vm2143_vm12, 1.0, %v5622_v24 }
 0x1db   : > { %vm2144_vm13 = vcmp.lt.s32.totalorder %v2112_v2, 600  ;;  %v1325_v10 = vadd.f32 %v1324_v55, %v4895_v60  ;;  %v2081_v63 = vadd.s32 248, %v4569_v52  ;;  %v2330_v0 = vadd.f32 %v2329_v4, %v2283_v31 }
 0x1dc   : > { %v1591_v22 = vpop.f32.mrf.mxu0  ;;  %v4985_v25 = vadd.f32 %v1588_v20, %v1500_v61  ;;  %v2289_v20 = vmul.f32 %v4972_v56, %v5679_v51  ;;  %v2493_v13 = vmul.f32 %v2286_v21, %v2286_v21  ;;  %v2292_v61 = vmul.f32 %v4989_v26, %v5523_v41 }
 0x1dd   : > { %1639 = vmatmul.bf16.gmra.mxu1 %v5677_v5  ;;  %1728 = vmatmul.bf16.gmra.mxu2 %v5678_v40  ;;  %v2537_v57 = vadd.f32 %v2536_v18, %v2490_v6  ;;  %v2039_v50 = vmax.f32 %v4991_v35, 0.0  ;;  %vm2145_vm14 = vcmp.lt.s32.totalorder %v2113_v19, 600  ;;  %v2295_v60 = vmul.f32 %v5003_v49, %v5522_v30  ;;  %v5682_v30 = vld [vmem:[#allocation37_spill] sm:$0xff] }
 0x1de   : > { %5676 = vst [vmem:[#allocation34_spill] sm:$0xff] %v4985_v25  ;;  %1817 = vmatmul.bf16.gmra.mxu3 %v5680_v7  ;;  %v2496_v51 = vmul.f32 %v2289_v20, %v2289_v20  ;;  %v5017_v52 = vsel %vm2144_vm13, 1.0, %v5622_v24  ;;  %v2331_v55 = vadd.f32 %v2330_v0, %v2286_v21  ;;  %v2114_v18 = vadd.s32 %v4578_v14, %v2081_v63 }
 0x1df   : > { %1906 = vmatmul.bf16.gmra.mxu0 %v5677_v5  ;;  %v2538_v7 = vadd.f32 %v2537_v57, %v2493_v13  ;;  %v2499_v19 = vmul.f32 %v2292_v61, %v2292_v61  ;;  %v1238_v41 = vadd.f32 %v5682_v30, %v4196_v23  ;;  %v2298_v21 = vmul.f32 %v5017_v52, %v2039_v50 }
 0x1e0   : > { %v1413_v29 = vpop.f32.mrf.mxu2  ;;  %v2332_v47 = vadd.f32 %v2331_v55, %v2289_v20  ;;  %vm2146_vm15 = vcmp.lt.s32.totalorder %v2114_v18, 600  ;;  %vm2753_vm0 = vcmask 1040384   ;;  %vm2757_vm1 = vcmask 1041408  }
 0x1e1   : > { %v5011_v40 = vadd.f32 %v1413_v29, %v1325_v10  ;;  %v1502_v5 = vpop.f32.mrf.mxu3  ;;  %v5023_v10 = vsel %vm2145_vm14, 1.0, %v5622_v24  ;;  %v2539_v0 = vadd.f32 %v2538_v7, %v2496_v51  ;;  %v5038_v30 = vsel %vm2146_vm15, 1.0, %v5622_v24 }
 0x1e2   : > { %v1503_v2 = vadd.f32 %v1502_v5, %v4216_v53  ;;  %v1326_v31 = vpop.f32.mrf.mxu1  ;;  %v2502_v5 = vmul.f32 %v2295_v60, %v2295_v60  ;;  %v2333_v6 = vadd.f32 %v2332_v47, %v2292_v61 }
 0x1e3   : > { %v5683_v14 = vmax.f32 %v5011_v40, 0.0  ;;  %v1327_v13 = vadd.f32 %v1326_v31, %v1238_v41  ;;  %v2540_v57 = vadd.f32 %v2539_v0, %v2499_v19  ;;  %v5684_v31 = vld [vmem:[#allocation40_spill] sm:$0xff] }
 0x1e4   : > { %v1593_v4 = vpop.f32.mrf.mxu0  ;;  %v5025_v29 = vadd.f32 %v1591_v22, %v1503_v2  ;;  %v2334_v2 = vadd.f32 %v2333_v6, %v2295_v60  ;;  %v3308_v60 = vld [vmem:[%s5413_s3] ss:$8 sm:$0x7] }
 0x1e5   : > { %v2301_v63 = vmul.f32 %v5023_v10, %v5683_v14  ;;  %v2541_v20 = vadd.f32 %v2540_v57, %v2502_v5  ;;  %v5046_v6 = vperm.slane %v3308_v60, 2  ;;  %v5685_v5 = vld [vmem:[#allocation39_spill] sm:$0xff]  ;;  %v5688_v57 = vmax.f32 %v4221_v39, 0.0 }
 0x1e6   : > { %5681 = vst [vmem:[#allocation36_spill] sm:$0xff] %v5025_v29  ;;  %v2505_v29 = vmul.f32 %v2298_v21, %v2298_v21  ;;  %v2335_v61 = vadd.f32 %v2334_v2, %v2298_v21  ;;  %v5686_v14 = vld [vmem:[#allocation3_spill] sm:$0xff] }
 0x1e7   : > { %v2508_v55 = vmul.f32 %v2301_v63, %v2301_v63 }
 0x1e8   : > { %v1415_v22 = vpop.f32.mrf.mxu2  ;;  %v2542_v24 = vadd.f32 %v2541_v20, %v2505_v29  ;;  %v2336_v0 = vadd.f32 %v2335_v61, %v2301_v63 }
 0x1e9   : > { %v5035_v25 = vadd.f32 %v1415_v22, %v1327_v13  ;;  %v1504_v23 = vpop.f32.mrf.mxu3 }
 0x1ea   : > { %v1505_v51 = vadd.f32 %v1504_v23, %v4216_v53  ;;  %v1605_v47 = vpop.f32.mrf.mxu1  ;;  %v2543_v29 = vadd.f32 %v2542_v24, %v2508_v55 }
 0x1eb   : > { %v2045_v41 = vmax.f32 %v5035_v25, 0.0  ;;  %v1606_v18 = vadd.f32 %v1605_v47, %v5684_v31 }
 0x1ec   : > { %v1872_v7 = vpop.f32.mrf.mxu0  ;;  %v5048_v19 = vadd.f32 %v1593_v4, %v1505_v51  ;;  %v5687_v4 = vld [vmem:[#allocation38_spill] sm:$0xff] }
 0x1ed   : > { %v2304_v53 = vmul.f32 %v5038_v30, %v2045_v41  ;;  %v1953_v21 = vmax.f32 %v1606_v18, 0.0  ;;  %1644 = vmatmul.bf16.gmra.mxu1 %v5685_v5  ;;  %1733 = vmatmul.bf16.gmra.mxu2 %v5686_v14  ;;  %v5794_v35 = vld [vmem:[#allocation36_spill] sm:$0xff] }
 0x1ee   : > { %1822 = vmatmul.bf16.gmra.mxu3 %v5687_v4 }
 0x1ef   : > { %1911 = vmatmul.bf16.gmra.mxu0 %v5685_v5  ;;  %v2337_v63 = vadd.f32 %v2336_v0, %v2304_v53  ;;  %v2511_v13 = vmul.f32 %v2304_v53, %v2304_v53  ;;  %v2625_v22 = vpack.c.bf16 %v1953_v21, %v5688_v57  ;;  %v2212_v14 = vmul.f32 %v4609_v44, %v1953_v21 }
 0x1f0   : > { %v1694_v2 = vpop.f32.mrf.mxu2  ;;  %v5689_v57 = vmax.f32 %v4247_v8, 0.0 }
 0x1f1   : > { %v2338_v23 = vrot.slane %v2337_v63, 4  ;;  %v2544_v20 = vadd.f32 %v2543_v29, %v2511_v13  ;;  %2689 = vst [vmem:[%s5060_s17] sm:$0xff] %v2625_v22  ;;  %v1695_v51 = vadd.f32 %v1694_v2, %v5046_v6  ;;  %v1783_v47 = vpop.f32.mrf.mxu3 }
 0x1f2   : > { %v1607_v61 = vpop.f32.mrf.mxu1 }
 0x1f3   : > { %v2339_v31 = vadd.f32 %v2338_v23, %v2337_v63  ;;  %v2545_v18 = vrot.slane %v2544_v20, 4  ;;  %v1784_v60 = vadd.f32 %v1783_v47, %v1695_v51  ;;  %v1608_v55 = vadd.f32 %v1607_v61, %v4269_v32 }
 0x1f4   : > { %v1874_v24 = vpop.f32.mrf.mxu0  ;;  %v2419_v51 = vmul.f32 %v2212_v14, %v2212_v14 }
 0x1f5   : > { %v2340_v0 = vrot.slane %v2339_v31, 2  ;;  %v2546_v53 = vadd.f32 %v2545_v18, %v2544_v20  ;;  %v1873_v39 = vadd.f32 %v1872_v7, %v1784_v60  ;;  %v1956_v5 = vmax.f32 %v1608_v55, 0.0 }
 0x1f7   : > { %v2341_v4 = vadd.f32 %v2340_v0, %v2339_v31  ;;  %v2547_v29 = vrot.slane %v2546_v53, 2  ;;  %v1954_v13 = vmax.f32 %v1873_v39, 0.0  ;;  %v2215_v63 = vmul.f32 %v4605_v16, %v1956_v5 }
 0x1f8   : > { %v2627_v32 = vpack.c.bf16 %v1956_v5, %v5689_v57  ;;  %v1696_v22 = vpop.f32.mrf.mxu2  ;;  %v5692_v57 = vmax.f32 %v4279_v42, 0.0 }
 0x1f9   : > { %v2342_v2 = vrot.slane %v2341_v4, 1  ;;  %v2548_v23 = vadd.f32 %v2547_v29, %v2546_v53  ;;  %v2626_v7 = vpack.c.bf16 %v1954_v13, %v1954_v13  ;;  %v1785_v20 = vpop.f32.mrf.mxu3  ;;  %v2344_v47 = vadd.f32 %v2215_v63, %v2212_v14  ;;  %v5690_v14 = vld [vmem:[#allocation6_spill] sm:$0xff] }
 0x1fa   : > { %v2422_v61 = vmul.f32 %v2215_v63, %v2215_v63  ;;  %2691 = vst [vmem:[%s5060_s17 + $0xc] sm:$0xff] %v2627_v32  ;;  %v1697_v21 = vadd.f32 %v1696_v22, %v5046_v6  ;;  %v1610_v31 = vpop.f32.mrf.mxu1 }
 0x1fb   : > { %v2549_v18 = vrot.slane %v2548_v23, 1  ;;  %2690 = vst [vmem:[%s5060_s17 + $0x8] sm:$0xf] %v2626_v7  ;;  %v1611_v60 = vadd.f32 %v1610_v31, %v4285_v28  ;;  %v2343_v39 = vadd.f32 %v2342_v2, %v2341_v4  ;;  %v5691_v28 = vld [vmem:[#allocation41_spill] sm:$0xff]  ;;  %v2213_v2 = vmul.f32 %v4609_v44, %v1954_v13 }
 0x1fc   : > { %v1877_v55 = vpop.f32.mrf.mxu0  ;;  %v2551_v8 = vadd.f32 %v2422_v61, %v2419_v51  ;;  %v1786_v0 = vadd.f32 %v1785_v20, %v1697_v21 }
 0x1fd   : > { %v2550_v53 = vadd.f32 %v2549_v18, %v2548_v23  ;;  %v1959_v5 = vmax.f32 %v1611_v60, 0.0  ;;  %1649 = vmatmul.bf16.gmra.mxu1 %v4251_v37  ;;  %1738 = vmatmul.bf16.gmra.mxu2 %v5690_v14  ;;  %v2420_v44 = vmul.f32 %v2213_v2, %v2213_v2 }
 0x1fe   : > { %v1875_v29 = vadd.f32 %v1874_v24, %v1786_v0  ;;  %1827 = vmatmul.bf16.gmra.mxu3 %v5691_v28 }
 0x1ff   : > { %1916 = vmatmul.bf16.gmra.mxu0 %v4251_v37  ;;  %v2754_v4 = vsel %vm2753_vm0, %v2343_v39, %v2550_v53  ;;  %v2218_v63 = vmul.f32 %v4613_v33, %v1959_v5  ;;  %v2629_v32 = vpack.c.bf16 %v1959_v5, %v5692_v57 }
 0x200   : > { %v2758_v22 = vsel %vm2757_vm1, %v2754_v4, 0.0  ;;  %v1957_v23 = vmax.f32 %v1875_v29, 0.0  ;;  %v1699_v7 = vpop.f32.mrf.mxu2  ;;  %v5693_v29 = vld [vmem:[#allocation42_spill] sm:$0xff] }
 0x201   : > { %2761 = vst [vmem:[%s5087_s20] sm:$0xff] %v2758_v22  ;;  %v2345_v24 = vadd.f32 %v2344_v47, %v2218_v63  ;;  %v2425_v20 = vmul.f32 %v2218_v63, %v2218_v63  ;;  %v1700_v51 = vadd.f32 %v1699_v7, %v5046_v6  ;;  %v1788_v37 = vpop.f32.mrf.mxu3  ;;  %v5694_v28 = vmax.f32 %v5693_v29, 0.0 }
 0x202   : > { %v2216_v61 = vmul.f32 %v4605_v16, %v1957_v23  ;;  %v2628_v21 = vpack.c.bf16 %v1957_v23, %v1957_v23  ;;  %2693 = vst [vmem:[%s5060_s17 + $0x18] sm:$0xff] %v2629_v32  ;;  %v1612_v31 = vpop.f32.mrf.mxu1 }
 0x203   : > { %v2552_v42 = vadd.f32 %v2551_v8, %v2425_v20  ;;  %v1789_v18 = vadd.f32 %v1788_v37, %v1700_v51  ;;  %v1613_v60 = vadd.f32 %v1612_v31, %v4303_v54  ;;  %v5695_v51 = vld [vmem:[#allocation46_spill] sm:$0xff] }
 0x204   : > { %v1879_v0 = vpop.f32.mrf.mxu0  ;;  %v2381_v13 = vadd.f32 %v2216_v61, %v2213_v2  ;;  %v2423_v39 = vmul.f32 %v2216_v61, %v2216_v61  ;;  %2692 = vst [vmem:[%s5060_s17 + $0x14] sm:$0xf] %v2628_v21 }
 0x205   : > { %v1878_v47 = vadd.f32 %v1877_v55, %v1789_v18  ;;  %v1962_v53 = vmax.f32 %v1613_v60, 0.0 }
 0x206   : > { %v2588_v5 = vadd.f32 %v2423_v39, %v2420_v44  ;;  %v5698_v44 = vld [vmem:[#allocation43_spill] sm:$0xff] }
 0x207   : > { %v1960_v14 = vmax.f32 %v1878_v47, 0.0  ;;  %v2221_v16 = vmul.f32 %v4625_v48, %v1962_v53  ;;  %v2631_v4 = vpack.c.bf16 %v1962_v53, %v5694_v28  ;;  %v5700_v47 = vld [vmem:[#allocation45_spill] sm:$0xff] }
 0x208   : > { %v1701_v8 = vpop.f32.mrf.mxu2 }
 0x209   : > { %v2219_v63 = vmul.f32 %v4613_v33, %v1960_v14  ;;  %v2630_v54 = vpack.c.bf16 %v1960_v14, %v1960_v14  ;;  %v2346_v57 = vadd.f32 %v2345_v24, %v2221_v16  ;;  %v2428_v32 = vmul.f32 %v2221_v16, %v2221_v16  ;;  %2695 = vst [vmem:[%s5060_s17 + $0x24] sm:$0xff] %v2631_v4  ;;  %v1790_v22 = vpop.f32.mrf.mxu3  ;;  %v5696_v33 = vld [vmem:[#allocation44_spill] sm:$0xff]  ;;  %v5697_v24 = vld [vmem:[#allocation9_spill] sm:$0xff] }
 0x20a   : > { %v1702_v2 = vadd.f32 %v1701_v8, %v5046_v6  ;;  %v1615_v55 = vpop.f32.mrf.mxu1 }
 0x20b   : > { %v2382_v23 = vadd.f32 %v2381_v13, %v2219_v63  ;;  %v2426_v7 = vmul.f32 %v2219_v63, %v2219_v63  ;;  %2694 = vst [vmem:[%s5060_s17 + $0x20] sm:$0xf] %v2630_v54  ;;  %v2553_v20 = vadd.f32 %v2552_v42, %v2428_v32  ;;  %v1616_v37 = vadd.f32 %v1615_v55, %v5695_v51  ;;  %v5699_v13 = vld [vmem:[#allocation16_spill] sm:$0xff] }
 0x20c   : > { %v1882_v61 = vpop.f32.mrf.mxu0  ;;  %v1791_v21 = vadd.f32 %v1790_v22, %v1702_v2  ;;  %v5701_v42 = vmax.f32 %v5700_v47, 0.0  ;;  %v5702_v22 = vld [vmem:[#allocation50_spill] sm:$0xff] }
 0x20d   : > { %v2589_v31 = vadd.f32 %v2588_v5, %v2426_v7  ;;  %v1965_v18 = vmax.f32 %v1616_v37, 0.0  ;;  %1654 = vmatmul.bf16.gmra.mxu1 %v5696_v33  ;;  %1743 = vmatmul.bf16.gmra.mxu2 %v5697_v24 }
 0x20e   : > { %v1880_v60 = vadd.f32 %v1879_v0, %v1791_v21  ;;  %1832 = vmatmul.bf16.gmra.mxu3 %v5698_v44 }
 0x20f   : > { %1921 = vmatmul.bf16.gmra.mxu0 %v5696_v33  ;;  %v2224_v39 = vmul.f32 %v5699_v13, %v1965_v18  ;;  %v2633_v53 = vpack.c.bf16 %v1965_v18, %v5701_v42  ;;  %v5703_v33 = vld [vmem:[#allocation18_spill] sm:$0xff] }
 0x210   : > { %v1963_v14 = vmax.f32 %v1880_v60, 0.0  ;;  %v1704_v16 = vpop.f32.mrf.mxu2  ;;  %v5704_v60 = vld [vmem:[#allocation47_spill] sm:$0xff] }
 0x211   : > { %v2347_v29 = vadd.f32 %v2346_v57, %v2224_v39  ;;  %v2431_v5 = vmul.f32 %v2224_v39, %v2224_v39  ;;  %2697 = vst [vmem:[%s5060_s17 + $0x30] sm:$0xff] %v2633_v53  ;;  %v1705_v28 = vadd.f32 %v1704_v16, %v5046_v6  ;;  %v1793_v4 = vpop.f32.mrf.mxu3 }
 0x212   : > { %v2222_v0 = vmul.f32 %v4625_v48, %v1963_v14  ;;  %v2632_v8 = vpack.c.bf16 %v1963_v14, %v1963_v14  ;;  %v1617_v63 = vpop.f32.mrf.mxu1  ;;  %v5705_v48 = vmax.f32 %v5704_v60, 0.0 }
 0x213   : > { %v2554_v54 = vadd.f32 %v2553_v20, %v2431_v5  ;;  %v1794_v32 = vadd.f32 %v1793_v4, %v1705_v28  ;;  %v1618_v2 = vadd.f32 %v1617_v63, %v5702_v22  ;;  %v5706_v28 = vld [vmem:[#allocation52_spill] sm:$0xff] }
 0x214   : > { %v1884_v55 = vpop.f32.mrf.mxu0  ;;  %v2383_v7 = vadd.f32 %v2382_v23, %v2222_v0  ;;  %v2429_v51 = vmul.f32 %v2222_v0, %v2222_v0  ;;  %2696 = vst [vmem:[%s5060_s17 + $0x2c] sm:$0xf] %v2632_v8 }
 0x215   : > { %v1883_v37 = vadd.f32 %v1882_v61, %v1794_v32  ;;  %v1968_v57 = vmax.f32 %v1618_v2, 0.0  ;;  %v5709_v2 = vld [vmem:[#allocation48_spill] sm:$0xff] }
 0x216   : > { %v2590_v21 = vadd.f32 %v2589_v31, %v2429_v51 }
 0x217   : > { %v1966_v18 = vmax.f32 %v1883_v37, 0.0  ;;  %v2227_v24 = vmul.f32 %v5703_v33, %v1968_v57  ;;  %v2635_v44 = vpack.c.bf16 %v1968_v57, %v5705_v48  ;;  %v5711_v37 = vld [vmem:[#allocation51_spill] sm:$0xff] }
 0x218   : > { %v1706_v39 = vpop.f32.mrf.mxu2 }
 0x219   : > { %v2225_v20 = vmul.f32 %v5699_v13, %v1966_v18  ;;  %v2634_v47 = vpack.c.bf16 %v1966_v18, %v1966_v18  ;;  %v2348_v42 = vadd.f32 %v2347_v29, %v2227_v24  ;;  %v2434_v53 = vmul.f32 %v2227_v24, %v2227_v24  ;;  %2699 = vst [vmem:[%s5060_s17 + $0x3c] sm:$0xff] %v2635_v44  ;;  %v1795_v23 = vpop.f32.mrf.mxu3  ;;  %v5707_v13 = vld [vmem:[#allocation49_spill] sm:$0xff] }
 0x21a   : > { %v1707_v14 = vadd.f32 %v1706_v39, %v5046_v6  ;;  %v1620_v61 = vpop.f32.mrf.mxu1  ;;  %v5708_v29 = vld [vmem:[#allocation13_spill] sm:$0xff] }
 0x21b   : > { %v2384_v16 = vadd.f32 %v2383_v7, %v2225_v20  ;;  %v2432_v5 = vmul.f32 %v2225_v20, %v2225_v20  ;;  %2698 = vst [vmem:[%s5060_s17 + $0x38] sm:$0xf] %v2634_v47  ;;  %v2555_v31 = vadd.f32 %v2554_v54, %v2434_v53  ;;  %v1621_v4 = vadd.f32 %v1620_v61, %v5706_v28  ;;  %v5710_v7 = vld [vmem:[#allocation15_spill] sm:$0xff] }
 0x21c   : > { %v1887_v0 = vpop.f32.mrf.mxu0  ;;  %v1796_v8 = vadd.f32 %v1795_v23, %v1707_v14  ;;  %v5712_v54 = vmax.f32 %v5711_v37, 0.0  ;;  %v5713_v23 = vld [vmem:[#allocation56_spill] sm:$0xff] }
 0x21d   : > { %v2591_v63 = vadd.f32 %v2590_v21, %v2432_v5  ;;  %v1971_v32 = vmax.f32 %v1621_v4, 0.0  ;;  %1659 = vmatmul.bf16.gmra.mxu1 %v5707_v13  ;;  %1748 = vmatmul.bf16.gmra.mxu2 %v5708_v29 }
 0x21e   : > { %v1885_v22 = vadd.f32 %v1884_v55, %v1796_v8  ;;  %1837 = vmatmul.bf16.gmra.mxu3 %v5709_v2 }
 0x21f   : > { %1926 = vmatmul.bf16.gmra.mxu0 %v5707_v13  ;;  %v2230_v51 = vmul.f32 %v5710_v7, %v1971_v32  ;;  %v2637_v57 = vpack.c.bf16 %v1971_v32, %v5712_v54  ;;  %v5714_v13 = vld [vmem:[#allocation17_spill] sm:$0xff] }
 0x220   : > { %v1969_v18 = vmax.f32 %v1885_v22, 0.0  ;;  %v1709_v24 = vpop.f32.mrf.mxu2  ;;  %v5715_v22 = vld [vmem:[#allocation53_spill] sm:$0xff] }
 0x221   : > { %v2349_v60 = vadd.f32 %v2348_v42, %v2230_v51  ;;  %v2437_v21 = vmul.f32 %v2230_v51, %v2230_v51  ;;  %2701 = vst [vmem:[%s5060_s17 + $0x48] sm:$0xff] %v2637_v57  ;;  %v1710_v48 = vadd.f32 %v1709_v24, %v5046_v6  ;;  %v1798_v44 = vpop.f32.mrf.mxu3 }
 0x222   : > { %v2228_v55 = vmul.f32 %v5703_v33, %v1969_v18  ;;  %v2636_v39 = vpack.c.bf16 %v1969_v18, %v1969_v18  ;;  %v1622_v20 = vpop.f32.mrf.mxu1  ;;  %v5716_v33 = vmax.f32 %v5715_v22, 0.0 }
 0x223   : > { %v2556_v47 = vadd.f32 %v2555_v31, %v2437_v21  ;;  %v1799_v53 = vadd.f32 %v1798_v44, %v1710_v48  ;;  %v1623_v14 = vadd.f32 %v1622_v20, %v5713_v23  ;;  %v5717_v48 = vld [vmem:[#allocation58_spill] sm:$0xff] }
 0x224   : > { %v1889_v61 = vpop.f32.mrf.mxu0  ;;  %v2385_v5 = vadd.f32 %v2384_v16, %v2228_v55  ;;  %v2435_v28 = vmul.f32 %v2228_v55, %v2228_v55  ;;  %2700 = vst [vmem:[%s5060_s17 + $0x44] sm:$0xf] %v2636_v39 }
 0x225   : > { %v1888_v4 = vadd.f32 %v1887_v0, %v1799_v53  ;;  %v1974_v42 = vmax.f32 %v1623_v14, 0.0  ;;  %v5720_v14 = vld [vmem:[#allocation54_spill] sm:$0xff] }
 0x226   : > { %v2592_v8 = vadd.f32 %v2591_v63, %v2435_v28 }
 0x227   : > { %v1972_v32 = vmax.f32 %v1888_v4, 0.0  ;;  %v2233_v29 = vmul.f32 %v5714_v13, %v1974_v42  ;;  %v2639_v2 = vpack.c.bf16 %v1974_v42, %v5716_v33  ;;  %v5722_v4 = vld [vmem:[#allocation57_spill] sm:$0xff] }
 0x228   : > { %v1711_v51 = vpop.f32.mrf.mxu2 }
 0x229   : > { %v2231_v31 = vmul.f32 %v5710_v7, %v1972_v32  ;;  %v2638_v37 = vpack.c.bf16 %v1972_v32, %v1972_v32  ;;  %v2350_v54 = vadd.f32 %v2349_v60, %v2233_v29  ;;  %v2440_v57 = vmul.f32 %v2233_v29, %v2233_v29  ;;  %2703 = vst [vmem:[%s5060_s17 + $0x54] sm:$0xff] %v2639_v2  ;;  %v1800_v16 = vpop.f32.mrf.mxu3  ;;  %v5718_v7 = vld [vmem:[#allocation55_spill] sm:$0xff]  ;;  %v5719_v60 = vld [vmem:[#allocation4_spill] sm:$0xff] }
 0x22a   : > { %v1712_v18 = vadd.f32 %v1711_v51, %v5046_v6  ;;  %v1625_v0 = vpop.f32.mrf.mxu1 }
 0x22b   : > { %v2386_v24 = vadd.f32 %v2385_v5, %v2231_v31  ;;  %v2438_v21 = vmul.f32 %v2231_v31, %v2231_v31  ;;  %2702 = vst [vmem:[%s5060_s17 + $0x50] sm:$0xf] %v2638_v37  ;;  %v2557_v63 = vadd.f32 %v2556_v47, %v2440_v57  ;;  %v1626_v44 = vadd.f32 %v1625_v0, %v5717_v48  ;;  %v5721_v5 = vld [vmem:[#allocation88_spill] sm:$0xff] }
 0x22c   : > { %v1892_v55 = vpop.f32.mrf.mxu0  ;;  %v1801_v39 = vadd.f32 %v1800_v16, %v1712_v18  ;;  %v5723_v47 = vmax.f32 %v5722_v4, 0.0  ;;  %v5724_v16 = vld [vmem:[#allocation62_spill] sm:$0xff] }
 0x22d   : > { %v2593_v20 = vadd.f32 %v2592_v8, %v2438_v21  ;;  %v1977_v53 = vmax.f32 %v1626_v44, 0.0  ;;  %1664 = vmatmul.bf16.gmra.mxu1 %v5718_v7  ;;  %1753 = vmatmul.bf16.gmra.mxu2 %v5719_v60 }
 0x22e   : > { %v1890_v23 = vadd.f32 %v1889_v61, %v1801_v39  ;;  %1842 = vmatmul.bf16.gmra.mxu3 %v5720_v14 }
 0x22f   : > { %1931 = vmatmul.bf16.gmra.mxu0 %v5718_v7  ;;  %v2236_v28 = vmul.f32 %v5721_v5, %v1977_v53  ;;  %v2641_v42 = vpack.c.bf16 %v1977_v53, %v5723_v47  ;;  %v5725_v7 = vld [vmem:[#allocation89_spill] sm:$0xff] }
 0x230   : > { %v1975_v32 = vmax.f32 %v1890_v23, 0.0  ;;  %v1714_v29 = vpop.f32.mrf.mxu2  ;;  %v5726_v23 = vld [vmem:[#allocation59_spill] sm:$0xff] }
 0x231   : > { %v2351_v22 = vadd.f32 %v2350_v54, %v2236_v28  ;;  %v2443_v8 = vmul.f32 %v2236_v28, %v2236_v28  ;;  %2705 = vst [vmem:[%s5060_s17 + $0x60] sm:$0xff] %v2641_v42  ;;  %v1715_v33 = vadd.f32 %v1714_v29, %v5046_v6  ;;  %v1803_v2 = vpop.f32.mrf.mxu3 }
 0x232   : > { %v2234_v61 = vmul.f32 %v5714_v13, %v1975_v32  ;;  %v2640_v51 = vpack.c.bf16 %v1975_v32, %v1975_v32  ;;  %v1627_v31 = vpop.f32.mrf.mxu1  ;;  %v5727_v13 = vmax.f32 %v5726_v23, 0.0 }
 0x233   : > { %v2558_v37 = vadd.f32 %v2557_v63, %v2443_v8  ;;  %v1804_v57 = vadd.f32 %v1803_v2, %v1715_v33  ;;  %v1628_v18 = vadd.f32 %v1627_v31, %v5724_v16  ;;  %v5728_v33 = vld [vmem:[#allocation64_spill] sm:$0xff] }
 0x234   : > { %v1894_v0 = vpop.f32.mrf.mxu0  ;;  %v2387_v21 = vadd.f32 %v2386_v24, %v2234_v61  ;;  %v2441_v48 = vmul.f32 %v2234_v61, %v2234_v61  ;;  %2704 = vst [vmem:[%s5060_s17 + $0x5c] sm:$0xf] %v2640_v51 }
 0x235   : > { %v1893_v44 = vadd.f32 %v1892_v55, %v1804_v57  ;;  %v1980_v54 = vmax.f32 %v1628_v18, 0.0  ;;  %v5731_v18 = vld [vmem:[#allocation60_spill] sm:$0xff] }
 0x236   : > { %v2594_v39 = vadd.f32 %v2593_v20, %v2441_v48 }
 0x237   : > { %v1978_v53 = vmax.f32 %v1893_v44, 0.0  ;;  %v2239_v60 = vmul.f32 %v5725_v7, %v1980_v54  ;;  %v2643_v14 = vpack.c.bf16 %v1980_v54, %v5727_v13  ;;  %v5733_v44 = vld [vmem:[#allocation63_spill] sm:$0xff] }
 0x238   : > { %v1716_v28 = vpop.f32.mrf.mxu2 }
 0x239   : > { %v2237_v63 = vmul.f32 %v5721_v5, %v1978_v53  ;;  %v2642_v4 = vpack.c.bf16 %v1978_v53, %v1978_v53  ;;  %v2352_v47 = vadd.f32 %v2351_v22, %v2239_v60  ;;  %v2446_v42 = vmul.f32 %v2239_v60, %v2239_v60  ;;  %2707 = vst [vmem:[%s5060_s17 + $0x6c] sm:$0xff] %v2643_v14  ;;  %v1805_v24 = vpop.f32.mrf.mxu3  ;;  %v5729_v5 = vld [vmem:[#allocation61_spill] sm:$0xff]  ;;  %v5730_v22 = vld [vmem:[#allocation7_spill] sm:$0xff] }
 0x23a   : > { %v1717_v32 = vadd.f32 %v1716_v28, %v5046_v6  ;;  %v1630_v55 = vpop.f32.mrf.mxu1 }
 0x23b   : > { %v2388_v29 = vadd.f32 %v2387_v21, %v2237_v63  ;;  %v2444_v8 = vmul.f32 %v2237_v63, %v2237_v63  ;;  %2706 = vst [vmem:[%s5060_s17 + $0x68] sm:$0xf] %v2642_v4  ;;  %v2559_v20 = vadd.f32 %v2558_v37, %v2446_v42  ;;  %v1631_v2 = vadd.f32 %v1630_v55, %v5728_v33  ;;  %v5732_v21 = vld [vmem:[#allocation91_spill] sm:$0xff] }
 0x23c   : > { %v1897_v61 = vpop.f32.mrf.mxu0  ;;  %v1806_v51 = vadd.f32 %v1805_v24, %v1717_v32  ;;  %v5734_v37 = vmax.f32 %v5733_v44, 0.0  ;;  %v5735_v24 = vld [vmem:[#allocation68_spill] sm:$0xff] }
 0x23d   : > { %v2595_v31 = vadd.f32 %v2594_v39, %v2444_v8  ;;  %v1983_v57 = vmax.f32 %v1631_v2, 0.0  ;;  %1669 = vmatmul.bf16.gmra.mxu1 %v5729_v5  ;;  %1758 = vmatmul.bf16.gmra.mxu2 %v5730_v22 }
 0x23e   : > { %v1895_v16 = vadd.f32 %v1894_v0, %v1806_v51  ;;  %1847 = vmatmul.bf16.gmra.mxu3 %v5731_v18 }
 0x23f   : > { %1936 = vmatmul.bf16.gmra.mxu0 %v5729_v5  ;;  %v2242_v48 = vmul.f32 %v5732_v21, %v1983_v57  ;;  %v2645_v54 = vpack.c.bf16 %v1983_v57, %v5734_v37  ;;  %v5736_v5 = vld [vmem:[#allocation20_spill] sm:$0xff] }
 0x240   : > { %v1981_v53 = vmax.f32 %v1895_v16, 0.0  ;;  %v1719_v60 = vpop.f32.mrf.mxu2  ;;  %v5737_v16 = vld [vmem:[#allocation65_spill] sm:$0xff] }
 0x241   : > { %v2353_v23 = vadd.f32 %v2352_v47, %v2242_v48  ;;  %v2449_v39 = vmul.f32 %v2242_v48, %v2242_v48  ;;  %2709 = vst [vmem:[%s5060_s17 + $0x78] sm:$0xff] %v2645_v54  ;;  %v1720_v13 = vadd.f32 %v1719_v60, %v5046_v6  ;;  %v1808_v14 = vpop.f32.mrf.mxu3 }
 0x242   : > { %v2240_v0 = vmul.f32 %v5725_v7, %v1981_v53  ;;  %v2644_v28 = vpack.c.bf16 %v1981_v53, %v1981_v53  ;;  %v1632_v63 = vpop.f32.mrf.mxu1  ;;  %v5738_v7 = vmax.f32 %v5737_v16, 0.0 }
 0x243   : > { %v2560_v4 = vadd.f32 %v2559_v20, %v2449_v39  ;;  %v1809_v42 = vadd.f32 %v1808_v14, %v1720_v13  ;;  %v1633_v32 = vadd.f32 %v1632_v63, %v5735_v24  ;;  %v5739_v13 = vld [vmem:[#allocation70_spill] sm:$0xff] }
 0x244   : > { %v1899_v55 = vpop.f32.mrf.mxu0  ;;  %v2389_v8 = vadd.f32 %v2388_v29, %v2240_v0  ;;  %v2447_v33 = vmul.f32 %v2240_v0, %v2240_v0  ;;  %2708 = vst [vmem:[%s5060_s17 + $0x74] sm:$0xf] %v2644_v28 }
 0x245   : > { %v1898_v2 = vadd.f32 %v1897_v61, %v1809_v42  ;;  %v1986_v47 = vmax.f32 %v1633_v32, 0.0  ;;  %v5742_v32 = vld [vmem:[#allocation66_spill] sm:$0xff] }
 0x246   : > { %v2596_v51 = vadd.f32 %v2595_v31, %v2447_v33 }
 0x247   : > { %v1984_v57 = vmax.f32 %v1898_v2, 0.0  ;;  %v2245_v22 = vmul.f32 %v5736_v5, %v1986_v47  ;;  %v2647_v18 = vpack.c.bf16 %v1986_v47, %v5738_v7  ;;  %v5744_v2 = vld [vmem:[#allocation69_spill] sm:$0xff] }
 0x248   : > { %v1721_v48 = vpop.f32.mrf.mxu2 }
 0x249   : > { %v2243_v20 = vmul.f32 %v5732_v21, %v1984_v57  ;;  %v2646_v44 = vpack.c.bf16 %v1984_v57, %v1984_v57  ;;  %v2354_v37 = vadd.f32 %v2353_v23, %v2245_v22  ;;  %v2452_v54 = vmul.f32 %v2245_v22, %v2245_v22  ;;  %2711 = vst [vmem:[%s5060_s17 + $0x84] sm:$0xff] %v2647_v18  ;;  %v1810_v29 = vpop.f32.mrf.mxu3  ;;  %v5740_v21 = vld [vmem:[#allocation67_spill] sm:$0xff]  ;;  %v5741_v23 = vld [vmem:[#allocation10_spill] sm:$0xff] }
 0x24a   : > { %v1722_v53 = vadd.f32 %v1721_v48, %v5046_v6  ;;  %v1635_v61 = vpop.f32.mrf.mxu1 }
 0x24b   : > { %v2390_v60 = vadd.f32 %v2389_v8, %v2243_v20  ;;  %v2450_v39 = vmul.f32 %v2243_v20, %v2243_v20  ;;  %2710 = vst [vmem:[%s5060_s17 + $0x80] sm:$0xf] %v2646_v44  ;;  %v2561_v31 = vadd.f32 %v2560_v4, %v2452_v54  ;;  %v1636_v14 = vadd.f32 %v1635_v61, %v5739_v13  ;;  %v5743_v8 = vld [vmem:[#allocation2_spill] sm:$0xff] }
 0x24c   : > { %v1902_v0 = vpop.f32.mrf.mxu0  ;;  %v1811_v28 = vadd.f32 %v1810_v29, %v1722_v53  ;;  %v5745_v4 = vmax.f32 %v5744_v2, 0.0  ;;  %v5746_v29 = vld [vmem:[#allocation74_spill] sm:$0xff] }
 0x24d   : > { %v2597_v63 = vadd.f32 %v2596_v51, %v2450_v39  ;;  %v1989_v42 = vmax.f32 %v1636_v14, 0.0  ;;  %1674 = vmatmul.bf16.gmra.mxu1 %v5740_v21  ;;  %1763 = vmatmul.bf16.gmra.mxu2 %v5741_v23 }
 0x24e   : > { %v1900_v24 = vadd.f32 %v1899_v55, %v1811_v28  ;;  %1852 = vmatmul.bf16.gmra.mxu3 %v5742_v32 }
 0x24f   : > { %1941 = vmatmul.bf16.gmra.mxu0 %v5740_v21  ;;  %v2248_v33 = vmul.f32 %v5743_v8, %v1989_v42  ;;  %v2649_v47 = vpack.c.bf16 %v1989_v42, %v5745_v4  ;;  %v5747_v21 = vld [vmem:[#allocation21_spill] sm:$0xff] }
 0x250   : > { %v1987_v57 = vmax.f32 %v1900_v24, 0.0  ;;  %v1724_v22 = vpop.f32.mrf.mxu2  ;;  %v5748_v24 = vld [vmem:[#allocation71_spill] sm:$0xff] }
 0x251   : > { %v2355_v16 = vadd.f32 %v2354_v37, %v2248_v33  ;;  %v2455_v51 = vmul.f32 %v2248_v33, %v2248_v33  ;;  %2713 = vst [vmem:[%s5060_s17 + $0x90] sm:$0xff] %v2649_v47  ;;  %v1725_v7 = vadd.f32 %v1724_v22, %v5046_v6  ;;  %v1813_v18 = vpop.f32.mrf.mxu3 }
 0x252   : > { %v2246_v55 = vmul.f32 %v5736_v5, %v1987_v57  ;;  %v2648_v48 = vpack.c.bf16 %v1987_v57, %v1987_v57  ;;  %v1637_v20 = vpop.f32.mrf.mxu1  ;;  %v5749_v5 = vmax.f32 %v5748_v24, 0.0 }
 0x253   : > { %v2562_v44 = vadd.f32 %v2561_v31, %v2455_v51  ;;  %v1814_v54 = vadd.f32 %v1813_v18, %v1725_v7  ;;  %v1638_v53 = vadd.f32 %v1637_v20, %v5746_v29  ;;  %v5750_v7 = vld [vmem:[#allocation76_spill] sm:$0xff] }
 0x254   : > { %v1904_v61 = vpop.f32.mrf.mxu0  ;;  %v2391_v39 = vadd.f32 %v2390_v60, %v2246_v55  ;;  %v2453_v13 = vmul.f32 %v2246_v55, %v2246_v55  ;;  %2712 = vst [vmem:[%s5060_s17 + $0x8c] sm:$0xf] %v2648_v48 }
 0x255   : > { %v1903_v14 = vadd.f32 %v1902_v0, %v1814_v54  ;;  %v1992_v37 = vmax.f32 %v1638_v53, 0.0  ;;  %v5753_v53 = vld [vmem:[#allocation72_spill] sm:$0xff] }
 0x256   : > { %v2598_v28 = vadd.f32 %v2597_v63, %v2453_v13  ;;  %v5754_v13 = vld [vmem:[#allocation75_spill] sm:$0xff] }
 0x257   : > { %v1990_v42 = vmax.f32 %v1903_v14, 0.0  ;;  %v2251_v23 = vmul.f32 %v5747_v21, %v1992_v37  ;;  %v2651_v32 = vpack.c.bf16 %v1992_v37, %v5749_v5 }
 0x258   : > { %v1726_v33 = vpop.f32.mrf.mxu2 }
 0x259   : > { %v2249_v31 = vmul.f32 %v5743_v8, %v1990_v42  ;;  %v2650_v2 = vpack.c.bf16 %v1990_v42, %v1990_v42  ;;  %v2356_v4 = vadd.f32 %v2355_v16, %v2251_v23  ;;  %v2458_v47 = vmul.f32 %v2251_v23, %v2251_v23  ;;  %2715 = vst [vmem:[%s5060_s17 + $0x9c] sm:$0xff] %v2651_v32  ;;  %v1815_v60 = vpop.f32.mrf.mxu3  ;;  %v5751_v8 = vld [vmem:[#allocation73_spill] sm:$0xff]  ;;  %v5752_v16 = vld [vmem:[#allocation14_spill] sm:$0xff] }
 0x25a   : > { %v1727_v57 = vadd.f32 %v1726_v33, %v5046_v6  ;;  %v1640_v0 = vpop.f32.mrf.mxu1 }
 0x25b   : > { %v2392_v22 = vadd.f32 %v2391_v39, %v2249_v31  ;;  %v2456_v51 = vmul.f32 %v2249_v31, %v2249_v31  ;;  %2714 = vst [vmem:[%s5060_s17 + $0x98] sm:$0xf] %v2650_v2  ;;  %v2563_v63 = vadd.f32 %v2562_v44, %v2458_v47  ;;  %v1641_v18 = vadd.f32 %v1640_v0, %v5750_v7  ;;  %v5756_v47 = vld [vmem:[#allocation78_spill] sm:$0xff] }
 0x25c   : > { %v1907_v55 = vpop.f32.mrf.mxu0  ;;  %v1816_v48 = vadd.f32 %v1815_v60, %v1727_v57  ;;  %v5755_v44 = vmax.f32 %v5754_v13, 0.0 }
 0x25d   : > { %v2599_v20 = vadd.f32 %v2598_v28, %v2456_v51  ;;  %v1995_v54 = vmax.f32 %v1641_v18, 0.0  ;;  %1679 = vmatmul.bf16.gmra.mxu1 %v5751_v8  ;;  %1768 = vmatmul.bf16.gmra.mxu2 %v5752_v16  ;;  %v5758_v16 = vld [vmem:[#allocation77_spill] sm:$0xff] }
 0x25e   : > { %v1905_v29 = vadd.f32 %v1904_v61, %v1816_v48  ;;  %1857 = vmatmul.bf16.gmra.mxu3 %v5753_v53 }
 0x25f   : > { %1946 = vmatmul.bf16.gmra.mxu0 %v5751_v8  ;;  %v2254_v39 = vmul.f32 %v4773_v59, %v1995_v54  ;;  %v2653_v14 = vpack.c.bf16 %v1995_v54, %v5755_v44  ;;  %v5757_v54 = vld [vmem:[#allocation22_spill] sm:$0xff] }
 0x260   : > { %v1993_v37 = vmax.f32 %v1905_v29, 0.0  ;;  %v1729_v42 = vpop.f32.mrf.mxu2 }
 0x261   : > { %v2357_v23 = vadd.f32 %v2356_v4, %v2254_v39  ;;  %v2461_v28 = vmul.f32 %v2254_v39, %v2254_v39  ;;  %2717 = vst [vmem:[%s5060_s17 + $0xa8] sm:$0xff] %v2653_v14  ;;  %v1730_v24 = vadd.f32 %v1729_v42, %v5046_v6  ;;  %v1818_v5 = vpop.f32.mrf.mxu3 }
 0x262   : > { %v2252_v61 = vmul.f32 %v5747_v21, %v1993_v37  ;;  %v2652_v32 = vpack.c.bf16 %v1993_v37, %v1993_v37  ;;  %v1642_v33 = vpop.f32.mrf.mxu1  ;;  %v5759_v21 = vmax.f32 %v5758_v16, 0.0 }
 0x263   : > { %v2564_v31 = vadd.f32 %v2563_v63, %v2461_v28  ;;  %v1819_v2 = vadd.f32 %v1818_v5, %v1730_v24  ;;  %v1643_v60 = vadd.f32 %v1642_v33, %v5756_v47  ;;  %v5760_v28 = vld [vmem:[#allocation80_spill] sm:$0xff]  ;;  %v5762_v47 = vld [vmem:[#allocation79_spill] sm:$0xff] }
 0x264   : > { %v1909_v57 = vpop.f32.mrf.mxu0  ;;  %v2393_v0 = vadd.f32 %v2392_v22, %v2252_v61  ;;  %v2459_v51 = vmul.f32 %v2252_v61, %v2252_v61  ;;  %2716 = vst [vmem:[%s5060_s17 + $0xa4] sm:$0xf] %v2652_v32 }
 0x265   : > { %v1908_v7 = vadd.f32 %v1907_v55, %v1819_v2  ;;  %v1998_v4 = vmax.f32 %v1643_v60, 0.0  ;;  %v5761_v2 = vld [vmem:[#allocation26_spill] sm:$0xff]  ;;  %v5763_v60 = vmax.f32 %v5762_v47, 0.0 }
 0x266   : > { %v2600_v18 = vadd.f32 %v2599_v20, %v2459_v51 }
 0x267   : > { %v1996_v48 = vmax.f32 %v1908_v7, 0.0  ;;  %v2257_v8 = vmul.f32 %v5757_v54, %v1998_v4  ;;  %v2655_v29 = vpack.c.bf16 %v1998_v4, %v5759_v21 }
 0x268   : > { %v1731_v53 = vpop.f32.mrf.mxu2 }
 0x269   : > { %v2255_v63 = vmul.f32 %v4773_v59, %v1996_v48  ;;  %v2654_v39 = vpack.c.bf16 %v1996_v48, %v1996_v48  ;;  %v2358_v13 = vadd.f32 %v2357_v23, %v2257_v8  ;;  %v2464_v44 = vmul.f32 %v2257_v8, %v2257_v8  ;;  %2719 = vst [vmem:[%s5060_s17 + $0xb4] sm:$0xff] %v2655_v29  ;;  %v1820_v22 = vpop.f32.mrf.mxu3 }
 0x26a   : > { %v1732_v14 = vadd.f32 %v1731_v53, %v5046_v6  ;;  %v1645_v55 = vpop.f32.mrf.mxu1  ;;  %v5764_v53 = vld [vmem:[#allocation82_spill] sm:$0xff] }
 0x26b   : > { %v2394_v37 = vadd.f32 %v2393_v0, %v2255_v63  ;;  %v2462_v20 = vmul.f32 %v2255_v63, %v2255_v63  ;;  %2718 = vst [vmem:[%s5060_s17 + $0xb0] sm:$0xf] %v2654_v39  ;;  %v2565_v42 = vadd.f32 %v2564_v31, %v2464_v44  ;;  %v1646_v24 = vadd.f32 %v1645_v55, %v5760_v28  ;;  %v5765_v28 = vld [vmem:[#allocation24_spill] sm:$0xff] }
 0x26c   : > { %v1912_v5 = vpop.f32.mrf.mxu0  ;;  %v1821_v61 = vadd.f32 %v1820_v22, %v1732_v14 }
 0x26d   : > { %v2601_v32 = vadd.f32 %v2600_v18, %v2462_v20  ;;  %v2001_v33 = vmax.f32 %v1646_v24, 0.0 }
 0x26e   : > { %v1910_v59 = vadd.f32 %v1909_v57, %v1821_v61  ;;  %v5766_v61 = vld [vmem:[#allocation81_spill] sm:$0xff] }
 0x26f   : > { %v2260_v23 = vmul.f32 %v5761_v2, %v2001_v33  ;;  %v2657_v51 = vpack.c.bf16 %v2001_v33, %v5763_v60 }
 0x270   : > { %v1999_v7 = vmax.f32 %v1910_v59, 0.0  ;;  %v1734_v4 = vpop.f32.mrf.mxu2 }
 0x271   : > { %v2359_v0 = vadd.f32 %v2358_v13, %v2260_v23  ;;  %v2467_v48 = vmul.f32 %v2260_v23, %v2260_v23  ;;  %2721 = vst [vmem:[%s5060_s17 + $0xc0] sm:$0xff] %v2657_v51  ;;  %v1735_v31 = vadd.f32 %v1734_v4, %v5046_v6  ;;  %v1823_v8 = vpop.f32.mrf.mxu3 }
 0x272   : > { %v2258_v16 = vmul.f32 %v5757_v54, %v1999_v7  ;;  %v2656_v21 = vpack.c.bf16 %v1999_v7, %v1999_v7  ;;  %v1647_v18 = vpop.f32.mrf.mxu1  ;;  %v5767_v54 = vmax.f32 %v5766_v61, 0.0 }
 0x273   : > { %v2566_v29 = vadd.f32 %v2565_v42, %v2467_v48  ;;  %v1824_v57 = vadd.f32 %v1823_v8, %v1735_v31  ;;  %v1648_v63 = vadd.f32 %v1647_v18, %v5764_v53  ;;  %v5768_v48 = vld [vmem:[#allocation84_spill] sm:$0xff] }
 0x274   : > { %v1914_v39 = vpop.f32.mrf.mxu0  ;;  %v2395_v44 = vadd.f32 %v2394_v37, %v2258_v16  ;;  %v2465_v22 = vmul.f32 %v2258_v16, %v2258_v16  ;;  %2720 = vst [vmem:[%s5060_s17 + $0xbc] sm:$0xf] %v2656_v21 }
 0x275   : > { %v1913_v14 = vadd.f32 %v1912_v5, %v1824_v57  ;;  %v2004_v13 = vmax.f32 %v1648_v63, 0.0  ;;  %v5769_v57 = vld [vmem:[#allocation83_spill] sm:$0xff] }
 0x276   : > { %v2602_v55 = vadd.f32 %v2601_v32, %v2465_v22  ;;  %v5770_v53 = vmax.f32 %v5769_v57, 0.0 }
 0x277   : > { %v2002_v20 = vmax.f32 %v1913_v14, 0.0  ;;  %v2263_v24 = vmul.f32 %v5765_v28, %v2004_v13  ;;  %v2659_v33 = vpack.c.bf16 %v2004_v13, %v5767_v54 }
 0x278   : > { %v1736_v59 = vpop.f32.mrf.mxu2 }
 0x279   : > { %v2261_v42 = vmul.f32 %v5761_v2, %v2002_v20  ;;  %v2658_v23 = vpack.c.bf16 %v2002_v20, %v2002_v20  ;;  %v2360_v47 = vadd.f32 %v2359_v0, %v2263_v24  ;;  %v2470_v60 = vmul.f32 %v2263_v24, %v2263_v24  ;;  %2723 = vst [vmem:[%s5060_s17 + $0xcc] sm:$0xff] %v2659_v33  ;;  %v1825_v37 = vpop.f32.mrf.mxu3  ;;  %v5771_v33 = vld [vmem:[#allocation86_spill] sm:$0xff] }
 0x27a   : > { %v1737_v51 = vadd.f32 %v1736_v59, %v5046_v6  ;;  %v1650_v5 = vpop.f32.mrf.mxu1 }
 0x27b   : > { %v2396_v7 = vadd.f32 %v2395_v44, %v2261_v42  ;;  %v2468_v32 = vmul.f32 %v2261_v42, %v2261_v42  ;;  %2722 = vst [vmem:[%s5060_s17 + $0xc8] sm:$0xf] %v2658_v23  ;;  %v2567_v4 = vadd.f32 %v2566_v29, %v2470_v60  ;;  %v1651_v31 = vadd.f32 %v1650_v5, %v5768_v48 }
 0x27c   : > { %v1917_v8 = vpop.f32.mrf.mxu0  ;;  %v1826_v16 = vadd.f32 %v1825_v37, %v1737_v51 }
 0x27d   : > { %v2603_v21 = vadd.f32 %v2602_v55, %v2468_v32  ;;  %v2007_v18 = vmax.f32 %v1651_v31, 0.0  ;;  %v5772_v32 = vld [vmem:[#allocation23_spill] sm:$0xff]  ;;  %v5773_v31 = vld [vmem:[#allocation85_spill] sm:$0xff] }
 0x27e   : > { %v1915_v2 = vadd.f32 %v1914_v39, %v1826_v16 }
 0x27f   : > { %v2266_v0 = vmul.f32 %v4836_v12, %v2007_v18  ;;  %v2661_v63 = vpack.c.bf16 %v2007_v18, %v5770_v53 }
 0x280   : > { %v2005_v22 = vmax.f32 %v1915_v2, 0.0  ;;  %v1739_v14 = vpop.f32.mrf.mxu2 }
 0x281   : > { %v2361_v44 = vadd.f32 %v2360_v47, %v2266_v0  ;;  %v2473_v13 = vmul.f32 %v2266_v0, %v2266_v0  ;;  %2725 = vst [vmem:[%s5060_s17 + $0xd8] sm:$0xff] %v2661_v63  ;;  %v1740_v29 = vadd.f32 %v1739_v14, %v5046_v6  ;;  %v1828_v20 = vpop.f32.mrf.mxu3  ;;  %v5775_v14 = vld [vmem:[#allocation11_spill] sm:$0xff] }
 0x282   : > { %v2264_v24 = vmul.f32 %v5765_v28, %v2005_v22  ;;  %v2660_v61 = vpack.c.bf16 %v2005_v22, %v2005_v22  ;;  %v1652_v55 = vpop.f32.mrf.mxu1  ;;  %v5774_v28 = vmax.f32 %v5773_v31, 0.0  ;;  %v5777_v31 = vld [vmem:[#allocation30_spill] sm:$0xff] }
 0x283   : > { %v2568_v54 = vadd.f32 %v2567_v4, %v2473_v13  ;;  %v1829_v39 = vadd.f32 %v1828_v20, %v1740_v29  ;;  %v1653_v59 = vadd.f32 %v1652_v55, %v5771_v33  ;;  %v5776_v55 = vmax.f32 %v4593_v34, 0.0 }
 0x284   : > { %v1919_v42 = vpop.f32.mrf.mxu0  ;;  %v2397_v23 = vadd.f32 %v2396_v7, %v2264_v24  ;;  %v2471_v60 = vmul.f32 %v2264_v24, %v2264_v24  ;;  %2724 = vst [vmem:[%s5060_s17 + $0xd4] sm:$0xf] %v2660_v61 }
 0x285   : > { %v1918_v37 = vadd.f32 %v1917_v8, %v1829_v39  ;;  %v2010_v47 = vmax.f32 %v1653_v59, 0.0 }
 0x286   : > { %v2604_v51 = vadd.f32 %v2603_v21, %v2471_v60 }
 0x287   : > { %v2008_v5 = vmax.f32 %v1918_v37, 0.0  ;;  %v2269_v48 = vmul.f32 %v5772_v32, %v2010_v47  ;;  %v2663_v16 = vpack.c.bf16 %v2010_v47, %v5774_v28 }
 0x288   : > { %v1741_v18 = vpop.f32.mrf.mxu2 }
 0x289   : > { %v2267_v4 = vmul.f32 %v4836_v12, %v2008_v5  ;;  %v2662_v2 = vpack.c.bf16 %v2008_v5, %v2008_v5  ;;  %v2362_v0 = vadd.f32 %v2361_v44, %v2269_v48  ;;  %v2476_v57 = vmul.f32 %v2269_v48, %v2269_v48  ;;  %2727 = vst [vmem:[%s5060_s17 + $0xe4] sm:$0xff] %v2663_v16  ;;  %v1830_v7 = vpop.f32.mrf.mxu3 }
 0x28a   : > { %v1742_v53 = vadd.f32 %v1741_v18, %v5046_v6  ;;  %v1655_v8 = vpop.f32.mrf.mxu1 }
 0x28b   : > { %v2398_v63 = vadd.f32 %v2397_v23, %v2267_v4  ;;  %v2474_v21 = vmul.f32 %v2267_v4, %v2267_v4  ;;  %2726 = vst [vmem:[%s5060_s17 + $0xe0] sm:$0xf] %v2662_v2  ;;  %v2569_v22 = vadd.f32 %v2568_v54, %v2476_v57  ;;  %v1656_v13 = vadd.f32 %v1655_v8, %v5775_v14 }
 0x28c   : > { %v1922_v29 = vpop.f32.mrf.mxu0  ;;  %v1831_v20 = vadd.f32 %v1830_v7, %v1742_v53 }
 0x28d   : > { %v2605_v24 = vadd.f32 %v2604_v51, %v2474_v21  ;;  %v2013_v61 = vmax.f32 %v1656_v13, 0.0 }
 0x28e   : > { %v1920_v12 = vadd.f32 %v1919_v42, %v1831_v20 }
 0x28f   : > { %v2272_v44 = vmul.f32 %v4862_v46, %v2013_v61  ;;  %v2665_v39 = vpack.c.bf16 %v2013_v61, %v5776_v55 }
 0x290   : > { %v2011_v33 = vmax.f32 %v1920_v12, 0.0  ;;  %v1744_v59 = vpop.f32.mrf.mxu2 }
 0x291   : > { %v2363_v23 = vadd.f32 %v2362_v0, %v2272_v44  ;;  %v2479_v60 = vmul.f32 %v2272_v44, %v2272_v44  ;;  %2729 = vst [vmem:[%s5060_s17 + $0xf0] sm:$0xff] %v2665_v39  ;;  %v1745_v54 = vadd.f32 %v1744_v59, %v5046_v6  ;;  %v1833_v37 = vpop.f32.mrf.mxu3  ;;  %v5779_v44 = vld [vmem:[#allocation87_spill] sm:$0xff] }
 0x292   : > { %v2270_v47 = vmul.f32 %v5772_v32, %v2011_v33  ;;  %v2664_v5 = vpack.c.bf16 %v2011_v33, %v2011_v33  ;;  %v1657_v51 = vpop.f32.mrf.mxu1  ;;  %v5778_v32 = vmax.f32 %v4866_v9, 0.0 }
 0x293   : > { %v2570_v48 = vadd.f32 %v2569_v22, %v2479_v60  ;;  %v1834_v42 = vadd.f32 %v1833_v37, %v1745_v54  ;;  %v1658_v28 = vadd.f32 %v1657_v51, %v5777_v31  ;;  %v5780_v60 = vmax.f32 %v4887_v58, 0.0 }
 0x294   : > { %v1924_v34 = vpop.f32.mrf.mxu0  ;;  %v2399_v16 = vadd.f32 %v2398_v63, %v2270_v47  ;;  %v2477_v18 = vmul.f32 %v2270_v47, %v2270_v47  ;;  %2728 = vst [vmem:[%s5060_s17 + $0xec] sm:$0xf] %v2664_v5 }
 0x295   : > { %v1923_v4 = vadd.f32 %v1922_v29, %v1834_v42  ;;  %v2016_v2 = vmax.f32 %v1658_v28, 0.0 }
 0x296   : > { %v2606_v0 = vadd.f32 %v2605_v24, %v2477_v18  ;;  %v5781_v18 = vld [vmem:[#allocation90_spill] sm:$0xff] }
 0x297   : > { %v2014_v57 = vmax.f32 %v1923_v4, 0.0  ;;  %v2275_v7 = vmul.f32 %v4880_v38, %v2016_v2  ;;  %v2667_v53 = vpack.c.bf16 %v2016_v2, %v5778_v32  ;;  %v5782_v32 = vmax.f32 %v4904_v27, 0.0 }
 0x298   : > { %v1746_v8 = vpop.f32.mrf.mxu2 }
 0x299   : > { %v2273_v21 = vmul.f32 %v4862_v46, %v2014_v57  ;;  %v2666_v22 = vpack.c.bf16 %v2014_v57, %v2014_v57  ;;  %v2364_v14 = vadd.f32 %v2363_v23, %v2275_v7  ;;  %v2482_v13 = vmul.f32 %v2275_v7, %v2275_v7  ;;  %2731 = vst [vmem:[%s5060_s17 + $0xfc] sm:$0xff] %v2667_v53  ;;  %v1835_v63 = vpop.f32.mrf.mxu3 }
 0x29a   : > { %v1747_v20 = vadd.f32 %v1746_v8, %v5046_v6  ;;  %v1660_v29 = vpop.f32.mrf.mxu1 }
 0x29b   : > { %v5277_v61 = vadd.f32 %v2399_v16, %v2273_v21  ;;  %v2480_v24 = vmul.f32 %v2273_v21, %v2273_v21  ;;  %2730 = vst [vmem:[%s5060_s17 + $0xf8] sm:$0xf] %v2666_v22  ;;  %v2571_v12 = vadd.f32 %v2570_v48, %v2482_v13  ;;  %v1661_v9 = vadd.f32 %v1660_v29, %v5779_v44 }
 0x29c   : > { %v1927_v55 = vpop.f32.mrf.mxu0  ;;  %v1836_v39 = vadd.f32 %v1835_v63, %v1747_v20 }
 0x29d   : > { %v5281_v33 = vadd.f32 %v2606_v0, %v2480_v24  ;;  %v2019_v46 = vmax.f32 %v1661_v9, 0.0  ;;  %v5783_v24 = vld [vmem:[#allocation19_spill] sm:$0xff] }
 0x29e   : > { %v1925_v59 = vadd.f32 %v1924_v34, %v1836_v39 }
 0x29f   : > { %v2278_v23 = vmul.f32 %v4915_v62, %v2019_v46  ;;  %v2669_v54 = vpack.c.bf16 %v2019_v46, %v5780_v60  ;;  %v5784_v46 = vmax.f32 %v4924_v17, 0.0 }
 0x2a0   : > { %v5286_v37 = vmax.f32 %v1925_v59, 0.0  ;;  %v1749_v47 = vpop.f32.mrf.mxu2 }
 0x2a1   : > { %v2365_v5 = vadd.f32 %v2364_v14, %v2278_v23  ;;  %v2485_v51 = vmul.f32 %v2278_v23, %v2278_v23  ;;  %2733 = vst [vmem:[%s5060_s17 + $0x108] sm:$0xff] %v2669_v54  ;;  %v1750_v48 = vadd.f32 %v1749_v47, %v5046_v6  ;;  %v1838_v42 = vpop.f32.mrf.mxu3 }
 0x2a2   : > { %v2668_v31 = vpack.c.bf16 %v5286_v37, %v5286_v37  ;;  %v1662_v28 = vpop.f32.mrf.mxu1 }
 0x2a3   : > { %v2572_v34 = vadd.f32 %v2571_v12, %v2485_v51  ;;  %v1839_v16 = vadd.f32 %v1838_v42, %v1750_v48  ;;  %v1663_v4 = vadd.f32 %v1662_v28, %v5781_v18 }
 0x2a4   : > { %v1929_v58 = vpop.f32.mrf.mxu0  ;;  %2732 = vst [vmem:[%s5060_s17 + $0x104] sm:$0xf] %v2668_v31 }
 0x2a5   : > { %v1928_v2 = vadd.f32 %v1927_v55, %v1839_v16  ;;  %v2022_v0 = vmax.f32 %v1663_v4, 0.0 }
 0x2a7   : > { %v5294_v57 = vmax.f32 %v1928_v2, 0.0  ;;  %v2281_v7 = vmul.f32 %v4921_v43, %v2022_v0  ;;  %v2671_v53 = vpack.c.bf16 %v2022_v0, %v5782_v32  ;;  %v5786_v0 = vmax.f32 %v4939_v15, 0.0 }
 0x2a8   : > { %v1751_v8 = vpop.f32.mrf.mxu2 }
 0x2a9   : > { %v2670_v21 = vpack.c.bf16 %v5294_v57, %v5294_v57  ;;  %v2366_v22 = vadd.f32 %v2365_v5, %v2281_v7  ;;  %v2488_v14 = vmul.f32 %v2281_v7, %v2281_v7  ;;  %2735 = vst [vmem:[%s5060_s17 + $0x114] sm:$0xff] %v2671_v53  ;;  %v1840_v13 = vpop.f32.mrf.mxu3  ;;  %v1752_v63 = vadd.f32 %v1751_v8, %v5046_v6 }
 0x2aa   : > { %v1665_v20 = vpop.f32.mrf.mxu1 }
 0x2ab   : > { %2734 = vst [vmem:[%s5060_s17 + $0x110] sm:$0xf] %v2670_v21  ;;  %v2573_v29 = vadd.f32 %v2572_v34, %v2488_v14  ;;  %v1666_v12 = vadd.f32 %v1665_v20, %v5783_v24  ;;  %v1841_v9 = vadd.f32 %v1840_v13, %v1752_v63  ;;  %v5785_v34 = vld [vmem:[#allocation25_spill] sm:$0xff] }
 0x2ac   : > { %v1932_v44 = vpop.f32.mrf.mxu0  ;;  %v5787_v20 = vld [vmem:[#allocation5_spill] sm:$0xff] }
 0x2ad   : > { %v2025_v27 = vmax.f32 %v1666_v12, 0.0  ;;  %v1930_v55 = vadd.f32 %v1929_v58, %v1841_v9 }
 0x2af   : > { %v2284_v39 = vmul.f32 %v4936_v36, %v2025_v27  ;;  %v2673_v59 = vpack.c.bf16 %v2025_v27, %v5784_v46  ;;  %v5308_v23 = vmax.f32 %v1930_v55, 0.0  ;;  %v5788_v27 = vmax.f32 %v4956_v3, 0.0 }
 0x2b0   : > { %v1754_v60 = vpop.f32.mrf.mxu2 }
 0x2b1   : > { %v2367_v54 = vadd.f32 %v2366_v22, %v2284_v39  ;;  %v2491_v47 = vmul.f32 %v2284_v39, %v2284_v39  ;;  %2737 = vst [vmem:[%s5060_s17 + $0x120] sm:$0xff] %v2673_v59  ;;  %v1755_v5 = vadd.f32 %v1754_v60, %v5046_v6  ;;  %v1843_v51 = vpop.f32.mrf.mxu3  ;;  %v2672_v48 = vpack.c.bf16 %v5308_v23, %v5308_v23 }
 0x2b2   : > { %v1667_v42 = vpop.f32.mrf.mxu1 }
 0x2b3   : > { %v2574_v31 = vadd.f32 %v2573_v29, %v2491_v47  ;;  %v1844_v28 = vadd.f32 %v1843_v51, %v1755_v5  ;;  %v1668_v16 = vadd.f32 %v1667_v42, %v5785_v34  ;;  %2736 = vst [vmem:[%s5060_s17 + $0x11c] sm:$0xf] %v2672_v48 }
 0x2b4   : > { %v1934_v17 = vpop.f32.mrf.mxu0 }
 0x2b5   : > { %v1933_v18 = vadd.f32 %v1932_v44, %v1844_v28  ;;  %v2028_v4 = vmax.f32 %v1668_v16, 0.0 }
 0x2b7   : > { %v5316_v58 = vmax.f32 %v1933_v18, 0.0  ;;  %v2287_v2 = vmul.f32 %v4949_v45, %v2028_v4  ;;  %v2675_v7 = vpack.c.bf16 %v2028_v4, %v5786_v0  ;;  %v5790_v4 = vmax.f32 %v4963_v1, 0.0 }
 0x2b8   : > { %v1756_v32 = vpop.f32.mrf.mxu2 }
 0x2b9   : > { %v2674_v53 = vpack.c.bf16 %v5316_v58, %v5316_v58  ;;  %v2368_v8 = vadd.f32 %v2367_v54, %v2287_v2  ;;  %v2494_v21 = vmul.f32 %v2287_v2, %v2287_v2  ;;  %2739 = vst [vmem:[%s5060_s17 + $0x12c] sm:$0xff] %v2675_v7  ;;  %v1845_v22 = vpop.f32.mrf.mxu3  ;;  %v1757_v14 = vadd.f32 %v1756_v32, %v5046_v6 }
 0x2ba   : > { %v1670_v13 = vpop.f32.mrf.mxu1 }
 0x2bb   : > { %2738 = vst [vmem:[%s5060_s17 + $0x128] sm:$0xf] %v2674_v53  ;;  %v2575_v63 = vadd.f32 %v2574_v31, %v2494_v21  ;;  %v1671_v29 = vadd.f32 %v1670_v13, %v5787_v20  ;;  %v1846_v12 = vadd.f32 %v1845_v22, %v1757_v14  ;;  %v5789_v31 = vld [vmem:[#allocation29_spill] sm:$0xff]  ;;  %v5791_v13 = vld [vmem:[#allocation31_spill] sm:$0xff] }
 0x2bc   : > { %v1937_v24 = vpop.f32.mrf.mxu0 }
 0x2bd   : > { %v2031_v15 = vmax.f32 %v1671_v29, 0.0  ;;  %v1935_v44 = vadd.f32 %v1934_v17, %v1846_v12  ;;  %v5792_v12 = vmax.f32 %v4976_v11, 0.0 }
 0x2bf   : > { %v2290_v9 = vmul.f32 %v4972_v56, %v2031_v15  ;;  %v2677_v55 = vpack.c.bf16 %v2031_v15, %v5788_v27  ;;  %v5330_v39 = vmax.f32 %v1935_v44, 0.0 }
 0x2c0   : > { %v1759_v46 = vpop.f32.mrf.mxu2 }
 0x2c1   : > { %v2369_v59 = vadd.f32 %v2368_v8, %v2290_v9  ;;  %v2497_v60 = vmul.f32 %v2290_v9, %v2290_v9  ;;  %2741 = vst [vmem:[%s5060_s17 + $0x138] sm:$0xff] %v2677_v55  ;;  %v1760_v54 = vadd.f32 %v1759_v46, %v5046_v6  ;;  %v1848_v47 = vpop.f32.mrf.mxu3  ;;  %v2676_v5 = vpack.c.bf16 %v5330_v39, %v5330_v39 }
 0x2c2   : > { %v1672_v51 = vpop.f32.mrf.mxu1 }
 0x2c3   : > { %v2576_v48 = vadd.f32 %v2575_v63, %v2497_v60  ;;  %v1849_v42 = vadd.f32 %v1848_v47, %v1760_v54  ;;  %v1673_v28 = vadd.f32 %v1672_v51, %v5789_v31  ;;  %2740 = vst [vmem:[%s5060_s17 + $0x134] sm:$0xf] %v2676_v5 }
 0x2c4   : > { %v1939_v16 = vpop.f32.mrf.mxu0 }
 0x2c5   : > { %v1938_v3 = vadd.f32 %v1937_v24, %v1849_v42  ;;  %v2034_v34 = vmax.f32 %v1673_v28, 0.0 }
 0x2c7   : > { %v5338_v17 = vmax.f32 %v1938_v3, 0.0  ;;  %v2293_v18 = vmul.f32 %v4989_v26, %v2034_v34  ;;  %v2679_v2 = vpack.c.bf16 %v2034_v34, %v5790_v4 }
 0x2c8   : > { %v1761_v0 = vpop.f32.mrf.mxu2 }
 0x2c9   : > { %v2678_v7 = vpack.c.bf16 %v5338_v17, %v5338_v17  ;;  %v2370_v32 = vadd.f32 %v2369_v59, %v2293_v18  ;;  %v2500_v53 = vmul.f32 %v2293_v18, %v2293_v18  ;;  %2743 = vst [vmem:[%s5060_s17 + $0x144] sm:$0xff] %v2679_v2  ;;  %v1850_v8 = vpop.f32.mrf.mxu3  ;;  %v1762_v21 = vadd.f32 %v1761_v0, %v5046_v6 }
 0x2ca   : > { %v1675_v22 = vpop.f32.mrf.mxu1 }
 0x2cb   : > { %2742 = vst [vmem:[%s5060_s17 + $0x140] sm:$0xf] %v2678_v7  ;;  %v2577_v14 = vadd.f32 %v2576_v48, %v2500_v53  ;;  %v1676_v63 = vadd.f32 %v1675_v22, %v5791_v13  ;;  %v1851_v20 = vadd.f32 %v1850_v8, %v1762_v21  ;;  %v5793_v48 = vld [vmem:[#allocation34_spill] sm:$0xff]  ;;  %v2279_v53 = vmul.f32 %v4915_v62, %v5294_v57 }
 0x2cc   : > { %v1942_v44 = vpop.f32.mrf.mxu0  ;;  %v5795_v57 = vmax.f32 %v5011_v40, 0.0 }
 0x2cd   : > { %v2037_v29 = vmax.f32 %v1676_v63, 0.0  ;;  %v1940_v1 = vadd.f32 %v1939_v16, %v1851_v20  ;;  %v2276_v16 = vmul.f32 %v4880_v38, %v5286_v37  ;;  %v2282_v38 = vmul.f32 %v4921_v43, %v5308_v23 }
 0x2ce   : > { %v2486_v63 = vmul.f32 %v2279_v53, %v2279_v53  ;;  %v2285_v20 = vmul.f32 %v4936_v36, %v5316_v58  ;;  %v2288_v23 = vmul.f32 %v4949_v45, %v5330_v39 }
 0x2cf   : > { %v2296_v24 = vmul.f32 %v5003_v49, %v2037_v29  ;;  %v2681_v15 = vpack.c.bf16 %v2037_v29, %v5792_v12  ;;  %v5352_v9 = vmax.f32 %v1940_v1, 0.0 }
 0x2d0   : > { %v1764_v27 = vpop.f32.mrf.mxu2 }
 0x2d1   : > { %v2371_v55 = vadd.f32 %v2370_v32, %v2296_v24  ;;  %v2503_v46 = vmul.f32 %v2296_v24, %v2296_v24  ;;  %2745 = vst [vmem:[%s5060_s17 + $0x150] sm:$0xff] %v2681_v15  ;;  %v1765_v59 = vadd.f32 %v1764_v27, %v5046_v6  ;;  %v1853_v60 = vpop.f32.mrf.mxu3  ;;  %v2680_v54 = vpack.c.bf16 %v5352_v9, %v5352_v9 }
 0x2d2   : > { %v1677_v47 = vpop.f32.mrf.mxu1  ;;  %v2401_v24 = vadd.f32 %v5277_v61, %v2276_v16  ;;  %v2489_v15 = vmul.f32 %v2282_v38, %v2282_v38 }
 0x2d3   : > { %v2578_v5 = vadd.f32 %v2577_v14, %v2503_v46  ;;  %v1854_v51 = vadd.f32 %v1853_v60, %v1765_v59  ;;  %v1678_v11 = vadd.f32 %v1677_v47, %v5793_v48  ;;  %2744 = vst [vmem:[%s5060_s17 + $0x14c] sm:$0xf] %v2680_v54  ;;  %v2483_v14 = vmul.f32 %v2276_v16, %v2276_v16 }
 0x2d4   : > { %v1944_v7 = vpop.f32.mrf.mxu0  ;;  %v2402_v46 = vadd.f32 %v2401_v24, %v2279_v53  ;;  %v2492_v59 = vmul.f32 %v2285_v20, %v2285_v20  ;;  %v2495_v48 = vmul.f32 %v2288_v23, %v2288_v23 }
 0x2d5   : > { %v1943_v42 = vadd.f32 %v1942_v44, %v1854_v51  ;;  %v2040_v31 = vmax.f32 %v1678_v11, 0.0  ;;  %v2608_v12 = vadd.f32 %v5281_v33, %v2483_v14  ;;  %v2291_v33 = vmul.f32 %v4972_v56, %v5338_v17 }
 0x2d6   : > { %v2403_v39 = vadd.f32 %v2402_v46, %v2282_v38 }
 0x2d7   : > { %v2038_v28 = vmax.f32 %v1943_v42, 0.0  ;;  %v2299_v3 = vmul.f32 %v5017_v52, %v2040_v31  ;;  %v2683_v34 = vpack.c.bf16 %v2040_v31, %v2039_v50  ;;  %v2609_v40 = vadd.f32 %v2608_v12, %v2486_v63 }
 0x2d8   : > { %v1766_v18 = vpop.f32.mrf.mxu2  ;;  %v2404_v31 = vadd.f32 %v2403_v39, %v2285_v20  ;;  %v2498_v16 = vmul.f32 %v2291_v33, %v2291_v33 }
 0x2d9   : > { %v2682_v4 = vpack.c.bf16 %v2038_v28, %v2038_v28  ;;  %v2372_v2 = vadd.f32 %v2371_v55, %v2299_v3  ;;  %v2506_v0 = vmul.f32 %v2299_v3, %v2299_v3  ;;  %2747 = vst [vmem:[%s5060_s17 + $0x15c] sm:$0xff] %v2683_v34  ;;  %v1855_v32 = vpop.f32.mrf.mxu3  ;;  %v1767_v8 = vadd.f32 %v1766_v18, %v5046_v6 }
 0x2da   : > { %v1680_v21 = vpop.f32.mrf.mxu1  ;;  %v2610_v51 = vadd.f32 %v2609_v40, %v2489_v15  ;;  %v2294_v34 = vmul.f32 %v4989_v26, %v5352_v9  ;;  %v2405_v17 = vadd.f32 %v2404_v31, %v2288_v23 }
 0x2db   : > { %2746 = vst [vmem:[%s5060_s17 + $0x158] sm:$0xf] %v2682_v4  ;;  %v2579_v22 = vadd.f32 %v2578_v5, %v2506_v0  ;;  %v1681_v50 = vadd.f32 %v1680_v21, %v5794_v35  ;;  %v1856_v37 = vadd.f32 %v1855_v32, %v1767_v8  ;;  %v2297_v4 = vmul.f32 %v5003_v49, %v2038_v28 }
 0x2dc   : > { %v1947_v47 = vpop.f32.mrf.mxu0  ;;  %v2611_v3 = vadd.f32 %v2610_v51, %v2492_v59  ;;  %v2406_v8 = vadd.f32 %v2405_v17, %v2291_v33  ;;  %v2501_v21 = vmul.f32 %v2294_v34, %v2294_v34 }
 0x2dd   : > { %v2043_v13 = vmax.f32 %v1681_v50, 0.0  ;;  %v1945_v29 = vadd.f32 %v1944_v7, %v1856_v37  ;;  %v2504_v14 = vmul.f32 %v2297_v4, %v2297_v4 }
 0x2de   : > { %v2612_v0 = vadd.f32 %v2611_v3, %v2495_v48  ;;  %v2407_v50 = vadd.f32 %v2406_v8, %v2294_v34 }
 0x2df   : > { %v2302_v62 = vmul.f32 %v5023_v10, %v2043_v13  ;;  %v2685_v1 = vpack.c.bf16 %v2043_v13, %v5795_v57  ;;  %v2041_v44 = vmax.f32 %v1945_v29, 0.0 }
 0x2e0   : > { %v1769_v43 = vpop.f32.mrf.mxu2  ;;  %v2408_v20 = vadd.f32 %v2407_v50, %v2297_v4 }
 0x2e1   : > { %v2373_v27 = vadd.f32 %v2372_v2, %v2302_v62  ;;  %v2509_v55 = vmul.f32 %v2302_v62, %v2302_v62  ;;  %2749 = vst [vmem:[%s5060_s17 + $0x168] sm:$0xff] %v2685_v1  ;;  %v1770_v36 = vadd.f32 %v1769_v43, %v5046_v6  ;;  %v1858_v58 = vpop.f32.mrf.mxu3  ;;  %v2684_v60 = vpack.c.bf16 %v2041_v44, %v2041_v44 }
 0x2e2   : > { %v1682_v61 = vpop.f32.mrf.mxu1  ;;  %v2300_v26 = vmul.f32 %v5017_v52, %v2041_v44 }
 0x2e3   : > { %v2580_v54 = vadd.f32 %v2579_v22, %v2509_v55  ;;  %v1859_v5 = vadd.f32 %v1858_v58, %v1770_v36  ;;  %v1683_v45 = vadd.f32 %v1682_v61, %v5048_v19  ;;  %2748 = vst [vmem:[%s5060_s17 + $0x164] sm:$0xf] %v2684_v60  ;;  %v2613_v22 = vadd.f32 %v2612_v0, %v2498_v16 }
 0x2e4   : > { %v1949_v13 = vpop.f32.mrf.mxu0  ;;  %v2507_v29 = vmul.f32 %v2300_v26, %v2300_v26  ;;  %v2409_v1 = vadd.f32 %v2408_v20, %v2300_v26 }
 0x2e5   : > { %v1948_v11 = vadd.f32 %v1947_v47, %v1859_v5  ;;  %v2046_v42 = vmax.f32 %v1683_v45, 0.0  ;;  %v2614_v63 = vadd.f32 %v2613_v22, %v2501_v21 }
 0x2e7   : > { %v2044_v18 = vmax.f32 %v1948_v11, 0.0  ;;  %v2305_v56 = vmul.f32 %v5038_v30, %v2046_v42  ;;  %v2687_v19 = vpack.c.bf16 %v2046_v42, %v2045_v41 }
 0x2e8   : > { %v1771_v2 = vpop.f32.mrf.mxu2 }
 0x2e9   : > { %v2686_v7 = vpack.c.bf16 %v2044_v18, %v2044_v18  ;;  %v2374_v32 = vadd.f32 %v2373_v27, %v2305_v56  ;;  %v2512_v53 = vmul.f32 %v2305_v56, %v2305_v56  ;;  %2751 = vst [vmem:[%s5060_s17 + $0x174] sm:$0xff] %v2687_v19  ;;  %v1772_v9 = vadd.f32 %v1771_v2, %v5046_v6  ;;  %v1860_v41 = vpop.f32.mrf.mxu3 }
 0x2ea   : > { %v2303_v49 = vmul.f32 %v5023_v10, %v2044_v18  ;;  %v2615_v6 = vadd.f32 %v2614_v63, %v2504_v14 }
 0x2eb   : > { %2750 = vst [vmem:[%s5060_s17 + $0x170] sm:$0xf] %v2686_v7  ;;  %v2375_v35 = vrot.slane %v2374_v32, 4  ;;  %v2581_v25 = vadd.f32 %v2580_v54, %v2512_v53  ;;  %v1861_v28 = vadd.f32 %v1860_v41, %v1772_v9 }
 0x2ec   : > { %v2510_v24 = vmul.f32 %v2303_v49, %v2303_v49  ;;  %v2616_v43 = vadd.f32 %v2615_v6, %v2507_v29  ;;  %v2410_v23 = vadd.f32 %v2409_v1, %v2303_v49 }
 0x2ed   : > { %v2376_v38 = vadd.f32 %v2375_v35, %v2374_v32  ;;  %v2582_v37 = vrot.slane %v2581_v25, 4  ;;  %v1950_v62 = vadd.f32 %v1949_v13, %v1861_v28 }
 0x2ee   : > { %v2617_v58 = vadd.f32 %v2616_v43, %v2510_v24 }
 0x2ef   : > { %v2377_v52 = vrot.slane %v2376_v38, 2  ;;  %v2583_v57 = vadd.f32 %v2582_v37, %v2581_v25  ;;  %v2047_v12 = vmax.f32 %v1950_v62, 0.0 }
 0x2f1   : > { %v2378_v15 = vadd.f32 %v2377_v52, %v2376_v38  ;;  %v2584_v44 = vrot.slane %v2583_v57, 2  ;;  %v2306_v10 = vmul.f32 %v5038_v30, %v2047_v12  ;;  %v2688_v27 = vpack.c.bf16 %v2047_v12, %v2047_v12 }
 0x2f3   : > { %v2379_v55 = vrot.slane %v2378_v15, 1  ;;  %v2585_v36 = vadd.f32 %v2584_v44, %v2583_v57  ;;  %v2411_v46 = vadd.f32 %v2410_v23, %v2306_v10  ;;  %v2513_v40 = vmul.f32 %v2306_v10, %v2306_v10  ;;  %2752 = vst [vmem:[%s5060_s17 + $0x17c] sm:$0xf] %v2688_v27 }
 0x2f5   : > { %v2586_v59 = vrot.slane %v2585_v36, 1  ;;  %v2412_v60 = vrot.slane %v2411_v46, 4  ;;  %v2618_v61 = vadd.f32 %v2617_v58, %v2513_v40  ;;  %v2380_v33 = vadd.f32 %v2379_v55, %v2378_v15 }
 0x2f7   : > { %v2587_v54 = vadd.f32 %v2586_v59, %v2585_v36  ;;  %v2413_v47 = vadd.f32 %v2412_v60, %v2411_v46  ;;  %v2619_v5 = vrot.slane %v2618_v61, 4 }
 0x2f9   : > { %v2755_v45 = vsel %vm2753_vm0, %v2380_v33, %v2587_v54  ;;  %v2414_v39 = vrot.slane %v2413_v47, 2  ;;  %v2620_v51 = vadd.f32 %v2619_v5, %v2618_v61 }
 0x2fa   : > { %v2759_v30 = vsel %vm2757_vm1, %v2755_v45, 0.0 }
 0x2fb   : > { %2762 = vst [vmem:[%s5087_s20 + $0x8] sm:$0xff] %v2759_v30  ;;  %v2415_v48 = vadd.f32 %v2414_v39, %v2413_v47  ;;  %v2621_v11 = vrot.slane %v2620_v51, 2 }
 0x2fd   : > { %v2416_v42 = vrot.slane %v2415_v48, 1  ;;  %v2622_v31 = vadd.f32 %v2621_v11, %v2620_v51 }
 0x2ff   : > { %v2623_v3 = vrot.slane %v2622_v31, 1  ;;  %v2417_v34 = vadd.f32 %v2416_v42, %v2415_v48 }
 0x301   : > { %v2624_v16 = vadd.f32 %v2623_v3, %v2622_v31 }
 0x303   : > { %v2756_v18 = vsel %vm2753_vm0, %v2417_v34, %v2624_v16 }
 0x304   : > { %v2760_v56 = vsel %vm2757_vm1, %v2756_v18, 0.0 }
 0x305   : > { %2763 = vst [vmem:[%s5087_s20 + $0x10] sm:$0xff] %v2760_v56 }
 0x306 PF: > { %s16_s18 = sadd.s32 1, %s3315_s18  }
 0x307   : > { %p13_p5 = scmp.ge.s32.totalorder %s16_s18, 5  }
 0x309   :  { %15 = sbr.rel (!%p13_p5) target bundleno = 1 (0x1), region = 79 }

// kernel: graph_net_auto_center.12
= control target key start
LH: loop header
LB: loop body
LE: loop exit
PB: predicated region body
PF: predicated region fallthrough
CT: control target
= control target key end

     0   :  { %s4349_s27 = smov 0   ;;  %s6835_s0 = inlined_call_operand.vmem [shape: bf16[768,384], index: 0, kind: input, shape index: {}]   ;;  %s6836_s1 = inlined_call_operand.vmem [shape: bf16[768,128], index: 1, kind: input, shape index: {}]   ;;  %s6837_s2 = inlined_call_operand.vmem [shape: f32[8,384], index: 2, kind: input, shape index: {}]   ;;  %s6838_s3 = inlined_call_operand.vmem [shape: f32[8,128], index: 3, kind: input, shape index: {}]   ;;  %s6839_s4 = inlined_call_operand.vmem [shape: bf16[384,384], index: 4, kind: input, shape index: {}]   ;;  %s6840_s5 = inlined_call_operand.vmem [shape: bf16[128,384], index: 5, kind: input, shape index: {}]   ;;  %s6841_s6 = inlined_call_operand.vmem [shape: f32[8,384], index: 6, kind: input, shape index: {}]   ;;  %s6842_s7 = inlined_call_operand.vmem [shape: bf16[768,384], index: 7, kind: output, shape index: {0}]   ;;  %s6843_s8 = inlined_call_operand.vmem [shape: f32[3,8,384], index: 8, kind: output, shape index: {1}]  }
   0x1 LB: > { %s4355_s28 = sadd.s32 4294967295, %s4301_s27   ;;  %p3645_p0 = scmp.ge.s32.totalorder %s4301_s27, 1  ;;  %s4301_s27 = sphi %s4349_s27, %s19_s27  }
   0x2   : > { %p278_p1 = scmp.lt.s32.totalorder %s4301_s27, 4 }
   0x4   : > { %p279_p2 = pnand %p3645_p0, %p278_p1 }
   0x6   : > { %282 = sbr.rel (%p279_p2) target bundleno = 970 (0x3ca), region = 48 }
   0xb   : > { %v3740_v0 = vld [vmem:[%s6840_s5 + $0xa8] sm:$0xf]  ;;  %v4167_v1 = vld [vmem:[%s6840_s5 + $0xb0] sm:$0xf0]  ;;  %v4166_v2 = vld [vmem:[%s6840_s5 + $0xac] sm:$0xf] }
   0xc   : > { %v3741_v3 = vor.u32 %v4167_v1, %v3740_v0  ;;  %v3742_v4 = vld [vmem:[%s6840_s5 + $0xb4] sm:$0xf0]  ;;  %v3748_v5 = vld [vmem:[%s6840_s5 + $0xb0] sm:$0xf]  ;;  %v4168_v6 = vld [vmem:[%s6840_s5 + $0xb8] sm:$0xf0] }
   0xd   : > { %v3745_v7 = vor.u32 %v4166_v2, %v3742_v4  ;;  %v3749_v8 = vor.u32 %v4168_v6, %v3748_v5  ;;  %v3836_v9 = vld [vmem:[%s6839_s4 + $0xa8] sm:$0xf]  ;;  %v4095_v10 = vld [vmem:[%s6839_s4 + $0xb0] sm:$0xf0]  ;;  %v3728_v11 = vld [vmem:[%s6840_s5 + $0x90] sm:$0xf] }
   0xe   : > { %1170 = vmatpush.bf16.msra.mxu0 %v3741_v3  ;;  %v3837_v12 = vor.u32 %v4095_v10, %v3836_v9  ;;  %v4164_v13 = vld [vmem:[%s6840_s5 + $0x98] sm:$0xf0]  ;;  %v4163_v14 = vld [vmem:[%s6840_s5 + $0x94] sm:$0xf]  ;;  %v3730_v15 = vld [vmem:[%s6840_s5 + $0x9c] sm:$0xf0] }
   0xf   : > { %1259 = vmatpush.bf16.msra.mxu1 %v3745_v7  ;;  %1348 = vmatpush.bf16.msra.mxu2 %v3749_v8  ;;  %v3729_v16 = vor.u32 %v4164_v13, %v3728_v11  ;;  %v3733_v17 = vor.u32 %v4163_v14, %v3730_v15  ;;  %v3736_v18 = vld [vmem:[%s6840_s5 + $0x98] sm:$0xf]  ;;  %v4165_v19 = vld [vmem:[%s6840_s5 + $0xa0] sm:$0xf0]  ;;  %v3824_v20 = vld [vmem:[%s6839_s4 + $0x90] sm:$0xf] }
  0x10   : > { %1821 = vmatpush.bf16.msra.mxu3 %v3837_v12  ;;  %v3737_v21 = vor.u32 %v4165_v19, %v3736_v18  ;;  %v4092_v22 = vld [vmem:[%s6839_s4 + $0x98] sm:$0xf0]  ;;  %v3716_v23 = vld [vmem:[%s6840_s5 + $0x78] sm:$0xf]  ;;  %v4161_v24 = vld [vmem:[%s6840_s5 + $0x80] sm:$0xf0] }
  0x11   : > { %v3825_v25 = vor.u32 %v4092_v22, %v3824_v20  ;;  %v4160_v26 = vld [vmem:[%s6840_s5 + $0x7c] sm:$0xf]  ;;  %v3718_v27 = vld [vmem:[%s6840_s5 + $0x84] sm:$0xf0]  ;;  %v3724_v28 = vld [vmem:[%s6840_s5 + $0x80] sm:$0xf]  ;;  %v3717_v29 = vor.u32 %v4161_v24, %v3716_v23 }
  0x12   : > { %1171 = vmatpush.bf16.msra.mxu0 %v3729_v16  ;;  %v4162_v30 = vld [vmem:[%s6840_s5 + $0x88] sm:$0xf0]  ;;  %v3812_v31 = vld [vmem:[%s6839_s4 + $0x78] sm:$0xf]  ;;  %v4089_v32 = vld [vmem:[%s6839_s4 + $0x80] sm:$0xf0]  ;;  %v3721_v33 = vor.u32 %v4160_v26, %v3718_v27 }
  0x13   : > { %1260 = vmatpush.bf16.msra.mxu1 %v3733_v17  ;;  %1349 = vmatpush.bf16.msra.mxu2 %v3737_v21  ;;  %v3725_v34 = vor.u32 %v4162_v30, %v3724_v28  ;;  %v3704_v35 = vld [vmem:[%s6840_s5 + $0x60] sm:$0xf]  ;;  %v4158_v36 = vld [vmem:[%s6840_s5 + $0x68] sm:$0xf0]  ;;  %v4157_v37 = vld [vmem:[%s6840_s5 + $0x64] sm:$0xf]  ;;  %v3813_v38 = vor.u32 %v4089_v32, %v3812_v31 }
  0x14   : > { %1822 = vmatpush.bf16.msra.mxu3 %v3825_v25  ;;  %v3706_v39 = vld [vmem:[%s6840_s5 + $0x6c] sm:$0xf0]  ;;  %v3712_v40 = vld [vmem:[%s6840_s5 + $0x68] sm:$0xf]  ;;  %v4159_v41 = vld [vmem:[%s6840_s5 + $0x70] sm:$0xf0]  ;;  %v3705_v44 = vor.u32 %v4158_v36, %v3704_v35 }
  0x15   : > { %v3800_v42 = vld [vmem:[%s6839_s4 + $0x60] sm:$0xf]  ;;  %v4086_v43 = vld [vmem:[%s6839_s4 + $0x68] sm:$0xf0]  ;;  %v3709_v45 = vor.u32 %v4157_v37, %v3706_v39  ;;  %v3713_v46 = vor.u32 %v4159_v41, %v3712_v40  ;;  %v3692_v47 = vld [vmem:[%s6840_s5 + $0x48] sm:$0xf] }
  0x16   : > { %1172 = vmatpush.bf16.msra.mxu0 %v3717_v29  ;;  %v4155_v48 = vld [vmem:[%s6840_s5 + $0x50] sm:$0xf0]  ;;  %v4154_v49 = vld [vmem:[%s6840_s5 + $0x4c] sm:$0xf]  ;;  %v3801_v50 = vor.u32 %v4086_v43, %v3800_v42  ;;  %v3694_v51 = vld [vmem:[%s6840_s5 + $0x54] sm:$0xf0] }
  0x17   : > { %1261 = vmatpush.bf16.msra.mxu1 %v3721_v33  ;;  %1350 = vmatpush.bf16.msra.mxu2 %v3725_v34  ;;  %v3700_v52 = vld [vmem:[%s6840_s5 + $0x50] sm:$0xf]  ;;  %v4156_v53 = vld [vmem:[%s6840_s5 + $0x58] sm:$0xf0]  ;;  %v3788_v54 = vld [vmem:[%s6839_s4 + $0x48] sm:$0xf]  ;;  %v3693_v56 = vor.u32 %v4155_v48, %v3692_v47  ;;  %v3697_v57 = vor.u32 %v4154_v49, %v3694_v51 }
  0x18   : > { %1823 = vmatpush.bf16.msra.mxu3 %v3813_v38  ;;  %v4083_v55 = vld [vmem:[%s6839_s4 + $0x50] sm:$0xf0]  ;;  %v3701_v58 = vor.u32 %v4156_v53, %v3700_v52  ;;  %v3680_v59 = vld [vmem:[%s6840_s5 + $0x30] sm:$0xf]  ;;  %v4152_v60 = vld [vmem:[%s6840_s5 + $0x38] sm:$0xf0] }
  0x19   : > { %v4151_v61 = vld [vmem:[%s6840_s5 + $0x34] sm:$0xf]  ;;  %v3789_v62 = vor.u32 %v4083_v55, %v3788_v54  ;;  %v3682_v63 = vld [vmem:[%s6840_s5 + $0x3c] sm:$0xf0]  ;;  %v3688_v0 = vld [vmem:[%s6840_s5 + $0x38] sm:$0xf]  ;;  %v3681_v5 = vor.u32 %v4152_v60, %v3680_v59 }
  0x1a   : > { %1173 = vmatpush.bf16.msra.mxu0 %v3705_v44  ;;  %v4153_v1 = vld [vmem:[%s6840_s5 + $0x40] sm:$0xf0]  ;;  %v3776_v2 = vld [vmem:[%s6839_s4 + $0x30] sm:$0xf]  ;;  %v4080_v3 = vld [vmem:[%s6839_s4 + $0x38] sm:$0xf0]  ;;  %v3685_v9 = vor.u32 %v4151_v61, %v3682_v63 }
  0x1b   : > { %1262 = vmatpush.bf16.msra.mxu1 %v3709_v45  ;;  %1351 = vmatpush.bf16.msra.mxu2 %v3713_v46  ;;  %v3668_v4 = vld [vmem:[%s6840_s5 + $0x18] sm:$0xf]  ;;  %v4149_v6 = vld [vmem:[%s6840_s5 + $0x20] sm:$0xf0]  ;;  %v4148_v7 = vld [vmem:[%s6840_s5 + $0x1c] sm:$0xf]  ;;  %v3689_v10 = vor.u32 %v4153_v1, %v3688_v0  ;;  %v3777_v14 = vor.u32 %v4080_v3, %v3776_v2 }
  0x1c   : > { %1824 = vmatpush.bf16.msra.mxu3 %v3801_v50  ;;  %v3670_v8 = vld [vmem:[%s6840_s5 + $0x24] sm:$0xf0]  ;;  %v3676_v11 = vld [vmem:[%s6840_s5 + $0x20] sm:$0xf]  ;;  %v4150_v12 = vld [vmem:[%s6840_s5 + $0x28] sm:$0xf0]  ;;  %v3669_v18 = vor.u32 %v4149_v6, %v3668_v4 }
  0x1d   : > { %v3764_v13 = vld [vmem:[%s6839_s4 + $0x18] sm:$0xf]  ;;  %v4077_v15 = vld [vmem:[%s6839_s4 + $0x20] sm:$0xf0]  ;;  %s3646_s19 = sshll.u32 %s4355_s28, 5  ;;  %v3673_v24 = vor.u32 %v4148_v7, %v3670_v8  ;;  %v3677_v25 = vor.u32 %v4150_v12, %v3676_v11  ;;  %p344_p4 = scmp.lt.s32.totalorder %s4355_s28, 2 }
  0x1e   : > { %1174 = vmatpush.bf16.msra.mxu0 %v3693_v56  ;;  %v3656_v16 = vld [vmem:[%s6840_s5] sm:$0xf]  ;;  %v4146_v17 = vld [vmem:[%s6840_s5 + $0x8] sm:$0xf0]  ;;  %p325_p3 = scmp.lt.s32.totalorder %s3646_s19, 95  ;;  %v3765_v28 = vor.u32 %v4077_v15, %v3764_v13 }
  0x1f   : > { %1263 = vmatpush.bf16.msra.mxu1 %v3697_v57  ;;  %1352 = vmatpush.bf16.msra.mxu2 %v3701_v58  ;;  %v4145_v19 = vld [vmem:[%s6840_s5 + $0x4] sm:$0xf]  ;;  %v3658_v20 = vld [vmem:[%s6840_s5 + $0xc] sm:$0xf0]  ;;  %v3664_v21 = vld [vmem:[%s6840_s5 + $0x8] sm:$0xf]  ;;  %v3657_v34 = vor.u32 %v4146_v17, %v3656_v16 }
  0x20   : > { %1825 = vmatpush.bf16.msra.mxu3 %v3789_v62  ;;  %v4147_v22 = vld [vmem:[%s6840_s5 + $0x10] sm:$0xf0]  ;;  %v3752_v23 = vld [vmem:[%s6839_s4] sm:$0xf]  ;;  %v4074_v26 = vld [vmem:[%s6839_s4 + $0x8] sm:$0xf0]  ;;  %v3661_v38 = vor.u32 %v4145_v19, %v3658_v20 }
  0x21   : > { %s7359_s19 = smov (!%p325_p3, %s3646_s19), 95  ;;  %v349_v27 = vld [vmem:[%s6837_s2] ss:$8 sm:$0x7]  ;;  %v4094_v31 = vld [vmem:[%s6839_s4 + $0xac] sm:$0xf]  ;;  %v3665_v39 = vor.u32 %v4147_v22, %v3664_v21  ;;  %v3753_v40 = vor.u32 %v4074_v26, %v3752_v23 }
  0x22   : > { %1175 = vmatpush.bf16.msra.mxu0 %v3681_v5  ;;  %v4560_v29 = vld [vmem:[%s6838_s3] ss:$0 sm:$0xff]  ;;  %v3653_v30 = vld [vmem:[%s6837_s2 + $0x1] ss:$8 sm:$0x7]  ;;  %s4248_s25 = smul.u32 12, %s7359_s19 }
  0x23   : > { %1264 = vmatpush.bf16.msra.mxu1 %v3685_v9  ;;  %1353 = vmatpush.bf16.msra.mxu2 %v3689_v10  ;;  %s3649_s26 = sshll.u32 %s7359_s19, 2  ;;  %v3838_v32 = vld [vmem:[%s6839_s4 + $0xb4] sm:$0xf0]  ;;  %v4118_v33 = vld [vmem:[%s6839_s4 + $0x16c] sm:$0xf]  ;;  %v4598_v42 = vperm.slane %v349_v27, 0 }
  0x24   : > { %1826 = vmatpush.bf16.msra.mxu3 %v3777_v14  ;;  %s4579_s13 = scalar_lea.vmem %s6836_s1, %s3649_s26  ;;  %v3934_v35 = vld [vmem:[%s6839_s4 + $0x174] sm:$0xf0]  ;;  %v4028_v36 = vld [vmem:[%s6839_s4 + $0x228] sm:$0xf]  ;;  %v4143_v37 = vld [vmem:[%s6839_s4 + $0x230] sm:$0xf0]  ;;  %s4596_s23 = scalar_lea.vmem %s6835_s0, %s4248_s25  ;;  %v3841_v51 = vor.u32 %v4094_v31, %v3838_v32 }
  0x25   : > { %v4170_v41 = vld [vmem:[%s4579_s13] sm:$0xff]   ;;  %v3932_v43 = vld [vmem:[%s6839_s4 + $0x168] sm:$0xf]  ;;  %v4119_v44 = vld [vmem:[%s6839_s4 + $0x170] sm:$0xf0]  ;;  %v4617_v50 = vperm.slane %v3653_v30, 0  ;;  %v3937_v54 = vor.u32 %v4118_v33, %v3934_v35  ;;  %v4029_v55 = vor.u32 %v4143_v37, %v4028_v36  ;;  %s6420_s16 = scalar_lea.vmem %s6842_s7, %s4248_s25 }
  0x26   : > { %1176 = vmatpush.bf16.msra.mxu0 %v3669_v18  ;;  %v4171_v45 = vunpack.c.l.bf16 %v4170_v41  ;;  %v4172_v46 = vunpack.c.h.bf16 %v4170_v41  ;;  %v4609_v47 = vld [vmem:[%s6838_s3 + $0x1] ss:$0 sm:$0xff]  ;;  %v4615_v49 = vld [vmem:[%s4596_s23 + $0xc] sm:$0xff]  ;;  %v3933_v58 = vor.u32 %v4119_v44, %v3932_v43  ;;  %v356_v3 = vld [vmem:[%s4596_s23 + $0x18] sm:$0xff] }
  0x27   : > { %1265 = vmatpush.bf16.msra.mxu1 %v3673_v24  ;;  %1354 = vmatpush.bf16.msra.mxu2 %v3677_v25  ;;  %v4612_v48 = vld [vmem:[%s4596_s23] sm:$0xff]  ;;  %v419_v53 = vunpack.c.l.bf16 %v4615_v49  ;;  %v4233_v1 = vld [vmem:[%s4579_s13 + $0x8] sm:$0xff]   ;;  %v422_v8 = vunpack.c.l.bf16 %v356_v3  ;;  %v4091_v10 = vld [vmem:[%s6839_s4 + $0x94] sm:$0xf] }
  0x28   : > { %1827 = vmatpush.bf16.msra.mxu3 %v3765_v28  ;;  %v416_v52 = vunpack.c.l.bf16 %v4612_v48  ;;  %v929_v56 = vmul.f32 %v4560_v29, %v4171_v45  ;;  %v930_v57 = vmul.f32 %v4560_v29, %v4172_v46  ;;  %v358_v4 = vld [vmem:[%s4596_s23 + $0x24] sm:$0xff]  ;;  %v4175_v6 = vunpack.c.l.bf16 %v4233_v1  ;;  %v3826_v11 = vld [vmem:[%s6839_s4 + $0x9c] sm:$0xf0]  ;;  %v4115_v12 = vld [vmem:[%s6839_s4 + $0x154] sm:$0xf] }
  0x29   : > { %v522_v60 = vmul.f32 %v4598_v42, %v419_v53  ;;  %v4176_v7 = vunpack.c.h.bf16 %v4233_v1  ;;  %v425_v9 = vunpack.c.l.bf16 %v358_v4  ;;  %v3829_v13 = vor.u32 %v4091_v10, %v3826_v11  ;;  %v3922_v14 = vld [vmem:[%s6839_s4 + $0x15c] sm:$0xf0]  ;;  %v4016_v15 = vld [vmem:[%s6839_s4 + $0x210] sm:$0xf]  ;;  %v4140_v16 = vld [vmem:[%s6839_s4 + $0x218] sm:$0xf0] }
  0x2a   : > { %1177 = vmatpush.bf16.msra.mxu0 %v3657_v34  ;;  %v519_v59 = vmul.f32 %v4598_v42, %v416_v52  ;;  %v962_v61 = vadd.f32 %v4609_v47, %v929_v56  ;;  %v963_v62 = vadd.f32 %v4609_v47, %v930_v57  ;;  %v3925_v17 = vor.u32 %v4115_v12, %v3922_v14  ;;  %v3920_v19 = vld [vmem:[%s6839_s4 + $0x150] sm:$0xf]  ;;  %v4116_v20 = vld [vmem:[%s6839_s4 + $0x158] sm:$0xf0]  ;;  %v364_v56 = vld [vmem:[%s4596_s23 + $0x48] sm:$0xff] }
  0x2b   : > { %1266 = vmatpush.bf16.msra.mxu1 %v3661_v38  ;;  %1355 = vmatpush.bf16.msra.mxu2 %v3665_v39  ;;  %v625_v0 = vadd.f32 %v4617_v50, %v522_v60  ;;  %v4017_v18 = vor.u32 %v4140_v16, %v4016_v15  ;;  %v931_v21 = vmul.f32 %v4560_v29, %v4175_v6  ;;  %v4234_v33 = vld [vmem:[%s4579_s13 + $0x10] sm:$0xff]   ;;  %v362_v35 = vld [vmem:[%s4596_s23 + $0x3c] sm:$0xff]  ;;  %v434_v60 = vunpack.c.l.bf16 %v364_v56  ;;  %v4004_v3 = vld [vmem:[%s6839_s4 + $0x1f8] sm:$0xf] }
  0x2c   : > { %1828 = vmatpush.bf16.msra.mxu3 %v3753_v40  ;;  %v622_v63 = vadd.f32 %v4617_v50, %v519_v59  ;;  %v994_v2 = vpack.c.bf16 %v963_v62, %v962_v61  ;;  %v932_v22 = vmul.f32 %v4560_v29, %v4176_v7  ;;  %v3921_v23 = vor.u32 %v4116_v20, %v3920_v19  ;;  %v360_v34 = vld [vmem:[%s4596_s23 + $0x30] sm:$0xff]  ;;  %v4088_v62 = vld [vmem:[%s6839_s4 + $0x7c] sm:$0xf]  ;;  %v4137_v4 = vld [vmem:[%s6839_s4 + $0x200] sm:$0xf0] }
  0x2d   : > { %v525_v24 = vmul.f32 %v4598_v42, %v422_v8  ;;  %v528_v25 = vmul.f32 %v4598_v42, %v425_v9  ;;  %v964_v26 = vadd.f32 %v4609_v47, %v931_v21  ;;  %v4179_v36 = vunpack.c.l.bf16 %v4234_v33  ;;  %v366_v57 = vld [vmem:[%s4596_s23 + $0x54] sm:$0xff]  ;;  %v4113_v9 = vld [vmem:[%s6839_s4 + $0x140] sm:$0xf0] }
  0x2e   : > { %1910 = vmatpush.bf16.msrb.mxu0 %v3933_v58  ;;  %v4632_v5 = vpack.c.bf16 %v625_v0, %v622_v63  ;;  %1267 = vmatmul.bf16.vlgmr.msra.gmra.mxu1 %v994_v2  ;;  %v965_v27 = vadd.f32 %v4609_v47, %v932_v22  ;;  %v4180_v37 = vunpack.c.h.bf16 %v4234_v33  ;;  %v428_v38 = vunpack.c.l.bf16 %v360_v34  ;;  %v3814_v63 = vld [vmem:[%s6839_s4 + $0x84] sm:$0xf0]  ;;  %v4112_v0 = vld [vmem:[%s6839_s4 + $0x13c] sm:$0xf]  ;;  %v3908_v8 = vld [vmem:[%s6839_s4 + $0x138] sm:$0xf] }
  0x2f   : > { %2088 = vmatpush.bf16.msrb.mxu2 %v3841_v51  ;;  %1999 = vmatpush.bf16.msrb.mxu1 %v4029_v55  ;;  %v628_v28 = vadd.f32 %v4617_v50, %v525_v24  ;;  %v631_v30 = vadd.f32 %v4617_v50, %v528_v25  ;;  %v431_v39 = vunpack.c.l.bf16 %v362_v35  ;;  %v933_v40 = vmul.f32 %v4560_v29, %v4179_v36  ;;  %v4235_v55 = vld [vmem:[%s4579_s13 + $0x18] sm:$0xff]   ;;  %v4236_v21 = vld [vmem:[%s4579_s13 + $0x20] sm:$0xff]  }
  0x30   : > { %2177 = vmatpush.bf16.msrb.mxu3 %v3937_v54  ;;  %6965 = vst [vmem:[#allocation2_spill] sm:$0xff] %v4632_v5  ;;  %1178 = vmatmul.bf16.vlgmr.msra.gmra.mxu0 %v994_v2  ;;  %v995_v31 = vpack.c.bf16 %v965_v27, %v964_v26  ;;  %v934_v41 = vmul.f32 %v4560_v29, %v4180_v37  ;;  %v4183_v58 = vunpack.c.l.bf16 %v4235_v55  ;;  %v4184_v59 = vunpack.c.h.bf16 %v4235_v55  ;;  %v368_v22 = vld [vmem:[%s4596_s23 + $0x60] sm:$0xff] }
  0x31   : > { %1356 = vmatmul.bf16.vlgmr.msra.gmra.mxu2 %v994_v2  ;;  %1829 = vmatmul.bf16.vlgmr.msra.gmra.mxu3 %v4632_v5  ;;  %v4667_v32 = vpack.c.bf16 %v631_v30, %v628_v28  ;;  %v531_v43 = vmul.f32 %v4598_v42, %v428_v38  ;;  %v534_v44 = vmul.f32 %v4598_v42, %v431_v39  ;;  %v437_v61 = vunpack.c.l.bf16 %v366_v57  ;;  %v3910_v2 = vld [vmem:[%s6839_s4 + $0x144] sm:$0xf0]  ;;  %v4109_v55 = vld [vmem:[%s6839_s4 + $0x124] sm:$0xf]  ;;  %v3898_v57 = vld [vmem:[%s6839_s4 + $0x12c] sm:$0xf0] }
  0x32   : > { %1911 = vmatpush.bf16.msrb.mxu0 %v3921_v23  ;;  %v966_v45 = vadd.f32 %v4609_v47, %v933_v40  ;;  %v967_v46 = vadd.f32 %v4609_v47, %v934_v41  ;;  %v3817_v1 = vor.u32 %v4088_v62, %v3814_v63  ;;  %v3913_v6 = vor.u32 %v4112_v0, %v3910_v2  ;;  %v370_v23 = vld [vmem:[%s4596_s23 + $0x6c] sm:$0xff]  ;;  %v372_v41 = vld [vmem:[%s4596_s23 + $0x78] sm:$0xff]  ;;  %v3896_v62 = vld [vmem:[%s6839_s4 + $0x120] sm:$0xf] }
  0x33   : > { %2089 = vmatpush.bf16.msrb.mxu2 %v3829_v13  ;;  %2000 = vmatpush.bf16.msrb.mxu1 %v4017_v18  ;;  %6966 = vst [vmem:[#allocation3_spill] sm:$0xff] %v4667_v32  ;;  %v634_v51 = vadd.f32 %v4617_v50, %v531_v43  ;;  %v637_v52 = vadd.f32 %v4617_v50, %v534_v44  ;;  %v4187_v24 = vunpack.c.l.bf16 %v4236_v21  ;;  %v4188_v25 = vunpack.c.h.bf16 %v4236_v21  ;;  %v4237_v40 = vld [vmem:[%s4579_s13 + $0x28] sm:$0xff]  }
  0x34   : > { %2178 = vmatpush.bf16.msrb.mxu3 %v3925_v17  ;;  %v996_v53 = vpack.c.bf16 %v967_v46, %v966_v45  ;;  %v4005_v7 = vor.u32 %v4137_v4, %v4004_v3  ;;  %v935_v10 = vmul.f32 %v4560_v29, %v4183_v58  ;;  %v936_v11 = vmul.f32 %v4560_v29, %v4184_v59  ;;  %v374_v43 = vld [vmem:[%s4596_s23 + $0x84] sm:$0xff]  ;;  %v3992_v58 = vld [vmem:[%s6839_s4 + $0x1e0] sm:$0xf]  ;;  %v4134_v59 = vld [vmem:[%s6839_s4 + $0x1e8] sm:$0xf0] }
  0x35   : > { %v4681_v54 = vpack.c.bf16 %v637_v52, %v634_v51  ;;  %v3909_v12 = vor.u32 %v4113_v9, %v3908_v8  ;;  %v537_v13 = vmul.f32 %v4598_v42, %v434_v60  ;;  %v540_v14 = vmul.f32 %v4598_v42, %v437_v61  ;;  %v4085_v52 = vld [vmem:[%s6839_s4 + $0x64] sm:$0xf]  ;;  %v4110_v63 = vld [vmem:[%s6839_s4 + $0x128] sm:$0xf0] }
  0x36   : > { %v968_v15 = vadd.f32 %v4609_v47, %v935_v10  ;;  %v969_v16 = vadd.f32 %v4609_v47, %v936_v11  ;;  %v440_v26 = vunpack.c.l.bf16 %v368_v22  ;;  %v443_v27 = vunpack.c.l.bf16 %v370_v23 }
  0x37   : > { %6967 = vst [vmem:[#allocation4_spill] sm:$0xff] %v4681_v54  ;;  %2090 = vmatpush.bf16.msrb.mxu2 %v3817_v1  ;;  %2001 = vmatpush.bf16.msrb.mxu1 %v4005_v7  ;;  %v640_v17 = vadd.f32 %v4617_v50, %v537_v13  ;;  %v643_v18 = vadd.f32 %v4617_v50, %v540_v14  ;;  %v4191_v44 = vunpack.c.l.bf16 %v4237_v40  ;;  %v4192_v45 = vunpack.c.h.bf16 %v4237_v40  ;;  %v376_v13 = vld [vmem:[%s4596_s23 + $0x90] sm:$0xff]  ;;  %v378_v14 = vld [vmem:[%s4596_s23 + $0x9c] sm:$0xff]  ;;  %v4082_v40 = vld [vmem:[%s6839_s4 + $0x4c] sm:$0xf] }
  0x38   : > { %2179 = vmatpush.bf16.msrb.mxu3 %v3913_v6  ;;  %1912 = vmatpush.bf16.msrb.mxu0 %v3909_v12  ;;  %v997_v19 = vpack.c.bf16 %v969_v16, %v968_v15  ;;  %v937_v28 = vmul.f32 %v4560_v29, %v4187_v24  ;;  %v938_v30 = vmul.f32 %v4560_v29, %v4188_v25  ;;  %v446_v46 = vunpack.c.l.bf16 %v372_v41  ;;  %v4238_v12 = vld [vmem:[%s4579_s13 + $0x30] sm:$0xff]   ;;  %v3790_v41 = vld [vmem:[%s6839_s4 + $0x54] sm:$0xf0] }
  0x39   : > { %v4719_v20 = vpack.c.bf16 %v643_v18, %v640_v17  ;;  %v546_v33 = vmul.f32 %v4598_v42, %v443_v27  ;;  %v449_v51 = vunpack.c.l.bf16 %v374_v43  ;;  %v3901_v60 = vor.u32 %v4109_v55, %v3898_v57  ;;  %v4106_v43 = vld [vmem:[%s6839_s4 + $0x10c] sm:$0xf]  ;;  %v4131_v57 = vld [vmem:[%s6839_s4 + $0x1d0] sm:$0xf0] }
  0x3a   : > { %v970_v34 = vadd.f32 %v4609_v47, %v937_v28  ;;  %v971_v35 = vadd.f32 %v4609_v47, %v938_v30  ;;  %v3993_v61 = vor.u32 %v4134_v59, %v3992_v58  ;;  %v939_v0 = vmul.f32 %v4560_v29, %v4191_v44  ;;  %v3884_v58 = vld [vmem:[%s6839_s4 + $0x108] sm:$0xf] }
  0x3b   : > { %6968 = vst [vmem:[#allocation5_spill] sm:$0xff] %v4719_v20  ;;  %v649_v37 = vadd.f32 %v4617_v50, %v546_v33  ;;  %v940_v1 = vmul.f32 %v4560_v29, %v4192_v45  ;;  %v3897_v2 = vor.u32 %v4110_v63, %v3896_v62  ;;  %v549_v3 = vmul.f32 %v4598_v42, %v446_v46  ;;  %v380_v33 = vld [vmem:[%s4596_s23 + $0xa8] sm:$0xff]  ;;  %v3886_v45 = vld [vmem:[%s6839_s4 + $0x114] sm:$0xf0] }
  0x3c   : > { %v998_v38 = vpack.c.bf16 %v971_v35, %v970_v34  ;;  %v552_v4 = vmul.f32 %v4598_v42, %v449_v51  ;;  %2180 = vmatpush.bf16.msrb.mxu3 %v3901_v60  ;;  %2002 = vmatpush.bf16.msrb.mxu1 %v3993_v61  ;;  %v972_v6 = vadd.f32 %v4609_v47, %v939_v0  ;;  %v4195_v15 = vunpack.c.l.bf16 %v4238_v12  ;;  %v382_v34 = vld [vmem:[%s4596_s23 + $0xb4] sm:$0xff] }
  0x3d   : > { %1913 = vmatpush.bf16.msrb.mxu0 %v3897_v2  ;;  %v973_v7 = vadd.f32 %v4609_v47, %v940_v1  ;;  %v652_v8 = vadd.f32 %v4617_v50, %v549_v3  ;;  %v4196_v16 = vunpack.c.h.bf16 %v4238_v12  ;;  %v452_v17 = vunpack.c.l.bf16 %v376_v13  ;;  %v4107_v60 = vld [vmem:[%s6839_s4 + $0x110] sm:$0xf0] }
  0x3e   : > { %1272 = vmatmul.bf16.gmra.mxu1 %v995_v31  ;;  %v655_v9 = vadd.f32 %v4617_v50, %v552_v4  ;;  %v455_v18 = vunpack.c.l.bf16 %v378_v14  ;;  %v3793_v44 = vor.u32 %v4082_v40, %v3790_v41  ;;  %v3889_v46 = vor.u32 %v4106_v43, %v3886_v45  ;;  %v4240_v4 = vld [vmem:[%s4579_s13 + $0x40] sm:$0xff]  }
  0x3f   : > { %v999_v10 = vpack.c.bf16 %v973_v7, %v972_v6  ;;  %v942_v21 = vmul.f32 %v4560_v29, %v4196_v16  ;;  %v555_v22 = vmul.f32 %v4598_v42, %v452_v17  ;;  %v3885_v61 = vor.u32 %v4107_v60, %v3884_v58  ;;  %v384_v6 = vld [vmem:[%s4596_s23 + $0xc0] sm:$0xff]  ;;  %v386_v7 = vld [vmem:[%s4596_s23 + $0xcc] sm:$0xff] }
  0x40   : > { %1183 = vmatmul.bf16.gmra.mxu0 %v995_v31  ;;  %v4771_v11 = vpack.c.bf16 %v655_v9, %v652_v8  ;;  %v558_v23 = vmul.f32 %v4598_v42, %v455_v18  ;;  %2181 = vmatpush.bf16.msrb.mxu3 %v3889_v46  ;;  %v4203_v8 = vunpack.c.l.bf16 %v4240_v4  ;;  %v4204_v9 = vunpack.c.h.bf16 %v4240_v4  ;;  %v3874_v41 = vld [vmem:[%s6839_s4 + $0xfc] sm:$0xf0]  ;;  %v3968_v58 = vld [vmem:[%s6839_s4 + $0x1b0] sm:$0xf] }
  0x41   : > { %1361 = vmatmul.bf16.gmra.mxu2 %v995_v31  ;;  %1834 = vmatmul.bf16.gmra.mxu3 %v4667_v32  ;;  %v543_v31 = vmul.f32 %v4598_v42, %v440_v26  ;;  %v975_v25 = vadd.f32 %v4609_v47, %v942_v21  ;;  %v658_v26 = vadd.f32 %v4617_v50, %v555_v22  ;;  %v467_v12 = vunpack.c.l.bf16 %v386_v7  ;;  %v3872_v60 = vld [vmem:[%s6839_s4 + $0xf0] sm:$0xf] }
  0x42   : > { %6970 = vst [vmem:[#allocation7_spill] sm:$0xff] %v4771_v11  ;;  %v661_v27 = vadd.f32 %v4617_v50, %v558_v23  ;;  %1914 = vmatpush.bf16.msrb.mxu0 %v3885_v61  ;;  %v945_v13 = vmul.f32 %v4560_v29, %v4203_v8  ;;  %v946_v14 = vmul.f32 %v4560_v29, %v4204_v9 }
  0x43   : > { %v646_v36 = vadd.f32 %v4617_v50, %v543_v31  ;;  %v4239_v31 = vld [vmem:[%s4579_s13 + $0x38] sm:$0xff]   ;;  %v570_v16 = vmul.f32 %v4598_v42, %v467_v12 }
  0x44   : > { %v4785_v30 = vpack.c.bf16 %v661_v27, %v658_v26  ;;  %v4199_v35 = vunpack.c.l.bf16 %v4239_v31  ;;  %v978_v17 = vadd.f32 %v4609_v47, %v945_v13  ;;  %v979_v18 = vadd.f32 %v4609_v47, %v946_v14  ;;  %v4241_v26 = vld [vmem:[%s4579_s13 + $0x48] sm:$0xff]   ;;  %v388_v27 = vld [vmem:[%s4596_s23 + $0xd8] sm:$0xff]  ;;  %v4242_v14 = vld [vmem:[%s4579_s13 + $0x50] sm:$0xff]  }
  0x45   : > { %v4733_v39 = vpack.c.bf16 %v649_v37, %v646_v36  ;;  %v4200_v36 = vunpack.c.h.bf16 %v4239_v31  ;;  %v458_v37 = vunpack.c.l.bf16 %v380_v33  ;;  %v673_v21 = vadd.f32 %v4617_v50, %v570_v16  ;;  %v394_v16 = vld [vmem:[%s4596_s23 + $0xfc] sm:$0xff] }
  0x46   : > { %6971 = vst [vmem:[#allocation8_spill] sm:$0xff] %v4785_v30  ;;  %v943_v51 = vmul.f32 %v4560_v29, %v4199_v35  ;;  %v1002_v22 = vpack.c.bf16 %v979_v18, %v978_v17  ;;  %v4207_v31 = vunpack.c.l.bf16 %v4241_v26  ;;  %v4208_v33 = vunpack.c.h.bf16 %v4241_v26 }
  0x47   : > { %6969 = vst [vmem:[#allocation6_spill] sm:$0xff] %v4733_v39  ;;  %v4211_v17 = vunpack.c.l.bf16 %v4242_v14  ;;  %v4212_v18 = vunpack.c.h.bf16 %v4242_v14 }
  0x48   : > { %v976_v62 = vadd.f32 %v4609_v47, %v943_v51  ;;  %v947_v46 = vmul.f32 %v4560_v29, %v4207_v31  ;;  %v948_v51 = vmul.f32 %v4560_v29, %v4208_v33 }
  0x49   : > { %v949_v26 = vmul.f32 %v4560_v29, %v4211_v17 }
  0x4e   : > { %1277 = vmatmul.bf16.gmra.mxu1 %v996_v53 }
  0x50   : > { %1188 = vmatmul.bf16.gmra.mxu0 %v996_v53 }
  0x51   : > { %1366 = vmatmul.bf16.gmra.mxu2 %v996_v53  ;;  %1839 = vmatmul.bf16.gmra.mxu3 %v4681_v54  ;;  %v3802_v53 = vld [vmem:[%s6839_s4 + $0x6c] sm:$0xf0] }
  0x52   : > { %v3805_v56 = vor.u32 %v4085_v52, %v3802_v53  ;;  %v944_v52 = vmul.f32 %v4560_v29, %v4200_v36  ;;  %v561_v53 = vmul.f32 %v4598_v42, %v458_v37  ;;  %v4079_v36 = vld [vmem:[%s6839_s4 + $0x34] sm:$0xf]  ;;  %v3778_v37 = vld [vmem:[%s6839_s4 + $0x3c] sm:$0xf0] }
  0x53   : > { %v3781_v40 = vor.u32 %v4079_v36, %v3778_v37  ;;  %v982_v36 = vadd.f32 %v4609_v47, %v949_v26  ;;  %v3956_v26 = vld [vmem:[%s6839_s4 + $0x198] sm:$0xf] }
  0x54   : > { %2091 = vmatpush.bf16.msrb.mxu2 %v3805_v56  ;;  %v3980_v56 = vld [vmem:[%s6839_s4 + $0x1c8] sm:$0xf]  ;;  %v977_v63 = vadd.f32 %v4609_v47, %v944_v52  ;;  %v664_v0 = vadd.f32 %v4617_v50, %v561_v53 }
  0x55   : > { %v3981_v59 = vor.u32 %v4131_v57, %v3980_v56 }
  0x56   : > { %v1001_v2 = vpack.c.bf16 %v977_v63, %v976_v62  ;;  %v4104_v62 = vld [vmem:[%s6839_s4 + $0xf8] sm:$0xf0] }
  0x57   : > { %2003 = vmatpush.bf16.msrb.mxu1 %v3981_v59  ;;  %v4128_v59 = vld [vmem:[%s6839_s4 + $0x1b8] sm:$0xf0]  ;;  %v3873_v63 = vor.u32 %v4104_v62, %v3872_v60 }
  0x58   : > { %2092 = vmatpush.bf16.msrb.mxu2 %v3793_v44  ;;  %v3969_v61 = vor.u32 %v4128_v59, %v3968_v58  ;;  %v396_v58 = vld [vmem:[%s4596_s23 + $0x108] sm:$0xff]  ;;  %v398_v59 = vld [vmem:[%s4596_s23 + $0x114] sm:$0xff] }
  0x59   : > { %1915 = vmatpush.bf16.msrb.mxu0 %v3873_v63  ;;  %v482_v62 = vunpack.c.l.bf16 %v396_v58  ;;  %v485_v63 = vunpack.c.l.bf16 %v398_v59 }
  0x5b   : > { %2004 = vmatpush.bf16.msrb.mxu1 %v3969_v61 }
  0x5c   : > { %2093 = vmatpush.bf16.msrb.mxu2 %v3781_v40 }
  0x5e   : > { %1282 = vmatmul.bf16.gmra.mxu1 %v997_v19 }
  0x60   : > { %1193 = vmatmul.bf16.gmra.mxu0 %v997_v19 }
  0x61   : > { %1371 = vmatmul.bf16.gmra.mxu2 %v997_v19  ;;  %1844 = vmatmul.bf16.gmra.mxu3 %v4719_v20  ;;  %v941_v19 = vmul.f32 %v4560_v29, %v4195_v15 }
  0x63   : > { %v974_v24 = vadd.f32 %v4609_v47, %v941_v19 }
  0x65   : > { %v1000_v28 = vpack.c.bf16 %v975_v25, %v974_v24 }
  0x6e   : > { %1287 = vmatmul.bf16.gmra.mxu1 %v998_v38 }
  0x70   : > { %1198 = vmatmul.bf16.gmra.mxu0 %v998_v38 }
  0x71   : > { %1376 = vmatmul.bf16.gmra.mxu2 %v998_v38  ;;  %1849 = vmatmul.bf16.gmra.mxu3 %v4733_v39  ;;  %v461_v38 = vunpack.c.l.bf16 %v382_v34  ;;  %v470_v34 = vunpack.c.l.bf16 %v388_v27  ;;  %v950_v27 = vmul.f32 %v4560_v29, %v4212_v18 }
  0x73   : > { %v564_v55 = vmul.f32 %v4598_v42, %v461_v38  ;;  %v4103_v38 = vld [vmem:[%s6839_s4 + $0xf4] sm:$0xf]  ;;  %v573_v56 = vmul.f32 %v4598_v42, %v470_v34  ;;  %v983_v37 = vadd.f32 %v4609_v47, %v950_v27  ;;  %v4125_v27 = vld [vmem:[%s6839_s4 + $0x1a0] sm:$0xf0] }
  0x74   : > { %v3877_v43 = vor.u32 %v4103_v38, %v3874_v41 }
  0x75   : > { %v667_v1 = vadd.f32 %v4617_v50, %v564_v55 }
  0x76   : > { %2182 = vmatpush.bf16.msrb.mxu3 %v3877_v43 }
  0x77   : > { %v4823_v3 = vpack.c.bf16 %v667_v1, %v664_v0  ;;  %v980_v0 = vadd.f32 %v4609_v47, %v947_v46  ;;  %v981_v1 = vadd.f32 %v4609_v47, %v948_v51 }
  0x79   : > { %6972 = vst [vmem:[#allocation9_spill] sm:$0xff] %v4823_v3  ;;  %v1003_v8 = vpack.c.bf16 %v981_v1, %v980_v0  ;;  %v4076_v0 = vld [vmem:[%s6839_s4 + $0x1c] sm:$0xf]  ;;  %v3766_v1 = vld [vmem:[%s6839_s4 + $0x24] sm:$0xf0] }
  0x7e   : > { %1292 = vmatmul.bf16.gmra.mxu1 %v999_v10 }
  0x80   : > { %1203 = vmatmul.bf16.gmra.mxu0 %v999_v10 }
  0x81   : > { %1381 = vmatmul.bf16.gmra.mxu2 %v999_v10  ;;  %1854 = vmatmul.bf16.gmra.mxu3 %v4771_v11  ;;  %v464_v10 = vunpack.c.l.bf16 %v384_v6 }
  0x83   : > { %v567_v15 = vmul.f32 %v4598_v42, %v464_v10 }
  0x85   : > { %v670_v19 = vadd.f32 %v4617_v50, %v567_v15  ;;  %v392_v15 = vld [vmem:[%s4596_s23 + $0xf0] sm:$0xff] }
  0x87   : > { %v4839_v25 = vpack.c.bf16 %v673_v21, %v670_v19  ;;  %v476_v19 = vunpack.c.l.bf16 %v392_v15  ;;  %v479_v21 = vunpack.c.l.bf16 %v394_v16 }
  0x89   : > { %6973 = vst [vmem:[#allocation10_spill] sm:$0xff] %v4839_v25  ;;  %v579_v34 = vmul.f32 %v4598_v42, %v476_v19 }
  0x8b   : > { %v682_v38 = vadd.f32 %v4617_v50, %v579_v34  ;;  %v3957_v34 = vor.u32 %v4125_v27, %v3956_v26 }
  0x8d   : > { %2005 = vmatpush.bf16.msrb.mxu1 %v3957_v34 }
  0x8e   : > { %1297 = vmatmul.bf16.gmra.mxu1 %v1000_v28 }
  0x90   : > { %1208 = vmatmul.bf16.gmra.mxu0 %v1000_v28 }
  0x91   : > { %1386 = vmatmul.bf16.gmra.mxu2 %v1000_v28  ;;  %1859 = vmatmul.bf16.gmra.mxu3 %v4785_v30  ;;  %v390_v28 = vld [vmem:[%s4596_s23 + $0xe4] sm:$0xff] }
  0x92   : > { %v473_v35 = vunpack.c.l.bf16 %v390_v28 }
  0x94   : > { %v576_v57 = vmul.f32 %v4598_v42, %v473_v35  ;;  %v582_v35 = vmul.f32 %v4598_v42, %v479_v21  ;;  %v585_v21 = vmul.f32 %v4598_v42, %v482_v62  ;;  %v4244_v62 = vld [vmem:[%s4579_s13 + $0x60] sm:$0xff]  }
  0x96   : > { %v679_v4 = vadd.f32 %v4617_v50, %v576_v57  ;;  %v685_v40 = vadd.f32 %v4617_v50, %v582_v35  ;;  %v4243_v57 = vld [vmem:[%s4579_s13 + $0x58] sm:$0xff]   ;;  %v4101_v35 = vld [vmem:[%s6839_s4 + $0xe0] sm:$0xf0] }
  0x97   : > { %v4215_v60 = vunpack.c.l.bf16 %v4243_v57  ;;  %v4216_v61 = vunpack.c.h.bf16 %v4243_v57 }
  0x99   : > { %v951_v15 = vmul.f32 %v4560_v29, %v4215_v60  ;;  %v952_v16 = vmul.f32 %v4560_v29, %v4216_v61 }
  0x9e   : > { %1302 = vmatmul.bf16.gmra.mxu1 %v1001_v2 }
  0xa0   : > { %1213 = vmatmul.bf16.gmra.mxu0 %v1001_v2 }
  0xa1   : > { %1391 = vmatmul.bf16.gmra.mxu2 %v1001_v2  ;;  %1864 = vmatmul.bf16.gmra.mxu3 %v4823_v3  ;;  %v676_v2 = vadd.f32 %v4617_v50, %v573_v56  ;;  %v4915_v56 = vpack.c.bf16 %v685_v40, %v682_v38  ;;  %v985_v38 = vadd.f32 %v4609_v47, %v952_v16 }
  0xa2   : > { %v688_v40 = vadd.f32 %v4617_v50, %v585_v21 }
  0xa3   : > { %v4889_v13 = vpack.c.bf16 %v679_v4, %v676_v2  ;;  %6978 = vst [vmem:[#allocation15_spill] sm:$0xff] %v4915_v56  ;;  %v4100_v2 = vld [vmem:[%s6839_s4 + $0xdc] sm:$0xf]  ;;  %v3769_v4 = vor.u32 %v4076_v0, %v3766_v1  ;;  %v402_v0 = vld [vmem:[%s4596_s23 + $0x12c] sm:$0xff]  ;;  %v4219_v1 = vunpack.c.l.bf16 %v4244_v62 }
  0xa5   : > { %2094 = vmatpush.bf16.msrb.mxu2 %v3769_v4 }
  0xab   : > { %v4837_v24 = vpop.f32.mrf.mxu1 }
  0xad   : > { %v1179_v23 = vpop.f32.mrf.mxu0 }
  0xae   : > { %1307 = vmatmul.bf16.gmra.mxu1 %v1002_v22 }
  0xb0   : > { %1218 = vmatmul.bf16.gmra.mxu0 %v1002_v22 }
  0xb1   : > { %1396 = vmatmul.bf16.gmra.mxu2 %v1002_v22  ;;  %1869 = vmatmul.bf16.gmra.mxu3 %v4839_v25 }
  0xb3   : > { %v4863_v55 = vpop.f32.mrf.mxu1 }
  0xb4   : > { %v4857_v44 = vpop.f32.mrf.mxu2  ;;  %v1830_v45 = vpop.f32.mrf.mxu3 }
  0xb5   : > { %6974 = vst [vmem:[#allocation11_spill] sm:$0xff] %v4857_v44  ;;  %v4861_v52 = vadd.f32 %v1830_v45, %v1179_v23  ;;  %v1181_v53 = vpop.f32.mrf.mxu0  ;;  %v1004_v45 = vpack.c.bf16 %v983_v37, %v982_v36  ;;  %v984_v37 = vadd.f32 %v4609_v47, %v951_v15  ;;  %v953_v15 = vmul.f32 %v4560_v29, %v4219_v1 }
  0xb7   : > { %v1005_v57 = vpack.c.bf16 %v985_v38, %v984_v37 }
  0xbb   : > { %v4887_v12 = vpop.f32.mrf.mxu1 }
  0xbc   : > { %v4883_v6 = vpop.f32.mrf.mxu2  ;;  %v1832_v7 = vpop.f32.mrf.mxu3 }
  0xbd   : > { %6975 = vst [vmem:[#allocation12_spill] sm:$0xff] %v4883_v6  ;;  %v4885_v9 = vadd.f32 %v1832_v7, %v1181_v53  ;;  %v1184_v10 = vpop.f32.mrf.mxu0  ;;  %v3862_v7 = vld [vmem:[%s6839_s4 + $0xe4] sm:$0xf0] }
  0xbe   : > { %1312 = vmatmul.bf16.gmra.mxu1 %v1003_v8 }
  0xc0   : > { %1223 = vmatmul.bf16.gmra.mxu0 %v1003_v8 }
  0xc1   : > { %1401 = vmatmul.bf16.gmra.mxu2 %v1003_v8  ;;  %1874 = vmatmul.bf16.gmra.mxu3 %v4889_v13  ;;  %v3865_v8 = vor.u32 %v4100_v2, %v3862_v7  ;;  %v4220_v2 = vunpack.c.h.bf16 %v4244_v62  ;;  %v491_v7 = vunpack.c.l.bf16 %v402_v0  ;;  %v4245_v62 = vld [vmem:[%s4579_s13 + $0x68] sm:$0xff]  }
  0xc2   : > { %v406_v0 = vld [vmem:[%s4596_s23 + $0x144] sm:$0xff]  ;;  %v4223_v1 = vunpack.c.l.bf16 %v4245_v62 }
  0xc3   : > { %v4901_v33 = vpop.f32.mrf.mxu1  ;;  %2183 = vmatpush.bf16.msrb.mxu3 %v3865_v8  ;;  %v954_v16 = vmul.f32 %v4560_v29, %v4220_v2  ;;  %v594_v27 = vmul.f32 %v4598_v42, %v491_v7  ;;  %v4224_v2 = vunpack.c.h.bf16 %v4245_v62  ;;  %v497_v7 = vunpack.c.l.bf16 %v406_v0 }
  0xc4   : > { %v4895_v22 = vpop.f32.mrf.mxu2  ;;  %v1835_v23 = vpop.f32.mrf.mxu3 }
  0xc5   : > { %6976 = vst [vmem:[#allocation13_spill] sm:$0xff] %v4895_v22  ;;  %v4899_v28 = vadd.f32 %v1835_v23, %v1184_v10  ;;  %v1186_v31 = vpop.f32.mrf.mxu0  ;;  %v588_v23 = vmul.f32 %v4598_v42, %v485_v63  ;;  %v400_v63 = vld [vmem:[%s4596_s23 + $0x120] sm:$0xff]  ;;  %v987_v34 = vadd.f32 %v4609_v47, %v954_v16  ;;  %v600_v0 = vmul.f32 %v4598_v42, %v497_v7  ;;  %v414_v22 = vld [vmem:[%s4596_s23 + $0x174] sm:$0xff] }
  0xc6   : > { %v488_v4 = vunpack.c.l.bf16 %v400_v63  ;;  %v404_v63 = vld [vmem:[%s4596_s23 + $0x138] sm:$0xff]  ;;  %v4097_v16 = vld [vmem:[%s6839_s4 + $0xc4] sm:$0xf] }
  0xc8   : > { %v591_v26 = vmul.f32 %v4598_v42, %v488_v4  ;;  %v494_v4 = vunpack.c.l.bf16 %v404_v63 }
  0xca   : > { %v597_v63 = vmul.f32 %v4598_v42, %v494_v4  ;;  %v4098_v4 = vld [vmem:[%s6839_s4 + $0xc8] sm:$0xf0] }
  0xcb   : > { %v4913_v53 = vpop.f32.mrf.mxu1 }
  0xcc   : > { %v4909_v41 = vpop.f32.mrf.mxu2  ;;  %v1837_v43 = vpop.f32.mrf.mxu3 }
  0xcd   : > { %6977 = vst [vmem:[#allocation14_spill] sm:$0xff] %v4909_v41  ;;  %v4911_v46 = vadd.f32 %v1837_v43, %v1186_v31  ;;  %v1189_v51 = vpop.f32.mrf.mxu0  ;;  %v3860_v31 = vld [vmem:[%s6839_s4 + $0xd8] sm:$0xf]  ;;  %v691_v43 = vadd.f32 %v4617_v50, %v588_v23  ;;  %v412_v41 = vld [vmem:[%s4596_s23 + $0x168] sm:$0xff] }
  0xce   : > { %1317 = vmatmul.bf16.gmra.mxu1 %v1004_v45  ;;  %v3861_v36 = vor.u32 %v4101_v35, %v3860_v31  ;;  %v986_v31 = vadd.f32 %v4609_v47, %v953_v15  ;;  %v694_v35 = vadd.f32 %v4617_v50, %v591_v26  ;;  %v3754_v15 = vld [vmem:[%s6839_s4 + $0xc] sm:$0xf0] }
  0xcf   : > { %v4965_v61 = vpack.c.bf16 %v691_v43, %v688_v40  ;;  %v3850_v26 = vld [vmem:[%s6839_s4 + $0xcc] sm:$0xf0] }
  0xd0   : > { %1228 = vmatmul.bf16.gmra.mxu0 %v1004_v45  ;;  %v1006_v40 = vpack.c.bf16 %v987_v34, %v986_v31 }
  0xd1   : > { %1406 = vmatmul.bf16.gmra.mxu2 %v1004_v45  ;;  %1879 = vmatmul.bf16.gmra.mxu3 %v4915_v56  ;;  %6981 = vst [vmem:[#allocation18_spill] sm:$0xff] %v4965_v61 }
  0xd2   : > { %1916 = vmatpush.bf16.msrb.mxu0 %v3861_v36  ;;  %v697_v36 = vadd.f32 %v4617_v50, %v594_v27  ;;  %v3853_v27 = vor.u32 %v4097_v16, %v3850_v26  ;;  %v703_v26 = vadd.f32 %v4617_v50, %v600_v0 }
  0xd3   : > { %v4939_v19 = vpop.f32.mrf.mxu1 }
  0xd4   : > { %v4933_v10 = vpop.f32.mrf.mxu2  ;;  %v1840_v14 = vpop.f32.mrf.mxu3  ;;  %2184 = vmatpush.bf16.msrb.mxu3 %v3853_v27 }
  0xd5   : > { %6979 = vst [vmem:[#allocation16_spill] sm:$0xff] %v4933_v10  ;;  %v4937_v17 = vadd.f32 %v1840_v14, %v1189_v51  ;;  %v1191_v18 = vpop.f32.mrf.mxu0 }
  0xdb   : > { %v4963_v60 = vpop.f32.mrf.mxu1 }
  0xdc   : > { %v4959_v45 = vpop.f32.mrf.mxu2  ;;  %v1842_v51 = vpop.f32.mrf.mxu3 }
  0xdd   : > { %6980 = vst [vmem:[#allocation17_spill] sm:$0xff] %v4959_v45  ;;  %v4961_v58 = vadd.f32 %v1842_v51, %v1191_v18  ;;  %v1194_v59 = vpop.f32.mrf.mxu0 }
  0xde   : > { %1322 = vmatmul.bf16.gmra.mxu1 %v1005_v57 }
  0xe0   : > { %1233 = vmatmul.bf16.gmra.mxu0 %v1005_v57 }
  0xe1   : > { %1411 = vmatmul.bf16.gmra.mxu2 %v1005_v57  ;;  %1884 = vmatmul.bf16.gmra.mxu3 %v4965_v61 }
  0xe3   : > { %v4977_v23 = vpop.f32.mrf.mxu1 }
  0xe4   : > { %v4971_v8 = vpop.f32.mrf.mxu2  ;;  %v1845_v14 = vpop.f32.mrf.mxu3 }
  0xe5   : > { %6982 = vst [vmem:[#allocation19_spill] sm:$0xff] %v4971_v8  ;;  %v4975_v18 = vadd.f32 %v1845_v14, %v1194_v59  ;;  %v1196_v21 = vpop.f32.mrf.mxu0  ;;  %v4991_v59 = vpack.c.bf16 %v697_v36, %v694_v35  ;;  %v4073_v14 = vld [vmem:[%s6839_s4 + $0x4] sm:$0xf]  ;;  %v955_v35 = vmul.f32 %v4560_v29, %v4223_v1  ;;  %v956_v36 = vmul.f32 %v4560_v29, %v4224_v2  ;;  %v4122_v1 = vld [vmem:[%s6839_s4 + $0x188] sm:$0xf0] }
  0xe7   : > { %6984 = vst [vmem:[#allocation21_spill] sm:$0xff] %v4991_v59  ;;  %v989_v16 = vadd.f32 %v4609_v47, %v956_v36  ;;  %v410_v36 = vld [vmem:[%s4596_s23 + $0x15c] sm:$0xff] }
  0xeb   : > { %v4989_v57 = vpop.f32.mrf.mxu1 }
  0xec   : > { %v4985_v37 = vpop.f32.mrf.mxu2  ;;  %v1847_v38 = vpop.f32.mrf.mxu3 }
  0xed   : > { %6983 = vst [vmem:[#allocation20_spill] sm:$0xff] %v4985_v37  ;;  %v4987_v43 = vadd.f32 %v1847_v38, %v1196_v21  ;;  %v1199_v51 = vpop.f32.mrf.mxu0  ;;  %v3757_v21 = vor.u32 %v4073_v14, %v3754_v15  ;;  %v3944_v14 = vld [vmem:[%s6839_s4 + $0x180] sm:$0xf]  ;;  %v988_v15 = vadd.f32 %v4609_v47, %v955_v35  ;;  %v4246_v35 = vld [vmem:[%s4579_s13 + $0x70] sm:$0xff]  }
  0xee   : > { %1327 = vmatmul.bf16.gmra.mxu1 %v1006_v40  ;;  %v3945_v2 = vor.u32 %v4122_v1, %v3944_v14 }
  0xef   : > { %2095 = vmatpush.bf16.msrb.mxu2 %v3757_v21  ;;  %v700_v21 = vadd.f32 %v4617_v50, %v597_v63  ;;  %v1007_v14 = vpack.c.bf16 %v989_v16, %v988_v15  ;;  %v4227_v63 = vunpack.c.l.bf16 %v4246_v35 }
  0xf0   : > { %1238 = vmatmul.bf16.gmra.mxu0 %v1006_v40  ;;  %2006 = vmatpush.bf16.msrb.mxu1 %v3945_v2  ;;  %v4228_v2 = vunpack.c.h.bf16 %v4246_v35  ;;  %v417_v35 = vunpack.c.h.bf16 %v4612_v48 }
  0xf1   : > { %1416 = vmatmul.bf16.gmra.mxu2 %v1006_v40  ;;  %1889 = vmatmul.bf16.gmra.mxu3 %v4991_v59  ;;  %v957_v16 = vmul.f32 %v4560_v29, %v4227_v63  ;;  %v5066_v63 = vld [vmem:[%s6837_s2] ss:$8 sm:$0x7] }
  0xf3   : > { %v5015_v62 = vpop.f32.mrf.mxu1 }
  0xf4   : > { %v5009_v31 = vpop.f32.mrf.mxu2  ;;  %v1850_v34 = vpop.f32.mrf.mxu3 }
  0xf5   : > { %6985 = vst [vmem:[#allocation22_spill] sm:$0xff] %v5009_v31  ;;  %v5013_v38 = vadd.f32 %v1850_v34, %v1199_v51  ;;  %v1201_v40 = vpop.f32.mrf.mxu0  ;;  %v3848_v51 = vld [vmem:[%s6839_s4 + $0xc0] sm:$0xf] }
  0xf6   : > { %v3849_v7 = vor.u32 %v4098_v4, %v3848_v51  ;;  %v5041_v51 = vpack.c.bf16 %v703_v26, %v700_v21  ;;  %v408_v4 = vld [vmem:[%s4596_s23 + $0x150] sm:$0xff]  ;;  %v958_v21 = vmul.f32 %v4560_v29, %v4228_v2  ;;  %v5069_v2 = vperm.slane %v5066_v63, 1 }
  0xf7   : > { %v500_v0 = vunpack.c.l.bf16 %v408_v4  ;;  %v420_v4 = vunpack.c.h.bf16 %v4615_v49 }
  0xf8   : > { %1917 = vmatpush.bf16.msrb.mxu0 %v3849_v7  ;;  %6987 = vst [vmem:[#allocation24_spill] sm:$0xff] %v5041_v51  ;;  %v503_v7 = vunpack.c.l.bf16 %v410_v36  ;;  %v990_v36 = vadd.f32 %v4609_v47, %v957_v16  ;;  %v520_v48 = vmul.f32 %v5069_v2, %v417_v35 }
  0xf9   : > { %v603_v8 = vmul.f32 %v4598_v42, %v500_v0  ;;  %v523_v49 = vmul.f32 %v5069_v2, %v420_v4  ;;  %v4247_v4 = vld [vmem:[%s4579_s13 + $0x78] sm:$0xff]  }
  0xfb   : > { %v5039_v37 = vpop.f32.mrf.mxu1  ;;  %v706_v29 = vadd.f32 %v4617_v50, %v603_v8 }
  0xfc   : > { %v5035_v27 = vpop.f32.mrf.mxu2  ;;  %v1852_v34 = vpop.f32.mrf.mxu3 }
  0xfd   : > { %6986 = vst [vmem:[#allocation23_spill] sm:$0xff] %v5035_v27  ;;  %v5037_v1 = vadd.f32 %v1852_v34, %v1201_v40  ;;  %v1204_v31 = vpop.f32.mrf.mxu0 }
  0xfe   : > { %1332 = vmatmul.bf16.gmra.mxu1 %v1007_v14 }
 0x100   : > { %1243 = vmatmul.bf16.gmra.mxu0 %v1007_v14 }
 0x101   : > { %1421 = vmatmul.bf16.gmra.mxu2 %v1007_v14  ;;  %1894 = vmatmul.bf16.gmra.mxu3 %v5041_v51  ;;  %v606_v14 = vmul.f32 %v4598_v42, %v503_v7 }
 0x103   : > { %v5053_v27 = vpop.f32.mrf.mxu1 }
 0x104   : > { %v5047_v15 = vpop.f32.mrf.mxu2  ;;  %v1855_v40 = vpop.f32.mrf.mxu3 }
 0x105   : > { %6988 = vst [vmem:[#allocation25_spill] sm:$0xff] %v5047_v15  ;;  %v5051_v26 = vadd.f32 %v1855_v40, %v1204_v31  ;;  %v1206_v34 = vpop.f32.mrf.mxu0  ;;  %v991_v15 = vadd.f32 %v4609_v47, %v958_v21  ;;  %v709_v31 = vadd.f32 %v4617_v50, %v606_v14  ;;  %v5076_v47 = vld [vmem:[%s6837_s2 + $0x1] ss:$8 sm:$0x7] }
 0x106   : > { %v5079_v8 = vperm.slane %v5076_v47, 1 }
 0x107   : > { %v1008_v40 = vpack.c.bf16 %v991_v15, %v990_v36  ;;  %v5087_v35 = vpack.c.bf16 %v709_v31, %v706_v29  ;;  %v4232_v15 = vunpack.c.h.bf16 %v4247_v4  ;;  %v509_v36 = vunpack.c.l.bf16 %v414_v22  ;;  %v3940_v29 = vld [vmem:[%s6839_s4 + $0x170] sm:$0xf]  ;;  %v4120_v31 = vld [vmem:[%s6839_s4 + $0x178] sm:$0xf0] }
 0x108   : > { %v623_v45 = vadd.f32 %v5079_v8, %v520_v48  ;;  %v626_v10 = vadd.f32 %v5079_v8, %v523_v49  ;;  %v4144_v48 = vld [vmem:[%s6839_s4 + $0x238] sm:$0xf0] }
 0x109   : > { %6991 = vst [vmem:[#allocation28_spill] sm:$0xff] %v5087_v35 }
 0x10a   : > { %v5094_v6 = vpack.c.bf16 %v626_v10, %v623_v45  ;;  %v4036_v10 = vld [vmem:[%s6839_s4 + $0x230] sm:$0xf]  ;;  %v3941_v45 = vor.u32 %v4120_v31, %v3940_v29  ;;  %v612_v31 = vmul.f32 %v4598_v42, %v509_v36  ;;  %v4264_v36 = vld [vmem:[%s6838_s3 + $0x1] ss:$0 sm:$0xff] }
 0x10b   : > { %v5085_v14 = vpop.f32.mrf.mxu1  ;;  %v4037_v49 = vor.u32 %v4144_v48, %v4036_v10  ;;  %v3844_v10 = vld [vmem:[%s6839_s4 + $0xb0] sm:$0xf] }
 0x10c   : > { %v5081_v0 = vpop.f32.mrf.mxu2  ;;  %v1857_v7 = vpop.f32.mrf.mxu3  ;;  %6990 = vst [vmem:[#allocation27_spill] sm:$0xff] %v5085_v14  ;;  %2444 = vmatpush.bf16.msra.mxu2 %v3941_v45 }
 0x10d   : > { %6989 = vst [vmem:[#allocation26_spill] sm:$0xff] %v5081_v0  ;;  %v5083_v16 = vadd.f32 %v1857_v7, %v1206_v34  ;;  %v1209_v21 = vpop.f32.mrf.mxu0  ;;  %v4231_v0 = vunpack.c.l.bf16 %v4247_v4  ;;  %v506_v34 = vunpack.c.l.bf16 %v412_v41  ;;  %v4263_v7 = vld [vmem:[%s6838_s3] ss:$0 sm:$0xff]  ;;  %2533 = vmatpush.bf16.msra.mxu3 %v4037_v49 }
 0x10e   : > { %6992 = vst [vmem:[#allocation29_spill] sm:$0xff] %v5094_v6  ;;  %1337 = vmatmul.bf16.gmra.mxu1 %v1008_v40  ;;  %v960_v4 = vmul.f32 %v4263_v7, %v4232_v15 }
 0x10f   : > { %v609_v29 = vmul.f32 %v4598_v42, %v506_v34  ;;  %v4030_v34 = vld [vmem:[%s6839_s4 + $0x234] sm:$0xf0] }
 0x110   : > { %1248 = vmatmul.bf16.gmra.mxu0 %v1008_v40  ;;  %v993_v48 = vadd.f32 %v4264_v36, %v960_v4 }
 0x111   : > { %1426 = vmatmul.bf16.gmra.mxu2 %v1008_v40  ;;  %1899 = vmatmul.bf16.gmra.mxu3 %v5087_v35  ;;  %v959_v40 = vmul.f32 %v4263_v7, %v4231_v0  ;;  %v4096_v0 = vld [vmem:[%s6839_s4 + $0xb8] sm:$0xf0]  ;;  %v712_v49 = vadd.f32 %v4617_v50, %v609_v29 }
 0x112   : > { %v3845_v15 = vor.u32 %v4096_v0, %v3844_v10 }
 0x113   : > { %v5116_v35 = vpop.f32.mrf.mxu1  ;;  %v992_v45 = vadd.f32 %v4264_v36, %v959_v40  ;;  %v355_v40 = vld [vmem:[%s4596_s23 + $0x14] sm:$0xf]  ;;  %v5156_v36 = vperm.slane %v5076_v47, 2 }
 0x114   : > { %v5109_v41 = vpop.f32.mrf.mxu2  ;;  %v1860_v22 = vpop.f32.mrf.mxu3  ;;  %6995 = vst [vmem:[#allocation32_spill] sm:$0xff] %v5116_v35  ;;  %2355 = vmatpush.bf16.msra.mxu1 %v3845_v15  ;;  %v421_v29 = vunpack.c.l.bf16 %v355_v40 }
 0x115   : > { %6993 = vst [vmem:[#allocation30_spill] sm:$0xff] %v5109_v41  ;;  %v5114_v44 = vadd.f32 %v1860_v22, %v1209_v21  ;;  %v1211_v14 = vpop.f32.mrf.mxu0  ;;  %v4142_v21 = vld [vmem:[%s6839_s4 + $0x22c] sm:$0xf]  ;;  %v715_v22 = vadd.f32 %v4617_v50, %v612_v31  ;;  %v1009_v0 = vpack.c.bf16 %v993_v48, %v992_v45  ;;  %v5148_v50 = vperm.slane %v5066_v63, 2 }
 0x116   : > { %v4033_v42 = vor.u32 %v4142_v21, %v4030_v34 }
 0x117   : > { %6994 = vst [vmem:[#allocation31_spill] sm:$0xff] %v5114_v44  ;;  %v5143_v35 = vpack.c.bf16 %v715_v22, %v712_v49  ;;  %v353_v44 = vld [vmem:[%s4596_s23 + $0x8] sm:$0xf] }
 0x118   : > { %2266 = vmatpush.bf16.msra.mxu0 %v4033_v42  ;;  %v418_v4 = vunpack.c.l.bf16 %v353_v44  ;;  %v524_v42 = vmul.f32 %v5148_v50, %v421_v29  ;;  %v359_v29 = vld [vmem:[%s4596_s23 + $0x2c] sm:$0xf] }
 0x119   : > { %6997 = vst [vmem:[#allocation34_spill] sm:$0xff] %v5143_v35 }
 0x11a   : > { %v521_v15 = vmul.f32 %v5148_v50, %v418_v4  ;;  %v627_v49 = vadd.f32 %v5156_v36, %v524_v42 }
 0x11b   : > { %v5141_v34 = vpop.f32.mrf.mxu1 }
 0x11c   : > { %v5137_v7 = vpop.f32.mrf.mxu2  ;;  %v1862_v10 = vpop.f32.mrf.mxu3  ;;  %v624_v48 = vadd.f32 %v5156_v36, %v521_v15 }
 0x11d   : > { %6996 = vst [vmem:[#allocation33_spill] sm:$0xff] %v5137_v7  ;;  %v5139_v41 = vadd.f32 %v1862_v10, %v1211_v14  ;;  %v1214_v21 = vpop.f32.mrf.mxu0 }
 0x11e   : > { %1342 = vmatmul.bf16.gmra.mxu1 %v1009_v0 }
 0x120   : > { %1253 = vmatmul.bf16.gmra.mxu0 %v1009_v0 }
 0x121   : > { %1431 = vmatmul.bf16.gmra.mxu2 %v1009_v0  ;;  %1904 = vmatmul.bf16.gmra.mxu3 %v5143_v35  ;;  %v5166_v0 = vpack.c.bf16 %v627_v49, %v624_v48  ;;  %v4117_v48 = vld [vmem:[%s6839_s4 + $0x160] sm:$0xf0]  ;;  %v4024_v49 = vld [vmem:[%s6839_s4 + $0x218] sm:$0xf] }
 0x123   : > { %v5160_v45 = vpop.f32.mrf.mxu1  ;;  %7001 = vst [vmem:[#allocation38_spill] sm:$0xff] %v5166_v0 }
 0x124   : > { %v5151_v31 = vpop.f32.mrf.mxu2  ;;  %v1865_v14 = vpop.f32.mrf.mxu3  ;;  %6999 = vst [vmem:[#allocation36_spill] sm:$0xff] %v5160_v45 }
 0x125   : > { %6998 = vst [vmem:[#allocation35_spill] sm:$0xff] %v5151_v31  ;;  %v5158_v44 = vadd.f32 %v1865_v14, %v1214_v21  ;;  %v1216_v63 = vpop.f32.mrf.mxu0  ;;  %v357_v21 = vld [vmem:[%s4596_s23 + $0x20] sm:$0xf]  ;;  %v4265_v14 = vld [vmem:[%s4596_s23 + $0x18] sm:$0xff]  ;;  %v4266_v31 = vld [vmem:[%s4596_s23 + $0x24] sm:$0xff] }
 0x126   : > { %v423_v15 = vunpack.c.h.bf16 %v4265_v14  ;;  %v426_v42 = vunpack.c.h.bf16 %v4266_v31  ;;  %v424_v7 = vunpack.c.l.bf16 %v357_v21  ;;  %v4141_v31 = vld [vmem:[%s6839_s4 + $0x220] sm:$0xf0] }
 0x127   : > { %v4025_v21 = vor.u32 %v4141_v31, %v4024_v49  ;;  %v3832_v49 = vld [vmem:[%s6839_s4 + $0x98] sm:$0xf] }
 0x129   : > { %2534 = vmatpush.bf16.msra.mxu3 %v4025_v21 }
 0x12b   : > { %v5170_v4 = vpop.f32.mrf.mxu1 }
 0x12c   : > { %v5164_v22 = vpop.f32.mrf.mxu2  ;;  %v1867_v10 = vpop.f32.mrf.mxu3  ;;  %7002 = vst [vmem:[#allocation39_spill] sm:$0xff] %v5170_v4  ;;  %v526_v4 = vmul.f32 %v5069_v2, %v423_v15  ;;  %v4093_v15 = vld [vmem:[%s6839_s4 + $0xa0] sm:$0xf0] }
 0x12d   : > { %7000 = vst [vmem:[#allocation37_spill] sm:$0xff] %v5164_v22  ;;  %v5168_v40 = vadd.f32 %v1867_v10, %v1216_v63  ;;  %v1219_v47 = vpop.f32.mrf.mxu0  ;;  %v427_v22 = vunpack.c.l.bf16 %v359_v29  ;;  %v3928_v63 = vld [vmem:[%s6839_s4 + $0x158] sm:$0xf] }
 0x12e   : > { %2007 = vmatmul.bf16.vlgmr.msrb.gmra.mxu1 %v5166_v0  ;;  %v3929_v10 = vor.u32 %v4117_v48, %v3928_v63 }
 0x12f   : > { %v530_v0 = vmul.f32 %v5148_v50, %v427_v22  ;;  %v3833_v22 = vor.u32 %v4093_v15, %v3832_v49 }
 0x130   : > { %1918 = vmatmul.bf16.vlgmr.msrb.gmra.mxu0 %v5094_v6  ;;  %2445 = vmatpush.bf16.msra.mxu2 %v3929_v10  ;;  %v629_v10 = vadd.f32 %v5079_v8, %v526_v4 }
 0x131   : > { %2096 = vmatmul.bf16.vlgmr.msrb.gmra.mxu2 %v4632_v5  ;;  %2185 = vmatmul.bf16.vlgmr.msrb.gmra.mxu3 %v5094_v6  ;;  %v529_v6 = vmul.f32 %v5069_v2, %v426_v42  ;;  %v527_v5 = vmul.f32 %v5148_v50, %v424_v7  ;;  %v4139_v7 = vld [vmem:[%s6839_s4 + $0x214] sm:$0xf] }
 0x132   : > { %2356 = vmatpush.bf16.msra.mxu1 %v3833_v22  ;;  %v4268_v22 = vld [vmem:[%s4596_s23 + $0x3c] sm:$0xff] }
 0x133   : > { %v5200_v48 = vpop.f32.mrf.mxu1  ;;  %v632_v31 = vadd.f32 %v5079_v8, %v529_v6  ;;  %v630_v21 = vadd.f32 %v5156_v36, %v527_v5  ;;  %v361_v6 = vld [vmem:[%s4596_s23 + $0x38] sm:$0xf]  ;;  %v4267_v5 = vld [vmem:[%s4596_s23 + $0x30] sm:$0xff] }
 0x134   : > { %v5192_v29 = vpop.f32.mrf.mxu2  ;;  %v1870_v14 = vpop.f32.mrf.mxu3  ;;  %7005 = vst [vmem:[#allocation42_spill] sm:$0xff] %v5200_v48 }
 0x135   : > { %7003 = vst [vmem:[#allocation40_spill] sm:$0xff] %v5192_v29  ;;  %v5198_v45 = vadd.f32 %v1870_v14, %v1219_v47  ;;  %v1221_v63 = vpop.f32.mrf.mxu0  ;;  %v4018_v47 = vld [vmem:[%s6839_s4 + $0x21c] sm:$0xf0]  ;;  %v633_v14 = vadd.f32 %v5156_v36, %v530_v0  ;;  %v5220_v29 = vpack.c.bf16 %v632_v31, %v629_v10  ;;  %v429_v0 = vunpack.c.h.bf16 %v4267_v5 }
 0x136   : > { %v4021_v42 = vor.u32 %v4139_v7, %v4018_v47 }
 0x137   : > { %7004 = vst [vmem:[#allocation41_spill] sm:$0xff] %v5198_v45  ;;  %v5222_v48 = vpack.c.bf16 %v633_v14, %v630_v21  ;;  %v363_v45 = vld [vmem:[%s4596_s23 + $0x44] sm:$0xf]  ;;  %v532_v21 = vmul.f32 %v5069_v2, %v429_v0 }
 0x138   : > { %2267 = vmatpush.bf16.msra.mxu0 %v4021_v42  ;;  %7007 = vst [vmem:[#allocation44_spill] sm:$0xff] %v5220_v29  ;;  %v432_v42 = vunpack.c.h.bf16 %v4268_v22  ;;  %v433_v10 = vunpack.c.l.bf16 %v363_v45 }
 0x139   : > { %7008 = vst [vmem:[#allocation45_spill] sm:$0xff] %v5222_v48 }
 0x13a   : > { %v535_v14 = vmul.f32 %v5069_v2, %v432_v42  ;;  %v536_v5 = vmul.f32 %v5148_v50, %v433_v10 }
 0x13b   : > { %v5226_v47 = vpop.f32.mrf.mxu1 }
 0x13c   : > { %v5218_v49 = vpop.f32.mrf.mxu2  ;;  %v1872_v15 = vpop.f32.mrf.mxu3  ;;  %7009 = vst [vmem:[#allocation46_spill] sm:$0xff] %v5226_v47  ;;  %v635_v47 = vadd.f32 %v5079_v8, %v532_v21  ;;  %v639_v42 = vadd.f32 %v5156_v36, %v536_v5  ;;  %v365_v21 = vld [vmem:[%s4596_s23 + $0x50] sm:$0xf]  ;;  %v4270_v5 = vld [vmem:[%s4596_s23 + $0x54] sm:$0xff] }
 0x13d   : > { %7006 = vst [vmem:[#allocation43_spill] sm:$0xff] %v5218_v49  ;;  %v5224_v7 = vadd.f32 %v1872_v15, %v1221_v63  ;;  %v1224_v4 = vpop.f32.mrf.mxu0  ;;  %v430_v49 = vunpack.c.l.bf16 %v361_v6 }
 0x13e   : > { %2012 = vmatmul.bf16.gmra.mxu1 %v5222_v48  ;;  %v367_v48 = vld [vmem:[%s4596_s23 + $0x5c] sm:$0xf] }
 0x13f   : > { %v533_v15 = vmul.f32 %v5148_v50, %v430_v49 }
 0x140   : > { %1923 = vmatmul.bf16.gmra.mxu0 %v5220_v29 }
 0x141   : > { %2101 = vmatmul.bf16.gmra.mxu2 %v4667_v32  ;;  %2190 = vmatmul.bf16.gmra.mxu3 %v5220_v29  ;;  %v636_v0 = vadd.f32 %v5156_v36, %v533_v15 }
 0x143   : > { %v5244_v6 = vpop.f32.mrf.mxu1 }
 0x144   : > { %v5236_v63 = vpop.f32.mrf.mxu2  ;;  %v1875_v31 = vpop.f32.mrf.mxu3  ;;  %7012 = vst [vmem:[#allocation49_spill] sm:$0xff] %v5244_v6 }
 0x145   : > { %7010 = vst [vmem:[#allocation47_spill] sm:$0xff] %v5236_v63  ;;  %v5242_v22 = vadd.f32 %v1875_v31, %v1224_v4  ;;  %v1226_v45 = vpop.f32.mrf.mxu0  ;;  %v638_v63 = vadd.f32 %v5079_v8, %v535_v14  ;;  %v5254_v4 = vpack.c.bf16 %v639_v42, %v636_v0  ;;  %v4269_v14 = vld [vmem:[%s4596_s23 + $0x48] sm:$0xff] }
 0x146   : > { %v435_v15 = vunpack.c.h.bf16 %v4269_v14 }
 0x147   : > { %7011 = vst [vmem:[#allocation48_spill] sm:$0xff] %v5242_v22  ;;  %v5252_v10 = vpack.c.bf16 %v638_v63, %v635_v47  ;;  %v436_v22 = vunpack.c.l.bf16 %v365_v21  ;;  %v439_v47 = vunpack.c.l.bf16 %v367_v48  ;;  %v4114_v63 = vld [vmem:[%s6839_s4 + $0x148] sm:$0xf0] }
 0x148   : > { %7015 = vst [vmem:[#allocation52_spill] sm:$0xff] %v5254_v4  ;;  %v4138_v48 = vld [vmem:[%s6839_s4 + $0x208] sm:$0xf0] }
 0x149   : > { %7014 = vst [vmem:[#allocation51_spill] sm:$0xff] %v5252_v10 }
 0x14b   : > { %v5258_v32 = vpop.f32.mrf.mxu1 }
 0x14c   : > { %v5250_v49 = vpop.f32.mrf.mxu2  ;;  %v1877_v29 = vpop.f32.mrf.mxu3  ;;  %7016 = vst [vmem:[#allocation53_spill] sm:$0xff] %v5258_v32 }
 0x14d   : > { %7013 = vst [vmem:[#allocation50_spill] sm:$0xff] %v5250_v49  ;;  %v5256_v31 = vadd.f32 %v1877_v29, %v1226_v45  ;;  %v1229_v6 = vpop.f32.mrf.mxu0  ;;  %v438_v49 = vunpack.c.h.bf16 %v4270_v5  ;;  %v3916_v29 = vld [vmem:[%s6839_s4 + $0x140] sm:$0xf]  ;;  %v538_v5 = vmul.f32 %v5069_v2, %v435_v15  ;;  %v4090_v15 = vld [vmem:[%s6839_s4 + $0x88] sm:$0xf0] }
 0x14e   : > { %2017 = vmatmul.bf16.gmra.mxu1 %v5254_v4  ;;  %v4012_v45 = vld [vmem:[%s6839_s4 + $0x200] sm:$0xf]  ;;  %v3917_v0 = vor.u32 %v4114_v63, %v3916_v29 }
 0x14f   : > { %v4013_v42 = vor.u32 %v4138_v48, %v4012_v45  ;;  %v541_v32 = vmul.f32 %v5069_v2, %v438_v49  ;;  %v3820_v45 = vld [vmem:[%s6839_s4 + $0x80] sm:$0xf] }
 0x150   : > { %1928 = vmatmul.bf16.gmra.mxu0 %v5252_v10  ;;  %2446 = vmatpush.bf16.msra.mxu2 %v3917_v0  ;;  %v3821_v49 = vor.u32 %v4090_v15, %v3820_v45  ;;  %v641_v0 = vadd.f32 %v5079_v8, %v538_v5 }
 0x151   : > { %2106 = vmatmul.bf16.gmra.mxu2 %v4681_v54  ;;  %2195 = vmatmul.bf16.gmra.mxu3 %v5252_v10  ;;  %v539_v10 = vmul.f32 %v5148_v50, %v436_v22  ;;  %v542_v54 = vmul.f32 %v5148_v50, %v439_v47  ;;  %v4136_v22 = vld [vmem:[%s6839_s4 + $0x1fc] sm:$0xf]  ;;  %v644_v48 = vadd.f32 %v5079_v8, %v541_v32  ;;  %v369_v32 = vld [vmem:[%s4596_s23 + $0x68] sm:$0xf] }
 0x152   : > { %2535 = vmatpush.bf16.msra.mxu3 %v4013_v42  ;;  %2357 = vmatpush.bf16.msra.mxu1 %v3821_v49  ;;  %v4272_v49 = vld [vmem:[%s4596_s23 + $0x6c] sm:$0xff] }
 0x153   : > { %v5288_v63 = vpop.f32.mrf.mxu1  ;;  %v642_v42 = vadd.f32 %v5156_v36, %v539_v10 }
 0x154   : > { %v5280_v21 = vpop.f32.mrf.mxu2  ;;  %v1880_v14 = vpop.f32.mrf.mxu3  ;;  %7019 = vst [vmem:[#allocation56_spill] sm:$0xff] %v5288_v63 }
 0x155   : > { %7017 = vst [vmem:[#allocation54_spill] sm:$0xff] %v5280_v21  ;;  %v5286_v4 = vadd.f32 %v1880_v14, %v1229_v6  ;;  %v1231_v29 = vpop.f32.mrf.mxu0  ;;  %v4006_v6 = vld [vmem:[%s6839_s4 + $0x204] sm:$0xf0]  ;;  %v645_v14 = vadd.f32 %v5156_v36, %v542_v54  ;;  %v5308_v21 = vpack.c.bf16 %v644_v48, %v641_v0  ;;  %v4271_v54 = vld [vmem:[%s4596_s23 + $0x60] sm:$0xff] }
 0x156   : > { %v4009_v47 = vor.u32 %v4136_v22, %v4006_v6  ;;  %v441_v10 = vunpack.c.h.bf16 %v4271_v54 }
 0x157   : > { %7018 = vst [vmem:[#allocation55_spill] sm:$0xff] %v5286_v4  ;;  %v5310_v63 = vpack.c.bf16 %v645_v14, %v642_v42  ;;  %v371_v4 = vld [vmem:[%s4596_s23 + $0x74] sm:$0xf] }
 0x158   : > { %2268 = vmatpush.bf16.msra.mxu0 %v4009_v47  ;;  %7021 = vst [vmem:[#allocation58_spill] sm:$0xff] %v5308_v21  ;;  %v444_v47 = vunpack.c.h.bf16 %v4272_v49  ;;  %v445_v0 = vunpack.c.l.bf16 %v371_v4  ;;  %v544_v42 = vmul.f32 %v5069_v2, %v441_v10 }
 0x15a   : > { %v547_v14 = vmul.f32 %v5069_v2, %v444_v47  ;;  %v548_v54 = vmul.f32 %v5148_v50, %v445_v0 }
 0x15b   : > { %v5314_v6 = vpop.f32.mrf.mxu1 }
 0x15c   : > { %v5306_v45 = vpop.f32.mrf.mxu2  ;;  %v1882_v15 = vpop.f32.mrf.mxu3  ;;  %7023 = vst [vmem:[#allocation60_spill] sm:$0xff] %v5314_v6  ;;  %v651_v47 = vadd.f32 %v5156_v36, %v548_v54  ;;  %v4274_v54 = vld [vmem:[%s4596_s23 + $0x84] sm:$0xff] }
 0x15d   : > { %7020 = vst [vmem:[#allocation57_spill] sm:$0xff] %v5306_v45  ;;  %v5312_v22 = vadd.f32 %v1882_v15, %v1231_v29  ;;  %v1234_v5 = vpop.f32.mrf.mxu0  ;;  %v442_v45 = vunpack.c.l.bf16 %v369_v32 }
 0x15e   : > { %2022 = vmatmul.bf16.gmra.mxu1 %v5310_v63 }
 0x15f   : > { %7022 = vst [vmem:[#allocation59_spill] sm:$0xff] %v5312_v22  ;;  %v545_v15 = vmul.f32 %v5148_v50, %v442_v45  ;;  %v647_v22 = vadd.f32 %v5079_v8, %v544_v42  ;;  %v373_v42 = vld [vmem:[%s4596_s23 + $0x80] sm:$0xf] }
 0x160   : > { %1933 = vmatmul.bf16.gmra.mxu0 %v5308_v21 }
 0x161   : > { %2111 = vmatmul.bf16.gmra.mxu2 %v4719_v20  ;;  %2200 = vmatmul.bf16.gmra.mxu3 %v5308_v21  ;;  %v648_v10 = vadd.f32 %v5156_v36, %v545_v15  ;;  %v375_v21 = vld [vmem:[%s4596_s23 + $0x8c] sm:$0xf]  ;;  %v448_v20 = vunpack.c.l.bf16 %v373_v42 }
 0x163   : > { %v5332_v32 = vpop.f32.mrf.mxu1 }
 0x164   : > { %v5324_v29 = vpop.f32.mrf.mxu2  ;;  %v1885_v48 = vpop.f32.mrf.mxu3  ;;  %7026 = vst [vmem:[#allocation63_spill] sm:$0xff] %v5332_v32 }
 0x165   : > { %7024 = vst [vmem:[#allocation61_spill] sm:$0xff] %v5324_v29  ;;  %v5330_v49 = vadd.f32 %v1885_v48, %v1234_v5  ;;  %v1236_v4 = vpop.f32.mrf.mxu0  ;;  %v650_v29 = vadd.f32 %v5079_v8, %v547_v14  ;;  %v5342_v5 = vpack.c.bf16 %v651_v47, %v648_v10  ;;  %v4273_v14 = vld [vmem:[%s4596_s23 + $0x78] sm:$0xff] }
 0x166   : > { %v447_v15 = vunpack.c.h.bf16 %v4273_v14 }
 0x167   : > { %7025 = vst [vmem:[#allocation62_spill] sm:$0xff] %v5330_v49  ;;  %v5340_v0 = vpack.c.bf16 %v650_v29, %v647_v22  ;;  %v451_v22 = vunpack.c.l.bf16 %v375_v21  ;;  %v4111_v29 = vld [vmem:[%s6839_s4 + $0x130] sm:$0xf0] }
 0x168   : > { %v4135_v21 = vld [vmem:[%s6839_s4 + $0x1f0] sm:$0xf0] }
 0x169   : > { %7028 = vst [vmem:[#allocation65_spill] sm:$0xff] %v5340_v0 }
 0x16b   : > { %v5346_v32 = vpop.f32.mrf.mxu1 }
 0x16c   : > { %v5338_v45 = vpop.f32.mrf.mxu2  ;;  %v1887_v6 = vpop.f32.mrf.mxu3  ;;  %7030 = vst [vmem:[#allocation67_spill] sm:$0xff] %v5346_v32  ;;  %v551_v32 = vmul.f32 %v5148_v50, %v448_v20  ;;  %v4133_v20 = vld [vmem:[%s6839_s4 + $0x1e4] sm:$0xf] }
 0x16d   : > { %7027 = vst [vmem:[#allocation64_spill] sm:$0xff] %v5338_v45  ;;  %v5344_v48 = vadd.f32 %v1887_v6, %v1236_v4  ;;  %v1239_v49 = vpop.f32.mrf.mxu0  ;;  %v450_v45 = vunpack.c.h.bf16 %v4274_v54  ;;  %v3904_v6 = vld [vmem:[%s6839_s4 + $0x128] sm:$0xf]  ;;  %v550_v54 = vmul.f32 %v5069_v2, %v447_v15  ;;  %v4087_v15 = vld [vmem:[%s6839_s4 + $0x70] sm:$0xf0] }
 0x16e   : > { %2027 = vmatmul.bf16.gmra.mxu1 %v5342_v5  ;;  %v4000_v4 = vld [vmem:[%s6839_s4 + $0x1e8] sm:$0xf]  ;;  %v3905_v10 = vor.u32 %v4111_v29, %v3904_v6 }
 0x16f   : > { %7029 = vst [vmem:[#allocation66_spill] sm:$0xff] %v5344_v48  ;;  %v4001_v47 = vor.u32 %v4135_v21, %v4000_v4  ;;  %v553_v48 = vmul.f32 %v5069_v2, %v450_v45  ;;  %v3808_v4 = vld [vmem:[%s6839_s4 + $0x68] sm:$0xf] }
 0x170   : > { %1938 = vmatmul.bf16.gmra.mxu0 %v5340_v0  ;;  %2447 = vmatpush.bf16.msra.mxu2 %v3905_v10  ;;  %v3809_v45 = vor.u32 %v4087_v15, %v3808_v4  ;;  %v653_v10 = vadd.f32 %v5079_v8, %v550_v54 }
 0x171   : > { %2116 = vmatmul.bf16.gmra.mxu2 %v4733_v39  ;;  %2205 = vmatmul.bf16.gmra.mxu3 %v5340_v0  ;;  %v554_v0 = vmul.f32 %v5148_v50, %v451_v22  ;;  %v656_v21 = vadd.f32 %v5079_v8, %v553_v48  ;;  %v377_v48 = vld [vmem:[%s4596_s23 + $0x98] sm:$0xf] }
 0x172   : > { %2536 = vmatpush.bf16.msra.mxu3 %v4001_v47  ;;  %v654_v47 = vadd.f32 %v5156_v36, %v551_v32  ;;  %2358 = vmatpush.bf16.msra.mxu1 %v3809_v45  ;;  %v4275_v32 = vld [vmem:[%s4596_s23 + $0x90] sm:$0xff]  ;;  %v4276_v45 = vld [vmem:[%s4596_s23 + $0x9c] sm:$0xff] }
 0x173   : > { %v5376_v29 = vpop.f32.mrf.mxu1 }
 0x174   : > { %v5368_v42 = vpop.f32.mrf.mxu2  ;;  %v1890_v14 = vpop.f32.mrf.mxu3  ;;  %7033 = vst [vmem:[#allocation70_spill] sm:$0xff] %v5376_v29  ;;  %v379_v29 = vld [vmem:[%s4596_s23 + $0xa4] sm:$0xf] }
 0x175   : > { %7031 = vst [vmem:[#allocation68_spill] sm:$0xff] %v5368_v42  ;;  %v5374_v39 = vadd.f32 %v1890_v14, %v1239_v49  ;;  %v1241_v6 = vpop.f32.mrf.mxu0  ;;  %v3994_v49 = vld [vmem:[%s6839_s4 + $0x1ec] sm:$0xf0]  ;;  %v657_v14 = vadd.f32 %v5156_v36, %v554_v0  ;;  %v5396_v42 = vpack.c.bf16 %v656_v21, %v653_v10  ;;  %v453_v0 = vunpack.c.h.bf16 %v4275_v32 }
 0x176   : > { %v3997_v22 = vor.u32 %v4133_v20, %v3994_v49  ;;  %v457_v10 = vunpack.c.l.bf16 %v379_v29 }
 0x177   : > { %7032 = vst [vmem:[#allocation69_spill] sm:$0xff] %v5374_v39  ;;  %v5398_v39 = vpack.c.bf16 %v657_v14, %v654_v47  ;;  %v556_v47 = vmul.f32 %v5069_v2, %v453_v0 }
 0x178   : > { %2269 = vmatpush.bf16.msra.mxu0 %v3997_v22  ;;  %7035 = vst [vmem:[#allocation72_spill] sm:$0xff] %v5396_v42  ;;  %v456_v22 = vunpack.c.h.bf16 %v4276_v45  ;;  %v560_v32 = vmul.f32 %v5148_v50, %v457_v10 }
 0x179   : > { %7036 = vst [vmem:[#allocation73_spill] sm:$0xff] %v5398_v39 }
 0x17a   : > { %v559_v14 = vmul.f32 %v5069_v2, %v456_v22  ;;  %v663_v22 = vadd.f32 %v5156_v36, %v560_v32  ;;  %v4278_v32 = vld [vmem:[%s4596_s23 + $0xb4] sm:$0xff] }
 0x17b   : > { %v5402_v49 = vpop.f32.mrf.mxu1 }
 0x17c   : > { %v5394_v4 = vpop.f32.mrf.mxu2  ;;  %v1892_v15 = vpop.f32.mrf.mxu3  ;;  %7038 = vst [vmem:[#allocation75_spill] sm:$0xff] %v5402_v49 }
 0x17d   : > { %7034 = vst [vmem:[#allocation71_spill] sm:$0xff] %v5394_v4  ;;  %v5400_v20 = vadd.f32 %v1892_v15, %v1241_v6  ;;  %v1244_v54 = vpop.f32.mrf.mxu0  ;;  %v454_v4 = vunpack.c.l.bf16 %v377_v48 }
 0x17e   : > { %2032 = vmatmul.bf16.gmra.mxu1 %v5398_v39  ;;  %v385_v39 = vld [vmem:[%s4596_s23 + $0xc8] sm:$0xf] }
 0x17f   : > { %7037 = vst [vmem:[#allocation74_spill] sm:$0xff] %v5400_v20  ;;  %v557_v15 = vmul.f32 %v5148_v50, %v454_v4  ;;  %v659_v20 = vadd.f32 %v5079_v8, %v556_v47  ;;  %v381_v47 = vld [vmem:[%s4596_s23 + $0xb0] sm:$0xf] }
 0x180   : > { %1943 = vmatmul.bf16.gmra.mxu0 %v5396_v42 }
 0x181   : > { %2121 = vmatmul.bf16.gmra.mxu2 %v4771_v11  ;;  %2210 = vmatmul.bf16.gmra.mxu3 %v5396_v42  ;;  %v660_v0 = vadd.f32 %v5156_v36, %v557_v15  ;;  %v383_v42 = vld [vmem:[%s4596_s23 + $0xbc] sm:$0xf]  ;;  %v460_v11 = vunpack.c.l.bf16 %v381_v47 }
 0x183   : > { %v5420_v48 = vpop.f32.mrf.mxu1 }
 0x184   : > { %v5412_v6 = vpop.f32.mrf.mxu2  ;;  %v1895_v21 = vpop.f32.mrf.mxu3  ;;  %7041 = vst [vmem:[#allocation78_spill] sm:$0xff] %v5420_v48 }
 0x185   : > { %7039 = vst [vmem:[#allocation76_spill] sm:$0xff] %v5412_v6  ;;  %v5418_v45 = vadd.f32 %v1895_v21, %v1244_v54  ;;  %v1246_v29 = vpop.f32.mrf.mxu0  ;;  %v662_v6 = vadd.f32 %v5079_v8, %v559_v14  ;;  %v5430_v54 = vpack.c.bf16 %v663_v22, %v660_v0  ;;  %v4277_v14 = vld [vmem:[%s4596_s23 + $0xa8] sm:$0xff]  ;;  %v563_v22 = vmul.f32 %v5148_v50, %v460_v11  ;;  %v4108_v11 = vld [vmem:[%s6839_s4 + $0x118] sm:$0xf0] }
 0x186   : > { %v459_v15 = vunpack.c.h.bf16 %v4277_v14 }
 0x187   : > { %7040 = vst [vmem:[#allocation77_spill] sm:$0xff] %v5418_v45  ;;  %v5428_v10 = vpack.c.bf16 %v662_v6, %v659_v20  ;;  %v463_v20 = vunpack.c.l.bf16 %v383_v42 }
 0x188   : > { %7044 = vst [vmem:[#allocation81_spill] sm:$0xff] %v5430_v54 }
 0x189   : > { %7043 = vst [vmem:[#allocation80_spill] sm:$0xff] %v5428_v10 }
 0x18b   : > { %v5434_v48 = vpop.f32.mrf.mxu1 }
 0x18c   : > { %v5426_v4 = vpop.f32.mrf.mxu2  ;;  %v1897_v49 = vpop.f32.mrf.mxu3  ;;  %7046 = vst [vmem:[#allocation83_spill] sm:$0xff] %v5434_v48  ;;  %v566_v48 = vmul.f32 %v5148_v50, %v463_v20  ;;  %v4132_v20 = vld [vmem:[%s6839_s4 + $0x1d8] sm:$0xf0] }
 0x18d   : > { %7042 = vst [vmem:[#allocation79_spill] sm:$0xff] %v5426_v4  ;;  %v5432_v21 = vadd.f32 %v1897_v49, %v1246_v29  ;;  %v1249_v45 = vpop.f32.mrf.mxu0  ;;  %v462_v4 = vunpack.c.h.bf16 %v4278_v32  ;;  %v562_v29 = vmul.f32 %v5069_v2, %v459_v15 }
 0x18e   : > { %2037 = vmatmul.bf16.gmra.mxu1 %v5430_v54 }
 0x18f   : > { %7045 = vst [vmem:[#allocation82_spill] sm:$0xff] %v5432_v21  ;;  %v565_v0 = vmul.f32 %v5069_v2, %v462_v4  ;;  %v665_v42 = vadd.f32 %v5079_v8, %v562_v29  ;;  %v669_v21 = vadd.f32 %v5156_v36, %v566_v48  ;;  %v3892_v4 = vld [vmem:[%s6839_s4 + $0x110] sm:$0xf] }
 0x190   : > { %1948 = vmatmul.bf16.gmra.mxu0 %v5428_v10  ;;  %v3893_v15 = vor.u32 %v4108_v11, %v3892_v4  ;;  %v3796_v48 = vld [vmem:[%s6839_s4 + $0x50] sm:$0xf] }
 0x191   : > { %2126 = vmatmul.bf16.gmra.mxu2 %v4785_v30  ;;  %2215 = vmatmul.bf16.gmra.mxu3 %v5428_v10  ;;  %v668_v10 = vadd.f32 %v5079_v8, %v565_v0 }
 0x192   : > { %2448 = vmatpush.bf16.msra.mxu2 %v3893_v15  ;;  %v4279_v15 = vld [vmem:[%s4596_s23 + $0xc0] sm:$0xff] }
 0x193   : > { %v5452_v47 = vpop.f32.mrf.mxu1  ;;  %v5478_v11 = vpack.c.bf16 %v668_v10, %v665_v42  ;;  %v466_v42 = vunpack.c.l.bf16 %v385_v39 }
 0x194   : > { %v5444_v49 = vpop.f32.mrf.mxu2  ;;  %v1900_v6 = vpop.f32.mrf.mxu3  ;;  %7049 = vst [vmem:[#allocation86_spill] sm:$0xff] %v5452_v47 }
 0x195   : > { %7047 = vst [vmem:[#allocation84_spill] sm:$0xff] %v5444_v49  ;;  %v5450_v14 = vadd.f32 %v1900_v6, %v1249_v45  ;;  %v1251_v32 = vpop.f32.mrf.mxu0  ;;  %v666_v49 = vadd.f32 %v5156_v36, %v563_v22  ;;  %v3988_v45 = vld [vmem:[%s6839_s4 + $0x1d0] sm:$0xf]  ;;  %v4084_v6 = vld [vmem:[%s6839_s4 + $0x58] sm:$0xf0] }
 0x196   : > { %v3989_v29 = vor.u32 %v4132_v20, %v3988_v45  ;;  %v3797_v0 = vor.u32 %v4084_v6, %v3796_v48  ;;  %7051 = vst [vmem:[#allocation88_spill] sm:$0xff] %v5478_v11  ;;  %v387_v45 = vld [vmem:[%s4596_s23 + $0xd4] sm:$0xf]  ;;  %v465_v20 = vunpack.c.h.bf16 %v4279_v15  ;;  %v4280_v48 = vld [vmem:[%s4596_s23 + $0xcc] sm:$0xff] }
 0x197   : > { %7048 = vst [vmem:[#allocation85_spill] sm:$0xff] %v5450_v14  ;;  %v5480_v47 = vpack.c.bf16 %v669_v21, %v666_v49  ;;  %v468_v10 = vunpack.c.h.bf16 %v4280_v48  ;;  %v469_v21 = vunpack.c.l.bf16 %v387_v45  ;;  %v4130_v49 = vld [vmem:[%s6839_s4 + $0x1cc] sm:$0xf]  ;;  %v569_v45 = vmul.f32 %v5148_v50, %v466_v42 }
 0x198   : > { %2537 = vmatpush.bf16.msra.mxu3 %v3989_v29  ;;  %2359 = vmatpush.bf16.msra.mxu1 %v3797_v0 }
 0x199   : > { %7052 = vst [vmem:[#allocation89_spill] sm:$0xff] %v5480_v47  ;;  %v571_v39 = vmul.f32 %v5069_v2, %v468_v10  ;;  %v572_v15 = vmul.f32 %v5148_v50, %v469_v21 }
 0x19b   : > { %v5484_v54 = vpop.f32.mrf.mxu1  ;;  %v675_v10 = vadd.f32 %v5156_v36, %v572_v15  ;;  %v4282_v15 = vld [vmem:[%s4596_s23 + $0xe4] sm:$0xff] }
 0x19c   : > { %v5476_v22 = vpop.f32.mrf.mxu2  ;;  %v1902_v4 = vpop.f32.mrf.mxu3  ;;  %7053 = vst [vmem:[#allocation90_spill] sm:$0xff] %v5484_v54 }
 0x19d   : > { %7050 = vst [vmem:[#allocation87_spill] sm:$0xff] %v5476_v22  ;;  %v5482_v14 = vadd.f32 %v1902_v4, %v1251_v32  ;;  %v1254_v30 = vpop.f32.mrf.mxu0  ;;  %v3982_v32 = vld [vmem:[%s6839_s4 + $0x1d4] sm:$0xf0]  ;;  %v568_v4 = vmul.f32 %v5069_v2, %v465_v20  ;;  %v672_v20 = vadd.f32 %v5156_v36, %v569_v45 }
 0x19e   : > { %2042 = vmatmul.bf16.gmra.mxu1 %v5480_v47  ;;  %v3985_v6 = vor.u32 %v4130_v49, %v3982_v32  ;;  %v674_v32 = vadd.f32 %v5079_v8, %v571_v39 }
 0x19f   : > { %v671_v49 = vadd.f32 %v5079_v8, %v568_v4  ;;  %v391_v4 = vld [vmem:[%s4596_s23 + $0xec] sm:$0xf] }
 0x1a0   : > { %1953 = vmatmul.bf16.gmra.mxu0 %v5478_v11 }
 0x1a1   : > { %2131 = vmatmul.bf16.gmra.mxu2 %v4823_v3  ;;  %2220 = vmatmul.bf16.gmra.mxu3 %v5478_v11  ;;  %v389_v11 = vld [vmem:[%s4596_s23 + $0xe0] sm:$0xf]  ;;  %v4281_v3 = vld [vmem:[%s4596_s23 + $0xd8] sm:$0xff] }
 0x1a2   : > { %2270 = vmatpush.bf16.msra.mxu0 %v3985_v6  ;;  %v471_v45 = vunpack.c.h.bf16 %v4281_v3 }
 0x1a3   : > { %v5508_v54 = vpop.f32.mrf.mxu1 }
 0x1a4   : > { %v5500_v29 = vpop.f32.mrf.mxu2  ;;  %v1905_v0 = vpop.f32.mrf.mxu3  ;;  %7056 = vst [vmem:[#allocation93_spill] sm:$0xff] %v5508_v54 }
 0x1a5   : > { %7054 = vst [vmem:[#allocation91_spill] sm:$0xff] %v5500_v29  ;;  %v5506_v48 = vadd.f32 %v1905_v0, %v1254_v30  ;;  %v1256_v22 = vpop.f32.mrf.mxu0  ;;  %v5516_v30 = vpack.c.bf16 %v674_v32, %v671_v49  ;;  %v5518_v0 = vpack.c.bf16 %v675_v10, %v672_v20  ;;  %v474_v49 = vunpack.c.h.bf16 %v4282_v15 }
 0x1a6   : > { %v472_v32 = vunpack.c.l.bf16 %v389_v11  ;;  %v475_v20 = vunpack.c.l.bf16 %v391_v4 }
 0x1a7   : > { %7055 = vst [vmem:[#allocation92_spill] sm:$0xff] %v5506_v48  ;;  %v577_v3 = vmul.f32 %v5069_v2, %v474_v49 }
 0x1a8   : > { %7058 = vst [vmem:[#allocation95_spill] sm:$0xff] %v5516_v30 }
 0x1a9   : > { %7059 = vst [vmem:[#allocation96_spill] sm:$0xff] %v5518_v0 }
 0x1ab   : > { %v2008_v6 = vpop.f32.mrf.mxu1 }
 0x1ac   : > { %v5514_v42 = vpop.f32.mrf.mxu2  ;;  %v1907_v21 = vpop.f32.mrf.mxu3 }
 0x1ad   : > { %7057 = vst [vmem:[#allocation94_spill] sm:$0xff] %v5514_v42  ;;  %v5520_v29 = vadd.f32 %v1907_v21, %v1256_v22  ;;  %v1919_v54 = vpop.f32.mrf.mxu0  ;;  %v574_v22 = vmul.f32 %v5069_v2, %v471_v45  ;;  %v578_v21 = vmul.f32 %v5148_v50, %v475_v20  ;;  %v680_v45 = vadd.f32 %v5079_v8, %v577_v3  ;;  %v3976_v20 = vld [vmem:[%s6839_s4 + $0x1b8] sm:$0xf]  ;;  %v4081_v3 = vld [vmem:[%s6839_s4 + $0x40] sm:$0xf0] }
 0x1ae   : > { %v1920_v39 = vadd.f32 %v1919_v54, %v4861_v52  ;;  %2047 = vmatmul.bf16.gmra.mxu1 %v5518_v0  ;;  %v575_v54 = vmul.f32 %v5148_v50, %v472_v32  ;;  %v393_v0 = vld [vmem:[%s4596_s23 + $0xf8] sm:$0xf] }
 0x1af   : > { %7060 = vst [vmem:[#allocation97_spill] sm:$0xff] %v5520_v29  ;;  %v677_v42 = vadd.f32 %v5079_v8, %v574_v22  ;;  %v681_v32 = vadd.f32 %v5156_v36, %v578_v21 }
 0x1b0   : > { %v5526_v47 = vadd.f32 %v2008_v6, %v1920_v39  ;;  %1958 = vmatmul.bf16.gmra.mxu0 %v5516_v30  ;;  %v678_v49 = vadd.f32 %v5156_v36, %v575_v54 }
 0x1b1   : > { %2136 = vmatmul.bf16.gmra.mxu2 %v4839_v25  ;;  %2225 = vmatmul.bf16.gmra.mxu3 %v5516_v30 }
 0x1b3   : > { %v2010_v15 = vpop.f32.mrf.mxu1 }
 0x1b4   : > { %v2097_v10 = vpop.f32.mrf.mxu2  ;;  %v2186_v52 = vpop.f32.mrf.mxu3 }
 0x1b5   : > { %v2098_v6 = vadd.f32 %v2097_v10, %v4837_v24  ;;  %v1921_v39 = vpop.f32.mrf.mxu0  ;;  %v3880_v24 = vld [vmem:[%s6839_s4 + $0xf8] sm:$0xf]  ;;  %v4129_v10 = vld [vmem:[%s6839_s4 + $0x1c0] sm:$0xf0] }
 0x1b6   : > { %v1922_v11 = vadd.f32 %v1921_v39, %v4885_v9  ;;  %v4105_v9 = vld [vmem:[%s6839_s4 + $0x100] sm:$0xf0]  ;;  %v5567_v39 = vpack.c.bf16 %v681_v32, %v678_v49 }
 0x1b7   : > { %v5539_v4 = vadd.f32 %v2186_v52, %v2098_v6  ;;  %v3881_v22 = vor.u32 %v4105_v9, %v3880_v24  ;;  %v3784_v52 = vld [vmem:[%s6839_s4 + $0x38] sm:$0xf]  ;;  %v5565_v6 = vpack.c.bf16 %v680_v45, %v677_v42  ;;  %v4283_v42 = vld [vmem:[%s4596_s23 + $0xf0] sm:$0xff] }
 0x1b8   : > { %v5542_v30 = vadd.f32 %v2010_v15, %v1922_v11  ;;  %v3977_v15 = vor.u32 %v4129_v10, %v3976_v20  ;;  %v3785_v11 = vor.u32 %v4081_v3, %v3784_v52  ;;  %v477_v45 = vunpack.c.h.bf16 %v4283_v42 }
 0x1b9   : > { %7061 = vst [vmem:[#allocation98_spill] sm:$0xff] %v5539_v4  ;;  %v395_v4 = vld [vmem:[%s4596_s23 + $0x104] sm:$0xf]  ;;  %2449 = vmatpush.bf16.msra.mxu2 %v3881_v22  ;;  %v478_v20 = vunpack.c.l.bf16 %v393_v0 }
 0x1ba   : > { %2538 = vmatpush.bf16.msra.mxu3 %v3977_v15  ;;  %2360 = vmatpush.bf16.msra.mxu1 %v3785_v11  ;;  %v481_v10 = vunpack.c.l.bf16 %v395_v4 }
 0x1bb   : > { %v2013_v25 = vpop.f32.mrf.mxu1  ;;  %v581_v4 = vmul.f32 %v5148_v50, %v478_v20 }
 0x1bc   : > { %v2099_v54 = vpop.f32.mrf.mxu2  ;;  %v2188_v21 = vpop.f32.mrf.mxu3 }
 0x1bd   : > { %v2100_v24 = vadd.f32 %v2099_v54, %v4863_v55  ;;  %v1924_v9 = vpop.f32.mrf.mxu0  ;;  %v4284_v55 = vld [vmem:[%s4596_s23 + $0xfc] sm:$0xff]  ;;  %v584_v54 = vmul.f32 %v5148_v50, %v481_v10 }
 0x1be   : > { %v1925_v29 = vadd.f32 %v1924_v9, %v4899_v28  ;;  %2052 = vmatmul.bf16.gmra.mxu1 %v5567_v39  ;;  %v480_v32 = vunpack.c.h.bf16 %v4284_v55  ;;  %v4127_v28 = vld [vmem:[%s6839_s4 + $0x1b4] sm:$0xf] }
 0x1bf   : > { %v5573_v48 = vadd.f32 %v2188_v21, %v2100_v24 }
 0x1c0   : > { %v5576_v49 = vadd.f32 %v2013_v25, %v1925_v29  ;;  %1963 = vmatmul.bf16.gmra.mxu0 %v5565_v6  ;;  %v3970_v25 = vld [vmem:[%s6839_s4 + $0x1bc] sm:$0xf0]  ;;  %v580_v29 = vmul.f32 %v5069_v2, %v477_v45  ;;  %v583_v0 = vmul.f32 %v5069_v2, %v480_v32  ;;  %v684_v32 = vadd.f32 %v5156_v36, %v581_v4  ;;  %v4285_v4 = vld [vmem:[%s4596_s23 + $0x108] sm:$0xff] }
 0x1c1   : > { %2141 = vmatmul.bf16.gmra.mxu2 %v4889_v13  ;;  %2230 = vmatmul.bf16.gmra.mxu3 %v5565_v6  ;;  %v3973_v22 = vor.u32 %v4127_v28, %v3970_v25 }
 0x1c2   : > { %v683_v42 = vadd.f32 %v5079_v8, %v580_v29  ;;  %v686_v55 = vadd.f32 %v5079_v8, %v583_v0 }
 0x1c3   : > { %v2015_v11 = vpop.f32.mrf.mxu1  ;;  %2271 = vmatpush.bf16.msra.mxu0 %v3973_v22 }
 0x1c4   : > { %v2102_v52 = vpop.f32.mrf.mxu2  ;;  %v2191_v3 = vpop.f32.mrf.mxu3  ;;  %v5603_v28 = vpack.c.bf16 %v686_v55, %v683_v42 }
 0x1c5   : > { %v2103_v21 = vadd.f32 %v2102_v52, %v4887_v12  ;;  %v1926_v15 = vpop.f32.mrf.mxu0  ;;  %v687_v12 = vadd.f32 %v5156_v36, %v584_v54  ;;  %v397_v52 = vld [vmem:[%s4596_s23 + $0x110] sm:$0xf] }
 0x1c6   : > { %v1927_v24 = vadd.f32 %v1926_v15, %v4911_v46  ;;  %7062 = vst [vmem:[#allocation99_spill] sm:$0xff] %v5603_v28  ;;  %v483_v15 = vunpack.c.h.bf16 %v4285_v4  ;;  %v484_v42 = vunpack.c.l.bf16 %v397_v52 }
 0x1c7   : > { %v5595_v9 = vadd.f32 %v2191_v3, %v2103_v21  ;;  %v5605_v25 = vpack.c.bf16 %v687_v12, %v684_v32  ;;  %v399_v3 = vld [vmem:[%s4596_s23 + $0x11c] sm:$0xf] }
 0x1c8   : > { %v5598_v45 = vadd.f32 %v2015_v11, %v1927_v24  ;;  %v4286_v11 = vld [vmem:[%s4596_s23 + $0x114] sm:$0xff] }
 0x1c9   : > { %7063 = vst [vmem:[#allocation100_spill] sm:$0xff] %v5605_v25  ;;  %v486_v24 = vunpack.c.h.bf16 %v4286_v11 }
 0x1cb   : > { %v2018_v29 = vpop.f32.mrf.mxu1  ;;  %v589_v12 = vmul.f32 %v5069_v2, %v486_v24 }
 0x1cc   : > { %v2104_v20 = vpop.f32.mrf.mxu2  ;;  %v2193_v10 = vpop.f32.mrf.mxu3 }
 0x1cd   : > { %v2105_v46 = vadd.f32 %v2104_v20, %v4901_v33  ;;  %v1929_v22 = vpop.f32.mrf.mxu0  ;;  %v487_v33 = vunpack.c.l.bf16 %v399_v3  ;;  %v587_v20 = vmul.f32 %v5148_v50, %v484_v42  ;;  %v3964_v42 = vld [vmem:[%s6839_s4 + $0x1a0] sm:$0xf] }
 0x1ce   : > { %v1930_v21 = vadd.f32 %v1929_v22, %v4937_v17  ;;  %2057 = vmatmul.bf16.gmra.mxu1 %v5605_v25  ;;  %v586_v17 = vmul.f32 %v5069_v2, %v483_v15  ;;  %v692_v15 = vadd.f32 %v5079_v8, %v589_v12 }
 0x1cf   : > { %v5611_v0 = vadd.f32 %v2193_v10, %v2105_v46  ;;  %v590_v10 = vmul.f32 %v5148_v50, %v487_v33  ;;  %v690_v11 = vadd.f32 %v5156_v36, %v587_v20 }
 0x1d0   : > { %v5614_v54 = vadd.f32 %v2018_v29, %v1930_v21  ;;  %1968 = vmatmul.bf16.gmra.mxu0 %v5603_v28  ;;  %v689_v21 = vadd.f32 %v5079_v8, %v586_v17  ;;  %v4126_v17 = vld [vmem:[%s6839_s4 + $0x1a8] sm:$0xf0] }
 0x1d1   : > { %2146 = vmatmul.bf16.gmra.mxu2 %v4915_v56  ;;  %2235 = vmatmul.bf16.gmra.mxu3 %v5603_v28  ;;  %v693_v24 = vadd.f32 %v5156_v36, %v590_v10  ;;  %v401_v28 = vld [vmem:[%s4596_s23 + $0x128] sm:$0xf]  ;;  %v403_v56 = vld [vmem:[%s4596_s23 + $0x134] sm:$0xf] }
 0x1d2   : > { %v5653_v10 = vpack.c.bf16 %v692_v15, %v689_v21  ;;  %v4287_v21 = vld [vmem:[%s4596_s23 + $0x120] sm:$0xff] }
 0x1d3   : > { %v2020_v29 = vpop.f32.mrf.mxu1  ;;  %v489_v15 = vunpack.c.h.bf16 %v4287_v21 }
 0x1d4   : > { %v2107_v55 = vpop.f32.mrf.mxu2  ;;  %v2196_v32 = vpop.f32.mrf.mxu3  ;;  %7065 = vst [vmem:[#allocation102_spill] sm:$0xff] %v5653_v10 }
 0x1d5   : > { %v2108_v46 = vadd.f32 %v2107_v55, %v4913_v53  ;;  %v1931_v22 = vpop.f32.mrf.mxu0  ;;  %v3868_v53 = vld [vmem:[%s6839_s4 + $0xe0] sm:$0xf] }
 0x1d6   : > { %v1932_v52 = vadd.f32 %v1931_v22, %v4961_v58  ;;  %v4102_v58 = vld [vmem:[%s6839_s4 + $0xe8] sm:$0xf0]  ;;  %v3772_v55 = vld [vmem:[%s6839_s4 + $0x20] sm:$0xf]  ;;  %v3965_v22 = vor.u32 %v4126_v17, %v3964_v42  ;;  %v490_v42 = vunpack.c.l.bf16 %v401_v28  ;;  %v493_v17 = vunpack.c.l.bf16 %v403_v56 }
 0x1d7   : > { %v5627_v3 = vadd.f32 %v2196_v32, %v2108_v46  ;;  %v3869_v33 = vor.u32 %v4102_v58, %v3868_v53  ;;  %v4078_v32 = vld [vmem:[%s6839_s4 + $0x28] sm:$0xf0]  ;;  %v5655_v46 = vpack.c.bf16 %v693_v24, %v690_v11 }
 0x1d8   : > { %v5630_v4 = vadd.f32 %v2020_v29, %v1932_v52  ;;  %v3773_v29 = vor.u32 %v4078_v32, %v3772_v55  ;;  %2539 = vmatpush.bf16.msra.mxu3 %v3965_v22  ;;  %v593_v56 = vmul.f32 %v5148_v50, %v490_v42 }
 0x1d9   : > { %7064 = vst [vmem:[#allocation101_spill] sm:$0xff] %v5627_v3  ;;  %2450 = vmatpush.bf16.msra.mxu2 %v3869_v33  ;;  %v592_v33 = vmul.f32 %v5069_v2, %v489_v15 }
 0x1da   : > { %7066 = vst [vmem:[#allocation103_spill] sm:$0xff] %v5655_v46  ;;  %2361 = vmatpush.bf16.msra.mxu1 %v3773_v29 }
 0x1db   : > { %v2023_v58 = vpop.f32.mrf.mxu1  ;;  %v695_v21 = vadd.f32 %v5079_v8, %v592_v33 }
 0x1dc   : > { %v2109_v12 = vpop.f32.mrf.mxu2  ;;  %v2198_v20 = vpop.f32.mrf.mxu3 }
 0x1dd   : > { %v2110_v52 = vadd.f32 %v2109_v12, %v4939_v19  ;;  %v1934_v53 = vpop.f32.mrf.mxu0  ;;  %v4288_v19 = vld [vmem:[%s4596_s23 + $0x12c] sm:$0xff] }
 0x1de   : > { %v1935_v25 = vadd.f32 %v1934_v53, %v4975_v18  ;;  %2062 = vmatmul.bf16.gmra.mxu1 %v5655_v46  ;;  %v492_v24 = vunpack.c.h.bf16 %v4288_v19  ;;  %v4124_v18 = vld [vmem:[%s6839_s4 + $0x19c] sm:$0xf] }
 0x1df   : > { %v5661_v3 = vadd.f32 %v2198_v20, %v2110_v52  ;;  %v596_v20 = vmul.f32 %v5148_v50, %v493_v17 }
 0x1e0   : > { %v5664_v11 = vadd.f32 %v2023_v58, %v1935_v25  ;;  %1973 = vmatmul.bf16.gmra.mxu0 %v5653_v10  ;;  %v3958_v25 = vld [vmem:[%s6839_s4 + $0x1a4] sm:$0xf0]  ;;  %v595_v28 = vmul.f32 %v5069_v2, %v492_v24  ;;  %v696_v24 = vadd.f32 %v5156_v36, %v593_v56  ;;  %v4289_v56 = vld [vmem:[%s4596_s23 + $0x138] sm:$0xff] }
 0x1e1   : > { %7067 = vst [vmem:[#allocation104_spill] sm:$0xff] %v5661_v3  ;;  %2151 = vmatmul.bf16.gmra.mxu2 %v4965_v61  ;;  %2240 = vmatmul.bf16.gmra.mxu3 %v5653_v10  ;;  %v3961_v55 = vor.u32 %v4124_v18, %v3958_v25  ;;  %v7123_v10 = vld [vmem:[#allocation56_spill] sm:$0xff] }
 0x1e2   : > { %v698_v19 = vadd.f32 %v5079_v8, %v595_v28 }
 0x1e3   : > { %v2025_v52 = vpop.f32.mrf.mxu1  ;;  %2272 = vmatpush.bf16.msra.mxu0 %v3961_v55 }
 0x1e4   : > { %v2112_v32 = vpop.f32.mrf.mxu2  ;;  %v2201_v12 = vpop.f32.mrf.mxu3  ;;  %v5691_v18 = vpack.c.bf16 %v698_v19, %v695_v21 }
 0x1e5   : > { %v2113_v22 = vadd.f32 %v2112_v32, %v4963_v60  ;;  %v1936_v29 = vpop.f32.mrf.mxu0  ;;  %v699_v60 = vadd.f32 %v5156_v36, %v596_v20  ;;  %v405_v32 = vld [vmem:[%s4596_s23 + $0x140] sm:$0xf] }
 0x1e6   : > { %v1937_v53 = vadd.f32 %v1936_v29, %v4987_v43  ;;  %7069 = vst [vmem:[#allocation106_spill] sm:$0xff] %v5691_v18  ;;  %v495_v29 = vunpack.c.h.bf16 %v4289_v56  ;;  %v496_v21 = vunpack.c.l.bf16 %v405_v32 }
 0x1e7   : > { %v5683_v58 = vadd.f32 %v2201_v12, %v2113_v22  ;;  %v5693_v25 = vpack.c.bf16 %v699_v60, %v696_v24  ;;  %v407_v12 = vld [vmem:[%s4596_s23 + $0x14c] sm:$0xf] }
 0x1e8   : > { %v5686_v15 = vadd.f32 %v2025_v52, %v1937_v53  ;;  %v4290_v52 = vld [vmem:[%s4596_s23 + $0x144] sm:$0xff] }
 0x1e9   : > { %7068 = vst [vmem:[#allocation105_spill] sm:$0xff] %v5683_v58  ;;  %v498_v53 = vunpack.c.h.bf16 %v4290_v52 }
 0x1ea   : > { %7070 = vst [vmem:[#allocation107_spill] sm:$0xff] %v5693_v25 }
 0x1eb   : > { %v2028_v33 = vpop.f32.mrf.mxu1  ;;  %v601_v60 = vmul.f32 %v5069_v2, %v498_v53 }
 0x1ec   : > { %v2114_v42 = vpop.f32.mrf.mxu2  ;;  %v2203_v17 = vpop.f32.mrf.mxu3 }
 0x1ed   : > { %v2115_v43 = vadd.f32 %v2114_v42, %v4977_v23  ;;  %v1939_v55 = vpop.f32.mrf.mxu0  ;;  %v499_v23 = vunpack.c.l.bf16 %v407_v12  ;;  %v599_v42 = vmul.f32 %v5148_v50, %v496_v21  ;;  %v3952_v21 = vld [vmem:[%s6839_s4 + $0x188] sm:$0xf] }
 0x1ee   : > { %v1940_v22 = vadd.f32 %v1939_v55, %v5013_v38  ;;  %2067 = vmatmul.bf16.gmra.mxu1 %v5693_v25  ;;  %v598_v38 = vmul.f32 %v5069_v2, %v495_v29  ;;  %v704_v29 = vadd.f32 %v5079_v8, %v601_v60 }
 0x1ef   : > { %v5699_v28 = vadd.f32 %v2203_v17, %v2115_v43  ;;  %v602_v17 = vmul.f32 %v5148_v50, %v499_v23  ;;  %v702_v52 = vadd.f32 %v5156_v36, %v599_v42 }
 0x1f0   : > { %v5702_v20 = vadd.f32 %v2028_v33, %v1940_v22  ;;  %1978 = vmatmul.bf16.gmra.mxu0 %v5691_v18  ;;  %v701_v22 = vadd.f32 %v5079_v8, %v598_v38  ;;  %v4123_v38 = vld [vmem:[%s6839_s4 + $0x190] sm:$0xf0] }
 0x1f1   : > { %7071 = vst [vmem:[#allocation108_spill] sm:$0xff] %v5699_v28  ;;  %2156 = vmatmul.bf16.gmra.mxu2 %v4991_v59  ;;  %2245 = vmatmul.bf16.gmra.mxu3 %v5691_v18  ;;  %v705_v53 = vadd.f32 %v5156_v36, %v602_v17  ;;  %v409_v18 = vld [vmem:[%s4596_s23 + $0x158] sm:$0xf]  ;;  %v411_v59 = vld [vmem:[%s4596_s23 + $0x164] sm:$0xf] }
 0x1f2   : > { %v5741_v17 = vpack.c.bf16 %v704_v29, %v701_v22  ;;  %v4291_v22 = vld [vmem:[%s4596_s23 + $0x150] sm:$0xff] }
 0x1f3   : > { %v2030_v33 = vpop.f32.mrf.mxu1  ;;  %v501_v29 = vunpack.c.h.bf16 %v4291_v22 }
 0x1f4   : > { %v2117_v19 = vpop.f32.mrf.mxu2  ;;  %v2206_v24 = vpop.f32.mrf.mxu3  ;;  %7073 = vst [vmem:[#allocation110_spill] sm:$0xff] %v5741_v17 }
 0x1f5   : > { %v2118_v43 = vadd.f32 %v2117_v19, %v4989_v57  ;;  %v1941_v55 = vpop.f32.mrf.mxu0  ;;  %v3856_v57 = vld [vmem:[%s6839_s4 + $0xc8] sm:$0xf] }
 0x1f6   : > { %v1942_v32 = vadd.f32 %v1941_v55, %v5037_v1  ;;  %v4099_v1 = vld [vmem:[%s6839_s4 + $0xd0] sm:$0xf0]  ;;  %v3760_v19 = vld [vmem:[%s6839_s4 + $0x8] sm:$0xf]  ;;  %v3953_v55 = vor.u32 %v4123_v38, %v3952_v21  ;;  %v502_v21 = vunpack.c.l.bf16 %v409_v18  ;;  %v505_v38 = vunpack.c.l.bf16 %v411_v59 }
 0x1f7   : > { %v5715_v12 = vadd.f32 %v2206_v24, %v2118_v43  ;;  %v3857_v23 = vor.u32 %v4099_v1, %v3856_v57  ;;  %v4075_v24 = vld [vmem:[%s6839_s4 + $0x10] sm:$0xf0]  ;;  %v5743_v43 = vpack.c.bf16 %v705_v53, %v702_v52 }
 0x1f8   : > { %v5718_v56 = vadd.f32 %v2030_v33, %v1942_v32  ;;  %v3761_v33 = vor.u32 %v4075_v24, %v3760_v19  ;;  %2540 = vmatpush.bf16.msra.mxu3 %v3953_v55  ;;  %v605_v59 = vmul.f32 %v5148_v50, %v502_v21 }
 0x1f9   : > { %7072 = vst [vmem:[#allocation109_spill] sm:$0xff] %v5715_v12  ;;  %2451 = vmatpush.bf16.msra.mxu2 %v3857_v23  ;;  %v604_v23 = vmul.f32 %v5069_v2, %v501_v29 }
 0x1fa   : > { %7074 = vst [vmem:[#allocation111_spill] sm:$0xff] %v5743_v43  ;;  %2362 = vmatpush.bf16.msra.mxu1 %v3761_v33 }
 0x1fb   : > { %v2033_v1 = vpop.f32.mrf.mxu1  ;;  %v707_v22 = vadd.f32 %v5079_v8, %v604_v23 }
 0x1fc   : > { %v2119_v60 = vpop.f32.mrf.mxu2  ;;  %v2208_v42 = vpop.f32.mrf.mxu3 }
 0x1fd   : > { %v2120_v32 = vadd.f32 %v2119_v60, %v5015_v62  ;;  %v1944_v57 = vpop.f32.mrf.mxu0  ;;  %v4292_v62 = vld [vmem:[%s4596_s23 + $0x15c] sm:$0xff] }
 0x1fe   : > { %v1945_v25 = vadd.f32 %v1944_v57, %v5051_v26  ;;  %2072 = vmatmul.bf16.gmra.mxu1 %v5743_v43  ;;  %v504_v53 = vunpack.c.h.bf16 %v4292_v62  ;;  %v4121_v26 = vld [vmem:[%s6839_s4 + $0x184] sm:$0xf] }
 0x1ff   : > { %v5749_v12 = vadd.f32 %v2208_v42, %v2120_v32  ;;  %v608_v42 = vmul.f32 %v5148_v50, %v505_v38 }
 0x200   : > { %v5752_v52 = vadd.f32 %v2033_v1, %v1945_v25  ;;  %1983 = vmatmul.bf16.gmra.mxu0 %v5741_v17  ;;  %v3946_v25 = vld [vmem:[%s6839_s4 + $0x18c] sm:$0xf0]  ;;  %v607_v18 = vmul.f32 %v5069_v2, %v504_v53  ;;  %v708_v53 = vadd.f32 %v5156_v36, %v605_v59  ;;  %v4293_v59 = vld [vmem:[%s4596_s23 + $0x168] sm:$0xff] }
 0x201   : > { %7075 = vst [vmem:[#allocation112_spill] sm:$0xff] %v5749_v12  ;;  %2161 = vmatmul.bf16.gmra.mxu2 %v5041_v51  ;;  %2250 = vmatmul.bf16.gmra.mxu3 %v5741_v17  ;;  %v3949_v19 = vor.u32 %v4121_v26, %v3946_v25 }
 0x202   : > { %v710_v62 = vadd.f32 %v5079_v8, %v607_v18 }
 0x203   : > { %v2035_v32 = vpop.f32.mrf.mxu1  ;;  %2273 = vmatpush.bf16.msra.mxu0 %v3949_v19 }
 0x204   : > { %v2122_v24 = vpop.f32.mrf.mxu2  ;;  %v2211_v60 = vpop.f32.mrf.mxu3  ;;  %v5779_v26 = vpack.c.bf16 %v710_v62, %v707_v22 }
 0x205   : > { %v2123_v55 = vadd.f32 %v2122_v24, %v5039_v37  ;;  %v1946_v33 = vpop.f32.mrf.mxu0  ;;  %v711_v37 = vadd.f32 %v5156_v36, %v608_v42  ;;  %v413_v24 = vld [vmem:[%s4596_s23 + $0x170] sm:$0xf] }
 0x206   : > { %v1947_v57 = vadd.f32 %v1946_v33, %v5083_v16  ;;  %7077 = vst [vmem:[#allocation114_spill] sm:$0xff] %v5779_v26  ;;  %v508_v62 = vunpack.c.l.bf16 %v413_v24 }
 0x207   : > { %v5771_v1 = vadd.f32 %v2211_v60, %v2123_v55  ;;  %v5781_v25 = vpack.c.bf16 %v711_v37, %v708_v53  ;;  %v415_v60 = vld [vmem:[%s4596_s23 + $0x17c] sm:$0xf]  ;;  %v7079_v55 = vld [vmem:[#allocation31_spill] sm:$0xff]  ;;  %v7081_v53 = vld [vmem:[#allocation28_spill] sm:$0xff] }
 0x208   : > { %v5774_v29 = vadd.f32 %v2035_v32, %v1947_v57  ;;  %v507_v32 = vunpack.c.h.bf16 %v4293_v59  ;;  %v4294_v57 = vld [vmem:[%s4596_s23 + $0x174] sm:$0xff]  ;;  %s4038_s23 = sshll.u32 %s4355_s28, 8  ;;  %s7361_s28 = smov (!%p344_p4, %s4355_s28), 2 }
 0x209   : > { %7076 = vst [vmem:[#allocation113_spill] sm:$0xff] %v5771_v1  ;;  %v510_v22 = vunpack.c.h.bf16 %v4294_v57  ;;  %s4249_s19 = smul.u32 24, %s7361_s28 }
 0x20a   : > { %7078 = vst [vmem:[#allocation115_spill] sm:$0xff] %v5781_v25  ;;  %v610_v37 = vmul.f32 %v5069_v2, %v507_v32 }
 0x20b   : > { %v2038_v23 = vpop.f32.mrf.mxu1  ;;  %s6448_s17 = scalar_lea.vmem %s6843_s8, %s4249_s19 }
 0x20c   : > { %v2124_v21 = vpop.f32.mrf.mxu2  ;;  %v2213_v38 = vpop.f32.mrf.mxu3 }
 0x20d   : > { %v2125_v16 = vadd.f32 %v2124_v21, %v5053_v27  ;;  %v1949_v19 = vpop.f32.mrf.mxu0  ;;  %v511_v27 = vunpack.c.l.bf16 %v415_v60 }
 0x20e   : > { %v1950_v33 = vadd.f32 %v1949_v19, %v7079_v55  ;;  %2077 = vmatmul.bf16.gmra.mxu1 %v5781_v25  ;;  %v611_v19 = vmul.f32 %v5148_v50, %v508_v62  ;;  %v7082_v55 = vld [vmem:[#allocation27_spill] sm:$0xff]  ;;  %v7109_v25 = vld [vmem:[#allocation4_spill] sm:$0xff] }
 0x20f   : > { %v5787_v18 = vadd.f32 %v2213_v38, %v2125_v16  ;;  %v613_v16 = vmul.f32 %v5069_v2, %v510_v22 }
 0x210   : > { %v5790_v42 = vadd.f32 %v2038_v23, %v1950_v33  ;;  %1988 = vmatmul.bf16.gmra.mxu0 %v5779_v26  ;;  %v614_v23 = vmul.f32 %v5148_v50, %v511_v27  ;;  %v714_v2 = vadd.f32 %v5156_v36, %v611_v19 }
 0x211   : > { %7080 = vst [vmem:[#allocation31_spill] sm:$0xff] %v5787_v18  ;;  %2166 = vmatmul.bf16.gmra.mxu2 %v7081_v53  ;;  %2255 = vmatmul.bf16.gmra.mxu3 %v5779_v26  ;;  %v713_v26 = vadd.f32 %v5079_v8, %v610_v37  ;;  %v716_v32 = vadd.f32 %v5079_v8, %v613_v16 }
 0x212   : > { %v717_v22 = vadd.f32 %v5156_v36, %v614_v23 }
 0x213   : > { %v2040_v57 = vpop.f32.mrf.mxu1  ;;  %v5811_v27 = vpack.c.bf16 %v716_v32, %v713_v26 }
 0x214   : > { %v2127_v21 = vpop.f32.mrf.mxu2  ;;  %v2216_v38 = vpop.f32.mrf.mxu3 }
 0x215   : > { %v2128_v33 = vadd.f32 %v2127_v21, %v7082_v55  ;;  %v1951_v59 = vpop.f32.mrf.mxu0  ;;  %7084 = vst [vmem:[#allocation116_spill] sm:$0xff] %v5811_v27  ;;  %v5813_v21 = vpack.c.bf16 %v717_v22, %v714_v2  ;;  %v7086_v55 = vld [vmem:[#allocation32_spill] sm:$0xff] }
 0x216   : > { %v1952_v24 = vadd.f32 %v1951_v59, %v5139_v41  ;;  %v7089_v22 = vld [vmem:[#allocation36_spill] sm:$0xff] }
 0x217   : > { %v5803_v60 = vadd.f32 %v2216_v38, %v2128_v33  ;;  %7085 = vst [vmem:[#allocation117_spill] sm:$0xff] %v5813_v21 }
 0x218   : > { %v5806_v53 = vadd.f32 %v2040_v57, %v1952_v24 }
 0x219   : > { %7083 = vst [vmem:[#allocation27_spill] sm:$0xff] %v5803_v60 }
 0x21b   : > { %v2043_v33 = vpop.f32.mrf.mxu1 }
 0x21c   : > { %v2129_v62 = vpop.f32.mrf.mxu2  ;;  %v2218_v50 = vpop.f32.mrf.mxu3 }
 0x21d   : > { %v2130_v41 = vadd.f32 %v2129_v62, %v7086_v55  ;;  %v1954_v38 = vpop.f32.mrf.mxu0 }
 0x21e   : > { %v1955_v37 = vadd.f32 %v1954_v38, %v5158_v44  ;;  %2082 = vmatmul.bf16.gmra.mxu1 %v5813_v21 }
 0x21f   : > { %v5817_v59 = vadd.f32 %v2218_v50, %v2130_v41  ;;  %v7090_v41 = vld [vmem:[#allocation41_spill] sm:$0xff] }
 0x220   : > { %v5819_v57 = vadd.f32 %v2043_v33, %v1955_v37  ;;  %1993 = vmatmul.bf16.gmra.mxu0 %v5811_v27 }
 0x221   : > { %7087 = vst [vmem:[#allocation32_spill] sm:$0xff] %v5817_v59  ;;  %2171 = vmatmul.bf16.gmra.mxu2 %v5143_v35  ;;  %2260 = vmatmul.bf16.gmra.mxu3 %v5811_v27  ;;  %v7108_v59 = vld [vmem:[#allocation52_spill] sm:$0xff] }
 0x223   : > { %v2045_v19 = vpop.f32.mrf.mxu1 }
 0x224   : > { %v2132_v8 = vpop.f32.mrf.mxu2  ;;  %v2221_v36 = vpop.f32.mrf.mxu3 }
 0x225   : > { %v2133_v26 = vadd.f32 %v2132_v8, %v5141_v34  ;;  %v1956_v16 = vpop.f32.mrf.mxu0  ;;  %v7092_v34 = vld [vmem:[#allocation38_spill] sm:$0xff] }
 0x226   : > { %v1957_v44 = vadd.f32 %v1956_v16, %v5168_v40  ;;  %v7093_v8 = vld [vmem:[#allocation2_spill] sm:$0xff]  ;;  %v7094_v40 = vld [vmem:[#allocation29_spill] sm:$0xff]  ;;  %v7095_v16 = vld [vmem:[#allocation39_spill] sm:$0xff] }
 0x227   : > { %v5827_v23 = vadd.f32 %v2221_v36, %v2133_v26 }
 0x228   : > { %v5829_v24 = vadd.f32 %v2045_v19, %v1957_v44 }
 0x229   : > { %7088 = vst [vmem:[#allocation118_spill] sm:$0xff] %v5827_v23 }
 0x22b   : > { %v2048_v55 = vpop.f32.mrf.mxu1 }
 0x22c   : > { %v2134_v32 = vpop.f32.mrf.mxu2  ;;  %v2223_v2 = vpop.f32.mrf.mxu3 }
 0x22d   : > { %v2135_v62 = vadd.f32 %v2134_v32, %v7089_v22  ;;  %v1959_v50 = vpop.f32.mrf.mxu0 }
 0x22e   : > { %v1960_v38 = vadd.f32 %v1959_v50, %v7090_v41  ;;  %2363 = vmatmul.bf16.vlgmr.msra.gmra.mxu1 %v7093_v8  ;;  %v7097_v41 = vld [vmem:[#allocation42_spill] sm:$0xff] }
 0x22f   : > { %v5833_v33 = vadd.f32 %v2223_v2, %v2135_v62 }
 0x230   : > { %v5835_v37 = vadd.f32 %v2048_v55, %v1960_v38  ;;  %2274 = vmatmul.bf16.vlgmr.msra.gmra.mxu0 %v7092_v34 }
 0x231   : > { %7091 = vst [vmem:[#allocation36_spill] sm:$0xff] %v5833_v33  ;;  %2452 = vmatmul.bf16.vlgmr.msra.gmra.mxu2 %v7094_v40  ;;  %2541 = vmatmul.bf16.vlgmr.msra.gmra.mxu3 %v7092_v34  ;;  %v7098_v33 = vld [vmem:[#allocation48_spill] sm:$0xff] }
 0x233   : > { %v2050_v32 = vpop.f32.mrf.mxu1 }
 0x234   : > { %v2137_v36 = vpop.f32.mrf.mxu2  ;;  %v2226_v26 = vpop.f32.mrf.mxu3 }
 0x235   : > { %v2138_v19 = vadd.f32 %v2137_v36, %v7095_v16  ;;  %v1961_v44 = vpop.f32.mrf.mxu0  ;;  %v7100_v16 = vld [vmem:[#allocation45_spill] sm:$0xff] }
 0x236   : > { %v1962_v22 = vadd.f32 %v1961_v44, %v5224_v7  ;;  %v7101_v7 = vld [vmem:[#allocation3_spill] sm:$0xff] }
 0x237   : > { %v5843_v2 = vadd.f32 %v2226_v26, %v2138_v19  ;;  %v7102_v26 = vld [vmem:[#allocation44_spill] sm:$0xff]  ;;  %v2823_v19 = vlaneseq }
 0x238   : > { %v5845_v62 = vadd.f32 %v2050_v32, %v1962_v22  ;;  %v7103_v22 = vld [vmem:[#allocation46_spill] sm:$0xff] }
 0x239   : > { %7096 = vst [vmem:[#allocation41_spill] sm:$0xff] %v5843_v2 }
 0x23b   : > { %v2053_v40 = vpop.f32.mrf.mxu1 }
 0x23c   : > { %v2139_v50 = vpop.f32.mrf.mxu2  ;;  %v2228_v55 = vpop.f32.mrf.mxu3 }
 0x23d   : > { %v2140_v38 = vadd.f32 %v2139_v50, %v7097_v41  ;;  %v1964_v8 = vpop.f32.mrf.mxu0 }
 0x23e   : > { %v1965_v34 = vadd.f32 %v1964_v8, %v7098_v33  ;;  %2368 = vmatmul.bf16.gmra.mxu1 %v7101_v7  ;;  %v5872_v7 = vstv %s4038_s23 }
 0x23f   : > { %v5849_v27 = vadd.f32 %v2228_v55, %v2140_v38  ;;  %v5859_v38 = vshrl.u32 %v2823_v19, 7 }
 0x240   : > { %v5851_v36 = vadd.f32 %v2053_v40, %v1965_v34  ;;  %2279 = vmatmul.bf16.gmra.mxu0 %v7100_v16  ;;  %v5869_v34 = vld [vmem:[%s6841_s6] ss:$8 sm:$0x7] }
 0x241   : > { %7099 = vst [vmem:[#allocation38_spill] sm:$0xff] %v5849_v27  ;;  %2457 = vmatmul.bf16.gmra.mxu2 %v7102_v26  ;;  %2546 = vmatmul.bf16.gmra.mxu3 %v7100_v16  ;;  %v2825_v16 = vadd.s32 8, %v5859_v38  ;;  %v2826_v26 = vadd.s32 16, %v5859_v38  ;;  %v7106_v27 = vld [vmem:[#allocation55_spill] sm:$0xff] }
 0x243   : > { %v2055_v33 = vpop.f32.mrf.mxu1  ;;  %v2859_v21 = vadd.s32 %v5872_v7, %v2826_v26  ;;  %v2829_v26 = vadd.s32 40, %v5859_v38 }
 0x244   : > { %v2142_v44 = vpop.f32.mrf.mxu2  ;;  %v2231_v32 = vpop.f32.mrf.mxu3 }
 0x245   : > { %v2143_v50 = vadd.f32 %v2142_v44, %v7103_v22  ;;  %v1966_v41 = vpop.f32.mrf.mxu0  ;;  %v7105_v22 = vld [vmem:[#allocation49_spill] sm:$0xff]  ;;  %vm2891_vm2 = vcmp.lt.s32.totalorder %v2859_v21, 600 }
 0x246   : > { %v1967_v55 = vadd.f32 %v1966_v41, %v5256_v31  ;;  %v5876_v31 = vperm.slane %v5869_v34, 0  ;;  %v7112_v21 = vld [vmem:[#allocation53_spill] sm:$0xff] }
 0x247   : > { %v5861_v8 = vadd.f32 %v2231_v32, %v2143_v50  ;;  %v2858_v32 = vadd.s32 %v5872_v7, %v2825_v16 }
 0x248   : > { %v5864_v40 = vadd.f32 %v2055_v33, %v1967_v55  ;;  %v2857_v55 = vadd.s32 %v5872_v7, %v5859_v38  ;;  %v5886_v35 = vadd.f32 %v5876_v31, %v5542_v30  ;;  %v5893_v16 = vadd.f32 %v5876_v31, %v5526_v47 }
 0x249   : > { %7104 = vst [vmem:[#allocation2_spill] sm:$0xff] %v5861_v8  ;;  %v2827_v8 = vadd.s32 24, %v5859_v38  ;;  %vm2890_vm0 = vcmp.lt.s32.totalorder %v2858_v32, 600  ;;  %v5902_v30 = vadd.f32 %v5876_v31, %v5576_v49  ;;  %v5915_v49 = vadd.f32 %v5876_v31, %v5598_v45 }
 0x24a   : > { %vm2889_vm1 = vcmp.lt.s32.totalorder %v2857_v55, 600  ;;  %v2862_v45 = vadd.s32 %v5872_v7, %v2829_v26  ;;  %v2831_v26 = vadd.s32 56, %v5859_v38 }
 0x24b   : > { %v2058_v33 = vpop.f32.mrf.mxu1  ;;  %v2860_v47 = vadd.s32 %v5872_v7, %v2827_v8  ;;  %7111 = vst [vmem:[#allocation39_spill] sm:$0xff] %v5915_v49  ;;  %v7116_v18 = vmax.f32 %v5902_v30, 0.0 }
 0x24c   : > { %v2144_v19 = vpop.f32.mrf.mxu2  ;;  %v2233_v44 = vpop.f32.mrf.mxu3  ;;  %vm2894_vm5 = vcmp.lt.s32.totalorder %v2862_v45, 600  ;;  %v2864_v45 = vadd.s32 %v5872_v7, %v2831_v26  ;;  %v2833_v26 = vadd.s32 72, %v5859_v38 }
 0x24d   : > { %v2145_v50 = vadd.f32 %v2144_v19, %v7105_v22  ;;  %v1969_v41 = vpop.f32.mrf.mxu0  ;;  %v2828_v19 = vadd.s32 32, %v5859_v38  ;;  %vm2892_vm3 = vcmp.lt.s32.totalorder %v2860_v47, 600 }
 0x24e   : > { %v1970_v2 = vadd.f32 %v1969_v41, %v7106_v27  ;;  %2373 = vmatmul.bf16.gmra.mxu1 %v7109_v25  ;;  %v7110_v27 = vld [vmem:[#allocation51_spill] sm:$0xff]  ;;  %v6893_v25 = vmov 0.0   ;;  %vm2896_vm7 = vcmp.lt.s32.totalorder %v2864_v45, 600 }
 0x24f   : > { %v5889_v23 = vadd.f32 %v2233_v44, %v2145_v50  ;;  %v5911_v32 = vsel %vm2890_vm0, 1.0, %v6893_v25  ;;  %v5919_v8 = vsel %vm2889_vm1, 1.0, %v6893_v25 }
 0x250   : > { %v5896_v22 = vadd.f32 %v2058_v33, %v1970_v2  ;;  %2284 = vmatmul.bf16.gmra.mxu0 %v7108_v59  ;;  %v5928_v2 = vsel %vm2891_vm2, 1.0, %v6893_v25  ;;  %v5937_v33 = vadd.f32 %v5876_v31, %v5614_v54  ;;  %v5954_v54 = vadd.f32 %v5876_v31, %v5630_v4 }
 0x251   : > { %7107 = vst [vmem:[#allocation29_spill] sm:$0xff] %v5889_v23  ;;  %2462 = vmatmul.bf16.gmra.mxu2 %v7110_v27  ;;  %2551 = vmatmul.bf16.gmra.mxu3 %v7108_v59  ;;  %v2861_v59 = vadd.s32 %v5872_v7, %v2828_v19  ;;  %v2830_v19 = vadd.s32 48, %v5859_v38  ;;  %v7113_v23 = vmax.f32 %v5886_v35, 0.0  ;;  %v2991_v17 = vmul.f32 %v5928_v2, %v7116_v18 }
 0x252   : > { %7119 = vst [vmem:[#allocation45_spill] sm:$0xff] %v5954_v54  ;;  %v7120_v18 = vmax.f32 %v5915_v49, 0.0  ;;  %v5967_v4 = vadd.f32 %v5876_v31, %v5664_v11  ;;  %v5986_v49 = vadd.f32 %v5876_v31, %v5686_v15  ;;  %v5999_v15 = vadd.f32 %v5876_v31, %v5702_v20 }
 0x253   : > { %v5925_v44 = vpop.f32.mrf.mxu1  ;;  %v2988_v60 = vmul.f32 %v5911_v32, %v7113_v23  ;;  %vm2893_vm4 = vcmp.lt.s32.totalorder %v2861_v59, 600  ;;  %v7117_v23 = vmov 0.0   ;;  %v3198_v28 = vmul.f32 %v2991_v17, %v2991_v17 }
 0x254   : > { %v2147_v50 = vpop.f32.mrf.mxu2  ;;  %v2236_v41 = vpop.f32.mrf.mxu3  ;;  %v5950_v51 = vsel %vm2892_vm3, 1.0, %v7117_v23  ;;  %v5960_v47 = vsel %vm2893_vm4, 1.0, %v7117_v23  ;;  %7121 = vst [vmem:[#allocation3_spill] sm:$0xff] %v5967_v4  ;;  %v5971_v59 = vsel %vm2894_vm5, 1.0, %v7117_v23  ;;  %v6011_v20 = vsel %vm2896_vm7, 1.0, %v7117_v23 }
 0x255   : > { %v2148_v55 = vadd.f32 %v2147_v50, %v7112_v21  ;;  %v5923_v27 = vpop.f32.mrf.mxu0  ;;  %v7115_v21 = vmax.f32 %v5893_v16, 0.0  ;;  %7118 = vst [vmem:[#allocation48_spill] sm:$0xff] %v5950_v51  ;;  %v2994_v43 = vmul.f32 %v5950_v51, %v7120_v18  ;;  %v6906_v18 = vmax.f32 %v5954_v54, 0.0 }
 0x256   : > { %7122 = vst [vmem:[#allocation44_spill] sm:$0xff] %v5971_v59  ;;  %v6908_v51 = vmax.f32 %v5967_v4, 0.0 }
 0x257   : > { %v5939_v50 = vadd.f32 %v2236_v41, %v2148_v55  ;;  %v2985_v25 = vmul.f32 %v5919_v8, %v7115_v21  ;;  %v2863_v41 = vadd.s32 %v5872_v7, %v2830_v19  ;;  %v2832_v55 = vadd.s32 64, %v5859_v38  ;;  %7125 = vst [vmem:[#allocation46_spill] sm:$0xff] %v5986_v49 }
 0x258   : > { %v3195_v21 = vmul.f32 %v2988_v60, %v2988_v60  ;;  %7129 = vst [vmem:[#allocation52_spill] sm:$0xff] %v5999_v15 }
 0x259   : > { %7114 = vst [vmem:[#allocation42_spill] sm:$0xff] %v5939_v50  ;;  %v3192_v50 = vmul.f32 %v2985_v25, %v2985_v25  ;;  %v3081_v12 = vadd.f32 %v2988_v60, %v2985_v25  ;;  %vm2895_vm6 = vcmp.lt.s32.totalorder %v2863_v41, 600  ;;  %v2865_v11 = vadd.s32 %v5872_v7, %v2832_v55  ;;  %v7127_v55 = vld [vmem:[#allocation5_spill] sm:$0xff] }
 0x25a   : > { %v7124_v60 = vmax.f32 %v5937_v33, 0.0  ;;  %v2834_v41 = vadd.s32 80, %v5859_v38  ;;  %7131 = vst [vmem:[#allocation4_spill] sm:$0xff] %v6011_v20 }
 0x25b   : > { %v5976_v58 = vpop.f32.mrf.mxu1  ;;  %v3288_v3 = vadd.f32 %v3195_v21, %v3192_v50  ;;  %v3082_v50 = vadd.f32 %v3081_v12, %v2991_v17  ;;  %vm2897_vm8 = vcmp.lt.s32.totalorder %v2865_v11, 600  ;;  %v6018_v11 = vadd.f32 %v5876_v31, %v5718_v56 }
 0x25c   : > { %v2149_v19 = vpop.f32.mrf.mxu2  ;;  %v2238_v1 = vpop.f32.mrf.mxu3  ;;  %v2997_v25 = vmul.f32 %v5960_v47, %v7124_v60  ;;  %v5995_v60 = vsel %vm2895_vm6, 1.0, %v7117_v23  ;;  %v6023_v45 = vsel %vm2897_vm8, 1.0, %v7117_v23  ;;  %v6037_v17 = vadd.f32 %v5876_v31, %v5752_v52 }
 0x25d   : > { %v2150_v61 = vadd.f32 %v2149_v19, %v7123_v10  ;;  %v5974_v46 = vpop.f32.mrf.mxu0  ;;  %v3201_v19 = vmul.f32 %v2994_v43, %v2994_v43  ;;  %v3289_v21 = vadd.f32 %v3288_v3, %v3198_v28  ;;  %7128 = vst [vmem:[#allocation55_spill] sm:$0xff] %v5995_v60  ;;  %v2835_v3 = vadd.s32 88, %v5859_v38 }
 0x25e   : > { %2378 = vmatmul.bf16.gmra.mxu1 %v7127_v55  ;;  %v2866_v55 = vadd.s32 %v5872_v7, %v2833_v26  ;;  %v3083_v28 = vadd.f32 %v3082_v50, %v2994_v43  ;;  %v3204_v12 = vmul.f32 %v2997_v25, %v2997_v25  ;;  %7132 = vst [vmem:[#allocation51_spill] sm:$0xff] %v6018_v11 }
 0x25f   : > { %v5988_v10 = vadd.f32 %v2238_v1, %v2150_v61  ;;  %v7130_v61 = vld [vmem:[#allocation58_spill] sm:$0xff]  ;;  %v3000_v1 = vmul.f32 %v5971_v59, %v6906_v18  ;;  %v2867_v26 = vadd.s32 %v5872_v7, %v2834_v41  ;;  %7133 = vst [vmem:[#allocation53_spill] sm:$0xff] %v6023_v45  ;;  %v2868_v56 = vadd.s32 %v5872_v7, %v2835_v3 }
 0x260   : > { %2289 = vmatmul.bf16.gmra.mxu0 %v5310_v63  ;;  %v3084_v50 = vadd.f32 %v3083_v28, %v2997_v25  ;;  %vm2898_vm9 = vcmp.lt.s32.totalorder %v2866_v55, 600  ;;  %v2836_v41 = vadd.s32 96, %v5859_v38  ;;  %v7135_v25 = vmax.f32 %v5986_v49, 0.0 }
 0x261   : > { %7126 = vst [vmem:[#allocation49_spill] sm:$0xff] %v5988_v10  ;;  %2467 = vmatmul.bf16.gmra.mxu2 %v7130_v61  ;;  %2556 = vmatmul.bf16.gmra.mxu3 %v5310_v63  ;;  %v3290_v61 = vadd.f32 %v3289_v21, %v3201_v19  ;;  %v3003_v63 = vmul.f32 %v5995_v60, %v6908_v51  ;;  %v7134_v10 = vld [vmem:[#allocation60_spill] sm:$0xff]  ;;  %vm2899_vm10 = vcmp.lt.s32.totalorder %v2867_v26, 600  ;;  %v2837_v55 = vadd.s32 104, %v5859_v38 }
 0x262   : > { %v3207_v51 = vmul.f32 %v3000_v1, %v3000_v1  ;;  %v3006_v28 = vmul.f32 %v6011_v20, %v7135_v25  ;;  %v3085_v3 = vadd.f32 %v3084_v50, %v3000_v1  ;;  %v7137_v59 = vmax.f32 %v5999_v15, 0.0  ;;  %v7143_v1 = vld [vmem:[#allocation63_spill] sm:$0xff] }
 0x263   : > { %v6028_v4 = vpop.f32.mrf.mxu1  ;;  %v3291_v60 = vadd.f32 %v3290_v61, %v3204_v12  ;;  %v6047_v61 = vsel %vm2898_vm9, 1.0, %v7117_v23  ;;  %v2838_v25 = vadd.s32 112, %v5859_v38  ;;  %vm2900_vm11 = vcmp.lt.s32.totalorder %v2868_v56, 600 }
 0x264   : > { %v2152_v18 = vpop.f32.mrf.mxu2  ;;  %v2241_v43 = vpop.f32.mrf.mxu3  ;;  %v3009_v12 = vmul.f32 %v6023_v45, %v7137_v59  ;;  %7138 = vst [vmem:[#allocation5_spill] sm:$0xff] %v6047_v61  ;;  %v2869_v26 = vadd.s32 %v5872_v7, %v2836_v41  ;;  %v3213_v54 = vmul.f32 %v3006_v28, %v3006_v28  ;;  %v6057_v50 = vsel %vm2899_vm10, 1.0, %v7117_v23 }
 0x265   : > { %v2153_v19 = vadd.f32 %v2152_v18, %v7134_v10  ;;  %v6026_v21 = vpop.f32.mrf.mxu0  ;;  %v3210_v10 = vmul.f32 %v3003_v63, %v3003_v63  ;;  %v3292_v52 = vadd.f32 %v3291_v60, %v3207_v51  ;;  %v6064_v51 = vadd.f32 %v5876_v31, %v5790_v42 }
 0x266   : > { %v6068_v41 = vsel %vm2900_vm11, 1.0, %v7117_v23  ;;  %vm2901_vm12 = vcmp.lt.s32.totalorder %v2869_v26, 600  ;;  %v7144_v45 = vmax.f32 %v6037_v17, 0.0  ;;  %v7146_v26 = vld [vmem:[#allocation6_spill] sm:$0xff] }
 0x267   : > { %v6039_v18 = vadd.f32 %v2241_v43, %v2153_v19  ;;  %v6052_v43 = vadd.f32 %v5876_v31, %v5774_v29  ;;  %v3086_v19 = vadd.f32 %v3085_v3, %v3003_v63  ;;  %v3293_v59 = vadd.f32 %v3292_v52, %v3210_v10  ;;  %7141 = vst [vmem:[#allocation60_spill] sm:$0xff] %v6064_v51 }
 0x268   : > { %v2870_v29 = vadd.s32 %v5872_v7, %v2837_v55  ;;  %v3216_v63 = vmul.f32 %v3009_v12, %v3009_v12  ;;  %7142 = vst [vmem:[#allocation119_spill] sm:$0xff] %v6068_v41  ;;  %v2871_v3 = vadd.s32 %v5872_v7, %v2838_v25  ;;  %v2839_v55 = vadd.s32 120, %v5859_v38 }
 0x269   : > { %7136 = vst [vmem:[#allocation56_spill] sm:$0xff] %v6039_v18  ;;  %v7140_v18 = vmax.f32 %v6018_v11, 0.0  ;;  %v6923_v42 = vmax.f32 %v6052_v43, 0.0  ;;  %v3015_v49 = vmul.f32 %v6057_v50, %v7144_v45  ;;  %v6083_v25 = vadd.f32 %v5876_v31, %v5806_v53  ;;  %v7148_v53 = vld [vmem:[#allocation65_spill] sm:$0xff] }
 0x26a   : > { %7139 = vst [vmem:[#allocation58_spill] sm:$0xff] %v6052_v43  ;;  %v6924_v20 = vmax.f32 %v6064_v51, 0.0  ;;  %vm2902_vm13 = vcmp.lt.s32.totalorder %v2870_v29, 600  ;;  %v6092_v45 = vsel %vm2901_vm12, 1.0, %v7117_v23  ;;  %vm2903_vm14 = vcmp.lt.s32.totalorder %v2871_v3, 600 }
 0x26b   : > { %v3012_v15 = vmul.f32 %v6047_v61, %v7140_v18  ;;  %v6074_v11 = vpop.f32.mrf.mxu1  ;;  %v3087_v18 = vadd.f32 %v3086_v19, %v3006_v28  ;;  %v3294_v61 = vadd.f32 %v3293_v59, %v3213_v54  ;;  %v2840_v28 = vadd.s32 128, %v5859_v38  ;;  %7147 = vst [vmem:[#allocation6_spill] sm:$0xff] %v6092_v45 }
 0x26c   : > { %v2154_v60 = vpop.f32.mrf.mxu2  ;;  %v2243_v56 = vpop.f32.mrf.mxu3  ;;  %v3018_v59 = vmul.f32 %v6068_v41, %v6923_v42  ;;  %v2842_v29 = vadd.s32 144, %v5859_v38  ;;  %v6139_v41 = vadd.f32 %v5876_v31, %v5835_v37 }
 0x26d   : > { %v2155_v10 = vadd.f32 %v2154_v60, %v7143_v1  ;;  %v6072_v52 = vpop.f32.mrf.mxu0  ;;  %v3219_v60 = vmul.f32 %v3012_v15, %v3012_v15  ;;  %v3088_v54 = vadd.f32 %v3087_v18, %v3009_v12  ;;  %v3295_v19 = vadd.f32 %v3294_v61, %v3216_v63 }
 0x26e   : > { %2383 = vmatmul.bf16.gmra.mxu1 %v7146_v26  ;;  %v2841_v12 = vadd.s32 136, %v5859_v38  ;;  %v3222_v63 = vmul.f32 %v3015_v49, %v3015_v49  ;;  %v6108_v26 = vsel %vm2902_vm13, 1.0, %v7117_v23  ;;  %v6120_v18 = vsel %vm2903_vm14, 1.0, %v7117_v23  ;;  %7155 = vst [vmem:[#allocation122_spill] sm:$0xff] %v6139_v41 }
 0x26f   : > { %v6085_v1 = vadd.f32 %v2243_v56, %v2155_v10  ;;  %v6101_v56 = vadd.f32 %v5876_v31, %v5819_v57  ;;  %v2872_v10 = vadd.s32 %v5872_v7, %v2839_v55  ;;  %v3089_v61 = vadd.f32 %v3088_v54, %v3012_v15  ;;  %7151 = vst [vmem:[#allocation121_spill] sm:$0xff] %v6120_v18 }
 0x270   : > { %2294 = vmatmul.bf16.gmra.mxu0 %v5342_v5  ;;  %v6115_v57 = vadd.f32 %v5876_v31, %v5829_v24  ;;  %v2873_v55 = vadd.s32 %v5872_v7, %v2840_v28  ;;  %v3225_v51 = vmul.f32 %v3018_v59, %v3018_v59  ;;  %v2874_v28 = vadd.s32 %v5872_v7, %v2841_v12 }
 0x271   : > { %7145 = vst [vmem:[#allocation63_spill] sm:$0xff] %v6085_v1  ;;  %2472 = vmatmul.bf16.gmra.mxu2 %v7148_v53  ;;  %2561 = vmatmul.bf16.gmra.mxu3 %v5342_v5  ;;  %v3296_v5 = vadd.f32 %v3295_v19, %v3219_v60  ;;  %v3021_v53 = vmul.f32 %v6092_v45, %v6924_v20  ;;  %v7152_v60 = vld [vmem:[#allocation67_spill] sm:$0xff]  ;;  %v6931_v24 = vmax.f32 %v6101_v56, 0.0  ;;  %vm2904_vm15 = vcmp.lt.s32.totalorder %v2872_v10, 600 }
 0x272   : > { %7149 = vst [vmem:[#allocation65_spill] sm:$0xff] %v6101_v56  ;;  %v3090_v54 = vadd.f32 %v3089_v61, %v3015_v49  ;;  %v7153_v49 = vmax.f32 %v6083_v25, 0.0  ;;  %v2843_v61 = vadd.s32 152, %v5859_v38  ;;  %vm2905_vm0 = vcmp.lt.s32.totalorder %v2873_v55, 600 }
 0x273   : > { %7150 = vst [vmem:[#allocation120_spill] sm:$0xff] %v6115_v57  ;;  %v6126_v20 = vpop.f32.mrf.mxu1  ;;  %v3297_v45 = vadd.f32 %v3296_v5, %v3222_v63  ;;  %v6142_v12 = vsel %vm2904_vm15, 1.0, %v7117_v23  ;;  %v2875_v63 = vadd.s32 %v5872_v7, %v2842_v29  ;;  %vm2906_vm1 = vcmp.lt.s32.totalorder %v2874_v28, 600 }
 0x274   : > { %v2157_v42 = vpop.f32.mrf.mxu2  ;;  %v2246_v15 = vpop.f32.mrf.mxu3  ;;  %v3024_v3 = vmul.f32 %v6108_v26, %v7153_v49  ;;  %v3091_v10 = vadd.f32 %v3090_v54, %v3018_v59  ;;  %7156 = vst [vmem:[#allocation123_spill] sm:$0xff] %v6142_v12  ;;  %v6153_v37 = vsel %vm2905_vm0, 1.0, %v7117_v23  ;;  %v2876_v59 = vadd.s32 %v5872_v7, %v2843_v61  ;;  %v7161_v61 = vld [vmem:[#allocation70_spill] sm:$0xff] }
 0x275   : > { %v2158_v19 = vadd.f32 %v2157_v42, %v7152_v60  ;;  %v6124_v1 = vpop.f32.mrf.mxu0  ;;  %v3228_v42 = vmul.f32 %v3021_v53, %v3021_v53  ;;  %v6933_v60 = vmax.f32 %v6115_v57, 0.0  ;;  %v3298_v5 = vadd.f32 %v3297_v45, %v3225_v51  ;;  %7158 = vst [vmem:[#allocation125_spill] sm:$0xff] %v6153_v37 }
 0x276   : > { %v3231_v49 = vmul.f32 %v3024_v3, %v3024_v3  ;;  %v2844_v55 = vadd.s32 160, %v5859_v38  ;;  %v3092_v54 = vadd.f32 %v3091_v10, %v3021_v53  ;;  %v6162_v28 = vsel %vm2906_vm1, 1.0, %v7117_v23 }
 0x277   : > { %v6134_v43 = vadd.f32 %v2246_v15, %v2158_v19  ;;  %v3027_v15 = vmul.f32 %v6120_v18, %v6931_v24  ;;  %v6150_v19 = vadd.f32 %v5876_v31, %v5845_v62  ;;  %v3299_v29 = vadd.f32 %v3298_v5, %v3228_v42  ;;  %7159 = vst [vmem:[#allocation126_spill] sm:$0xff] %v6162_v28 }
 0x278   : > { %v3030_v51 = vmul.f32 %v6142_v12, %v6933_v60  ;;  %vm2907_vm2 = vcmp.lt.s32.totalorder %v2875_v63, 600  ;;  %v3093_v10 = vadd.f32 %v3092_v54, %v3024_v3  ;;  %v2845_v45 = vadd.s32 168, %v5859_v38  ;;  %v7165_v54 = vld [vmem:[#allocation73_spill] sm:$0xff]  ;;  %v7166_v60 = vld [vmem:[#allocation7_spill] sm:$0xff] }
 0x279   : > { %7154 = vst [vmem:[#allocation67_spill] sm:$0xff] %v6134_v43  ;;  %v6166_v43 = vadd.f32 %v5876_v31, %v5851_v36  ;;  %v3234_v5 = vmul.f32 %v3027_v15, %v3027_v15  ;;  %v3300_v57 = vadd.f32 %v3299_v29, %v3231_v49  ;;  %vm2908_vm3 = vcmp.lt.s32.totalorder %v2876_v59, 600 }
 0x27a   : > { %7157 = vst [vmem:[#allocation124_spill] sm:$0xff] %v6150_v19  ;;  %v2877_v12 = vadd.s32 %v5872_v7, %v2844_v55  ;;  %v3237_v36 = vmul.f32 %v3030_v51, %v3030_v51  ;;  %v7163_v63 = vmax.f32 %v6139_v41, 0.0  ;;  %v2846_v3 = vadd.s32 176, %v5859_v38  ;;  %v7167_v55 = vld [vmem:[#allocation59_spill] sm:$0xff] }
 0x27b   : > { %7160 = vst [vmem:[#allocation127_spill] sm:$0xff] %v6166_v43  ;;  %v6171_v42 = vpop.f32.mrf.mxu1  ;;  %v3094_v49 = vadd.f32 %v3093_v10, %v3027_v15  ;;  %v6944_v29 = vmax.f32 %v6166_v43, 0.0  ;;  %v7169_v41 = vmax.f32 %v6150_v19, 0.0  ;;  %v2878_v15 = vadd.s32 %v5872_v7, %v2845_v45 }
 0x27c   : > { %v2159_v24 = vpop.f32.mrf.mxu2  ;;  %v2248_v62 = vpop.f32.mrf.mxu3  ;;  %v6206_v10 = vadd.f32 %v5876_v31, %v5896_v22  ;;  %vm2909_vm4 = vcmp.lt.s32.totalorder %v2877_v12, 600  ;;  %v7172_v12 = vld [vmem:[#allocation75_spill] sm:$0xff]  ;;  %vm3527_vm0 = vcmask 1040384   ;;  %vm3531_vm1 = vcmask 1041408  }
 0x27d   : > { %v2160_v56 = vadd.f32 %v2159_v24, %v7161_v61  ;;  %v6169_v53 = vpop.f32.mrf.mxu0  ;;  %v3033_v24 = vmul.f32 %v6153_v37, %v7163_v63  ;;  %v6182_v61 = vsel %vm2907_vm2, 1.0, %v7117_v23  ;;  %v7168_v63 = vld [vmem:[#allocation72_spill] sm:$0xff]  ;;  %v3036_v37 = vmul.f32 %v6162_v28, %v7169_v41 }
 0x27e   : > { %7164 = vst [vmem:[#allocation128_spill] sm:$0xff] %v6182_v61  ;;  %2388 = vmatmul.bf16.gmra.mxu1 %v7166_v60  ;;  %v6201_v60 = vsel %vm2908_vm3, 1.0, %v7117_v23  ;;  %v2879_v41 = vadd.s32 %v5872_v7, %v2846_v3  ;;  %vm2910_vm5 = vcmp.lt.s32.totalorder %v2878_v15, 600  ;;  %v2848_v3 = vadd.s32 192, %v5859_v38 }
 0x27f   : > { %v6176_v18 = vadd.f32 %v2248_v62, %v2160_v56  ;;  %v6190_v56 = vadd.f32 %v5876_v31, %v5864_v40  ;;  %v1972_v62 = vadd.f32 %v5923_v27, %v7167_v55  ;;  %v3095_v40 = vadd.f32 %v3094_v49, %v3030_v51  ;;  %7170 = vst [vmem:[#allocation73_spill] sm:$0xff] %v6206_v10 }
 0x280   : > { %2299 = vmatmul.bf16.gmra.mxu0 %v7165_v54  ;;  %v2847_v27 = vadd.s32 184, %v5859_v38  ;;  %v3039_v51 = vmul.f32 %v6182_v61, %v6944_v29  ;;  %v6949_v43 = vmax.f32 %v6206_v10, 0.0  ;;  %vm2911_vm6 = vcmp.lt.s32.totalorder %v2879_v41, 600 }
 0x281   : > { %7162 = vst [vmem:[#allocation70_spill] sm:$0xff] %v6176_v18  ;;  %2477 = vmatmul.bf16.gmra.mxu2 %v7168_v63  ;;  %2566 = vmatmul.bf16.gmra.mxu3 %v7165_v54  ;;  %v3301_v18 = vadd.f32 %v3300_v57, %v3234_v5  ;;  %v3240_v57 = vmul.f32 %v3033_v24, %v3033_v24  ;;  %v7171_v5 = vld [vmem:[#allocation62_spill] sm:$0xff]  ;;  %v7175_v28 = vmax.f32 %v6190_v56, 0.0 }
 0x282   : > { %v1975_v55 = vadd.f32 %v5974_v46, %v7171_v5  ;;  %v2061_v22 = vadd.f32 %v5925_v44, %v1972_v62  ;;  %v6221_v46 = vsel %vm2909_vm4, 1.0, %v7117_v23  ;;  %v3096_v5 = vadd.f32 %v3095_v40, %v3033_v24 }
 0x283   : > { %v3302_v54 = vadd.f32 %v3301_v18, %v3237_v36  ;;  %v6218_v18 = vpop.f32.mrf.mxu1  ;;  %v3243_v36 = vmul.f32 %v3036_v37, %v3036_v37  ;;  %v2880_v29 = vadd.s32 %v5872_v7, %v2847_v27  ;;  %v3246_v61 = vmul.f32 %v3039_v51, %v3039_v51 }
 0x284   : > { %v2162_v59 = vpop.f32.mrf.mxu2  ;;  %v2251_v63 = vpop.f32.mrf.mxu3  ;;  %v2064_v62 = vadd.f32 %v5976_v58, %v1975_v55  ;;  %v3042_v15 = vmul.f32 %v6201_v60, %v7175_v28  ;;  %v6235_v24 = vadd.f32 %v5876_v31, %v2061_v22  ;;  %v6238_v40 = vsel %vm2910_vm5, 1.0, %v7117_v23 }
 0x285   : > { %v2163_v49 = vadd.f32 %v2162_v59, %v7172_v12  ;;  %v1986_v19 = vpop.f32.mrf.mxu0  ;;  %v3303_v44 = vadd.f32 %v3302_v54, %v3240_v57  ;;  %v7174_v59 = vld [vmem:[#allocation66_spill] sm:$0xff]  ;;  %v3097_v27 = vadd.f32 %v3096_v5, %v3036_v37  ;;  %v7176_v54 = vld [vmem:[#allocation69_spill] sm:$0xff]  ;;  %v2881_v57 = vadd.s32 %v5872_v7, %v2848_v3 }
 0x286   : > { %v1977_v12 = vadd.f32 %v6026_v21, %v7174_v59  ;;  %v1980_v58 = vadd.f32 %v6072_v52, %v7176_v54  ;;  %v3045_v21 = vmul.f32 %v6221_v46, %v6949_v43  ;;  %v6247_v55 = vsel %vm2911_vm6, 1.0, %v7117_v23  ;;  %v7178_v54 = vld [vmem:[#allocation78_spill] sm:$0xff] }
 0x287   : > { %v6226_v45 = vadd.f32 %v2251_v63, %v2163_v49  ;;  %v3304_v63 = vadd.f32 %v3303_v44, %v3243_v36  ;;  %vm2912_vm7 = vcmp.lt.s32.totalorder %v2880_v29, 600  ;;  %v2849_v28 = vadd.s32 200, %v5859_v38  ;;  %v7177_v49 = vld [vmem:[#allocation74_spill] sm:$0xff] }
 0x288   : > { %v3098_v41 = vadd.f32 %v3097_v27, %v3039_v51  ;;  %v6251_v22 = vadd.f32 %v5876_v31, %v2064_v62  ;;  %v2066_v37 = vadd.f32 %v6028_v4, %v1977_v12  ;;  %v1982_v52 = vadd.f32 %v6124_v1, %v7177_v49  ;;  %v7179_v27 = vld [vmem:[#allocation77_spill] sm:$0xff] }
 0x289   : > { %7173 = vst [vmem:[#allocation7_spill] sm:$0xff] %v6226_v45  ;;  %v3305_v5 = vadd.f32 %v3304_v63, %v3246_v61  ;;  %v3249_v44 = vmul.f32 %v3042_v15, %v3042_v15  ;;  %v6259_v51 = vsel %vm2912_vm7, 1.0, %v7117_v23  ;;  %v2069_v62 = vadd.f32 %v6074_v11, %v1980_v58  ;;  %v7181_v11 = vld [vmem:[#allocation81_spill] sm:$0xff]  ;;  %v7182_v58 = vld [vmem:[#allocation8_spill] sm:$0xff] }
 0x28a   : > { %vm2913_vm8 = vcmp.lt.s32.totalorder %v2881_v57, 600  ;;  %v2850_v4 = vadd.s32 208, %v5859_v38  ;;  %v3252_v12 = vmul.f32 %v3045_v21, %v3045_v21  ;;  %v2882_v1 = vadd.s32 %v5872_v7, %v2849_v28 }
 0x28b   : > { %v2078_v45 = vpop.f32.mrf.mxu1  ;;  %v1985_v61 = vadd.f32 %v6169_v53, %v7179_v27  ;;  %v3099_v49 = vadd.f32 %v3098_v41, %v3042_v15  ;;  %v2071_v59 = vadd.f32 %v6126_v20, %v1982_v52  ;;  %v3306_v57 = vadd.f32 %v3305_v5, %v3249_v44  ;;  %v7184_v53 = vld [vmem:[#allocation82_spill] sm:$0xff]  ;;  %v7185_v41 = vld [vmem:[#allocation80_spill] sm:$0xff]  ;;  %v7186_v27 = vld [vmem:[#allocation85_spill] sm:$0xff] }
 0x28c   : > { %v2164_v36 = vpop.f32.mrf.mxu2  ;;  %v2253_v3 = vpop.f32.mrf.mxu3  ;;  %v7183_v28 = vmax.f32 %v6235_v24, 0.0  ;;  %v1987_v15 = vadd.f32 %v1986_v19, %v7184_v53  ;;  %v6285_v20 = vadd.f32 %v5876_v31, %v2069_v62  ;;  %v2883_v52 = vadd.s32 %v5872_v7, %v2850_v4 }
 0x28d   : > { %v2165_v43 = vadd.f32 %v2164_v36, %v7178_v54  ;;  %v1989_v29 = vpop.f32.mrf.mxu0  ;;  %v6951_v36 = vmax.f32 %v6251_v22, 0.0  ;;  %v6270_v54 = vadd.f32 %v5876_v31, %v2066_v37  ;;  %v3100_v37 = vadd.f32 %v3099_v49, %v3045_v21 }
 0x28e   : > { %2393 = vmatmul.bf16.gmra.mxu1 %v7182_v58  ;;  %v3048_v10 = vmul.f32 %v6238_v40, %v7183_v28  ;;  %v3307_v5 = vadd.f32 %v3306_v57, %v3252_v12  ;;  %vm2914_vm9 = vcmp.lt.s32.totalorder %v2882_v1, 600  ;;  %v2074_v44 = vadd.f32 %v6171_v42, %v1985_v61  ;;  %v7188_v42 = vld [vmem:[#allocation83_spill] sm:$0xff] }
 0x28f   : > { %v6266_v63 = vadd.f32 %v2253_v3, %v2165_v43  ;;  %v6279_v43 = vsel %vm2913_vm8, 1.0, %v7117_v23  ;;  %v2851_v3 = vadd.s32 216, %v5859_v38  ;;  %v1990_v58 = vadd.f32 %v1989_v29, %v7186_v27 }
 0x290   : > { %2304 = vmatmul.bf16.gmra.mxu0 %v7181_v11  ;;  %v3051_v19 = vmul.f32 %v6247_v55, %v6951_v36  ;;  %v6296_v21 = vadd.f32 %v5876_v31, %v2071_v59  ;;  %v2852_v62 = vadd.s32 224, %v5859_v38  ;;  %v3101_v28 = vadd.f32 %v3100_v37, %v3048_v10 }
 0x291   : > { %7180 = vst [vmem:[#allocation59_spill] sm:$0xff] %v6266_v63  ;;  %2482 = vmatmul.bf16.gmra.mxu2 %v7185_v41  ;;  %2571 = vmatmul.bf16.gmra.mxu3 %v7181_v11  ;;  %v3255_v12 = vmul.f32 %v3048_v10, %v3048_v10  ;;  %v2076_v57 = vadd.f32 %v6218_v18, %v1987_v15  ;;  %v6952_v41 = vmax.f32 %v6285_v20, 0.0  ;;  %vm2915_vm10 = vcmp.lt.s32.totalorder %v2883_v52, 600 }
 0x292   : > { %7187 = vst [vmem:[#allocation72_spill] sm:$0xff] %v6296_v21  ;;  %v2884_v27 = vadd.s32 %v5872_v7, %v2851_v3  ;;  %v6305_v36 = vadd.f32 %v5876_v31, %v2074_v44  ;;  %v2079_v11 = vadd.f32 %v2078_v45, %v1990_v58  ;;  %v2853_v10 = vadd.s32 232, %v5859_v38 }
 0x293   : > { %v2080_v53 = vpop.f32.mrf.mxu1  ;;  %v3258_v18 = vmul.f32 %v3051_v19, %v3051_v19  ;;  %v7191_v15 = vmax.f32 %v6270_v54, 0.0  ;;  %v6320_v3 = vadd.f32 %v5876_v31, %v2076_v57  ;;  %v2854_v44 = vadd.s32 240, %v5859_v38 }
 0x294   : > { %v2167_v4 = vpop.f32.mrf.mxu2  ;;  %v2256_v49 = vpop.f32.mrf.mxu3  ;;  %7189 = vst [vmem:[#allocation62_spill] sm:$0xff] %v6305_v36  ;;  %v3308_v58 = vadd.f32 %v3307_v5, %v3255_v12  ;;  %vm2916_vm11 = vcmp.lt.s32.totalorder %v2884_v27, 600  ;;  %v2886_v57 = vadd.s32 %v5872_v7, %v2853_v10  ;;  %v7202_v27 = vld [vmem:[#allocation89_spill] sm:$0xff] }
 0x295   : > { %v2168_v61 = vadd.f32 %v2167_v4, %v7188_v42  ;;  %v1991_v29 = vpop.f32.mrf.mxu0  ;;  %v3054_v37 = vmul.f32 %v6259_v51, %v7191_v15  ;;  %v6953_v4 = vmax.f32 %v6296_v21, 0.0  ;;  %v2885_v42 = vadd.s32 %v5872_v7, %v2852_v62  ;;  %7193 = vst [vmem:[#allocation69_spill] sm:$0xff] %v6320_v3  ;;  %v7196_v15 = vld [vmem:[#allocation86_spill] sm:$0xff] }
 0x296   : > { %v1992_v59 = vadd.f32 %v1991_v29, %v5482_v14  ;;  %v6317_v14 = vsel %vm2914_vm9, 1.0, %v7117_v23  ;;  %v6328_v29 = vsel %vm2915_vm10, 1.0, %v7117_v23  ;;  %v6332_v62 = vadd.f32 %v5876_v31, %v2079_v11 }
 0x297   : > { %v6307_v63 = vadd.f32 %v2256_v49, %v2168_v61  ;;  %7192 = vst [vmem:[#allocation66_spill] sm:$0xff] %v6317_v14  ;;  %v3102_v49 = vadd.f32 %v3101_v28, %v3051_v19  ;;  %v3057_v61 = vmul.f32 %v6279_v43, %v6952_v41  ;;  %v3060_v5 = vmul.f32 %v6317_v14, %v6953_v4  ;;  %v7198_v4 = vld [vmem:[#allocation92_spill] sm:$0xff] }
 0x298   : > { %v2081_v45 = vadd.f32 %v2080_v53, %v1992_v59  ;;  %7194 = vst [vmem:[#allocation74_spill] sm:$0xff] %v6332_v62  ;;  %v3309_v53 = vadd.f32 %v3308_v58, %v3258_v18  ;;  %v3261_v59 = vmul.f32 %v3054_v37, %v3054_v37  ;;  %vm2917_vm12 = vcmp.lt.s32.totalorder %v2885_v42, 600 }
 0x299   : > { %7190 = vst [vmem:[#allocation75_spill] sm:$0xff] %v6307_v63  ;;  %v2887_v10 = vadd.s32 %v5872_v7, %v2854_v44  ;;  %v3103_v18 = vadd.f32 %v3102_v49, %v3054_v37  ;;  %v3264_v58 = vmul.f32 %v3057_v61, %v3057_v61  ;;  %v6346_v63 = vsel %vm2916_vm11, 1.0, %v7117_v23  ;;  %v7203_v49 = vld [vmem:[#allocation9_spill] sm:$0xff] }
 0x29a   : > { %v6340_v12 = vadd.f32 %v5876_v31, %v2081_v45  ;;  %7197 = vst [vmem:[#allocation77_spill] sm:$0xff] %v6346_v63  ;;  %v7199_v14 = vmax.f32 %v6305_v36, 0.0  ;;  %vm2918_vm13 = vcmp.lt.s32.totalorder %v2886_v57, 600  ;;  %v6357_v37 = vsel %vm2917_vm12, 1.0, %v7117_v23  ;;  %v7205_v57 = vld [vmem:[#allocation88_spill] sm:$0xff] }
 0x29b   : > { %v2083_v1 = vpop.f32.mrf.mxu1  ;;  %7201 = vst [vmem:[#allocation8_spill] sm:$0xff] %v6357_v37  ;;  %vm2919_vm14 = vcmp.lt.s32.totalorder %v2887_v10, 600  ;;  %v3104_v42 = vadd.f32 %v3103_v18, %v3057_v61 }
 0x29c   : > { %v2169_v19 = vpop.f32.mrf.mxu2  ;;  %v2258_v28 = vpop.f32.mrf.mxu3  ;;  %7195 = vst [vmem:[#allocation78_spill] sm:$0xff] %v6340_v12  ;;  %v3063_v52 = vmul.f32 %v6328_v29, %v7199_v14  ;;  %v7204_v14 = vmax.f32 %v6320_v3, 0.0 }
 0x29d   : > { %v2170_v41 = vadd.f32 %v2169_v19, %v7196_v15  ;;  %v1994_v11 = vpop.f32.mrf.mxu0  ;;  %v3310_v15 = vadd.f32 %v3309_v53, %v3261_v59  ;;  %v7206_v59 = vmax.f32 %v6332_v62, 0.0 }
 0x29e   : > { %v1995_v21 = vadd.f32 %v1994_v11, %v7198_v4  ;;  %2398 = vmatmul.bf16.gmra.mxu1 %v7203_v49  ;;  %v2855_v4 = vadd.s32 248, %v5859_v38  ;;  %v3267_v11 = vmul.f32 %v3060_v5, %v3060_v5  ;;  %v3066_v45 = vmul.f32 %v6346_v63, %v7204_v14 }
 0x29f   : > { %v6353_v19 = vadd.f32 %v2258_v28, %v2170_v41  ;;  %v3311_v38 = vadd.f32 %v3310_v15, %v3264_v58  ;;  %v3270_v53 = vmul.f32 %v3063_v52, %v3063_v52  ;;  %v3069_v28 = vmul.f32 %v6357_v37, %v7206_v59  ;;  %v7208_v15 = vld [vmem:[#allocation90_spill] sm:$0xff] }
 0x2a0   : > { %v2084_v44 = vadd.f32 %v2083_v1, %v1995_v21  ;;  %2309 = vmatmul.bf16.gmra.mxu0 %v7202_v27  ;;  %v6369_v21 = vsel %vm2918_vm13, 1.0, %v7117_v23  ;;  %v3105_v49 = vadd.f32 %v3104_v42, %v3060_v5  ;;  %v6379_v14 = vsel %vm2919_vm14, 1.0, %v7117_v23  ;;  %v7209_v42 = vld [vmem:[#allocation97_spill] sm:$0xff] }
 0x2a1   : > { %7200 = vst [vmem:[#allocation81_spill] sm:$0xff] %v6353_v19  ;;  %2487 = vmatmul.bf16.gmra.mxu2 %v7205_v57  ;;  %2576 = vmatmul.bf16.gmra.mxu3 %v7202_v27  ;;  %v2888_v18 = vadd.s32 %v5872_v7, %v2855_v4  ;;  %v3312_v57 = vadd.f32 %v3311_v38, %v3267_v11 }
 0x2a2   : > { %v6372_v1 = vadd.f32 %v5876_v31, %v2084_v44  ;;  %v3273_v41 = vmul.f32 %v3066_v45, %v3066_v45  ;;  %v7207_v44 = vmax.f32 %v6340_v12, 0.0  ;;  %v3106_v5 = vadd.f32 %v3105_v49, %v3063_v52 }
 0x2a3   : > { %v2085_v59 = vpop.f32.mrf.mxu1  ;;  %v3313_v37 = vadd.f32 %v3312_v57, %v3270_v53  ;;  %v3276_v3 = vmul.f32 %v3069_v28, %v3069_v28  ;;  %vm2920_vm15 = vcmp.lt.s32.totalorder %v2888_v18, 600 }
 0x2a4   : > { %v2172_v27 = vpop.f32.mrf.mxu2  ;;  %v2261_v61 = vpop.f32.mrf.mxu3  ;;  %v3072_v58 = vmul.f32 %v6369_v21, %v7207_v44  ;;  %v7210_v63 = vmax.f32 %v6372_v1, 0.0  ;;  %v3107_v4 = vadd.f32 %v3106_v5, %v3066_v45  ;;  %v6400_v45 = vperm.slane %v5869_v34, 1 }
 0x2a5   : > { %v2173_v19 = vadd.f32 %v2172_v27, %v7208_v15  ;;  %v1996_v62 = vpop.f32.mrf.mxu0  ;;  %v3314_v38 = vadd.f32 %v3313_v37, %v3273_v41  ;;  %v7211_v37 = vld [vmem:[#allocation93_spill] sm:$0xff] }
 0x2a6   : > { %v1997_v10 = vadd.f32 %v1996_v62, %v7209_v42  ;;  %v3075_v36 = vmul.f32 %v6379_v14, %v7210_v63  ;;  %v3279_v44 = vmul.f32 %v3072_v58, %v3072_v58  ;;  %v3108_v12 = vadd.f32 %v3107_v4, %v3069_v28  ;;  %v7213_v42 = vld [vmem:[#allocation96_spill] sm:$0xff]  ;;  %v7214_v4 = vld [vmem:[#allocation10_spill] sm:$0xff] }
 0x2a7   : > { %v6390_v7 = vadd.f32 %v2261_v61, %v2173_v19  ;;  %v3315_v52 = vadd.f32 %v3314_v38, %v3276_v3  ;;  %v6396_v62 = vsel %vm2920_vm15, 1.0, %v7117_v23  ;;  %v7212_v3 = vld [vmem:[#allocation98_spill] sm:$0xff] }
 0x2a8   : > { %v2086_v11 = vadd.f32 %v2085_v59, %v1997_v10  ;;  %v3282_v49 = vmul.f32 %v3075_v36, %v3075_v36  ;;  %v3109_v53 = vadd.f32 %v3108_v12, %v3072_v58 }
 0x2a9   : > { %v3316_v10 = vadd.f32 %v3315_v52, %v3279_v44  ;;  %v7216_v52 = vld [vmem:[#allocation11_spill] sm:$0xff] }
 0x2aa   : > { %v6393_v27 = vadd.f32 %v5876_v31, %v2086_v11  ;;  %v3110_v31 = vadd.f32 %v3109_v53, %v3075_v36  ;;  %v7215_v11 = vld [vmem:[#allocation95_spill] sm:$0xff] }
 0x2ab   : > { %v2364_v61 = vpop.f32.mrf.mxu1  ;;  %v3317_v18 = vadd.f32 %v3316_v10, %v3282_v49 }
 0x2ac   : > { %v2819_v57 = vmax.f32 %v6393_v27, 0.0  ;;  %v2174_v63 = vpop.f32.mrf.mxu2  ;;  %v2263_v19 = vpop.f32.mrf.mxu3  ;;  %v2365_v49 = vadd.f32 %v2364_v61, %v7216_v52 }
 0x2ad   : > { %v2175_v41 = vadd.f32 %v2174_v63, %v7211_v37  ;;  %v2275_v28 = vpop.f32.mrf.mxu0 }
 0x2ae   : > { %v3078_v23 = vmul.f32 %v6396_v62, %v2819_v57  ;;  %v2276_v12 = vadd.f32 %v2275_v28, %v7212_v3  ;;  %2403 = vmatmul.bf16.gmra.mxu1 %v7214_v4 }
 0x2af   : > { %v6407_v58 = vadd.f32 %v2263_v19, %v2175_v41  ;;  %v7217_v19 = vmax.f32 %v5893_v16, 0.0 }
 0x2b0   : > { %v3111_v15 = vadd.f32 %v3110_v31, %v3078_v23  ;;  %v3285_v59 = vmul.f32 %v3078_v23, %v3078_v23  ;;  %v2631_v5 = vadd.f32 %v6400_v45, %v2276_v12  ;;  %2314 = vmatmul.bf16.gmra.mxu0 %v7213_v42  ;;  %v6426_v31 = vperm.slane %v5869_v34, 2 }
 0x2b1   : > { %2492 = vmatmul.bf16.gmra.mxu2 %v7215_v11  ;;  %2581 = vmatmul.bf16.gmra.mxu3 %v7213_v42 }
 0x2b2   : > { %v3112_v36 = vrot.slane %v3111_v15, 4  ;;  %v3318_v38 = vadd.f32 %v3317_v18, %v3285_v59  ;;  %v2727_v44 = vmax.f32 %v2631_v5, 0.0 }
 0x2b3   : > { %v2366_v3 = vpop.f32.mrf.mxu1 }
 0x2b4   : > { %v3113_v53 = vadd.f32 %v3112_v36, %v3111_v15  ;;  %v3319_v63 = vrot.slane %v3318_v38, 4  ;;  %v3399_v10 = vpack.c.bf16 %v2727_v44, %v7217_v19  ;;  %v2453_v37 = vpop.f32.mrf.mxu2  ;;  %v2542_v41 = vpop.f32.mrf.mxu3  ;;  %v2986_v42 = vmul.f32 %v5919_v8, %v2727_v44 }
 0x2b5   : > { %v2454_v28 = vadd.f32 %v2453_v37, %v2365_v49  ;;  %v2277_v23 = vpop.f32.mrf.mxu0 }
 0x2b6   : > { %v3114_v12 = vrot.slane %v3113_v53, 2  ;;  %v3320_v18 = vadd.f32 %v3319_v63, %v3318_v38  ;;  %3463 = vst [vmem:[%s6420_s16] sm:$0xff] %v3399_v10  ;;  %v2278_v59 = vadd.f32 %v2277_v23, %v5573_v48  ;;  %v7218_v48 = vld [vmem:[#allocation12_spill] sm:$0xff]  ;;  %v7219_v63 = vmax.f32 %v5886_v35, 0.0 }
 0x2b7   : > { %v2543_v61 = vadd.f32 %v2542_v41, %v2454_v28  ;;  %v2367_v52 = vadd.f32 %v2366_v3, %v7218_v48  ;;  %v3193_v41 = vmul.f32 %v2986_v42, %v2986_v42  ;;  %v7220_v48 = vld [vmem:[#allocation13_spill] sm:$0xff] }
 0x2b8   : > { %v3115_v16 = vadd.f32 %v3114_v12, %v3113_v53  ;;  %v3321_v15 = vrot.slane %v3320_v18, 2  ;;  %v2634_v5 = vadd.f32 %v6400_v45, %v2278_v59 }
 0x2b9   : > { %v2632_v34 = vadd.f32 %v6426_v31, %v2543_v61 }
 0x2ba   : > { %v3116_v4 = vrot.slane %v3115_v16, 1  ;;  %v3322_v11 = vadd.f32 %v3321_v15, %v3320_v18  ;;  %v2730_v36 = vmax.f32 %v2634_v5, 0.0 }
 0x2bb   : > { %v2728_v38 = vmax.f32 %v2632_v34, 0.0  ;;  %v2369_v18 = vpop.f32.mrf.mxu1 }
 0x2bc   : > { %v3323_v49 = vrot.slane %v3322_v11, 1  ;;  %v2989_v53 = vmul.f32 %v5911_v32, %v2730_v36  ;;  %v3401_v19 = vpack.c.bf16 %v2730_v36, %v7219_v63  ;;  %v2455_v44 = vpop.f32.mrf.mxu2  ;;  %v2544_v10 = vpop.f32.mrf.mxu3  ;;  %v3117_v37 = vadd.f32 %v3116_v4, %v3115_v16 }
 0x2bd   : > { %v3400_v28 = vpack.c.bf16 %v2728_v38, %v2728_v38  ;;  %v2456_v23 = vadd.f32 %v2455_v44, %v2367_v52  ;;  %v2280_v12 = vpop.f32.mrf.mxu0  ;;  %v2370_v52 = vadd.f32 %v2369_v18, %v7220_v48 }
 0x2be   : > { %v3324_v59 = vadd.f32 %v3323_v49, %v3322_v11  ;;  %v3118_v61 = vadd.f32 %v2989_v53, %v2986_v42  ;;  %v3196_v3 = vmul.f32 %v2989_v53, %v2989_v53  ;;  %3465 = vst [vmem:[%s6420_s16 + $0xc] sm:$0xff] %v3401_v19  ;;  %v2281_v15 = vadd.f32 %v2280_v12, %v5595_v9 }
 0x2bf   : > { %3464 = vst [vmem:[%s6420_s16 + $0x8] sm:$0xf] %v3400_v28  ;;  %v2545_v35 = vadd.f32 %v2544_v10, %v2456_v23  ;;  %2408 = vmatmul.bf16.gmra.mxu1 %v4889_v13  ;;  %v2987_v11 = vmul.f32 %v5919_v8, %v2728_v38  ;;  %v7221_v13 = vmax.f32 %v5902_v30, 0.0 }
 0x2c0   : > { %v3528_v16 = vsel %vm3527_vm0, %v3117_v37, %v3324_v59  ;;  %v3325_v5 = vadd.f32 %v3196_v3, %v3193_v41  ;;  %v2637_v34 = vadd.f32 %v6400_v45, %v2281_v15  ;;  %2319 = vmatmul.bf16.gmra.mxu0 %v5567_v39 }
 0x2c1   : > { %v3532_v42 = vsel %vm3531_vm1, %v3528_v16, 0.0  ;;  %v2635_v9 = vadd.f32 %v6426_v31, %v2545_v35  ;;  %2497 = vmatmul.bf16.gmra.mxu2 %v5565_v6  ;;  %2586 = vmatmul.bf16.gmra.mxu3 %v5567_v39  ;;  %v3194_v38 = vmul.f32 %v2987_v11, %v2987_v11  ;;  %v7222_v16 = vld [vmem:[#allocation14_spill] sm:$0xff] }
 0x2c2   : > { %3535 = vst [vmem:[%s6448_s17] sm:$0xff] %v3532_v42  ;;  %v2733_v4 = vmax.f32 %v2637_v34, 0.0  ;;  %v7223_v34 = vld [vmem:[#allocation48_spill] sm:$0xff] }
 0x2c3   : > { %v2731_v36 = vmax.f32 %v2635_v9, 0.0  ;;  %v2371_v37 = vpop.f32.mrf.mxu1 }
 0x2c4   : > { %v2992_v49 = vmul.f32 %v5928_v2, %v2733_v4  ;;  %v3403_v53 = vpack.c.bf16 %v2733_v4, %v7221_v13  ;;  %v2458_v63 = vpop.f32.mrf.mxu2  ;;  %v2547_v19 = vpop.f32.mrf.mxu3 }
 0x2c5   : > { %v2990_v6 = vmul.f32 %v5911_v32, %v2731_v36  ;;  %v3402_v44 = vpack.c.bf16 %v2731_v36, %v2731_v36  ;;  %v2459_v39 = vadd.f32 %v2458_v63, %v2370_v52  ;;  %v2282_v10 = vpop.f32.mrf.mxu0 }
 0x2c6   : > { %v3119_v41 = vadd.f32 %v3118_v61, %v2992_v49  ;;  %v3199_v28 = vmul.f32 %v2992_v49, %v2992_v49  ;;  %3467 = vst [vmem:[%s6420_s16 + $0x18] sm:$0xff] %v3403_v53  ;;  %v2283_v8 = vadd.f32 %v2282_v10, %v5611_v0  ;;  %v2372_v61 = vadd.f32 %v2371_v37, %v7222_v16  ;;  %v7224_v0 = vld [vmem:[#allocation39_spill] sm:$0xff] }
 0x2c7   : > { %v3155_v23 = vadd.f32 %v2990_v6, %v2987_v11  ;;  %v3197_v12 = vmul.f32 %v2990_v6, %v2990_v6  ;;  %3466 = vst [vmem:[%s6420_s16 + $0x14] sm:$0xf] %v3402_v44  ;;  %v2548_v30 = vadd.f32 %v2547_v19, %v2459_v39  ;;  %v7225_v9 = vmax.f32 %v7224_v0, 0.0  ;;  %v7226_v19 = vld [vmem:[#allocation101_spill] sm:$0xff] }
 0x2c8   : > { %v3326_v18 = vadd.f32 %v3325_v5, %v3199_v28  ;;  %v2640_v59 = vadd.f32 %v6400_v45, %v2283_v8  ;;  %v7227_v8 = vld [vmem:[#allocation100_spill] sm:$0xff] }
 0x2c9   : > { %v3362_v3 = vadd.f32 %v3197_v12, %v3194_v38  ;;  %v2638_v32 = vadd.f32 %v6426_v31, %v2548_v30  ;;  %v7228_v38 = vld [vmem:[#allocation15_spill] sm:$0xff] }
 0x2ca   : > { %v2736_v15 = vmax.f32 %v2640_v59, 0.0  ;;  %v7229_v30 = vld [vmem:[#allocation99_spill] sm:$0xff]  ;;  %v7230_v59 = vld [vmem:[#allocation16_spill] sm:$0xff] }
 0x2cb   : > { %v2734_v35 = vmax.f32 %v2638_v32, 0.0  ;;  %v2374_v13 = vpop.f32.mrf.mxu1 }
 0x2cc   : > { %v2995_v42 = vmul.f32 %v7223_v34, %v2736_v15  ;;  %v3405_v4 = vpack.c.bf16 %v2736_v15, %v7225_v9  ;;  %v2460_v11 = vpop.f32.mrf.mxu2  ;;  %v2549_v36 = vpop.f32.mrf.mxu3  ;;  %v2375_v32 = vadd.f32 %v2374_v13, %v7230_v59  ;;  %v7231_v15 = vmax.f32 %v5937_v33, 0.0 }
 0x2cd   : > { %v2993_v5 = vmul.f32 %v5928_v2, %v2734_v35  ;;  %v3404_v48 = vpack.c.bf16 %v2734_v35, %v2734_v35  ;;  %v2461_v52 = vadd.f32 %v2460_v11, %v2372_v61  ;;  %v2285_v49 = vpop.f32.mrf.mxu0 }
 0x2ce   : > { %v3120_v53 = vadd.f32 %v3119_v41, %v2995_v42  ;;  %v3202_v63 = vmul.f32 %v2995_v42, %v2995_v42  ;;  %3469 = vst [vmem:[%s6420_s16 + $0x24] sm:$0xff] %v3405_v4  ;;  %v2286_v6 = vadd.f32 %v2285_v49, %v7226_v19 }
 0x2cf   : > { %v3156_v44 = vadd.f32 %v3155_v23, %v2993_v5  ;;  %v3200_v39 = vmul.f32 %v2993_v5, %v2993_v5  ;;  %3468 = vst [vmem:[%s6420_s16 + $0x20] sm:$0xf] %v3404_v48  ;;  %v2550_v10 = vadd.f32 %v2549_v36, %v2461_v52  ;;  %2413 = vmatmul.bf16.gmra.mxu1 %v7228_v38  ;;  %v7232_v5 = vld [vmem:[#allocation104_spill] sm:$0xff]  ;;  %v7235_v38 = vld [vmem:[#allocation45_spill] sm:$0xff] }
 0x2d0   : > { %v3327_v37 = vadd.f32 %v3326_v18, %v3202_v63  ;;  %v2643_v28 = vadd.f32 %v6400_v45, %v2286_v6  ;;  %2324 = vmatmul.bf16.gmra.mxu0 %v7227_v8 }
 0x2d1   : > { %v3363_v2 = vadd.f32 %v3362_v3, %v3200_v39  ;;  %v2641_v12 = vadd.f32 %v6426_v31, %v2550_v10  ;;  %2502 = vmatmul.bf16.gmra.mxu2 %v7229_v30  ;;  %2591 = vmatmul.bf16.gmra.mxu3 %v7227_v8  ;;  %v7233_v10 = vld [vmem:[#allocation17_spill] sm:$0xff] }
 0x2d2   : > { %v2739_v41 = vmax.f32 %v2643_v28, 0.0 }
 0x2d3   : > { %v2737_v23 = vmax.f32 %v2641_v12, 0.0  ;;  %v2376_v4 = vpop.f32.mrf.mxu1  ;;  %v7236_v12 = vmax.f32 %v7235_v38, 0.0 }
 0x2d4   : > { %v2998_v18 = vmul.f32 %v5960_v47, %v2739_v41  ;;  %v3407_v35 = vpack.c.bf16 %v2739_v41, %v7231_v15  ;;  %v2463_v16 = vpop.f32.mrf.mxu2  ;;  %v2552_v61 = vpop.f32.mrf.mxu3  ;;  %v2377_v28 = vadd.f32 %v2376_v4, %v7233_v10  ;;  %v7238_v4 = vld [vmem:[#allocation103_spill] sm:$0xff] }
 0x2d5   : > { %v2996_v3 = vmul.f32 %v7223_v34, %v2737_v23  ;;  %v3406_v42 = vpack.c.bf16 %v2737_v23, %v2737_v23  ;;  %v2464_v0 = vadd.f32 %v2463_v16, %v2375_v32  ;;  %v2287_v9 = vpop.f32.mrf.mxu0 }
 0x2d6   : > { %v3121_v11 = vadd.f32 %v3120_v53, %v2998_v18  ;;  %v3205_v36 = vmul.f32 %v2998_v18, %v2998_v18  ;;  %3471 = vst [vmem:[%s6420_s16 + $0x30] sm:$0xff] %v3407_v35  ;;  %v2288_v48 = vadd.f32 %v2287_v9, %v7232_v5  ;;  %v7234_v53 = vld [vmem:[#allocation44_spill] sm:$0xff]  ;;  %v7237_v35 = vld [vmem:[#allocation105_spill] sm:$0xff] }
 0x2d7   : > { %v3157_v52 = vadd.f32 %v3156_v44, %v2996_v3  ;;  %v3203_v49 = vmul.f32 %v2996_v3, %v2996_v3  ;;  %3470 = vst [vmem:[%s6420_s16 + $0x2c] sm:$0xf] %v3406_v42  ;;  %v2553_v13 = vadd.f32 %v2552_v61, %v2464_v0 }
 0x2d8   : > { %v3328_v63 = vadd.f32 %v3327_v37, %v3205_v36  ;;  %v2646_v33 = vadd.f32 %v6400_v45, %v2288_v48  ;;  %v7239_v36 = vld [vmem:[#allocation18_spill] sm:$0xff] }
 0x2d9   : > { %v3364_v19 = vadd.f32 %v3363_v2, %v3203_v49  ;;  %v2644_v34 = vadd.f32 %v6426_v31, %v2553_v13  ;;  %v7240_v48 = vld [vmem:[#allocation102_spill] sm:$0xff]  ;;  %v7241_v49 = vld [vmem:[#allocation19_spill] sm:$0xff] }
 0x2da   : > { %v2742_v6 = vmax.f32 %v2646_v33, 0.0  ;;  %v7242_v33 = vld [vmem:[#allocation55_spill] sm:$0xff] }
 0x2db   : > { %v2740_v39 = vmax.f32 %v2644_v34, 0.0  ;;  %v2379_v32 = vpop.f32.mrf.mxu1  ;;  %v7243_v34 = vld [vmem:[#allocation3_spill] sm:$0xff] }
 0x2dc   : > { %v3001_v8 = vmul.f32 %v7234_v53, %v2742_v6  ;;  %v3409_v44 = vpack.c.bf16 %v2742_v6, %v7236_v12  ;;  %v2465_v30 = vpop.f32.mrf.mxu2  ;;  %v2554_v41 = vpop.f32.mrf.mxu3  ;;  %v2380_v13 = vadd.f32 %v2379_v32, %v7241_v49  ;;  %v7244_v6 = vmax.f32 %v7243_v34, 0.0 }
 0x2dd   : > { %v2999_v37 = vmul.f32 %v5960_v47, %v2740_v39  ;;  %v3408_v23 = vpack.c.bf16 %v2740_v39, %v2740_v39  ;;  %v2466_v59 = vadd.f32 %v2465_v30, %v2377_v28  ;;  %v2290_v2 = vpop.f32.mrf.mxu0 }
 0x2de   : > { %v3122_v18 = vadd.f32 %v3121_v11, %v3001_v8  ;;  %v3208_v15 = vmul.f32 %v3001_v8, %v3001_v8  ;;  %3473 = vst [vmem:[%s6420_s16 + $0x3c] sm:$0xff] %v3409_v44  ;;  %v2291_v16 = vadd.f32 %v2290_v2, %v7237_v35 }
 0x2df   : > { %v3158_v61 = vadd.f32 %v3157_v52, %v2999_v37  ;;  %v3206_v3 = vmul.f32 %v2999_v37, %v2999_v37  ;;  %3472 = vst [vmem:[%s6420_s16 + $0x38] sm:$0xf] %v3408_v23  ;;  %v2555_v42 = vadd.f32 %v2554_v41, %v2466_v59  ;;  %2418 = vmatmul.bf16.gmra.mxu1 %v7239_v36  ;;  %v7245_v37 = vld [vmem:[#allocation108_spill] sm:$0xff] }
 0x2e0   : > { %v3329_v0 = vadd.f32 %v3328_v63, %v3208_v15  ;;  %v2649_v9 = vadd.f32 %v6400_v45, %v2291_v16  ;;  %2329 = vmatmul.bf16.gmra.mxu0 %v7238_v4 }
 0x2e1   : > { %v3365_v47 = vadd.f32 %v3364_v19, %v3206_v3  ;;  %v2647_v5 = vadd.f32 %v6426_v31, %v2555_v42  ;;  %2507 = vmatmul.bf16.gmra.mxu2 %v7240_v48  ;;  %2596 = vmatmul.bf16.gmra.mxu3 %v7238_v4 }
 0x2e2   : > { %v2745_v11 = vmax.f32 %v2649_v9, 0.0  ;;  %v7246_v9 = vld [vmem:[#allocation20_spill] sm:$0xff] }
 0x2e3   : > { %v2743_v52 = vmax.f32 %v2647_v5, 0.0  ;;  %v2381_v44 = vpop.f32.mrf.mxu1  ;;  %v7248_v5 = vld [vmem:[#allocation46_spill] sm:$0xff] }
 0x2e4   : > { %v3004_v63 = vmul.f32 %v7242_v33, %v2745_v11  ;;  %v3411_v39 = vpack.c.bf16 %v2745_v11, %v7244_v6  ;;  %v2468_v10 = vpop.f32.mrf.mxu2  ;;  %v2557_v28 = vpop.f32.mrf.mxu3  ;;  %v2382_v4 = vadd.f32 %v2381_v44, %v7246_v9  ;;  %v7249_v48 = vmax.f32 %v7248_v5, 0.0  ;;  %v7251_v44 = vld [vmem:[#allocation107_spill] sm:$0xff] }
 0x2e5   : > { %v3002_v19 = vmul.f32 %v7234_v53, %v2743_v52  ;;  %v3410_v8 = vpack.c.bf16 %v2743_v52, %v2743_v52  ;;  %v2469_v38 = vadd.f32 %v2468_v10, %v2380_v13  ;;  %v2292_v12 = vpop.f32.mrf.mxu0 }
 0x2e6   : > { %v3123_v30 = vadd.f32 %v3122_v18, %v3004_v63  ;;  %v3211_v41 = vmul.f32 %v3004_v63, %v3004_v63  ;;  %3475 = vst [vmem:[%s6420_s16 + $0x48] sm:$0xff] %v3411_v39  ;;  %v2293_v23 = vadd.f32 %v2292_v12, %v7245_v37  ;;  %v7247_v18 = vld [vmem:[#allocation4_spill] sm:$0xff]  ;;  %v7250_v39 = vld [vmem:[#allocation109_spill] sm:$0xff] }
 0x2e7   : > { %v3159_v59 = vadd.f32 %v3158_v61, %v3002_v19  ;;  %v3209_v2 = vmul.f32 %v3002_v19, %v3002_v19  ;;  %3474 = vst [vmem:[%s6420_s16 + $0x44] sm:$0xf] %v3410_v8  ;;  %v2558_v32 = vadd.f32 %v2557_v28, %v2469_v38 }
 0x2e8   : > { %v3330_v15 = vadd.f32 %v3329_v0, %v3211_v41  ;;  %v2652_v35 = vadd.f32 %v6400_v45, %v2293_v23  ;;  %v7252_v41 = vld [vmem:[#allocation21_spill] sm:$0xff]  ;;  %v7253_v23 = vld [vmem:[#allocation106_spill] sm:$0xff] }
 0x2e9   : > { %v3366_v16 = vadd.f32 %v3365_v47, %v3209_v2  ;;  %v2650_v53 = vadd.f32 %v6426_v31, %v2558_v32  ;;  %v7254_v2 = vld [vmem:[#allocation22_spill] sm:$0xff] }
 0x2ea   : > { %v2748_v3 = vmax.f32 %v2652_v35, 0.0  ;;  %v7255_v35 = vld [vmem:[#allocation53_spill] sm:$0xff] }
 0x2eb   : > { %v2746_v42 = vmax.f32 %v2650_v53, 0.0  ;;  %v2384_v63 = vpop.f32.mrf.mxu1  ;;  %v7256_v53 = vld [vmem:[#allocation52_spill] sm:$0xff] }
 0x2ec   : > { %v3007_v36 = vmul.f32 %v7247_v18, %v2748_v3  ;;  %v3413_v61 = vpack.c.bf16 %v2748_v3, %v7249_v48  ;;  %v2470_v11 = vpop.f32.mrf.mxu2  ;;  %v2559_v52 = vpop.f32.mrf.mxu3  ;;  %v2385_v32 = vadd.f32 %v2384_v63, %v7254_v2  ;;  %v7257_v3 = vmax.f32 %v7256_v53, 0.0 }
 0x2ed   : > { %v3005_v0 = vmul.f32 %v7242_v33, %v2746_v42  ;;  %v3412_v49 = vpack.c.bf16 %v2746_v42, %v2746_v42  ;;  %v2471_v13 = vadd.f32 %v2470_v11, %v2382_v4  ;;  %v2295_v47 = vpop.f32.mrf.mxu0 }
 0x2ee   : > { %v3124_v34 = vadd.f32 %v3123_v30, %v3007_v36  ;;  %v3214_v6 = vmul.f32 %v3007_v36, %v3007_v36  ;;  %3477 = vst [vmem:[%s6420_s16 + $0x54] sm:$0xff] %v3413_v61  ;;  %v2296_v10 = vadd.f32 %v2295_v47, %v7250_v39 }
 0x2ef   : > { %v3160_v28 = vadd.f32 %v3159_v59, %v3005_v0  ;;  %v3212_v19 = vmul.f32 %v3005_v0, %v3005_v0  ;;  %3476 = vst [vmem:[%s6420_s16 + $0x50] sm:$0xf] %v3412_v49  ;;  %v2560_v8 = vadd.f32 %v2559_v52, %v2471_v13  ;;  %2423 = vmatmul.bf16.gmra.mxu1 %v7252_v41  ;;  %v7258_v0 = vld [vmem:[#allocation112_spill] sm:$0xff] }
 0x2f0   : > { %v3331_v38 = vadd.f32 %v3330_v15, %v3214_v6  ;;  %v2655_v12 = vadd.f32 %v6400_v45, %v2296_v10  ;;  %2334 = vmatmul.bf16.gmra.mxu0 %v7251_v44 }
 0x2f1   : > { %v3367_v33 = vadd.f32 %v3366_v16, %v3212_v19  ;;  %v2653_v37 = vadd.f32 %v6426_v31, %v2560_v8  ;;  %2512 = vmatmul.bf16.gmra.mxu2 %v7253_v23  ;;  %2601 = vmatmul.bf16.gmra.mxu3 %v7251_v44 }
 0x2f2   : > { %v2751_v30 = vmax.f32 %v2655_v12, 0.0  ;;  %v7259_v12 = vld [vmem:[#allocation23_spill] sm:$0xff] }
 0x2f3   : > { %v2749_v59 = vmax.f32 %v2653_v37, 0.0  ;;  %v2386_v61 = vpop.f32.mrf.mxu1  ;;  %v7261_v37 = vld [vmem:[#allocation51_spill] sm:$0xff] }
 0x2f4   : > { %v3010_v15 = vmul.f32 %v7255_v35, %v2751_v30  ;;  %v3415_v42 = vpack.c.bf16 %v2751_v30, %v7257_v3  ;;  %v2473_v9 = vpop.f32.mrf.mxu2  ;;  %v2562_v4 = vpop.f32.mrf.mxu3  ;;  %v2387_v44 = vadd.f32 %v2386_v61, %v7259_v12  ;;  %v7262_v23 = vmax.f32 %v7261_v37, 0.0  ;;  %v7264_v61 = vld [vmem:[#allocation111_spill] sm:$0xff] }
 0x2f5   : > { %v3008_v16 = vmul.f32 %v7247_v18, %v2749_v59  ;;  %v3414_v36 = vpack.c.bf16 %v2749_v59, %v2749_v59  ;;  %v2474_v5 = vadd.f32 %v2473_v9, %v2385_v32  ;;  %v2297_v48 = vpop.f32.mrf.mxu0 }
 0x2f6   : > { %v3125_v11 = vadd.f32 %v3124_v34, %v3010_v15  ;;  %v3217_v52 = vmul.f32 %v3010_v15, %v3010_v15  ;;  %3479 = vst [vmem:[%s6420_s16 + $0x60] sm:$0xff] %v3415_v42  ;;  %v2298_v49 = vadd.f32 %v2297_v48, %v7258_v0  ;;  %v7260_v34 = vld [vmem:[#allocation5_spill] sm:$0xff] }
 0x2f7   : > { %v3161_v13 = vadd.f32 %v3160_v28, %v3008_v16  ;;  %v3215_v47 = vmul.f32 %v3008_v16, %v3008_v16  ;;  %3478 = vst [vmem:[%s6420_s16 + $0x5c] sm:$0xf] %v3414_v36  ;;  %v2563_v63 = vadd.f32 %v2562_v4, %v2474_v5  ;;  %v7263_v42 = vld [vmem:[#allocation113_spill] sm:$0xff] }
 0x2f8   : > { %v3332_v6 = vadd.f32 %v3331_v38, %v3217_v52  ;;  %v2658_v39 = vadd.f32 %v6400_v45, %v2298_v49  ;;  %v7265_v52 = vld [vmem:[#allocation24_spill] sm:$0xff]  ;;  %v7266_v49 = vld [vmem:[#allocation110_spill] sm:$0xff] }
 0x2f9   : > { %v3368_v10 = vadd.f32 %v3367_v33, %v3215_v47  ;;  %v2656_v18 = vadd.f32 %v6426_v31, %v2563_v63  ;;  %v7267_v47 = vld [vmem:[#allocation25_spill] sm:$0xff] }
 0x2fa   : > { %v2754_v19 = vmax.f32 %v2658_v39, 0.0  ;;  %v7268_v39 = vmax.f32 %v6037_v17, 0.0 }
 0x2fb   : > { %v2752_v8 = vmax.f32 %v2656_v18, 0.0  ;;  %v2389_v15 = vpop.f32.mrf.mxu1 }
 0x2fc   : > { %v3013_v41 = vmul.f32 %v7260_v34, %v2754_v19  ;;  %v3417_v28 = vpack.c.bf16 %v2754_v19, %v7262_v23  ;;  %v2475_v30 = vpop.f32.mrf.mxu2  ;;  %v2564_v59 = vpop.f32.mrf.mxu3  ;;  %v2390_v63 = vadd.f32 %v2389_v15, %v7267_v47 }
 0x2fd   : > { %v3011_v38 = vmul.f32 %v7255_v35, %v2752_v8  ;;  %v3416_v2 = vpack.c.bf16 %v2752_v8, %v2752_v8  ;;  %v2476_v32 = vadd.f32 %v2475_v30, %v2387_v44  ;;  %v2300_v33 = vpop.f32.mrf.mxu0  ;;  %v7269_v30 = vld [vmem:[#allocation31_spill] sm:$0xff] }
 0x2fe   : > { %v3126_v53 = vadd.f32 %v3125_v11, %v3013_v41  ;;  %v3220_v3 = vmul.f32 %v3013_v41, %v3013_v41  ;;  %3481 = vst [vmem:[%s6420_s16 + $0x6c] sm:$0xff] %v3417_v28  ;;  %v2301_v9 = vadd.f32 %v2300_v33, %v7263_v42 }
 0x2ff   : > { %v3162_v4 = vadd.f32 %v3161_v13, %v3011_v38  ;;  %v3218_v16 = vmul.f32 %v3011_v38, %v3011_v38  ;;  %3480 = vst [vmem:[%s6420_s16 + $0x68] sm:$0xf] %v3416_v2  ;;  %v2565_v36 = vadd.f32 %v2564_v59, %v2476_v32  ;;  %2428 = vmatmul.bf16.gmra.mxu1 %v7265_v52 }
 0x300   : > { %v3333_v5 = vadd.f32 %v3332_v6, %v3220_v3  ;;  %v2661_v48 = vadd.f32 %v6400_v45, %v2301_v9  ;;  %2339 = vmatmul.bf16.gmra.mxu0 %v7264_v61  ;;  %v7270_v9 = vld [vmem:[#allocation26_spill] sm:$0xff] }
 0x301   : > { %v3369_v35 = vadd.f32 %v3368_v10, %v3218_v16  ;;  %v2659_v0 = vadd.f32 %v6426_v31, %v2565_v36  ;;  %2517 = vmatmul.bf16.gmra.mxu2 %v7266_v49  ;;  %2606 = vmatmul.bf16.gmra.mxu3 %v7264_v61 }
 0x302   : > { %v2757_v11 = vmax.f32 %v2661_v48, 0.0  ;;  %v7272_v48 = vld [vmem:[#allocation58_spill] sm:$0xff] }
 0x303   : > { %v2755_v13 = vmax.f32 %v2659_v0, 0.0  ;;  %v2391_v37 = vpop.f32.mrf.mxu1  ;;  %v7273_v61 = vmax.f32 %v7272_v48, 0.0 }
 0x304   : > { %v3016_v6 = vmul.f32 %v6057_v50, %v2757_v11  ;;  %v3419_v18 = vpack.c.bf16 %v2757_v11, %v7268_v39  ;;  %v2478_v19 = vpop.f32.mrf.mxu2  ;;  %v2567_v8 = vpop.f32.mrf.mxu3  ;;  %v2392_v16 = vadd.f32 %v2391_v37, %v7270_v9 }
 0x305   : > { %v3014_v10 = vmul.f32 %v7260_v34, %v2755_v13  ;;  %v3418_v12 = vpack.c.bf16 %v2755_v13, %v2755_v13  ;;  %v2479_v44 = vadd.f32 %v2478_v19, %v2390_v63  ;;  %v2302_v41 = vpop.f32.mrf.mxu0 }
 0x306   : > { %v3127_v23 = vadd.f32 %v3126_v53, %v3016_v6  ;;  %v3223_v28 = vmul.f32 %v3016_v6, %v3016_v6  ;;  %3483 = vst [vmem:[%s6420_s16 + $0x78] sm:$0xff] %v3419_v18  ;;  %v2303_v59 = vadd.f32 %v2302_v41, %v7269_v30  ;;  %v7271_v53 = vld [vmem:[#allocation119_spill] sm:$0xff]  ;;  %v7276_v41 = vld [vmem:[#allocation28_spill] sm:$0xff] }
 0x307   : > { %v3163_v38 = vadd.f32 %v3162_v4, %v3014_v10  ;;  %v3221_v2 = vmul.f32 %v3014_v10, %v3014_v10  ;;  %3482 = vst [vmem:[%s6420_s16 + $0x74] sm:$0xf] %v3418_v12  ;;  %v2568_v32 = vadd.f32 %v2567_v8, %v2479_v44  ;;  %v7274_v6 = vld [vmem:[#allocation27_spill] sm:$0xff] }
 0x308   : > { %v3334_v33 = vadd.f32 %v3333_v5, %v3223_v28  ;;  %v2664_v17 = vadd.f32 %v6400_v45, %v2303_v59  ;;  %v7275_v44 = vld [vmem:[#allocation115_spill] sm:$0xff]  ;;  %v7277_v28 = vld [vmem:[#allocation114_spill] sm:$0xff] }
 0x309   : > { %v3370_v15 = vadd.f32 %v3369_v35, %v3221_v2  ;;  %v2662_v34 = vadd.f32 %v6426_v31, %v2568_v32  ;;  %v7278_v59 = vld [vmem:[#allocation30_spill] sm:$0xff] }
 0x30a   : > { %v2760_v3 = vmax.f32 %v2664_v17, 0.0  ;;  %v7279_v2 = vld [vmem:[#allocation6_spill] sm:$0xff] }
 0x30b   : > { %v2758_v42 = vmax.f32 %v2662_v34, 0.0  ;;  %v2394_v13 = vpop.f32.mrf.mxu1 }
 0x30c   : > { %v3019_v36 = vmul.f32 %v7271_v53, %v2760_v3  ;;  %v3421_v4 = vpack.c.bf16 %v2760_v3, %v7273_v61  ;;  %v2480_v52 = vpop.f32.mrf.mxu2  ;;  %v2569_v0 = vpop.f32.mrf.mxu3 }
 0x30d   : > { %v3017_v5 = vmul.f32 %v6057_v50, %v2758_v42  ;;  %v3420_v49 = vpack.c.bf16 %v2758_v42, %v2758_v42  ;;  %v2481_v11 = vadd.f32 %v2480_v52, %v2392_v16  ;;  %v2305_v35 = vpop.f32.mrf.mxu0  ;;  %v7282_v52 = vld [vmem:[#allocation32_spill] sm:$0xff] }
 0x30e   : > { %v3128_v47 = vadd.f32 %v3127_v23, %v3019_v36  ;;  %v3226_v63 = vmul.f32 %v3019_v36, %v3019_v36  ;;  %3485 = vst [vmem:[%s6420_s16 + $0x84] sm:$0xff] %v3421_v4  ;;  %v2306_v39 = vadd.f32 %v2305_v35, %v7274_v6 }
 0x30f   : > { %v3164_v18 = vadd.f32 %v3163_v38, %v3017_v5  ;;  %v3224_v19 = vmul.f32 %v3017_v5, %v3017_v5  ;;  %3484 = vst [vmem:[%s6420_s16 + $0x80] sm:$0xf] %v3420_v49  ;;  %v2570_v8 = vadd.f32 %v2569_v0, %v2481_v11  ;;  %2433 = vmatmul.bf16.gmra.mxu1 %v7276_v41 }
 0x310   : > { %v3335_v10 = vadd.f32 %v3334_v33, %v3226_v63  ;;  %v2667_v12 = vadd.f32 %v6400_v45, %v2306_v39  ;;  %2344 = vmatmul.bf16.gmra.mxu0 %v7275_v44  ;;  %v2395_v38 = vadd.f32 %v2394_v13, %v7278_v59  ;;  %v7280_v33 = vld [vmem:[#allocation60_spill] sm:$0xff] }
 0x311   : > { %v3371_v50 = vadd.f32 %v3370_v15, %v3224_v19  ;;  %v2665_v37 = vadd.f32 %v6426_v31, %v2570_v8  ;;  %2522 = vmatmul.bf16.gmra.mxu2 %v7277_v28  ;;  %2611 = vmatmul.bf16.gmra.mxu3 %v7275_v44  ;;  %v7281_v17 = vmax.f32 %v7280_v33, 0.0  ;;  %v7283_v19 = vld [vmem:[#allocation33_spill] sm:$0xff] }
 0x312   : > { %v2763_v23 = vmax.f32 %v2667_v12, 0.0  ;;  %v7284_v12 = vmax.f32 %v6083_v25, 0.0 }
 0x313   : > { %v2761_v30 = vmax.f32 %v2665_v37, 0.0  ;;  %v2396_v48 = vpop.f32.mrf.mxu1 }
 0x314   : > { %v3022_v32 = vmul.f32 %v7279_v2, %v2763_v23  ;;  %v3423_v34 = vpack.c.bf16 %v2763_v23, %v7281_v17  ;;  %v2483_v3 = vpop.f32.mrf.mxu2  ;;  %v2572_v42 = vpop.f32.mrf.mxu3  ;;  %v2397_v8 = vadd.f32 %v2396_v48, %v7283_v19 }
 0x315   : > { %v3020_v15 = vmul.f32 %v7271_v53, %v2761_v30  ;;  %v3422_v9 = vpack.c.bf16 %v2761_v30, %v2761_v30  ;;  %v2484_v16 = vadd.f32 %v2483_v3, %v2395_v38  ;;  %v2307_v36 = vpop.f32.mrf.mxu0  ;;  %v7285_v38 = vld [vmem:[#allocation118_spill] sm:$0xff] }
 0x316   : > { %v3129_v61 = vadd.f32 %v3128_v47, %v3022_v32  ;;  %v3229_v4 = vmul.f32 %v3022_v32, %v3022_v32  ;;  %3487 = vst [vmem:[%s6420_s16 + $0x90] sm:$0xff] %v3423_v34  ;;  %v2308_v0 = vadd.f32 %v2307_v36, %v7282_v52  ;;  %v7290_v52 = vld [vmem:[#allocation121_spill] sm:$0xff] }
 0x317   : > { %v3165_v5 = vadd.f32 %v3164_v18, %v3020_v15  ;;  %v3227_v49 = vmul.f32 %v3020_v15, %v3020_v15  ;;  %3486 = vst [vmem:[%s6420_s16 + $0x8c] sm:$0xf] %v3422_v9  ;;  %v2573_v11 = vadd.f32 %v2572_v42, %v2484_v16  ;;  %v7286_v42 = vld [vmem:[#allocation117_spill] sm:$0xff]  ;;  %v7287_v15 = vld [vmem:[#allocation34_spill] sm:$0xff]  ;;  %v7288_v16 = vld [vmem:[#allocation116_spill] sm:$0xff] }
 0x318   : > { %v3336_v35 = vadd.f32 %v3335_v10, %v3229_v4  ;;  %v2670_v13 = vadd.f32 %v6400_v45, %v2308_v0 }
 0x319   : > { %v3372_v63 = vadd.f32 %v3371_v50, %v3227_v49  ;;  %v2668_v53 = vadd.f32 %v6426_v31, %v2573_v11 }
 0x31a   : > { %v2766_v6 = vmax.f32 %v2670_v13, 0.0 }
 0x31b   : > { %v2764_v39 = vmax.f32 %v2668_v53, 0.0  ;;  %v2399_v23 = vpop.f32.mrf.mxu1 }
 0x31c   : > { %v3025_v47 = vmul.f32 %v6108_v26, %v2766_v6  ;;  %v3425_v18 = vpack.c.bf16 %v2766_v6, %v7284_v12  ;;  %v2485_v44 = vpop.f32.mrf.mxu2  ;;  %v2574_v41 = vpop.f32.mrf.mxu3  ;;  %v7293_v12 = vld [vmem:[#allocation36_spill] sm:$0xff] }
 0x31d   : > { %v3023_v10 = vmul.f32 %v7279_v2, %v2764_v39  ;;  %v3424_v37 = vpack.c.bf16 %v2764_v39, %v2764_v39  ;;  %v2486_v28 = vadd.f32 %v2485_v44, %v2397_v8  ;;  %v2310_v50 = vpop.f32.mrf.mxu0 }
 0x31e   : > { %v3130_v30 = vadd.f32 %v3129_v61, %v3025_v47  ;;  %v3232_v59 = vmul.f32 %v3025_v47, %v3025_v47  ;;  %3489 = vst [vmem:[%s6420_s16 + $0x9c] sm:$0xff] %v3425_v18  ;;  %v2311_v32 = vadd.f32 %v2310_v50, %v7285_v38  ;;  %v7289_v61 = vld [vmem:[#allocation35_spill] sm:$0xff]  ;;  %v7294_v38 = vld [vmem:[#allocation37_spill] sm:$0xff] }
 0x31f   : > { %v3166_v33 = vadd.f32 %v3165_v5, %v3023_v10  ;;  %v3230_v17 = vmul.f32 %v3023_v10, %v3023_v10  ;;  %3488 = vst [vmem:[%s6420_s16 + $0x98] sm:$0xf] %v3424_v37  ;;  %v2575_v34 = vadd.f32 %v2574_v41, %v2486_v28  ;;  %2438 = vmatmul.bf16.gmra.mxu1 %v7287_v15  ;;  %v7291_v5 = vld [vmem:[#allocation65_spill] sm:$0xff] }
 0x320   : > { %v3337_v3 = vadd.f32 %v3336_v35, %v3232_v59  ;;  %v2673_v25 = vadd.f32 %v6400_v45, %v2311_v32  ;;  %2349 = vmatmul.bf16.gmra.mxu0 %v7286_v42  ;;  %v2400_v4 = vadd.f32 %v2399_v23, %v7289_v61  ;;  %v7292_v49 = vmax.f32 %v7291_v5, 0.0 }
 0x321   : > { %v3373_v2 = vadd.f32 %v3372_v63, %v3230_v17  ;;  %v2671_v9 = vadd.f32 %v6426_v31, %v2575_v34  ;;  %2527 = vmatmul.bf16.gmra.mxu2 %v7288_v16  ;;  %2616 = vmatmul.bf16.gmra.mxu3 %v7286_v42  ;;  %v7296_v34 = vld [vmem:[#allocation120_spill] sm:$0xff] }
 0x322   : > { %v2769_v36 = vmax.f32 %v2673_v25, 0.0  ;;  %v7297_v25 = vmax.f32 %v7296_v34, 0.0 }
 0x323   : > { %v2767_v48 = vmax.f32 %v2671_v9, 0.0  ;;  %v2401_v19 = vpop.f32.mrf.mxu1 }
 0x324   : > { %v3028_v0 = vmul.f32 %v7290_v52, %v2769_v36  ;;  %v3427_v11 = vpack.c.bf16 %v2769_v36, %v7292_v49  ;;  %v2488_v35 = vpop.f32.mrf.mxu2  ;;  %v2577_v13 = vpop.f32.mrf.mxu3  ;;  %v2402_v32 = vadd.f32 %v2401_v19, %v7294_v38 }
 0x325   : > { %v3026_v63 = vmul.f32 %v6108_v26, %v2767_v48  ;;  %v3426_v53 = vpack.c.bf16 %v2767_v48, %v2767_v48  ;;  %v2489_v6 = vadd.f32 %v2488_v35, %v2400_v4  ;;  %v2312_v39 = vpop.f32.mrf.mxu0  ;;  %v7298_v4 = vld [vmem:[#allocation41_spill] sm:$0xff] }
 0x326   : > { %v3131_v8 = vadd.f32 %v3130_v30, %v3028_v0  ;;  %v3235_v47 = vmul.f32 %v3028_v0, %v3028_v0  ;;  %3491 = vst [vmem:[%s6420_s16 + $0xa8] sm:$0xff] %v3427_v11  ;;  %v2313_v18 = vadd.f32 %v2312_v39, %v7293_v12  ;;  %v7295_v30 = vld [vmem:[#allocation123_spill] sm:$0xff]  ;;  %v7299_v39 = vld [vmem:[#allocation40_spill] sm:$0xff]  ;;  %v7301_v12 = vld [vmem:[#allocation122_spill] sm:$0xff] }
 0x327   : > { %v3167_v44 = vadd.f32 %v3166_v33, %v3026_v63  ;;  %v3233_v41 = vmul.f32 %v3026_v63, %v3026_v63  ;;  %3490 = vst [vmem:[%s6420_s16 + $0xa4] sm:$0xf] %v3426_v53  ;;  %v2578_v10 = vadd.f32 %v2577_v13, %v2489_v6 }
 0x328   : > { %v3338_v37 = vadd.f32 %v3337_v3, %v3235_v47  ;;  %v2676_v28 = vadd.f32 %v6400_v45, %v2313_v18  ;;  %v7302_v18 = vmax.f32 %v7301_v12, 0.0 }
 0x329   : > { %v3374_v50 = vadd.f32 %v3373_v2, %v3233_v41  ;;  %v2674_v26 = vadd.f32 %v6426_v31, %v2578_v10 }
 0x32a   : > { %v2772_v23 = vmax.f32 %v2676_v28, 0.0 }
 0x32b   : > { %v2770_v59 = vmax.f32 %v2674_v26, 0.0  ;;  %v2404_v36 = vpop.f32.mrf.mxu1 }
 0x32c   : > { %v3031_v17 = vmul.f32 %v7295_v30, %v2772_v23  ;;  %v3429_v33 = vpack.c.bf16 %v2772_v23, %v7297_v25  ;;  %v2490_v42 = vpop.f32.mrf.mxu2  ;;  %v2579_v15 = vpop.f32.mrf.mxu3  ;;  %v2405_v19 = vadd.f32 %v2404_v36, %v7299_v39 }
 0x32d   : > { %v3029_v3 = vmul.f32 %v7290_v52, %v2770_v59  ;;  %v3428_v9 = vpack.c.bf16 %v2770_v59, %v2770_v59  ;;  %v2491_v16 = vadd.f32 %v2490_v42, %v2402_v32  ;;  %v2315_v2 = vpop.f32.mrf.mxu0  ;;  %v7303_v32 = vld [vmem:[#allocation38_spill] sm:$0xff] }
 0x32e   : > { %v3132_v48 = vadd.f32 %v3131_v8, %v3031_v17  ;;  %v3238_v61 = vmul.f32 %v3031_v17, %v3031_v17  ;;  %3493 = vst [vmem:[%s6420_s16 + $0xb4] sm:$0xff] %v3429_v33  ;;  %v2316_v0 = vadd.f32 %v2315_v2, %v7298_v4  ;;  %v7300_v8 = vld [vmem:[#allocation125_spill] sm:$0xff]  ;;  %v7304_v2 = vld [vmem:[#allocation43_spill] sm:$0xff]  ;;  %v7306_v4 = vld [vmem:[#allocation124_spill] sm:$0xff] }
 0x32f   : > { %v3168_v5 = vadd.f32 %v3167_v44, %v3029_v3  ;;  %v3236_v49 = vmul.f32 %v3029_v3, %v3029_v3  ;;  %3492 = vst [vmem:[%s6420_s16 + $0xb0] sm:$0xf] %v3428_v9  ;;  %v2580_v11 = vadd.f32 %v2579_v15, %v2491_v16 }
 0x330   : > { %v3339_v35 = vadd.f32 %v3338_v37, %v3238_v61  ;;  %v2679_v13 = vadd.f32 %v6400_v45, %v2316_v0  ;;  %v7307_v0 = vmax.f32 %v7306_v4, 0.0 }
 0x331   : > { %v3375_v63 = vadd.f32 %v3374_v50, %v3236_v49  ;;  %v2677_v52 = vadd.f32 %v6426_v31, %v2580_v11 }
 0x332   : > { %v2775_v53 = vmax.f32 %v2679_v13, 0.0 }
 0x333   : > { %v2773_v6 = vmax.f32 %v2677_v52, 0.0  ;;  %v2406_v23 = vpop.f32.mrf.mxu1 }
 0x334   : > { %v3034_v47 = vmul.f32 %v7300_v8, %v2775_v53  ;;  %v3431_v44 = vpack.c.bf16 %v2775_v53, %v7302_v18  ;;  %v2493_v41 = vpop.f32.mrf.mxu2  ;;  %v2582_v10 = vpop.f32.mrf.mxu3  ;;  %v2407_v36 = vadd.f32 %v2406_v23, %v7304_v2 }
 0x335   : > { %v3032_v37 = vmul.f32 %v7295_v30, %v2773_v6  ;;  %v3430_v28 = vpack.c.bf16 %v2773_v6, %v2773_v6  ;;  %v2494_v26 = vadd.f32 %v2493_v41, %v2405_v19  ;;  %v2317_v50 = vpop.f32.mrf.mxu0  ;;  %v7308_v19 = vld [vmem:[#allocation2_spill] sm:$0xff] }
 0x336   : > { %v3133_v59 = vadd.f32 %v3132_v48, %v3034_v47  ;;  %v3241_v38 = vmul.f32 %v3034_v47, %v3034_v47  ;;  %3495 = vst [vmem:[%s6420_s16 + $0xc0] sm:$0xff] %v3431_v44  ;;  %v2318_v17 = vadd.f32 %v2317_v50, %v7303_v32  ;;  %v7305_v48 = vld [vmem:[#allocation126_spill] sm:$0xff]  ;;  %v7309_v50 = vld [vmem:[#allocation47_spill] sm:$0xff] }
 0x337   : > { %v3169_v34 = vadd.f32 %v3168_v5, %v3032_v37  ;;  %v3239_v25 = vmul.f32 %v3032_v37, %v3032_v37  ;;  %3494 = vst [vmem:[%s6420_s16 + $0xbc] sm:$0xf] %v3430_v28  ;;  %v2583_v33 = vadd.f32 %v2582_v10, %v2494_v26  ;;  %v7311_v32 = vld [vmem:[#allocation127_spill] sm:$0xff] }
 0x338   : > { %v3340_v42 = vadd.f32 %v3339_v35, %v3241_v38  ;;  %v2682_v15 = vadd.f32 %v6400_v45, %v2318_v17  ;;  %v7312_v17 = vmax.f32 %v7311_v32, 0.0 }
 0x339   : > { %v3376_v3 = vadd.f32 %v3375_v63, %v3239_v25  ;;  %v2680_v30 = vadd.f32 %v6426_v31, %v2583_v33 }
 0x33a   : > { %v2778_v9 = vmax.f32 %v2682_v15, 0.0 }
 0x33b   : > { %v2776_v16 = vmax.f32 %v2680_v30, 0.0 }
 0x33c   : > { %v3037_v61 = vmul.f32 %v7305_v48, %v2778_v9  ;;  %v3433_v5 = vpack.c.bf16 %v2778_v9, %v7307_v0  ;;  %v2495_v49 = vpop.f32.mrf.mxu2  ;;  %v2584_v11 = vpop.f32.mrf.mxu3 }
 0x33d   : > { %v3035_v35 = vmul.f32 %v7300_v8, %v2776_v16  ;;  %v3432_v13 = vpack.c.bf16 %v2776_v16, %v2776_v16  ;;  %v2496_v52 = vadd.f32 %v2495_v49, %v2407_v36  ;;  %v2320_v63 = vpop.f32.mrf.mxu0  ;;  %v2409_v53 = vpop.f32.mrf.mxu1  ;;  %v7313_v36 = vld [vmem:[#allocation29_spill] sm:$0xff] }
 0x33e   : > { %v3134_v6 = vadd.f32 %v3133_v59, %v3037_v61  ;;  %v3244_v39 = vmul.f32 %v3037_v61, %v3037_v61  ;;  %3497 = vst [vmem:[%s6420_s16 + $0xcc] sm:$0xff] %v3433_v5  ;;  %v2321_v47 = vadd.f32 %v2320_v63, %v7308_v19  ;;  %v2410_v23 = vadd.f32 %v2409_v53, %v7309_v50  ;;  %v7310_v59 = vld [vmem:[#allocation128_spill] sm:$0xff]  ;;  %v7314_v63 = vld [vmem:[#allocation50_spill] sm:$0xff] }
 0x33f   : > { %v3170_v12 = vadd.f32 %v3169_v34, %v3035_v35  ;;  %v3242_v18 = vmul.f32 %v3035_v35, %v3035_v35  ;;  %3496 = vst [vmem:[%s6420_s16 + $0xc8] sm:$0xf] %v3432_v13  ;;  %v2585_v44 = vadd.f32 %v2584_v11, %v2496_v52 }
 0x340   : > { %v3341_v41 = vadd.f32 %v3340_v42, %v3244_v39  ;;  %v2685_v10 = vadd.f32 %v6400_v45, %v2321_v47  ;;  %v7315_v39 = vmax.f32 %v6190_v56, 0.0 }
 0x341   : > { %v3377_v37 = vadd.f32 %v3376_v3, %v3242_v18  ;;  %v2683_v8 = vadd.f32 %v6426_v31, %v2585_v44 }
 0x342   : > { %v2781_v28 = vmax.f32 %v2685_v10, 0.0 }
 0x343   : > { %v2779_v26 = vmax.f32 %v2683_v8, 0.0 }
 0x344   : > { %v3040_v38 = vmul.f32 %v7310_v59, %v2781_v28  ;;  %v3435_v34 = vpack.c.bf16 %v2781_v28, %v7312_v17  ;;  %v2498_v25 = vpop.f32.mrf.mxu2  ;;  %v2587_v33 = vpop.f32.mrf.mxu3 }
 0x345   : > { %v3038_v42 = vmul.f32 %v7305_v48, %v2779_v26  ;;  %v3434_v15 = vpack.c.bf16 %v2779_v26, %v2779_v26  ;;  %v2499_v30 = vadd.f32 %v2498_v25, %v2410_v23  ;;  %v2322_v3 = vpop.f32.mrf.mxu0  ;;  %v2411_v9 = vpop.f32.mrf.mxu1  ;;  %v7316_v26 = vld [vmem:[#allocation42_spill] sm:$0xff] }
 0x346   : > { %v3135_v16 = vadd.f32 %v3134_v6, %v3040_v38  ;;  %v3247_v2 = vmul.f32 %v3040_v38, %v3040_v38  ;;  %3499 = vst [vmem:[%s6420_s16 + $0xd8] sm:$0xff] %v3435_v34  ;;  %v2323_v61 = vadd.f32 %v2322_v3, %v7313_v36  ;;  %v2412_v53 = vadd.f32 %v2411_v9, %v7314_v63  ;;  %v7318_v3 = vld [vmem:[#allocation73_spill] sm:$0xff] }
 0x347   : > { %v3171_v4 = vadd.f32 %v3170_v12, %v3038_v42  ;;  %v3245_v0 = vmul.f32 %v3038_v42, %v3038_v42  ;;  %3498 = vst [vmem:[%s6420_s16 + $0xd4] sm:$0xf] %v3434_v15  ;;  %v2588_v5 = vadd.f32 %v2587_v33, %v2499_v30  ;;  %v7317_v42 = vld [vmem:[#allocation54_spill] sm:$0xff]  ;;  %v7319_v9 = vmax.f32 %v7318_v3, 0.0 }
 0x348   : > { %v3342_v49 = vadd.f32 %v3341_v41, %v3247_v2  ;;  %v2688_v11 = vadd.f32 %v6400_v45, %v2323_v61 }
 0x349   : > { %v3378_v35 = vadd.f32 %v3377_v37, %v3245_v0  ;;  %v2686_v48 = vadd.f32 %v6426_v31, %v2588_v5 }
 0x34a   : > { %v2784_v13 = vmax.f32 %v2688_v11, 0.0 }
 0x34b   : > { %v2782_v52 = vmax.f32 %v2686_v48, 0.0  ;;  %v7320_v48 = vld [vmem:[#allocation49_spill] sm:$0xff] }
 0x34c   : > { %v3043_v6 = vmul.f32 %v6201_v60, %v2784_v13  ;;  %v3437_v19 = vpack.c.bf16 %v2784_v13, %v7315_v39  ;;  %v2500_v47 = vpop.f32.mrf.mxu2  ;;  %v2589_v12 = vpop.f32.mrf.mxu3 }
 0x34d   : > { %v3041_v18 = vmul.f32 %v7310_v59, %v2782_v52  ;;  %v3436_v44 = vpack.c.bf16 %v2782_v52, %v2782_v52  ;;  %v2501_v41 = vadd.f32 %v2500_v47, %v2412_v53  ;;  %v2325_v10 = vpop.f32.mrf.mxu0  ;;  %v2414_v37 = vpop.f32.mrf.mxu1 }
 0x34e   : > { %v3136_v8 = vadd.f32 %v3135_v16, %v3043_v6  ;;  %v3250_v28 = vmul.f32 %v3043_v6, %v3043_v6  ;;  %3501 = vst [vmem:[%s6420_s16 + $0xe4] sm:$0xff] %v3437_v19  ;;  %v2326_v50 = vadd.f32 %v2325_v10, %v7316_v26  ;;  %v2415_v15 = vadd.f32 %v2414_v37, %v7317_v42 }
 0x34f   : > { %v3172_v23 = vadd.f32 %v3171_v4, %v3041_v18  ;;  %v3248_v38 = vmul.f32 %v3041_v18, %v3041_v18  ;;  %3500 = vst [vmem:[%s6420_s16 + $0xe0] sm:$0xf] %v3436_v44  ;;  %v2590_v32 = vadd.f32 %v2589_v12, %v2501_v41  ;;  %v7321_v18 = vld [vmem:[#allocation57_spill] sm:$0xff]  ;;  %v7322_v10 = vmax.f32 %v6235_v24, 0.0 }
 0x350   : > { %v3343_v17 = vadd.f32 %v3342_v49, %v3250_v28  ;;  %v2691_v56 = vadd.f32 %v6400_v45, %v2326_v50 }
 0x351   : > { %v3379_v34 = vadd.f32 %v3378_v35, %v3248_v38  ;;  %v2689_v59 = vadd.f32 %v6426_v31, %v2590_v32 }
 0x352   : > { %v2787_v25 = vmax.f32 %v2691_v56, 0.0 }
 0x353   : > { %v2785_v33 = vmax.f32 %v2689_v59, 0.0 }
 0x354   : > { %v3046_v30 = vmul.f32 %v6221_v46, %v2787_v25  ;;  %v3439_v16 = vpack.c.bf16 %v2787_v25, %v7319_v9  ;;  %v2503_v2 = vpop.f32.mrf.mxu2  ;;  %v2592_v36 = vpop.f32.mrf.mxu3 }
 0x355   : > { %v3044_v61 = vmul.f32 %v6201_v60, %v2785_v33  ;;  %v3438_v4 = vpack.c.bf16 %v2785_v33, %v2785_v33  ;;  %v2504_v0 = vadd.f32 %v2503_v2, %v2415_v15  ;;  %v2327_v5 = vpop.f32.mrf.mxu0  ;;  %v2416_v49 = vpop.f32.mrf.mxu1 }
 0x356   : > { %v3137_v11 = vadd.f32 %v3136_v8, %v3046_v30  ;;  %v3253_v35 = vmul.f32 %v3046_v30, %v3046_v30  ;;  %3503 = vst [vmem:[%s6420_s16 + $0xf0] sm:$0xff] %v3439_v16  ;;  %v2328_v13 = vadd.f32 %v2327_v5, %v7320_v48  ;;  %v2417_v44 = vadd.f32 %v2416_v49, %v7321_v18  ;;  %v7324_v16 = vld [vmem:[#allocation61_spill] sm:$0xff] }
 0x357   : > { %v3173_v52 = vadd.f32 %v3172_v23, %v3044_v61  ;;  %v3251_v63 = vmul.f32 %v3044_v61, %v3044_v61  ;;  %3502 = vst [vmem:[%s6420_s16 + $0xec] sm:$0xf] %v3438_v4  ;;  %v2593_v53 = vadd.f32 %v2592_v36, %v2504_v0  ;;  %v7325_v61 = vmax.f32 %v6251_v22, 0.0 }
 0x358   : > { %v3344_v6 = vadd.f32 %v3343_v17, %v3253_v35  ;;  %v2694_v39 = vadd.f32 %v6400_v45, %v2328_v13 }
 0x359   : > { %v3380_v19 = vadd.f32 %v3379_v34, %v3251_v63  ;;  %v2692_v60 = vadd.f32 %v6426_v31, %v2593_v53  ;;  %v7323_v34 = vld [vmem:[#allocation56_spill] sm:$0xff]  ;;  %v7326_v63 = vld [vmem:[#allocation63_spill] sm:$0xff] }
 0x35a   : > { %v2790_v47 = vmax.f32 %v2694_v39, 0.0 }
 0x35b   : > { %v2788_v12 = vmax.f32 %v2692_v60, 0.0 }
 0x35c   : > { %v3049_v41 = vmul.f32 %v6238_v40, %v2790_v47  ;;  %v3441_v37 = vpack.c.bf16 %v2790_v47, %v7322_v10  ;;  %v2505_v8 = vpop.f32.mrf.mxu2  ;;  %v2594_v28 = vpop.f32.mrf.mxu3 }
 0x35d   : > { %v3047_v26 = vmul.f32 %v6221_v46, %v2788_v12  ;;  %v3440_v50 = vpack.c.bf16 %v2788_v12, %v2788_v12  ;;  %v2506_v23 = vadd.f32 %v2505_v8, %v2417_v44  ;;  %v2330_v38 = vpop.f32.mrf.mxu0  ;;  %v2419_v32 = vpop.f32.mrf.mxu1  ;;  %v7327_v12 = vld [vmem:[#allocation64_spill] sm:$0xff] }
 0x35e   : > { %v3138_v17 = vadd.f32 %v3137_v11, %v3049_v41  ;;  %v3256_v56 = vmul.f32 %v3049_v41, %v3049_v41  ;;  %3505 = vst [vmem:[%s6420_s16 + $0xfc] sm:$0xff] %v3441_v37  ;;  %v2331_v59 = vadd.f32 %v2330_v38, %v7323_v34  ;;  %v2420_v2 = vadd.f32 %v2419_v32, %v7324_v16 }
 0x35f   : > { %v6682_v25 = vadd.f32 %v3173_v52, %v3047_v26  ;;  %v3254_v33 = vmul.f32 %v3047_v26, %v3047_v26  ;;  %3504 = vst [vmem:[%s6420_s16 + $0xf8] sm:$0xf] %v3440_v50  ;;  %v2595_v42 = vadd.f32 %v2594_v28, %v2506_v23  ;;  %v7328_v41 = vmax.f32 %v6270_v54, 0.0 }
 0x360   : > { %v3345_v24 = vadd.f32 %v3344_v6, %v3256_v56  ;;  %v2697_v15 = vadd.f32 %v6400_v45, %v2331_v59  ;;  %v7331_v16 = vmax.f32 %v6285_v20, 0.0 }
 0x361   : > { %v6686_v30 = vadd.f32 %v3380_v19, %v3254_v33  ;;  %v2695_v46 = vadd.f32 %v6426_v31, %v2595_v42 }
 0x362   : > { %v2793_v3 = vmax.f32 %v2697_v15, 0.0  ;;  %v7330_v15 = vld [vmem:[#allocation68_spill] sm:$0xff] }
 0x363   : > { %v6689_v9 = vmax.f32 %v2695_v46, 0.0 }
 0x364   : > { %v3052_v36 = vmul.f32 %v6247_v55, %v2793_v3  ;;  %v3443_v4 = vpack.c.bf16 %v2793_v3, %v7325_v61  ;;  %v2508_v0 = vpop.f32.mrf.mxu2  ;;  %v2597_v5 = vpop.f32.mrf.mxu3 }
 0x365   : > { %v3442_v49 = vpack.c.bf16 %v6689_v9, %v6689_v9  ;;  %v2509_v11 = vadd.f32 %v2508_v0, %v2420_v2  ;;  %v2332_v35 = vpop.f32.mrf.mxu0  ;;  %v2421_v48 = vpop.f32.mrf.mxu1 }
 0x366   : > { %v3139_v13 = vadd.f32 %v3138_v17, %v3052_v36  ;;  %v3259_v52 = vmul.f32 %v3052_v36, %v3052_v36  ;;  %3507 = vst [vmem:[%s6420_s16 + $0x108] sm:$0xff] %v3443_v4  ;;  %v2333_v53 = vadd.f32 %v2332_v35, %v7326_v63  ;;  %v2422_v18 = vadd.f32 %v2421_v48, %v7327_v12  ;;  %v7329_v17 = vld [vmem:[#allocation67_spill] sm:$0xff]  ;;  %v7332_v48 = vld [vmem:[#allocation70_spill] sm:$0xff] }
 0x367   : > { %3506 = vst [vmem:[%s6420_s16 + $0x104] sm:$0xf] %v3442_v49  ;;  %v2598_v6 = vadd.f32 %v2597_v5, %v2509_v11 }
 0x368   : > { %v3346_v39 = vadd.f32 %v3345_v24, %v3259_v52  ;;  %v2700_v22 = vadd.f32 %v6400_v45, %v2333_v53 }
 0x369   : > { %v2698_v19 = vadd.f32 %v6426_v31, %v2598_v6 }
 0x36a   : > { %v2796_v60 = vmax.f32 %v2700_v22, 0.0  ;;  %v7333_v22 = vld [vmem:[#allocation71_spill] sm:$0xff] }
 0x36b   : > { %v6702_v47 = vmax.f32 %v2698_v19, 0.0 }
 0x36c   : > { %v3055_v44 = vmul.f32 %v6259_v51, %v2796_v60  ;;  %v3445_v10 = vpack.c.bf16 %v2796_v60, %v7328_v41  ;;  %v2510_v37 = vpop.f32.mrf.mxu2  ;;  %v2599_v8 = vpop.f32.mrf.mxu3  ;;  %v7334_v60 = vld [vmem:[#allocation66_spill] sm:$0xff] }
 0x36d   : > { %v3444_v28 = vpack.c.bf16 %v6702_v47, %v6702_v47  ;;  %v2511_v26 = vadd.f32 %v2510_v37, %v2422_v18  ;;  %v2335_v50 = vpop.f32.mrf.mxu0  ;;  %v2424_v23 = vpop.f32.mrf.mxu1  ;;  %v7335_v18 = vld [vmem:[#allocation72_spill] sm:$0xff] }
 0x36e   : > { %v3140_v38 = vadd.f32 %v3139_v13, %v3055_v44  ;;  %v3262_v32 = vmul.f32 %v3055_v44, %v3055_v44  ;;  %3509 = vst [vmem:[%s6420_s16 + $0x114] sm:$0xff] %v3445_v10  ;;  %v2336_v56 = vadd.f32 %v2335_v50, %v7329_v17  ;;  %v2425_v46 = vadd.f32 %v2424_v23, %v7330_v15  ;;  %v7338_v15 = vld [vmem:[#allocation76_spill] sm:$0xff] }
 0x36f   : > { %3508 = vst [vmem:[%s6420_s16 + $0x110] sm:$0xf] %v3444_v28  ;;  %v2600_v34 = vadd.f32 %v2599_v8, %v2511_v26  ;;  %v7336_v44 = vmax.f32 %v7335_v18, 0.0 }
 0x370   : > { %v3347_v59 = vadd.f32 %v3346_v39, %v3262_v32  ;;  %v2703_v54 = vadd.f32 %v6400_v45, %v2336_v56  ;;  %v7337_v32 = vld [vmem:[#allocation7_spill] sm:$0xff] }
 0x371   : > { %v2701_v33 = vadd.f32 %v6426_v31, %v2600_v34 }
 0x372   : > { %v2799_v42 = vmax.f32 %v2703_v54, 0.0 }
 0x373   : > { %v6715_v24 = vmax.f32 %v2701_v33, 0.0 }
 0x374   : > { %v3058_v3 = vmul.f32 %v6279_v43, %v2799_v42  ;;  %v3447_v2 = vpack.c.bf16 %v2799_v42, %v7331_v16  ;;  %v2513_v36 = vpop.f32.mrf.mxu2  ;;  %v2602_v61 = vpop.f32.mrf.mxu3  ;;  %v7339_v16 = vld [vmem:[#allocation62_spill] sm:$0xff] }
 0x375   : > { %v3446_v4 = vpack.c.bf16 %v6715_v24, %v6715_v24  ;;  %v2514_v0 = vadd.f32 %v2513_v36, %v2425_v46  ;;  %v2337_v5 = vpop.f32.mrf.mxu0  ;;  %v2426_v49 = vpop.f32.mrf.mxu1 }
 0x376   : > { %v3141_v11 = vadd.f32 %v3140_v38, %v3058_v3  ;;  %v3265_v35 = vmul.f32 %v3058_v3, %v3058_v3  ;;  %3511 = vst [vmem:[%s6420_s16 + $0x120] sm:$0xff] %v3447_v2  ;;  %v2338_v13 = vadd.f32 %v2337_v5, %v7332_v48  ;;  %v2427_v19 = vadd.f32 %v2426_v49, %v7333_v22 }
 0x377   : > { %3510 = vst [vmem:[%s6420_s16 + $0x11c] sm:$0xf] %v3446_v4  ;;  %v2603_v52 = vadd.f32 %v2602_v61, %v2514_v0  ;;  %v7340_v2 = vmax.f32 %v7339_v16, 0.0 }
 0x378   : > { %v3348_v63 = vadd.f32 %v3347_v59, %v3265_v35  ;;  %v2706_v20 = vadd.f32 %v6400_v45, %v2338_v13  ;;  %v7341_v13 = vld [vmem:[#allocation59_spill] sm:$0xff] }
 0x379   : > { %v2704_v53 = vadd.f32 %v6426_v31, %v2603_v52 }
 0x37a   : > { %v2802_v6 = vmax.f32 %v2706_v20, 0.0 }
 0x37b   : > { %v6728_v39 = vmax.f32 %v2704_v53, 0.0 }
 0x37c   : > { %v3061_v12 = vmul.f32 %v7334_v60, %v2802_v6  ;;  %v3449_v41 = vpack.c.bf16 %v2802_v6, %v7336_v44  ;;  %v2515_v10 = vpop.f32.mrf.mxu2  ;;  %v2604_v37 = vpop.f32.mrf.mxu3  ;;  %v7343_v44 = vld [vmem:[#allocation77_spill] sm:$0xff] }
 0x37d   : > { %v3448_v8 = vpack.c.bf16 %v6728_v39, %v6728_v39  ;;  %v2516_v28 = vadd.f32 %v2515_v10, %v2427_v19  ;;  %v2340_v26 = vpop.f32.mrf.mxu0  ;;  %v2429_v50 = vpop.f32.mrf.mxu1  ;;  %v7344_v10 = vld [vmem:[#allocation69_spill] sm:$0xff] }
 0x37e   : > { %v3142_v23 = vadd.f32 %v3141_v11, %v3061_v12  ;;  %v3268_v38 = vmul.f32 %v3061_v12, %v3061_v12  ;;  %3513 = vst [vmem:[%s6420_s16 + $0x12c] sm:$0xff] %v3449_v41  ;;  %v2341_v17 = vadd.f32 %v2340_v26, %v7337_v32  ;;  %v2430_v46 = vadd.f32 %v2429_v50, %v7338_v15  ;;  %v7342_v12 = vld [vmem:[#allocation79_spill] sm:$0xff] }
 0x37f   : > { %3512 = vst [vmem:[%s6420_s16 + $0x128] sm:$0xf] %v3448_v8  ;;  %v2605_v56 = vadd.f32 %v2604_v37, %v2516_v28  ;;  %v7345_v37 = vmax.f32 %v7344_v10, 0.0 }
 0x380   : > { %v3349_v34 = vadd.f32 %v3348_v63, %v3268_v38  ;;  %v2709_v59 = vadd.f32 %v6400_v45, %v2341_v17 }
 0x381   : > { %v2707_v54 = vadd.f32 %v6426_v31, %v2605_v56 }
 0x382   : > { %v2805_v33 = vmax.f32 %v2709_v59, 0.0 }
 0x383   : > { %v6741_v42 = vmax.f32 %v2707_v54, 0.0 }
 0x384   : > { %v3064_v3 = vmul.f32 %v6328_v29, %v2805_v33  ;;  %v3451_v36 = vpack.c.bf16 %v2805_v33, %v7340_v2  ;;  %v2518_v61 = vpop.f32.mrf.mxu2  ;;  %v2607_v4 = vpop.f32.mrf.mxu3  ;;  %v7347_v2 = vld [vmem:[#allocation84_spill] sm:$0xff] }
 0x385   : > { %v3450_v0 = vpack.c.bf16 %v6741_v42, %v6741_v42  ;;  %v2519_v5 = vadd.f32 %v2518_v61, %v2430_v46  ;;  %v2342_v49 = vpop.f32.mrf.mxu0  ;;  %v2431_v11 = vpop.f32.mrf.mxu1  ;;  %v7348_v61 = vld [vmem:[#allocation8_spill] sm:$0xff] }
 0x386   : > { %v3143_v35 = vadd.f32 %v3142_v23, %v3064_v3  ;;  %v3271_v48 = vmul.f32 %v3064_v3, %v3064_v3  ;;  %3515 = vst [vmem:[%s6420_s16 + $0x138] sm:$0xff] %v3451_v36  ;;  %v2343_v52 = vadd.f32 %v2342_v49, %v7341_v13  ;;  %v2432_v18 = vadd.f32 %v2431_v11, %v7342_v12 }
 0x387   : > { %3514 = vst [vmem:[%s6420_s16 + $0x134] sm:$0xf] %v3450_v0  ;;  %v2608_v63 = vadd.f32 %v2607_v4, %v2519_v5  ;;  %v7349_v0 = vld [vmem:[#allocation74_spill] sm:$0xff] }
 0x388   : > { %v3350_v20 = vadd.f32 %v3349_v34, %v3271_v48  ;;  %v2712_v53 = vadd.f32 %v6400_v45, %v2343_v52  ;;  %v7346_v34 = vld [vmem:[#allocation75_spill] sm:$0xff]  ;;  %v7350_v5 = vmax.f32 %v7349_v0, 0.0 }
 0x389   : > { %v2710_v6 = vadd.f32 %v6426_v31, %v2608_v63 }
 0x38a   : > { %v2808_v22 = vmax.f32 %v2712_v53, 0.0 }
 0x38b   : > { %v6754_v19 = vmax.f32 %v2710_v6, 0.0  ;;  %v7351_v6 = vld [vmem:[#allocation81_spill] sm:$0xff] }
 0x38c   : > { %v3067_v41 = vmul.f32 %v7343_v44, %v2808_v22  ;;  %v3453_v8 = vpack.c.bf16 %v2808_v22, %v7345_v37  ;;  %v2520_v28 = vpop.f32.mrf.mxu2  ;;  %v2609_v26 = vpop.f32.mrf.mxu3  ;;  %v3050_v37 = vmul.f32 %v6238_v40, %v6689_v9 }
 0x38d   : > { %v3452_v50 = vpack.c.bf16 %v6754_v19, %v6754_v19  ;;  %v2521_v23 = vadd.f32 %v2520_v28, %v2432_v18  ;;  %v2345_v38 = vpop.f32.mrf.mxu0  ;;  %v2434_v32 = vpop.f32.mrf.mxu1 }
 0x38e   : > { %v3144_v17 = vadd.f32 %v3143_v35, %v3067_v41  ;;  %v3274_v56 = vmul.f32 %v3067_v41, %v3067_v41  ;;  %3517 = vst [vmem:[%s6420_s16 + $0x144] sm:$0xff] %v3453_v8  ;;  %v2346_v59 = vadd.f32 %v2345_v38, %v7346_v34  ;;  %v2435_v36 = vadd.f32 %v2434_v32, %v7347_v2  ;;  %v7353_v32 = vld [vmem:[#allocation78_spill] sm:$0xff] }
 0x38f   : > { %3516 = vst [vmem:[%s6420_s16 + $0x140] sm:$0xf] %v3452_v50  ;;  %v2610_v54 = vadd.f32 %v2609_v26, %v2521_v23  ;;  %v7352_v26 = vld [vmem:[#allocation87_spill] sm:$0xff]  ;;  %v3053_v23 = vmul.f32 %v6247_v55, %v6702_v47  ;;  %v3056_v55 = vmul.f32 %v6259_v51, %v6715_v24 }
 0x390   : > { %v3351_v33 = vadd.f32 %v3350_v20, %v3274_v56  ;;  %v2715_v15 = vadd.f32 %v6400_v45, %v2346_v59  ;;  %v7355_v51 = vld [vmem:[#allocation91_spill] sm:$0xff] }
 0x391   : > { %v2713_v46 = vadd.f32 %v6426_v31, %v2610_v54 }
 0x392   : > { %v2811_v3 = vmax.f32 %v2715_v15, 0.0 }
 0x393   : > { %v6767_v16 = vmax.f32 %v2713_v46, 0.0  ;;  %v3257_v46 = vmul.f32 %v3050_v37, %v3050_v37 }
 0x394   : > { %v3070_v4 = vmul.f32 %v7348_v61, %v2811_v3  ;;  %v3455_v49 = vpack.c.bf16 %v2811_v3, %v7350_v5  ;;  %v2523_v11 = vpop.f32.mrf.mxu2  ;;  %v2612_v35 = vpop.f32.mrf.mxu3  ;;  %v3175_v5 = vadd.f32 %v6682_v25, %v3050_v37 }
 0x395   : > { %v3454_v48 = vpack.c.bf16 %v6767_v16, %v6767_v16  ;;  %v2524_v13 = vadd.f32 %v2523_v11, %v2435_v36  ;;  %v2347_v52 = vpop.f32.mrf.mxu0  ;;  %v2436_v63 = vpop.f32.mrf.mxu1  ;;  %v3260_v36 = vmul.f32 %v3053_v23, %v3053_v23 }
 0x396   : > { %v3145_v20 = vadd.f32 %v3144_v17, %v3070_v4  ;;  %v3277_v53 = vmul.f32 %v3070_v4, %v3070_v4  ;;  %3519 = vst [vmem:[%s6420_s16 + $0x150] sm:$0xff] %v3455_v49  ;;  %v2348_v22 = vadd.f32 %v2347_v52, %v7351_v6  ;;  %v2437_v50 = vadd.f32 %v2436_v63, %v7352_v26 }
 0x397   : > { %3518 = vst [vmem:[%s6420_s16 + $0x14c] sm:$0xf] %v3454_v48  ;;  %v2613_v12 = vadd.f32 %v2612_v35, %v2524_v13  ;;  %v7354_v17 = vmax.f32 %v7353_v32, 0.0  ;;  %v3059_v49 = vmul.f32 %v6279_v43, %v6728_v39  ;;  %v3382_v35 = vadd.f32 %v6686_v30, %v3257_v46 }
 0x398   : > { %v3352_v18 = vadd.f32 %v3351_v33, %v3277_v53  ;;  %v2718_v41 = vadd.f32 %v6400_v45, %v2348_v22  ;;  %v3176_v48 = vadd.f32 %v3175_v5, %v3053_v23  ;;  %v3263_v13 = vmul.f32 %v3056_v55, %v3056_v55 }
 0x399   : > { %v2716_v10 = vadd.f32 %v6426_v31, %v2613_v12  ;;  %v3383_v63 = vadd.f32 %v3382_v35, %v3260_v36  ;;  %v7356_v43 = vmax.f32 %v6372_v1, 0.0  ;;  %v3266_v22 = vmul.f32 %v3059_v49, %v3059_v49 }
 0x39a   : > { %v2814_v8 = vmax.f32 %v2718_v41, 0.0  ;;  %v3177_v30 = vadd.f32 %v3176_v48, %v3056_v55 }
 0x39b   : > { %v2812_v28 = vmax.f32 %v2716_v10, 0.0  ;;  %v3065_v10 = vmul.f32 %v6328_v29, %v6754_v19 }
 0x39c   : > { %v3073_v38 = vmul.f32 %v6369_v21, %v2814_v8  ;;  %v3457_v56 = vpack.c.bf16 %v2814_v8, %v7354_v17  ;;  %v2525_v34 = vpop.f32.mrf.mxu2  ;;  %v2614_v59 = vpop.f32.mrf.mxu3  ;;  %v3178_v1 = vadd.f32 %v3177_v30, %v3059_v49  ;;  %v3068_v17 = vmul.f32 %v7343_v44, %v6767_v16 }
 0x39d   : > { %v3456_v54 = vpack.c.bf16 %v2812_v28, %v2812_v28  ;;  %v2526_v33 = vadd.f32 %v2525_v34, %v2437_v50  ;;  %v2350_v15 = vpop.f32.mrf.mxu0  ;;  %v2439_v2 = vpop.f32.mrf.mxu1  ;;  %v3272_v34 = vmul.f32 %v3065_v10, %v3065_v10 }
 0x39e   : > { %v3146_v40 = vadd.f32 %v3145_v20, %v3073_v38  ;;  %v3280_v9 = vmul.f32 %v3073_v38, %v3073_v38  ;;  %3521 = vst [vmem:[%s6420_s16 + $0x15c] sm:$0xff] %v3457_v56  ;;  %v2351_v3 = vadd.f32 %v2350_v15, %v6390_v7  ;;  %v2440_v24 = vadd.f32 %v2439_v2, %v7355_v51 }
 0x39f   : > { %3520 = vst [vmem:[%s6420_s16 + $0x158] sm:$0xf] %v3456_v54  ;;  %v2615_v47 = vadd.f32 %v2614_v59, %v2526_v33  ;;  %v3062_v20 = vmul.f32 %v7334_v60, %v6741_v42  ;;  %v3384_v42 = vadd.f32 %v3383_v63, %v3263_v13  ;;  %v7357_v33 = vld [vmem:[#allocation94_spill] sm:$0xff] }
 0x3a0   : > { %v3353_v4 = vadd.f32 %v3352_v18, %v3280_v9  ;;  %v2721_v0 = vadd.f32 %v6400_v45, %v2351_v3  ;;  %v3275_v9 = vmul.f32 %v3068_v17, %v3068_v17 }
 0x3a1   : > { %v2719_v11 = vadd.f32 %v6426_v31, %v2615_v47  ;;  %v3269_v50 = vmul.f32 %v3062_v20, %v3062_v20  ;;  %v3385_v29 = vadd.f32 %v3384_v42, %v3266_v22  ;;  %v3179_v19 = vadd.f32 %v3178_v1, %v3062_v20 }
 0x3a2   : > { %v2817_v7 = vmax.f32 %v2721_v0, 0.0 }
 0x3a3   : > { %v2815_v52 = vmax.f32 %v2719_v11, 0.0  ;;  %v3386_v46 = vadd.f32 %v3385_v29, %v3269_v50 }
 0x3a4   : > { %v3076_v25 = vmul.f32 %v6379_v14, %v2817_v7  ;;  %v3459_v39 = vpack.c.bf16 %v2817_v7, %v7356_v43  ;;  %v2528_v53 = vpop.f32.mrf.mxu2  ;;  %v2617_v6 = vpop.f32.mrf.mxu3 }
 0x3a5   : > { %v3458_v12 = vpack.c.bf16 %v2815_v52, %v2815_v52  ;;  %v2529_v18 = vadd.f32 %v2528_v53, %v2440_v24  ;;  %v2352_v41 = vpop.f32.mrf.mxu0  ;;  %v2441_v32 = vpop.f32.mrf.mxu1  ;;  %v3074_v3 = vmul.f32 %v6369_v21, %v2815_v52  ;;  %v3387_v47 = vadd.f32 %v3386_v46, %v3272_v34 }
 0x3a6   : > { %v3147_v37 = vadd.f32 %v3146_v40, %v3076_v25  ;;  %v3283_v8 = vmul.f32 %v3076_v25, %v3076_v25  ;;  %3523 = vst [vmem:[%s6420_s16 + $0x168] sm:$0xff] %v3459_v39  ;;  %v2353_v60 = vadd.f32 %v2352_v41, %v6407_v58  ;;  %v3071_v58 = vmul.f32 %v7348_v61, %v2812_v28 }
 0x3a7   : > { %3522 = vst [vmem:[%s6420_s16 + $0x164] sm:$0xf] %v3458_v12  ;;  %v2618_v26 = vadd.f32 %v2617_v6, %v2529_v18  ;;  %v2442_v15 = vadd.f32 %v2441_v32, %v7357_v33  ;;  %v3180_v40 = vadd.f32 %v3179_v19, %v3065_v10  ;;  %v3281_v7 = vmul.f32 %v3074_v3, %v3074_v3 }
 0x3a8   : > { %v3354_v23 = vadd.f32 %v3353_v4, %v3283_v8  ;;  %v2724_v38 = vadd.f32 %v6400_v45, %v2353_v60  ;;  %v3278_v0 = vmul.f32 %v3071_v58, %v3071_v58 }
 0x3a9   : > { %v2722_v56 = vadd.f32 %v6426_v31, %v2618_v26  ;;  %v3181_v4 = vadd.f32 %v3180_v40, %v3068_v17 }
 0x3aa   : > { %v2820_v59 = vmax.f32 %v2724_v38, 0.0 }
 0x3ab   : > { %v2818_v54 = vmax.f32 %v2722_v56, 0.0  ;;  %v3182_v35 = vadd.f32 %v3181_v4, %v3071_v58 }
 0x3ac   : > { %v3079_v45 = vmul.f32 %v6396_v62, %v2820_v59  ;;  %v3461_v44 = vpack.c.bf16 %v2820_v59, %v2819_v57  ;;  %v2530_v16 = vpop.f32.mrf.mxu2  ;;  %v2619_v28 = vpop.f32.mrf.mxu3  ;;  %v3388_v57 = vadd.f32 %v3387_v47, %v3275_v9 }
 0x3ad   : > { %v3460_v2 = vpack.c.bf16 %v2818_v54, %v2818_v54  ;;  %v2531_v55 = vadd.f32 %v2530_v16, %v2442_v15  ;;  %v3077_v5 = vmul.f32 %v6379_v14, %v2818_v54  ;;  %v3183_v51 = vadd.f32 %v3182_v35, %v3074_v3 }
 0x3ae   : > { %v3148_v36 = vadd.f32 %v3147_v37, %v3079_v45  ;;  %v3286_v61 = vmul.f32 %v3079_v45, %v3079_v45  ;;  %3525 = vst [vmem:[%s6420_s16 + $0x174] sm:$0xff] %v3461_v44  ;;  %v3389_v52 = vadd.f32 %v3388_v57, %v3278_v0 }
 0x3af   : > { %3524 = vst [vmem:[%s6420_s16 + $0x170] sm:$0xf] %v3460_v2  ;;  %v2620_v49 = vadd.f32 %v2619_v28, %v2531_v55  ;;  %v3284_v24 = vmul.f32 %v3077_v5, %v3077_v5  ;;  %v3184_v14 = vadd.f32 %v3183_v51, %v3077_v5 }
 0x3b0   : > { %v3149_v11 = vrot.slane %v3148_v36, 4  ;;  %v3355_v27 = vadd.f32 %v3354_v23, %v3286_v61  ;;  %v3390_v43 = vadd.f32 %v3389_v52, %v3281_v7 }
 0x3b1   : > { %v2725_v21 = vadd.f32 %v6426_v31, %v2620_v49 }
 0x3b2   : > { %v3150_v48 = vadd.f32 %v3149_v11, %v3148_v36  ;;  %v3356_v13 = vrot.slane %v3355_v27, 4  ;;  %v3391_v22 = vadd.f32 %v3390_v43, %v3284_v24 }
 0x3b3   : > { %v2821_v63 = vmax.f32 %v2725_v21, 0.0 }
 0x3b4   : > { %v3151_v20 = vrot.slane %v3150_v48, 2  ;;  %v3357_v25 = vadd.f32 %v3356_v13, %v3355_v27 }
 0x3b5   : > { %v3080_v39 = vmul.f32 %v6396_v62, %v2821_v63  ;;  %v3462_v53 = vpack.c.bf16 %v2821_v63, %v2821_v63 }
 0x3b6   : > { %v3152_v6 = vadd.f32 %v3151_v20, %v3150_v48  ;;  %v3358_v30 = vrot.slane %v3357_v25, 2 }
 0x3b7   : > { %v3185_v12 = vadd.f32 %v3184_v14, %v3080_v39  ;;  %v3287_v18 = vmul.f32 %v3080_v39, %v3080_v39  ;;  %3526 = vst [vmem:[%s6420_s16 + $0x17c] sm:$0xf] %v3462_v53 }
 0x3b8   : > { %v3153_v31 = vrot.slane %v3152_v6, 1  ;;  %v3359_v41 = vadd.f32 %v3358_v30, %v3357_v25 }
 0x3b9   : > { %v3186_v10 = vrot.slane %v3185_v12, 4  ;;  %v3392_v37 = vadd.f32 %v3391_v22, %v3287_v18 }
 0x3ba   : > { %v3360_v8 = vrot.slane %v3359_v41, 1  ;;  %v3154_v26 = vadd.f32 %v3153_v31, %v3152_v6 }
 0x3bb   : > { %v3187_v60 = vadd.f32 %v3186_v10, %v3185_v12  ;;  %v3393_v42 = vrot.slane %v3392_v37, 4 }
 0x3bc   : > { %v3361_v1 = vadd.f32 %v3360_v8, %v3359_v41 }
 0x3bd   : > { %v3188_v50 = vrot.slane %v3187_v60, 2  ;;  %v3394_v62 = vadd.f32 %v3393_v42, %v3392_v37 }
 0x3be   : > { %v3529_v23 = vsel %vm3527_vm0, %v3154_v26, %v3361_v1 }
 0x3bf   : > { %v3533_v38 = vsel %vm3531_vm1, %v3529_v23, 0.0  ;;  %v3189_v32 = vadd.f32 %v3188_v50, %v3187_v60  ;;  %v3395_v17 = vrot.slane %v3394_v62, 2 }
 0x3c0   : > { %3536 = vst [vmem:[%s6448_s17 + $0x8] sm:$0xff] %v3533_v38 }
 0x3c1   : > { %v3190_v56 = vrot.slane %v3189_v32, 1  ;;  %v3396_v29 = vadd.f32 %v3395_v17, %v3394_v62 }
 0x3c3   : > { %v3397_v19 = vrot.slane %v3396_v29, 1  ;;  %v3191_v34 = vadd.f32 %v3190_v56, %v3189_v32 }
 0x3c5   : > { %v3398_v59 = vadd.f32 %v3397_v19, %v3396_v29 }
 0x3c7   : > { %v3530_v58 = vsel %vm3527_vm0, %v3191_v34, %v3398_v59 }
 0x3c8   : > { %v3534_v54 = vsel %vm3531_vm1, %v3530_v58, 0.0 }
 0x3c9   : > { %3537 = vst [vmem:[%s6448_s17 + $0x10] sm:$0xff] %v3534_v54 }
 0x3ca PF: > { %s19_s27 = sadd.s32 1, %s4301_s27  }
 0x3cb   : > { %p16_p5 = scmp.ge.s32.totalorder %s19_s27, 5  }
 0x3cd   :  { %18 = sbr.rel (!%p16_p5) target bundleno = 1 (0x1), region = 94 }

// kernel: graph_net_auto_center.15
= control target key start
LH: loop header
LB: loop body
LE: loop exit
PB: predicated region body
PF: predicated region fallthrough
CT: control target
= control target key end

     0   :  { %vm756_vm0 = vcmask 1040384   ;;  %vm760_vm1 = vcmask 1041408   ;;  %s1706_s2 = inlined_call_operand.vmem [shape: bf16[384,384], index: 2, kind: input, shape index: {}]   ;;  %s1707_s1 = inlined_call_operand.vmem [shape: f32[8,384], index: 1, kind: input, shape index: {}]   ;;  %s1708_s0 = inlined_call_operand.vmem [shape: bf16[16,384], index: 0, kind: input, shape index: {}]   ;;  %s1709_s3 = inlined_call_operand.vmem [shape: f32[8,384], index: 3, kind: input, shape index: {}]   ;;  %s1710_s4 = inlined_call_operand.vmem [shape: bf16[16,384], index: 4, kind: output, shape index: {0}]   ;;  %s1711_s5 = inlined_call_operand.vmem [shape: f32[1,8,384], index: 5, kind: output, shape index: {1}]  }
   0x1   :  { %v862_v0 = vld [vmem:[%s1706_s2 + $0xa8] sm:$0xf]  ;;  %v1086_v1 = vld [vmem:[%s1706_s2 + $0xb0] sm:$0xf0]  ;;  %v850_v5 = vld [vmem:[%s1706_s2 + $0x90] sm:$0xf] }
   0x2   :  { %v958_v2 = vld [vmem:[%s1706_s2 + $0x168] sm:$0xf]  ;;  %v863_v3 = vor.u32 %v1086_v1, %v862_v0  ;;  %v1110_v4 = vld [vmem:[%s1706_s2 + $0x170] sm:$0xf0]  ;;  %v1083_v6 = vld [vmem:[%s1706_s2 + $0x98] sm:$0xf0] }
   0x3   :  { %v959_v7 = vor.u32 %v1110_v4, %v958_v2  ;;  %v946_v8 = vld [vmem:[%s1706_s2 + $0x150] sm:$0xf]  ;;  %v1107_v9 = vld [vmem:[%s1706_s2 + $0x158] sm:$0xf0]  ;;  %v851_v10 = vor.u32 %v1083_v6, %v850_v5  ;;  %v1054_v11 = vld [vmem:[%s1706_s2 + $0x228] sm:$0xf] }
   0x4   :  { %549 = vmatpush.bf16.msra.mxu0 %v863_v3  ;;  %v1134_v12 = vld [vmem:[%s1706_s2 + $0x230] sm:$0xf0]  ;;  %v947_v13 = vor.u32 %v1107_v9, %v946_v8  ;;  %v838_v14 = vld [vmem:[%s1706_s2 + $0x78] sm:$0xf]  ;;  %v1080_v15 = vld [vmem:[%s1706_s2 + $0x80] sm:$0xf0] }
   0x5   :  { %563 = vmatpush.bf16.msra.mxu1 %v959_v7  ;;  %v1055_v16 = vor.u32 %v1134_v12, %v1054_v11  ;;  %v934_v17 = vld [vmem:[%s1706_s2 + $0x138] sm:$0xf]  ;;  %v1104_v18 = vld [vmem:[%s1706_s2 + $0x140] sm:$0xf0]  ;;  %v1042_v19 = vld [vmem:[%s1706_s2 + $0x210] sm:$0xf]  ;;  %v839_v24 = vor.u32 %v1080_v15, %v838_v14 }
   0x6   :  { %v1131_v20 = vld [vmem:[%s1706_s2 + $0x218] sm:$0xf0]  ;;  %v1085_v22 = vld [vmem:[%s1706_s2 + $0xac] sm:$0xf]  ;;  %v864_v23 = vld [vmem:[%s1706_s2 + $0xb4] sm:$0xf0]  ;;  %v935_v28 = vor.u32 %v1104_v18, %v934_v17 }
   0x7   :  { %577 = vmatpush.bf16.msra.mxu2 %v1055_v16  ;;  %v1043_v21 = vor.u32 %v1131_v20, %v1042_v19  ;;  %v826_v25 = vld [vmem:[%s1706_s2 + $0x60] sm:$0xf]  ;;  %v1077_v26 = vld [vmem:[%s1706_s2 + $0x68] sm:$0xf0]  ;;  %v867_v27 = vor.u32 %v1085_v22, %v864_v23  ;;  %v1030_v29 = vld [vmem:[%s1706_s2 + $0x1f8] sm:$0xf] }
   0x8   :  { %550 = vmatpush.bf16.msra.mxu0 %v851_v10  ;;  %v1128_v30 = vld [vmem:[%s1706_s2 + $0x200] sm:$0xf0]  ;;  %v1082_v31 = vld [vmem:[%s1706_s2 + $0x94] sm:$0xf]  ;;  %v922_v32 = vld [vmem:[%s1706_s2 + $0x120] sm:$0xf]  ;;  %v827_v38 = vor.u32 %v1077_v26, %v826_v25 }
   0x9   :  { %564 = vmatpush.bf16.msra.mxu1 %v947_v13  ;;  %591 = vmatpush.bf16.msra.mxu3 %v867_v27  ;;  %v1101_v33 = vld [vmem:[%s1706_s2 + $0x128] sm:$0xf0]  ;;  %v852_v34 = vld [vmem:[%s1706_s2 + $0x9c] sm:$0xf0]  ;;  %v1031_v35 = vor.u32 %v1128_v30, %v1030_v29  ;;  %v1079_v40 = vld [vmem:[%s1706_s2 + $0x7c] sm:$0xf] }
   0xa   :  { %v855_v36 = vor.u32 %v1082_v31, %v852_v34  ;;  %v1018_v37 = vld [vmem:[%s1706_s2 + $0x1e0] sm:$0xf]  ;;  %v1125_v39 = vld [vmem:[%s1706_s2 + $0x1e8] sm:$0xf0]  ;;  %v840_v41 = vld [vmem:[%s1706_s2 + $0x84] sm:$0xf0]  ;;  %v923_v42 = vor.u32 %v1101_v33, %v922_v32 }
   0xb   :  { %578 = vmatpush.bf16.msra.mxu2 %v1043_v21  ;;  %v814_v43 = vld [vmem:[%s1706_s2 + $0x48] sm:$0xf]  ;;  %v1074_v44 = vld [vmem:[%s1706_s2 + $0x50] sm:$0xf0]  ;;  %v843_v47 = vor.u32 %v1079_v40, %v840_v41  ;;  %v1019_v48 = vor.u32 %v1125_v39, %v1018_v37  ;;  %v1076_v49 = vld [vmem:[%s1706_s2 + $0x64] sm:$0xf] }
   0xc   :  { %551 = vmatpush.bf16.msra.mxu0 %v839_v24  ;;  %v910_v45 = vld [vmem:[%s1706_s2 + $0x108] sm:$0xf]  ;;  %v1098_v46 = vld [vmem:[%s1706_s2 + $0x110] sm:$0xf0]  ;;  %v828_v50 = vld [vmem:[%s1706_s2 + $0x6c] sm:$0xf0]  ;;  %v815_v51 = vor.u32 %v1074_v44, %v814_v43 }
   0xd   :  { %565 = vmatpush.bf16.msra.mxu1 %v935_v28  ;;  %592 = vmatpush.bf16.msra.mxu3 %v855_v36  ;;  %v1006_v52 = vld [vmem:[%s1706_s2 + $0x1c8] sm:$0xf]  ;;  %v1122_v53 = vld [vmem:[%s1706_s2 + $0x1d0] sm:$0xf0]  ;;  %v911_v54 = vor.u32 %v1098_v46, %v910_v45  ;;  %v802_v55 = vld [vmem:[%s1706_s2 + $0x30] sm:$0xf]  ;;  %v831_v59 = vor.u32 %v1076_v49, %v828_v50 }
   0xe   :  { %v1071_v56 = vld [vmem:[%s1706_s2 + $0x38] sm:$0xf0]  ;;  %v898_v57 = vld [vmem:[%s1706_s2 + $0xf0] sm:$0xf]  ;;  %v790_v60 = vld [vmem:[%s1706_s2 + $0x18] sm:$0xf]  ;;  %v1007_v61 = vor.u32 %v1122_v53, %v1006_v52 }
   0xf   :  { %579 = vmatpush.bf16.msra.mxu2 %v1031_v35  ;;  %v1095_v58 = vld [vmem:[%s1706_s2 + $0xf8] sm:$0xf0]  ;;  %v1073_v62 = vld [vmem:[%s1706_s2 + $0x4c] sm:$0xf]  ;;  %v816_v63 = vld [vmem:[%s1706_s2 + $0x54] sm:$0xf0]  ;;  %v803_v0 = vor.u32 %v1071_v56, %v802_v55 }
  0x10   :  { %552 = vmatpush.bf16.msra.mxu0 %v827_v38  ;;  %v1068_v1 = vld [vmem:[%s1706_s2 + $0x20] sm:$0xf0]  ;;  %v994_v2 = vld [vmem:[%s1706_s2 + $0x1b0] sm:$0xf]  ;;  %v1119_v3 = vld [vmem:[%s1706_s2 + $0x1b8] sm:$0xf0]  ;;  %v899_v4 = vor.u32 %v1095_v58, %v898_v57  ;;  %v819_v9 = vor.u32 %v1073_v62, %v816_v63 }
  0x11   :  { %566 = vmatpush.bf16.msra.mxu1 %v923_v42  ;;  %593 = vmatpush.bf16.msra.mxu3 %v843_v47  ;;  %v886_v5 = vld [vmem:[%s1706_s2 + $0xd8] sm:$0xf]  ;;  %v1092_v6 = vld [vmem:[%s1706_s2 + $0xe0] sm:$0xf0]  ;;  %v1319_v7 = vld [vmem:[%s1706_s2] sm:$0xf]  ;;  %v995_v12 = vor.u32 %v1119_v3, %v994_v2  ;;  %v791_v20 = vor.u32 %v1068_v1, %v790_v60 }
  0x12   :  { %v1324_v8 = vld [vmem:[%s1706_s2 + $0x8] sm:$0xf0]  ;;  %v1334_v11 = vld [vmem:[%s1706_s2 + $0x174] sm:$0xf0]  ;;  %v1339_v13 = vld [vmem:[%s1706_s2 + $0xc0] sm:$0xf]  ;;  %v887_v24 = vor.u32 %v1092_v6, %v886_v5 }
  0x13   :  { %580 = vmatpush.bf16.msra.mxu2 %v1019_v48  ;;  %v1329_v10 = vld [vmem:[%s1706_s2 + $0x16c] sm:$0xf]  ;;  %v1354_v16 = vld [vmem:[%s1706_s2 + $0x234] sm:$0xf0]  ;;  %v1070_v18 = vld [vmem:[%s1706_s2 + $0x34] sm:$0xf]  ;;  %v779_v27 = vor.u32 %v1324_v8, %v1319_v7 }
  0x14   :  { %553 = vmatpush.bf16.msra.mxu0 %v815_v51  ;;  %v1344_v14 = vld [vmem:[%s1706_s2 + $0xc8] sm:$0xf0]  ;;  %v982_v17 = vld [vmem:[%s1706_s2 + $0x198] sm:$0xf]  ;;  %v804_v19 = vld [vmem:[%s1706_s2 + $0x3c] sm:$0xf0]  ;;  %v963_v28 = vor.u32 %v1329_v10, %v1334_v11 }
  0x15   :  { %567 = vmatpush.bf16.msra.mxu1 %v911_v54  ;;  %594 = vmatpush.bf16.msra.mxu3 %v831_v59  ;;  %v1349_v15 = vld [vmem:[%s1706_s2 + $0x22c] sm:$0xf]  ;;  %v1116_v21 = vld [vmem:[%s1706_s2 + $0x1a0] sm:$0xf0]  ;;  %v1371_v22 = vld [vmem:[%s1706_s2 + $0x154] sm:$0xf]  ;;  %v807_v29 = vor.u32 %v1070_v18, %v804_v19  ;;  %v875_v40 = vor.u32 %v1344_v14, %v1339_v13 }
  0x16   :  { %v1376_v23 = vld [vmem:[%s1706_s2 + $0x15c] sm:$0xf0]  ;;  %v23_v31 = vld [vmem:[%s1708_s0 + $0x8] sm:$0xf]  ;;  %v25_v32 = vld [vmem:[%s1708_s0 + $0x14] sm:$0xf]  ;;  %v983_v34 = vor.u32 %v1116_v21, %v982_v17  ;;  %v1059_v41 = vor.u32 %v1349_v15, %v1354_v16 }
  0x17   :  { %581 = vmatpush.bf16.msra.mxu2 %v1007_v61  ;;  %v1381_v25 = vld [vmem:[%s1707_s1] ss:$8 sm:$0x7]  ;;  %v1386_v26 = vld [vmem:[%s1707_s1 + $0x1] ss:$8 sm:$0x7]  ;;  %v28_v37 = vunpack.c.l.bf16 %v23_v31  ;;  %v31_v38 = vunpack.c.l.bf16 %v25_v32  ;;  %v951_v42 = vor.u32 %v1371_v22, %v1376_v23 }
  0x18   :  { %554 = vmatpush.bf16.msra.mxu0 %v803_v0  ;;  %v970_v30 = vld [vmem:[%s1706_s2 + $0x180] sm:$0xf]  ;;  %v35_v33 = vperm.slane %v1381_v25, 2  ;;  %v1067_v35 = vld [vmem:[%s1706_s2 + $0x1c] sm:$0xf]  ;;  %v48_v39 = vperm.slane %v1386_v26, 2 }
  0x19   :  { %568 = vmatpush.bf16.msra.mxu1 %v899_v4  ;;  %595 = vmatpush.bf16.msra.mxu3 %v819_v9  ;;  %v792_v36 = vld [vmem:[%s1706_s2 + $0x24] sm:$0xf0]  ;;  %v1113_v43 = vld [vmem:[%s1706_s2 + $0x188] sm:$0xf0]  ;;  %v22_v44 = vld [vmem:[%s1708_s0] sm:$0xff]  ;;  %v33_v46 = vperm.slane %v1381_v25, 0 }
  0x1a   :  { %v24_v45 = vld [vmem:[%s1708_s0 + $0xc] sm:$0xff]  ;;  %v41_v47 = vmul.f32 %v35_v33, %v28_v37  ;;  %v44_v48 = vmul.f32 %v35_v33, %v31_v38  ;;  %v1087_v50 = vld [vmem:[%s1706_s2 + $0xb8] sm:$0xf0]  ;;  %v26_v51 = vunpack.c.l.bf16 %v22_v44  ;;  %v46_v52 = vperm.slane %v1386_v26, 0  ;;  %v1130_v53 = vld [vmem:[%s1706_s2 + $0x214] sm:$0xf] }
  0x1b   :  { %582 = vmatpush.bf16.msra.mxu2 %v995_v12  ;;  %v870_v49 = vld [vmem:[%s1706_s2 + $0xb0] sm:$0xf]  ;;  %v1044_v54 = vld [vmem:[%s1706_s2 + $0x21c] sm:$0xf0]  ;;  %v795_v55 = vor.u32 %v1067_v35, %v792_v36  ;;  %v29_v56 = vunpack.c.l.bf16 %v24_v45  ;;  %v27_v57 = vunpack.c.h.bf16 %v22_v44  ;;  %v30_v58 = vunpack.c.h.bf16 %v24_v45  ;;  %v1064_v1 = vld [vmem:[%s1706_s2 + $0x4] sm:$0xf] }
  0x1c   :  { %555 = vmatpush.bf16.msra.mxu0 %v791_v20  ;;  %v971_v59 = vor.u32 %v1113_v43, %v970_v30  ;;  %v54_v60 = vadd.f32 %v48_v39, %v41_v47  ;;  %v57_v61 = vadd.f32 %v48_v39, %v44_v48  ;;  %v39_v62 = vmul.f32 %v33_v46, %v26_v51  ;;  %v780_v2 = vld [vmem:[%s1706_s2 + $0xc] sm:$0xf0]  ;;  %v1103_v6 = vld [vmem:[%s1706_s2 + $0x13c] sm:$0xf]  ;;  %v936_v11 = vld [vmem:[%s1706_s2 + $0x144] sm:$0xf0] }
  0x1d   :  { %569 = vmatpush.bf16.msra.mxu1 %v887_v24  ;;  %596 = vmatpush.bf16.msra.mxu3 %v807_v29  ;;  %v871_v63 = vor.u32 %v1087_v50, %v870_v49  ;;  %v42_v0 = vmul.f32 %v33_v46, %v29_v56  ;;  %v34_v3 = vperm.slane %v1381_v25, 1  ;;  %v47_v4 = vperm.slane %v1386_v26, 1  ;;  %v966_v9 = vld [vmem:[%s1706_s2 + $0x170] sm:$0xf]  ;;  %v1111_v10 = vld [vmem:[%s1706_s2 + $0x178] sm:$0xf0] }
  0x1e   :  { %v1047_v5 = vor.u32 %v1130_v53, %v1044_v54  ;;  %v1449_v7 = vpack.c.bf16 %v57_v61, %v54_v60  ;;  %v52_v8 = vadd.f32 %v46_v52, %v39_v62  ;;  %v858_v15 = vld [vmem:[%s1706_s2 + $0x98] sm:$0xf]  ;;  %v1084_v16 = vld [vmem:[%s1706_s2 + $0xa0] sm:$0xf0]  ;;  %v1127_v17 = vld [vmem:[%s1706_s2 + $0x1fc] sm:$0xf]  ;;  %v783_v19 = vor.u32 %v1064_v1, %v780_v2 }
  0x1f   :  { %583 = vmatpush.bf16.msra.mxu2 %v983_v34  ;;  %v55_v12 = vadd.f32 %v46_v52, %v42_v0  ;;  %v40_v13 = vmul.f32 %v34_v3, %v27_v57  ;;  %v43_v14 = vmul.f32 %v34_v3, %v30_v58  ;;  %v1032_v18 = vld [vmem:[%s1706_s2 + $0x204] sm:$0xf0]  ;;  %v967_v21 = vor.u32 %v1111_v10, %v966_v9  ;;  %v1100_v25 = vld [vmem:[%s1706_s2 + $0x124] sm:$0xf]  ;;  %v924_v30 = vld [vmem:[%s1706_s2 + $0x12c] sm:$0xf0] }
  0x20   :  { %556 = vmatpush.bf16.msra.mxu0 %v779_v27  ;;  %v939_v24 = vor.u32 %v1103_v6, %v936_v11  ;;  %v859_v26 = vor.u32 %v1084_v16, %v858_v15  ;;  %v954_v27 = vld [vmem:[%s1706_s2 + $0x158] sm:$0xf]  ;;  %v1035_v29 = vor.u32 %v1127_v17, %v1032_v18  ;;  %v846_v32 = vld [vmem:[%s1706_s2 + $0x80] sm:$0xf]  ;;  %v1081_v33 = vld [vmem:[%s1706_s2 + $0x88] sm:$0xf0]  ;;  %v927_v37 = vor.u32 %v1100_v25, %v924_v30 }
  0x21   :  { %570 = vmatpush.bf16.msra.mxu1 %v875_v40  ;;  %597 = vmatpush.bf16.msra.mxu3 %v795_v55  ;;  %v1472_v20 = vpack.c.bf16 %v55_v12, %v52_v8  ;;  %v53_v22 = vadd.f32 %v47_v4, %v40_v13  ;;  %v56_v23 = vadd.f32 %v47_v4, %v43_v14  ;;  %v1124_v34 = vld [vmem:[%s1706_s2 + $0x1e4] sm:$0xf]  ;;  %v1020_v35 = vld [vmem:[%s1706_s2 + $0x1ec] sm:$0xf0]  ;;  %v1097_v38 = vld [vmem:[%s1706_s2 + $0x10c] sm:$0xf] }
  0x22   :  { %v847_v39 = vor.u32 %v1081_v33, %v846_v32  ;;  %v942_v40 = vld [vmem:[%s1706_s2 + $0x140] sm:$0xf]  ;;  %v912_v43 = vld [vmem:[%s1706_s2 + $0x114] sm:$0xf0]  ;;  %v834_v44 = vld [vmem:[%s1706_s2 + $0x68] sm:$0xf] }
  0x23   :  { %584 = vmatpush.bf16.msra.mxu2 %v971_v59  ;;  %v1487_v31 = vpack.c.bf16 %v56_v23, %v53_v22  ;;  %557 = vmatmul.bf16.vlgmr.msra.gmra.mxu0 %v1472_v20  ;;  %v1078_v45 = vld [vmem:[%s1706_s2 + $0x70] sm:$0xf0]  ;;  %v1121_v46 = vld [vmem:[%s1706_s2 + $0x1cc] sm:$0xf]  ;;  %v1008_v47 = vld [vmem:[%s1706_s2 + $0x1d4] sm:$0xf0]  ;;  %v915_v49 = vor.u32 %v1097_v38, %v912_v43 }
  0x24   :  { %605 = vmatpush.bf16.msrb.mxu0 %v963_v28  ;;  %v1108_v28 = vld [vmem:[%s1706_s2 + $0x160] sm:$0xf0]  ;;  %v1094_v50 = vld [vmem:[%s1706_s2 + $0xf4] sm:$0xf]  ;;  %v835_v51 = vor.u32 %v1078_v45, %v834_v44  ;;  %v930_v52 = vld [vmem:[%s1706_s2 + $0x128] sm:$0xf]  ;;  %v1011_v54 = vor.u32 %v1121_v46, %v1008_v47 }
  0x25   :  { %619 = vmatpush.bf16.msrb.mxu1 %v1059_v41  ;;  %598 = vmatpush.bf16.msra.mxu3 %v783_v19  ;;  %v955_v36 = vor.u32 %v1108_v28, %v954_v27  ;;  %v1105_v41 = vld [vmem:[%s1706_s2 + $0x148] sm:$0xf0]  ;;  %v1102_v53 = vld [vmem:[%s1706_s2 + $0x130] sm:$0xf0]  ;;  %v900_v55 = vld [vmem:[%s1706_s2 + $0xfc] sm:$0xf0] }
  0x26   :  { %585 = vmatmul.bf16.vlgmr.msra.gmra.mxu2 %v1449_v7  ;;  %571 = vmatmul.bf16.vlgmr.msra.gmra.mxu1 %v1487_v31  ;;  %v943_v48 = vor.u32 %v1105_v41, %v942_v40  ;;  %v822_v56 = vld [vmem:[%s1706_s2 + $0x50] sm:$0xf]  ;;  %v1075_v57 = vld [vmem:[%s1706_s2 + $0x58] sm:$0xf0]  ;;  %v1118_v58 = vld [vmem:[%s1706_s2 + $0x1b4] sm:$0xf]  ;;  %v931_v60 = vor.u32 %v1102_v53, %v930_v52  ;;  %v903_v61 = vor.u32 %v1094_v50, %v900_v55 }
  0x27   :  { %633 = vmatpush.bf16.msrb.mxu2 %v871_v63  ;;  %v996_v59 = vld [vmem:[%s1706_s2 + $0x1bc] sm:$0xf0]  ;;  %v1091_v62 = vld [vmem:[%s1706_s2 + $0xdc] sm:$0xf]  ;;  %v823_v63 = vor.u32 %v1075_v57, %v822_v56  ;;  %v918_v0 = vld [vmem:[%s1706_s2 + $0x110] sm:$0xf] }
  0x28   :  { %606 = vmatpush.bf16.msrb.mxu0 %v951_v42  ;;  %v1023_v42 = vor.u32 %v1124_v34, %v1020_v35  ;;  %599 = vmatmul.bf16.vlgmr.msra.gmra.mxu3 %v1472_v20  ;;  %v1099_v1 = vld [vmem:[%s1706_s2 + $0x118] sm:$0xf0]  ;;  %v999_v2 = vor.u32 %v1118_v58, %v996_v59  ;;  %v888_v3 = vld [vmem:[%s1706_s2 + $0xe4] sm:$0xf0]  ;;  %v810_v4 = vld [vmem:[%s1706_s2 + $0x38] sm:$0xf] }
  0x29   :  { %620 = vmatpush.bf16.msrb.mxu1 %v1047_v5  ;;  %647 = vmatpush.bf16.msrb.mxu3 %v967_v21  ;;  %v1072_v5 = vld [vmem:[%s1706_s2 + $0x40] sm:$0xf0]  ;;  %v1115_v6 = vld [vmem:[%s1706_s2 + $0x19c] sm:$0xf]  ;;  %v984_v8 = vld [vmem:[%s1706_s2 + $0x1a4] sm:$0xf0]  ;;  %v919_v10 = vor.u32 %v1099_v1, %v918_v0  ;;  %v891_v11 = vor.u32 %v1091_v62, %v888_v3 }
  0x2a   :  { %v1088_v9 = vld [vmem:[%s1706_s2 + $0xc4] sm:$0xf]  ;;  %v876_v12 = vld [vmem:[%s1706_s2 + $0xcc] sm:$0xf0]  ;;  %v811_v13 = vor.u32 %v1072_v5, %v810_v4  ;;  %v906_v14 = vld [vmem:[%s1706_s2 + $0xf8] sm:$0xf]  ;;  %v987_v16 = vor.u32 %v1115_v6, %v984_v8 }
  0x2b   :  { %634 = vmatpush.bf16.msrb.mxu2 %v859_v26  ;;  %v1096_v15 = vld [vmem:[%s1706_s2 + $0x100] sm:$0xf0]  ;;  %v1062_v17 = vld [vmem:[%s1706_s2 + $0x230] sm:$0xf]  ;;  %v798_v18 = vld [vmem:[%s1706_s2 + $0x20] sm:$0xf]  ;;  %v879_v25 = vor.u32 %v1088_v9, %v876_v12 }
  0x2c   :  { %607 = vmatpush.bf16.msrb.mxu0 %v939_v24  ;;  %v1069_v19 = vld [vmem:[%s1706_s2 + $0x28] sm:$0xf0]  ;;  %v1135_v21 = vld [vmem:[%s1706_s2 + $0x238] sm:$0xf0]  ;;  %v1112_v22 = vld [vmem:[%s1706_s2 + $0x184] sm:$0xf]  ;;  %v907_v24 = vor.u32 %v1096_v15, %v906_v14 }
  0x2d   :  { %621 = vmatpush.bf16.msrb.mxu1 %v1035_v29  ;;  %648 = vmatpush.bf16.msrb.mxu3 %v955_v36  ;;  %v972_v23 = vld [vmem:[%s1706_s2 + $0x18c] sm:$0xf0]  ;;  %v799_v26 = vor.u32 %v1069_v19, %v798_v18  ;;  %v894_v27 = vld [vmem:[%s1706_s2 + $0xe0] sm:$0xf]  ;;  %v1093_v28 = vld [vmem:[%s1706_s2 + $0xe8] sm:$0xf0]  ;;  %v1063_v29 = vor.u32 %v1135_v21, %v1062_v17 }
  0x2e   :  { %v975_v30 = vor.u32 %v1112_v22, %v972_v23  ;;  %v786_v32 = vld [vmem:[%s1706_s2 + $0x8] sm:$0xf]  ;;  %v1066_v33 = vld [vmem:[%s1706_s2 + $0x10] sm:$0xf0]  ;;  %v1050_v34 = vld [vmem:[%s1706_s2 + $0x218] sm:$0xf]  ;;  %v895_v36 = vor.u32 %v1093_v28, %v894_v27 }
  0x2f   :  { %635 = vmatpush.bf16.msrb.mxu2 %v847_v39  ;;  %v1132_v35 = vld [vmem:[%s1706_s2 + $0x220] sm:$0xf0]  ;;  %v882_v38 = vld [vmem:[%s1706_s2 + $0xc8] sm:$0xf]  ;;  %v1090_v39 = vld [vmem:[%s1706_s2 + $0xd0] sm:$0xf0] }
  0x30   :  { %608 = vmatpush.bf16.msrb.mxu0 %v927_v37  ;;  %v787_v37 = vor.u32 %v1066_v33, %v786_v32  ;;  %v1051_v40 = vor.u32 %v1132_v35, %v1050_v34  ;;  %v1038_v41 = vld [vmem:[%s1706_s2 + $0x200] sm:$0xf]  ;;  %v883_v43 = vor.u32 %v1090_v39, %v882_v38  ;;  %v1026_v45 = vld [vmem:[%s1706_s2 + $0x1e8] sm:$0xf]  ;;  %v1126_v46 = vld [vmem:[%s1706_s2 + $0x1f0] sm:$0xf0] }
  0x31   :  { %622 = vmatpush.bf16.msrb.mxu1 %v1023_v42  ;;  %649 = vmatpush.bf16.msrb.mxu3 %v943_v48  ;;  %v1129_v42 = vld [vmem:[%s1706_s2 + $0x208] sm:$0xf0]  ;;  %v1027_v47 = vor.u32 %v1126_v46, %v1026_v45  ;;  %v1014_v48 = vld [vmem:[%s1706_s2 + $0x1d0] sm:$0xf]  ;;  %v990_v52 = vld [vmem:[%s1706_s2 + $0x1a0] sm:$0xf] }
  0x32   :  { %v1039_v44 = vor.u32 %v1129_v42, %v1038_v41  ;;  %v1117_v53 = vld [vmem:[%s1706_s2 + $0x1a8] sm:$0xf0]  ;;  %v978_v55 = vld [vmem:[%s1706_s2 + $0x188] sm:$0xf]  ;;  %v1114_v56 = vld [vmem:[%s1706_s2 + $0x190] sm:$0xf0] }
  0x33   :  { %636 = vmatpush.bf16.msrb.mxu2 %v835_v51  ;;  %v1002_v51 = vld [vmem:[%s1706_s2 + $0x1b8] sm:$0xf]  ;;  %v979_v57 = vor.u32 %v1114_v56, %v978_v55  ;;  %v1674_v58 = vld [vmem:[%s1709_s3] ss:$8 sm:$0x7] }
  0x34   :  { %609 = vmatpush.bf16.msrb.mxu0 %v915_v49  ;;  %v1123_v49 = vld [vmem:[%s1706_s2 + $0x1d8] sm:$0xf0]  ;;  %v159_v59 = vperm.slane %v1674_v58, 0  ;;  %v160_v14 = vperm.slane %v1674_v58, 1 }
  0x35   :  { %623 = vmatpush.bf16.msrb.mxu1 %v1011_v54  ;;  %650 = vmatpush.bf16.msrb.mxu3 %v931_v60  ;;  %v1015_v50 = vor.u32 %v1123_v49, %v1014_v48  ;;  %v991_v54 = vor.u32 %v1117_v53, %v990_v52 }
  0x37   :  { %637 = vmatpush.bf16.msrb.mxu2 %v823_v63 }
  0x38   :  { %610 = vmatpush.bf16.msrb.mxu0 %v903_v61 }
  0x39   :  { %624 = vmatpush.bf16.msrb.mxu1 %v999_v2  ;;  %651 = vmatpush.bf16.msrb.mxu3 %v919_v10 }
  0x3b   :  { %638 = vmatpush.bf16.msrb.mxu2 %v811_v13 }
  0x3c   :  { %611 = vmatpush.bf16.msrb.mxu0 %v891_v11 }
  0x3d   :  { %625 = vmatpush.bf16.msrb.mxu1 %v987_v16  ;;  %652 = vmatpush.bf16.msrb.mxu3 %v907_v24 }
  0x3f   :  { %639 = vmatpush.bf16.msrb.mxu2 %v799_v26 }
  0x40   :  { %612 = vmatpush.bf16.msrb.mxu0 %v879_v25 }
  0x41   :  { %626 = vmatpush.bf16.msrb.mxu1 %v975_v30  ;;  %653 = vmatpush.bf16.msrb.mxu3 %v895_v36 }
  0x43   :  { %613 = vmatmul.bf16.vlgmr.msrb.gmra.mxu0 %v1487_v31  ;;  %640 = vmatpush.bf16.msrb.mxu2 %v787_v37 }
  0x44   :  { %661 = vmatpush.bf16.msra.mxu0 %v1063_v29  ;;  %627 = vmatmul.bf16.vlgmr.msrb.gmra.mxu1 %v1449_v7 }
  0x45   :  { %654 = vmatpush.bf16.msrb.mxu3 %v883_v43 }
  0x46   :  { %641 = vmatmul.bf16.vlgmr.msrb.gmra.mxu2 %v1472_v20  ;;  %v1120_v20 = vld [vmem:[%s1706_s2 + $0x1c0] sm:$0xf0] }
  0x48   :  { %662 = vmatpush.bf16.msra.mxu0 %v1051_v40  ;;  %655 = vmatmul.bf16.vlgmr.msrb.gmra.mxu3 %v1487_v31  ;;  %v1003_v31 = vor.u32 %v1120_v20, %v1002_v51  ;;  %v161_v20 = vperm.slane %v1674_v58, 2 }
  0x4c   :  { %663 = vmatpush.bf16.msra.mxu0 %v1039_v44 }
  0x50   :  { %664 = vmatpush.bf16.msra.mxu0 %v1027_v47 }
  0x54   :  { %665 = vmatpush.bf16.msra.mxu0 %v1015_v50 }
  0x58   :  { %666 = vmatpush.bf16.msra.mxu0 %v1003_v31 }
  0x5c   :  { %667 = vmatpush.bf16.msra.mxu0 %v991_v54 }
  0x60   :  { %668 = vmatpush.bf16.msra.mxu0 %v979_v57 }
  0x63   :  { %669 = vmatmul.bf16.vlgmr.msra.gmra.mxu0 %v1449_v7 }
  0xa0   :  { %v558_v60 = vpop.f32.mrf.mxu0 }
  0xa1   :  { %v559_v61 = vadd.f32 %v558_v60, %v159_v59 }
  0xa3   :  { %v572_v62 = vpop.f32.mrf.mxu1 }
  0xa4   :  { %v573_v63 = vadd.f32 %v572_v62, %v559_v61 }
  0xa8   :  { %v560_v2 = vpop.f32.mrf.mxu0 }
  0xa9   :  { %v586_v0 = vpop.f32.mrf.mxu2  ;;  %v561_v3 = vadd.f32 %v560_v2, %v159_v59 }
  0xaa   :  { %v587_v1 = vadd.f32 %v586_v0, %v573_v63 }
  0xab   :  { %v574_v4 = vpop.f32.mrf.mxu1  ;;  %v600_v11 = vpop.f32.mrf.mxu3 }
  0xac   :  { %v575_v5 = vadd.f32 %v574_v4, %v561_v3  ;;  %v675_v6 = vmax.f32 %v587_v1, 0.0  ;;  %v601_v19 = vadd.f32 %v600_v11, %v160_v14 }
  0xae   :  { %v721_v9 = vmul.f32 %v675_v6, %v675_v6 }
  0xb1   :  { %v588_v8 = vpop.f32.mrf.mxu2 }
  0xb2   :  { %v589_v7 = vadd.f32 %v588_v8, %v575_v5 }
  0xb3   :  { %v602_v28 = vpop.f32.mrf.mxu3 }
  0xb4   :  { %v678_v10 = vmax.f32 %v589_v7, 0.0  ;;  %v603_v36 = vadd.f32 %v602_v28, %v160_v14 }
  0xb6   :  { %v700_v12 = vadd.f32 %v678_v10, %v675_v6  ;;  %v724_v13 = vmul.f32 %v678_v10, %v678_v10 }
  0xb8   :  { %v701_v15 = vrot.slane %v700_v12, 4  ;;  %v727_v16 = vadd.f32 %v724_v13, %v721_v9 }
  0xba   :  { %v702_v17 = vadd.f32 %v701_v15, %v700_v12  ;;  %v728_v18 = vrot.slane %v727_v16, 4 }
  0xbc   :  { %v703_v21 = vrot.slane %v702_v17, 2  ;;  %v729_v22 = vadd.f32 %v728_v18, %v727_v16 }
  0xbe   :  { %v704_v24 = vadd.f32 %v703_v21, %v702_v17  ;;  %v730_v25 = vrot.slane %v729_v22, 2 }
  0xc0   :  { %v614_v23 = vpop.f32.mrf.mxu0  ;;  %v705_v29 = vrot.slane %v704_v24, 1  ;;  %v731_v30 = vadd.f32 %v730_v25, %v729_v22 }
  0xc1   :  { %v615_v26 = vadd.f32 %v614_v23, %v601_v19  ;;  %v628_v27 = vpop.f32.mrf.mxu1 }
  0xc2   :  { %v706_v33 = vadd.f32 %v705_v29, %v704_v24  ;;  %v732_v34 = vrot.slane %v731_v30, 1 }
  0xc3   :  { %v629_v32 = vadd.f32 %v628_v27, %v615_v26 }
  0xc4   :  { %v733_v37 = vadd.f32 %v732_v34, %v731_v30 }
  0xc5   :  { %v676_v35 = vmax.f32 %v629_v32, 0.0 }
  0xc6   :  { %v757_v40 = vsel %vm756_vm0, %v706_v33, %v733_v37 }
  0xc7   :  { %v748_v38 = vpack.c.bf16 %v676_v35, %v675_v6  ;;  %v761_v43 = vsel %vm760_vm1, %v757_v40, 0.0  ;;  %v722_v45 = vmul.f32 %v676_v35, %v676_v35 }
  0xc8   :  { %v616_v39 = vpop.f32.mrf.mxu0  ;;  %764 = vst [vmem:[%s1711_s5] sm:$0xff] %v761_v43 }
  0xc9   :  { %752 = vst [vmem:[%s1710_s4] sm:$0xff] %v748_v38  ;;  %v617_v41 = vadd.f32 %v616_v39, %v603_v36  ;;  %v630_v42 = vpop.f32.mrf.mxu1  ;;  %v642_v53 = vpop.f32.mrf.mxu2 }
  0xca   :  { %v643_v56 = vadd.f32 %v642_v53, %v161_v20 }
  0xcb   :  { %v631_v44 = vadd.f32 %v630_v42, %v617_v41  ;;  %v656_v60 = vpop.f32.mrf.mxu3 }
  0xcc   :  { %v657_v63 = vadd.f32 %v656_v60, %v643_v56 }
  0xcd   :  { %v679_v46 = vmax.f32 %v631_v44, 0.0 }
  0xcf   :  { %v707_v47 = vadd.f32 %v679_v46, %v676_v35  ;;  %v725_v48 = vmul.f32 %v679_v46, %v679_v46  ;;  %v750_v49 = vpack.c.bf16 %v679_v46, %v678_v10 }
  0xd1   :  { %v708_v50 = vrot.slane %v707_v47, 4  ;;  %v734_v51 = vadd.f32 %v725_v48, %v722_v45  ;;  %754 = vst [vmem:[%s1710_s4 + $0xc] sm:$0xff] %v750_v49  ;;  %v644_v3 = vpop.f32.mrf.mxu2 }
  0xd2   :  { %v645_v8 = vadd.f32 %v644_v3, %v161_v20 }
  0xd3   :  { %v709_v31 = vadd.f32 %v708_v50, %v707_v47  ;;  %v735_v52 = vrot.slane %v734_v51, 4  ;;  %v658_v9 = vpop.f32.mrf.mxu3 }
  0xd4   :  { %v659_v11 = vadd.f32 %v658_v9, %v645_v8 }
  0xd5   :  { %v710_v54 = vrot.slane %v709_v31, 2  ;;  %v736_v55 = vadd.f32 %v735_v52, %v734_v51 }
  0xd7   :  { %v711_v57 = vadd.f32 %v710_v54, %v709_v31  ;;  %v737_v59 = vrot.slane %v736_v55, 2 }
  0xd9   :  { %v712_v61 = vrot.slane %v711_v57, 1  ;;  %v738_v62 = vadd.f32 %v737_v59, %v736_v55 }
  0xdb   :  { %v739_v0 = vrot.slane %v738_v62, 1  ;;  %v713_v1 = vadd.f32 %v712_v61, %v711_v57 }
  0xdd   :  { %v740_v2 = vadd.f32 %v739_v0, %v738_v62 }
  0xdf   :  { %v758_v58 = vsel %vm756_vm0, %v713_v1, %v740_v2 }
  0xe0   :  { %v670_v4 = vpop.f32.mrf.mxu0  ;;  %v762_v6 = vsel %vm760_vm1, %v758_v58, 0.0 }
  0xe1   :  { %v671_v5 = vadd.f32 %v670_v4, %v657_v63  ;;  %765 = vst [vmem:[%s1711_s5 + $0x8] sm:$0xff] %v762_v6 }
  0xe3   :  { %v677_v7 = vmax.f32 %v671_v5, 0.0 }
  0xe5   :  { %v749_v10 = vpack.c.bf16 %v677_v7, %v677_v7  ;;  %v723_v15 = vmul.f32 %v677_v7, %v677_v7 }
  0xe7   :  { %753 = vst [vmem:[%s1710_s4 + $0x8] sm:$0xf] %v749_v10 }
  0xe8   :  { %v672_v12 = vpop.f32.mrf.mxu0 }
  0xe9   :  { %v673_v13 = vadd.f32 %v672_v12, %v659_v11 }
  0xeb   :  { %v680_v14 = vmax.f32 %v673_v13, 0.0 }
  0xed   :  { %v714_v16 = vadd.f32 %v680_v14, %v677_v7  ;;  %v726_v17 = vmul.f32 %v680_v14, %v680_v14  ;;  %v751_v18 = vpack.c.bf16 %v680_v14, %v680_v14 }
  0xef   :  { %v715_v19 = vrot.slane %v714_v16, 4  ;;  %v741_v21 = vadd.f32 %v726_v17, %v723_v15  ;;  %755 = vst [vmem:[%s1710_s4 + $0x14] sm:$0xf] %v751_v18 }
  0xf1   :  { %v716_v22 = vadd.f32 %v715_v19, %v714_v16  ;;  %v742_v23 = vrot.slane %v741_v21, 4 }
  0xf3   :  { %v717_v24 = vrot.slane %v716_v22, 2  ;;  %v743_v25 = vadd.f32 %v742_v23, %v741_v21 }
  0xf5   :  { %v718_v26 = vadd.f32 %v717_v24, %v716_v22  ;;  %v744_v27 = vrot.slane %v743_v25, 2 }
  0xf7   :  { %v719_v28 = vrot.slane %v718_v26, 1  ;;  %v745_v29 = vadd.f32 %v744_v27, %v743_v25 }
  0xf9   :  { %v746_v30 = vrot.slane %v745_v29, 1  ;;  %v720_v32 = vadd.f32 %v719_v28, %v718_v26 }
  0xfb   :  { %v747_v33 = vadd.f32 %v746_v30, %v745_v29 }
  0xfd   :  { %v759_v34 = vsel %vm756_vm0, %v720_v32, %v747_v33 }
  0xfe   :  { %v763_v35 = vsel %vm760_vm1, %v759_v34, 0.0 }
  0xff   :  { %766 = vst [vmem:[%s1711_s5 + $0x10] sm:$0xff] %v763_v35 }

// kernel: graph_net_auto_center.17
= control target key start
LH: loop header
LB: loop body
LE: loop exit
PB: predicated region body
PF: predicated region fallthrough
CT: control target
= control target key end

     0   :  { %s182_s0 = inlined_call_operand.vmem [shape: bf16[16,384], index: 0, kind: input, shape index: {}]   ;;  %s183_s1 = inlined_call_operand.vmem [shape: f32[8,384], index: 1, kind: input, shape index: {}]   ;;  %s184_s2 = inlined_call_operand.vmem [shape: f32[16,384], index: 2, kind: input, shape index: {}]   ;;  %s185_s3 = inlined_call_operand.hbm [shape: f32[16,384], index: 3, kind: output, shape index: {}]  }
   0x1   :  { %v15_v0 = vld [vmem:[%s182_s0] sm:$0xff]  ;;  %v16_v9 = vld [vmem:[%s182_s0 + $0x8] sm:$0xf]  ;;  %v17_v15 = vld [vmem:[%s182_s0 + $0xc] sm:$0xff] }
   0x2   :  { %v25_v1 = vld [vmem:[%s183_s1] ss:$8 sm:$0x7]  ;;  %v19_v2 = vunpack.c.l.bf16 %v15_v0  ;;  %v90_v4 = vld [vmem:[%s183_s1 + $0x1] ss:$8 sm:$0x7]  ;;  %v20_v5 = vunpack.c.h.bf16 %v15_v0  ;;  %v21_v13 = vunpack.c.l.bf16 %v16_v9  ;;  %v22_v18 = vunpack.c.l.bf16 %v17_v15 }
   0x3   :  { %v27_v3 = vperm.slane %v25_v1, 0  ;;  %v28_v6 = vperm.slane %v25_v1, 1  ;;  %v42_v7 = vperm.slane %v90_v4, 0  ;;  %v43_v8 = vperm.slane %v90_v4, 1  ;;  %v54_v16 = vld [vmem:[%s184_s2] sm:$0xff]  ;;  %v55_v17 = vld [vmem:[%s184_s2 + $0x8] sm:$0xff] }
   0x4   :  { %v29_v10 = vperm.slane %v25_v1, 2  ;;  %v44_v14 = vperm.slane %v90_v4, 2  ;;  %v23_v19 = vunpack.c.h.bf16 %v17_v15  ;;  %v18_v20 = vld [vmem:[%s182_s0 + $0x14] sm:$0xf] }
   0x5   :  { %v33_v11 = vmul.f32 %v27_v3, %v19_v2  ;;  %v34_v12 = vmul.f32 %v28_v6, %v20_v5  ;;  %v24_v24 = vunpack.c.l.bf16 %v18_v20 }
   0x6   :  { %v35_v23 = vmul.f32 %v29_v10, %v21_v13 }
   0x7   :  { %v48_v21 = vadd.f32 %v42_v7, %v33_v11  ;;  %v49_v22 = vadd.f32 %v43_v8, %v34_v12 }
   0x8   :  { %8 = vsyncpa [#allocation3], 0  ;;  %v56_v25 = vld [vmem:[%s184_s2 + $0x10] sm:$0xff]  ;;  %v36_v26 = vmul.f32 %v27_v3, %v22_v18  ;;  %v37_v27 = vmul.f32 %v28_v6, %v23_v19  ;;  %v50_v30 = vadd.f32 %v44_v14, %v35_v23  ;;  %v57_v31 = vld [vmem:[%s184_s2 + $0x18] sm:$0xff]  ;;  %v38_v33 = vmul.f32 %v29_v10, %v24_v24  ;;  %s120_s7 = smov [#allocation2]   ;;  %s78_s11 = sshll.u32 %s185_s3, 4  ;;  %s79_s11 = int_to_ptr.hbm [resolvable:$true] %s78_s11 }
   0x9   :  { %v60_v28 = vadd.f32 %v54_v16, %v48_v21  ;;  %v61_v29 = vadd.f32 %v55_v17, %v49_v22  ;;  %v58_v32 = vld [vmem:[%s184_s2 + $0x20] sm:$0xff]  ;;  %v59_v36 = vld [vmem:[%s184_s2 + $0x28] sm:$0xff]  ;;  %s76_s8 = sshll.u32 %s120_s7, 4  ;;  %s121_s2 = smov 384   ;;  %s77_s8 = int_to_ptr.vmem [resolvable:$true] %s76_s8 }
   0xa   :  { %v51_v34 = vadd.f32 %v42_v7, %v36_v26  ;;  %v52_v35 = vadd.f32 %v43_v8, %v37_v27  ;;  %v62_v37 = vadd.f32 %v56_v25, %v50_v30  ;;  %v53_v38 = vadd.f32 %v44_v14, %v38_v33  ;;  %s122_s12 = smov 24  }
   0xb   :  { %66 = vst [vmem:[#allocation2] sm:$0xff] %v60_v28 }
   0xc   :  { %67 = vst [vmem:[#allocation2 + $0x8] sm:$0xff] %v61_v29  ;;  %v63_v39 = vadd.f32 %v57_v31, %v51_v34  ;;  %v64_v40 = vadd.f32 %v58_v32, %v52_v35  ;;  %v65_v41 = vadd.f32 %v59_v36, %v53_v38 }
   0xd   :  { %68 = vst [vmem:[#allocation2 + $0x10] sm:$0xff] %v62_v37 }
   0xe   :  { %69 = vst [vmem:[#allocation2 + $0x18] sm:$0xff] %v63_v39 }
   0xf   :  { %70 = vst [vmem:[#allocation2 + $0x20] sm:$0xff] %v64_v40 }
  0x10   :  { %71 = vst [vmem:[#allocation2 + $0x28] sm:$0xff] %v65_v41 }
  0x11   :  { %84 = dma.vmem_to_hbm [thread:$0]  %s77_s8, 768, %s79_s11, [#allocation3], %s121_s2, %s121_s2, %s122_s12  }
  0x12   :  { %118 = dma.done.wait [#allocation3], 768  }
  0x13   :  { %119 = vsyncadd [#allocation3], 4294966528 }
  0x14   :  { %89 = vsyncpa [#allocation3], 1 }

</bundles_post_ra>
